<compile_context>
chip_gen: v6e
topology: v6e:2x2x1
jax: 0.10.0
libtpu: 0.0.40
codegen_flags: <defaults>
</compile_context>

<pallas_src>
import math

import jax
import jax.numpy as jnp
from jax import lax
from jax.experimental import pallas as pl
from jax.experimental.pallas import tpu as pltpu

_VMEM_LIMIT = 48 * 1024 * 1024  # within v7x's 64 MiB physical VMEM; fine on v5e/v6e


def _lane_tile_pref():
    """MXU-native cout tile width: 128 on v5e-class chips, 256 on v6e/v7x."""
    try:
        kind = jax.devices()[0].device_kind.lower()
    except Exception:
        return 256
    for tag in ("v2", "v3", "v4", "v5"):
        if tag in kind:
            return 128
    return 256


# ---------------------------------------------------------------------------
# Fused 3x3 conv (padding=1, no bias) with optional BN/ReLU input transform,
# residual add, output ReLU, and fused per-channel BN statistics of the output.
# ---------------------------------------------------------------------------
def _conv3x3(x, w, stride, *, scale=None, shift=None, in_relu=False,
             residual=None, out_relu=False):
    """x: (N, H, W, Cin) bf16 (unpadded); w: (3,3,Cin,Cout) f32 (HWIO).
    residual: optional (N*Ho*Wo, Cout) bf16 added to the output.
    Returns (y, ysum, ysq):
      y    (N*Ho*Wo, Cout) bf16  — conv output (+residual, +ReLU if out_relu)
      ysum (1, Cout) f32         — per-channel sum of y   (for the next BatchNorm)
      ysq  (1, Cout) f32         — per-channel sum of y*y
    """
    N, H, W, Cin = map(int, x.shape)
    assert w.shape[:3] == (3, 3, Cin)
    Cout = int(w.shape[3])
    assert stride in (1, 2) and H % stride == 0 and W % stride == 0
    P = stride
    Ho, Wo = H // P, W // P
    Hq, Wq = (H + 2) // P, (W + 2) // P          # padded extent per parity plane
    M = N * Ho * Wo                              # batch folded into matmul M

    has_bn = scale is not None
    has_res = residual is not None
    transform = has_bn or in_relu

    tn = min(Cout, _lane_tile_pref())
    assert Cout % tn == 0
    n_j = Cout // tn

    # ---- host-side prep: pure layout, no pad pass (padding happens in-kernel) ----
    wq = w.reshape(9, Cin, Cout).astype(jnp.bfloat16)
    xb = x.astype(jnp.bfloat16)
    if P == 1:
        xq = xb.reshape(1, N, H, W, Cin)
    else:
        # raw stride-parity planes: xq[a*2+b, n, i, j, :] = x[n, 2i+a, 2j+b, :]
        xq = xb.reshape(N, Ho, 2, Wo, 2, Cin).transpose(2, 4, 0, 1, 3, 5)
        xq = xq.reshape(4, N, Ho, Wo, Cin)

    operands = [xq, wq]
    in_specs = [
        pl.BlockSpec((P * P, N, Ho, Wo, Cin), lambda j: (0, 0, 0, 0, 0)),
        pl.BlockSpec((9, Cin, tn), lambda j: (0, 0, j)),
    ]
    if has_bn:
        operands += [scale.reshape(1, Cin).astype(jnp.float32),
                     shift.reshape(1, Cin).astype(jnp.float32)]
        in_specs += [pl.BlockSpec((1, Cin), lambda j: (0, 0))] * 2
    if has_res:
        operands.append(residual.reshape(M, Cout).astype(jnp.bfloat16))
        in_specs.append(pl.BlockSpec((M, tn), lambda j: (0, j)))

    def kernel(*refs):
        x_ref, w_ref = refs[0], refs[1]
        idx = 2
        sc_ref = sh_ref = r_ref = None
        if has_bn:
            sc_ref, sh_ref = refs[idx], refs[idx + 1]
            idx += 2
        if has_res:
            r_ref = refs[idx]
            idx += 1
        o_ref, sum_ref, sq_ref = refs[idx], refs[idx + 1], refs[idx + 2]
        pad_ref = refs[idx + 3]

        # -- pre-pass: BN scale/shift + ReLU applied ONCE per slab; the zero pad
        #    ring is materialized by writing the transformed interior into a
        #    zeroed scratch (parity-split planes when stride == 2).
        xv = x_ref[...]
        if transform:
            xv = xv.astype(jnp.float32)          # VPU math in f32 (v5e: no bf16 VPU)
            if has_bn:
                xv = xv * sc_ref[...] + sh_ref[...]
            if in_relu:
                xv = jnp.maximum(xv, 0.0)
            xv = xv.astype(jnp.bfloat16)
        pad_ref[...] = jnp.zeros(pad_ref.shape, pad_ref.dtype)
        if P == 1:
            pad_ref[0, :, 1:H + 1, 1:W + 1, :] = xv[0]
        else:
            for a in range(2):
                for b in range(2):
                    ra = 0 if a == 0 else 1      # raw-even rows land at padded rows 0..
                    rb = 0 if b == 0 else 1
                    pad_ref[(1 - a) * 2 + (1 - b), :,
                            ra:ra + Ho, rb:rb + Wo, :] = xv[a * 2 + b]

        # -- 9 taps -> bf16 MXU matmuls into an f32 accumulator (no im2col)
        acc = jnp.zeros((M, tn), jnp.float32)
        for kh in range(3):
            for kw in range(3):
                t = kh * 3 + kw
                qp = (kh % P) * P + (kw % P)
                hs, ws = kh // P, kw // P
                a_val = pad_ref[qp, :, hs:hs + Ho, ws:ws + Wo, :]   # (N, Ho, Wo, Cin)
                acc = acc + jnp.dot(a_val.reshape(M, Cin), w_ref[t],
                                    preferred_element_type=jnp.float32)

        # -- epilogue: residual add, optional ReLU, fused BN statistics, store
        y = acc
        if has_res:
            y = y + r_ref[...].astype(jnp.float32)
        if out_relu:
            y = jnp.maximum(y, 0.0)
        sum_ref[...] = jnp.sum(y, axis=0, keepdims=True)
        sq_ref[...] = jnp.sum(y * y, axis=0, keepdims=True)
        o_ref[...] = y.astype(o_ref.dtype)

    flops = 2 * M * 9 * Cin * Cout
    bytes_accessed = 2 * (xq.size + wq.size + M * Cout
                          + (M * Cout if has_res else 0))
    cost = pl.CostEstimate(flops=int(flops), transcendentals=0,
                           bytes_accessed=int(bytes_accessed))

    out_shape = (jax.ShapeDtypeStruct((M, Cout), jnp.bfloat16),
                 jax.ShapeDtypeStruct((1, Cout), jnp.float32),
                 jax.ShapeDtypeStruct((1, Cout), jnp.float32))
    out_specs = (pl.BlockSpec((M, tn), lambda j: (0, j)),
                 pl.BlockSpec((1, tn), lambda j: (0, j)),
                 pl.BlockSpec((1, tn), lambda j: (0, j)))

    return pl.pallas_call(
        kernel,
        out_shape=out_shape,
        grid_spec=pltpu.PrefetchScalarGridSpec(
            num_scalar_prefetch=0,
            grid=(n_j,),
            in_specs=in_specs,
            out_specs=out_specs,
            scratch_shapes=[pltpu.VMEM((P * P, N, Hq, Wq, Cin), jnp.bfloat16)]),
        compiler_params=pltpu.CompilerParams(
            dimension_semantics=("parallel",),
            vmem_limit_bytes=_VMEM_LIMIT),
        cost_estimate=cost,
    )(*operands)


# ---------------------------------------------------------------------------
# BatchNorm (training-mode batch statistics) combine — tiny XLA op
# ---------------------------------------------------------------------------
def _bn_scale_shift(sum_, sumsq, count, gamma, beta, eps=1e-5):
    # Biased batch variance, PyTorch training mode.  Single-pass E[x^2]-E[x]^2 in
    # f32 is adequate at these counts; clamped at 0 defensively.
    mean = sum_.reshape(-1) / float(count)
    var = jnp.maximum(sumsq.reshape(-1) / float(count) - mean * mean, 0.0)
    scale = gamma * lax.rsqrt(var + eps)
    shift = beta - mean * scale
    return scale, shift


# ---------------------------------------------------------------------------
# Shortcut glue: psi(2,-1) + injective_pad (pure layout, left to XLA)
# ---------------------------------------------------------------------------
def _space_to_depth2(x):
    # TODO(synk): psi()/injective_pad() sources were not provided with the reference;
    # implemented as the standard iRevNet pixel-unshuffle(2) with (h-offset, w-offset,
    # channel) ordering followed by a channel crop / zero-pad for injective_pad.
    N, H, W, C = x.shape
    x = x.reshape(N, H // 2, 2, W // 2, 2, C)
    x = x.transpose(0, 1, 3, 2, 4, 5)
    return x.reshape(N, H // 2, W // 2, 4 * C)


# ---------------------------------------------------------------------------
# Parameter construction (mirrors Disc.__init__ / irevnet_stack / resnet_block)
# ---------------------------------------------------------------------------
def _conv_weight(key, cin, cout):
    fan_in = 9 * cin
    return jax.random.normal(key, (3, 3, cin, cout), jnp.float32) / math.sqrt(fan_in)


def init_disc_params(key, input_shape, block_num=1, nClasses=1, mult=2):
    C_in, H, W = input_shape
    stride_number = math.ceil(math.log(H, 2))
    nChannels = [64]
    for _ in range(stride_number - 1):
        nChannels.append(nChannels[-1] * 2)
    nBlocks = [block_num] * stride_number
    nStrides = [2] * stride_number

    strides, channels = [], []
    for ch, depth, st in zip(nChannels, nBlocks, nStrides):
        strides += [st] + [1] * (depth - 1)
        channels += [ch] * depth
    in_sizes = [H]
    for st in strides:
        in_sizes.append(int(in_sizes[-1] // st))

    keys = jax.random.split(key, 2 + 2 * len(strides))
    ki = 0
    params = {'first_conv': _conv_weight(keys[ki], C_in, 64)}
    ki += 1

    blocks = []
    in_ch = 64
    for ch, in_size, st in zip(channels, in_sizes, strides):
        out_size = int(in_size // st)
        mid = int(in_ch // mult)
        blk = {'stride': st, 'in_ch': in_ch, 'mid_ch': mid, 'out_ch': ch}
        blk['bn1'] = ((jnp.ones((in_ch,), jnp.float32),
                       jnp.zeros((in_ch,), jnp.float32))
                      if (in_size > 1 and in_ch > 1) else None)
        blk['w1'] = _conv_weight(keys[ki], in_ch, mid)
        ki += 1
        blk['bn2'] = ((jnp.ones((mid,), jnp.float32),
                       jnp.zeros((mid,), jnp.float32))
                      if (out_size > 1 and ch > 1) else None)
        blk['w2'] = _conv_weight(keys[ki], mid, ch)
        ki += 1
        blocks.append(blk)
        in_ch = ch
    params['blocks'] = blocks

    lin_in = nChannels[-1]
    params['linear_w'] = (jax.random.normal(keys[ki], (lin_in, nClasses), jnp.float32)
                          / math.sqrt(lin_in))
    params['linear_b'] = jnp.zeros((1, nClasses), jnp.float32)
    return params


# ---------------------------------------------------------------------------
# Forward pass
# ---------------------------------------------------------------------------
def _block_forward(x2d, spatial, x_stats, blk):
    """resnet_block.forward: y = bottleneck(x) + injective_pad(psi(x)).

    x2d: (N*H*W, Cin) bf16; spatial = (N, H, W); x_stats = (sum, sumsq) of x."""
    N, H, W = spatial
    Cin = int(x2d.shape[-1])
    st = blk['stride']
    Ho, Wo = H // st, W // st
    out_ch = blk['out_ch']

    x4 = x2d.reshape(N, H, W, Cin)

    # --- shortcut: psi(2,-1) + injective_pad (channel crop / zero pad), XLA glue ---
    sc = _space_to_depth2(x4) if st == 2 else x4
    c_sc = sc.shape[-1]
    if out_ch <= c_sc:
        sc = sc[..., :out_ch]
    else:
        sc = jnp.pad(sc, ((0, 0), (0, 0), (0, 0), (0, out_ch - c_sc)))
    sc2d = sc.reshape(N * Ho * Wo, out_ch)

    # --- bottleneck: [BN] + ReLU fused into conv1's input path ---
    if blk['bn1'] is not None:
        g1, b1 = blk['bn1']
        s1, t1 = _bn_scale_shift(x_stats[0], x_stats[1], N * H * W, g1, b1)
    else:
        s1 = t1 = None
    m2d, m_sum, m_sq = _conv3x3(x4, blk['w1'], st, scale=s1, shift=t1, in_relu=True)

    # --- [BN] + ReLU fused into conv2's input; residual fused into the epilogue ---
    if blk['bn2'] is not None:
        g2, b2 = blk['bn2']
        s2, t2 = _bn_scale_shift(m_sum, m_sq, N * Ho * Wo, g2, b2)
    else:
        s2 = t2 = None
    m4 = m2d.reshape(N, Ho, Wo, blk['mid_ch'])
    y2d, y_sum, y_sq = _conv3x3(m4, blk['w2'], 1, scale=s2, shift=t2,
                                in_relu=True, residual=sc2d)
    return y2d, (N, Ho, Wo), (y_sum, y_sq)


def disc_forward(params, x_nchw):
    x = jnp.transpose(x_nchw, (0, 2, 3, 1)).astype(jnp.bfloat16)   # NCHW -> NHWC
    N, H, W, _ = x.shape
    # stem: conv + ReLU; BN stats of its output fused into the epilogue
    y2d, y_sum, y_sq = _conv3x3(x, params['first_conv'], 1, out_relu=True)
    spatial, stats = (N, H, W), (y_sum, y_sq)
    for blk in params['blocks']:
        y2d, spatial, stats = _block_forward(y2d, spatial, stats, blk)
    n, h, w = spatial
    assert h == 1 and w == 1          # Disc reduces to 1x1 before the linear head
    feat = y2d.reshape(n, -1).astype(jnp.float32)
    # final nn.Linear (N x 256 -> nClasses): tiny, left to plain XLA on purpose
    return feat @ params['linear_w'] + params['linear_b']


# NOTE: the ConvTranspose2d (upsampling) branch of resnet_block is never taken by
# Disc (all its strides are downsampling), so it is not implemented here.
# BatchNorm uses training-mode batch statistics (PyTorch module default state).

if __name__ == "__main__":
    key = jax.random.PRNGKey(0)
    k_param, k_x = jax.random.split(key)

    input_shape = (4, 8, 8)   # (C, H, W); H a power of two, as Disc assumes
    batch = 2

    params = init_disc_params(k_param, input_shape, block_num=1, nClasses=1, mult=2)
    x = jax.random.normal(k_x, (batch,) + input_shape, jnp.float32)  # NCHW, like PyTorch

    fwd = jax.jit(lambda inp: disc_forward(params, inp))
    out = jax.block_until_ready(fwd(x))
    assert out.shape == (batch, 1), out.shape
    assert bool(jnp.all(jnp.isfinite(out)))
    print("KERNEL_OK")
</pallas_src>

<mosaic_0001>
module attributes {stable_mosaic.version = 11 : i64} {
  func.func @kernel(%arg0: i32, %arg1: memref<1x2x8x8x4xbf16, #tpu.memory_space<vmem>>, %arg2: memref<9x4x64xbf16, #tpu.memory_space<vmem>>, %arg3: memref<128x64xbf16, #tpu.memory_space<vmem>>, %arg4: memref<1x64xf32, #tpu.memory_space<vmem>>, %arg5: memref<1x64xf32, #tpu.memory_space<vmem>>, %arg6: memref<1x2x10x10x4xbf16, #tpu.memory_space<vmem>>) attributes {dimension_semantics = [#tpu.dimension_semantics<parallel>], iteration_bounds = array<i64: 1>, scalar_prefetch = 0 : i64, scratch_operands = 1 : i64, tpu.core_type = #tpu.core_type<tc>, window_params = [{pipeline_mode = #tpu.pipeline_mode<synchronous>, transform_indices = @transform_0, window_bounds = array<i64: 1, 2, 8, 8, 4>}, {transform_indices = @transform_1, window_bounds = array<i64: 9, 4, 64>}, {transform_indices = @transform_2, window_bounds = array<i64: 128, 64>}, {transform_indices = @transform_3, window_bounds = array<i64: 1, 64>}, {transform_indices = @transform_4, window_bounds = array<i64: 1, 64>}]} {
    %c0 = arith.constant 0 : index
    %c0_0 = arith.constant 0 : index
    %c0_1 = arith.constant 0 : index
    %c0_2 = arith.constant 0 : index
    %c0_3 = arith.constant 0 : index
    %0 = vector.load %arg1[%c0, %c0_0, %c0_1, %c0_2, %c0_3] : memref<1x2x8x8x4xbf16, #tpu.memory_space<vmem>>, vector<1x2x8x8x4xbf16>
    %cst = arith.constant 0.000000e+00 : bf16
    %1 = vector.broadcast %cst : bf16 to vector<1x2x10x10x4xbf16>
    %c0_4 = arith.constant 0 : index
    %c0_5 = arith.constant 0 : index
    %c0_6 = arith.constant 0 : index
    %c0_7 = arith.constant 0 : index
    %c0_8 = arith.constant 0 : index
    %2 = vector.load %arg6[%c0_4, %c0_5, %c0_6, %c0_7, %c0_8] : memref<1x2x10x10x4xbf16, #tpu.memory_space<vmem>>, vector<1x2x10x10x4xbf16>
    tpu.vector_store %arg6[%c0_4, %c0_5, %c0_6, %c0_7, %c0_8], %1 {strides = array<i32>} : memref<1x2x10x10x4xbf16, #tpu.memory_space<vmem>>, vector<1x2x10x10x4xbf16>,
    %3 = vector.shape_cast %0 : vector<1x2x8x8x4xbf16> to vector<2x8x8x4xbf16>
    %c0_9 = arith.constant 0 : index
    %c0_10 = arith.constant 0 : index
    %c1 = arith.constant 1 : index
    %c1_11 = arith.constant 1 : index
    %c0_12 = arith.constant 0 : index
    %4 = vector.load %arg6[%c0_9, %c0_10, %c1, %c1_11, %c0_12] : memref<1x2x10x10x4xbf16, #tpu.memory_space<vmem>>, vector<1x2x8x8x4xbf16>
    %5 = vector.shape_cast %4 : vector<1x2x8x8x4xbf16> to vector<2x8x8x4xbf16>
    %6 = vector.shape_cast %3 : vector<2x8x8x4xbf16> to vector<1x2x8x8x4xbf16>
    tpu.vector_store %arg6[%c0_9, %c0_10, %c1, %c1_11, %c0_12], %6 {strides = array<i32>} : memref<1x2x10x10x4xbf16, #tpu.memory_space<vmem>>, vector<1x2x8x8x4xbf16>,
    %cst_13 = arith.constant 0.000000e+00 : f32
    %7 = vector.broadcast %cst_13 : f32 to vector<128x64xf32>
    %c0_14 = arith.constant 0 : index
    %c0_15 = arith.constant 0 : index
    %c0_16 = arith.constant 0 : index
    %c0_17 = arith.constant 0 : index
    %c0_18 = arith.constant 0 : index
    %8 = vector.load %arg6[%c0_14, %c0_15, %c0_16, %c0_17, %c0_18] : memref<1x2x10x10x4xbf16, #tpu.memory_space<vmem>>, vector<1x2x8x8x4xbf16>
    %9 = vector.shape_cast %8 : vector<1x2x8x8x4xbf16> to vector<2x8x8x4xbf16>
    %10 = vector.shape_cast %9 : vector<2x8x8x4xbf16> to vector<128x4xbf16>
    %c0_19 = arith.constant 0 : index
    %c0_20 = arith.constant 0 : index
    %c0_21 = arith.constant 0 : index
    %11 = vector.load %arg2[%c0_19, %c0_20, %c0_21] : memref<9x4x64xbf16, #tpu.memory_space<vmem>>, vector<1x4x64xbf16>
    %12 = vector.shape_cast %11 : vector<1x4x64xbf16> to vector<4x64xbf16>
    %cst_22 = arith.constant dense<0.000000e+00> : vector<128x64xf32>
    %13 = tpu.matmul %10, %12, %cst_22 {dimension_numbers = #tpu.dot_dimension_numbers<[1], [0], [0], [1], [0, 0, 1, 1], [], []>} : vector<128x4xbf16>, vector<4x64xbf16>, vector<128x64xf32> -> vector<128x64xf32>
    %14 = arith.addf %7, %13 : vector<128x64xf32>
    %c0_23 = arith.constant 0 : index
    %c0_24 = arith.constant 0 : index
    %c0_25 = arith.constant 0 : index
    %c1_26 = arith.constant 1 : index
    %c0_27 = arith.constant 0 : index
    %15 = vector.load %arg6[%c0_23, %c0_24, %c0_25, %c1_26, %c0_27] : memref<1x2x10x10x4xbf16, #tpu.memory_space<vmem>>, vector<1x2x8x8x4xbf16>
    %16 = vector.shape_cast %15 : vector<1x2x8x8x4xbf16> to vector<2x8x8x4xbf16>
    %17 = vector.shape_cast %16 : vector<2x8x8x4xbf16> to vector<128x4xbf16>
    %c1_28 = arith.constant 1 : index
    %c0_29 = arith.constant 0 : index
    %c0_30 = arith.constant 0 : index
    %18 = vector.load %arg2[%c1_28, %c0_29, %c0_30] : memref<9x4x64xbf16, #tpu.memory_space<vmem>>, vector<1x4x64xbf16>
    %19 = vector.shape_cast %18 : vector<1x4x64xbf16> to vector<4x64xbf16>
    %cst_31 = arith.constant dense<0.000000e+00> : vector<128x64xf32>
    %20 = tpu.matmul %17, %19, %cst_31 {dimension_numbers = #tpu.dot_dimension_numbers<[1], [0], [0], [1], [0, 0, 1, 1], [], []>} : vector<128x4xbf16>, vector<4x64xbf16>, vector<128x64xf32> -> vector<128x64xf32>
    %21 = arith.addf %14, %20 : vector<128x64xf32>
    %c0_32 = arith.constant 0 : index
    %c0_33 = arith.constant 0 : index
    %c0_34 = arith.constant 0 : index
    %c2 = arith.constant 2 : index
    %c0_35 = arith.constant 0 : index
    %22 = vector.load %arg6[%c0_32, %c0_33, %c0_34, %c2, %c0_35] : memref<1x2x10x10x4xbf16, #tpu.memory_space<vmem>>, vector<1x2x8x8x4xbf16>
    %23 = vector.shape_cast %22 : vector<1x2x8x8x4xbf16> to vector<2x8x8x4xbf16>
    %24 = vector.shape_cast %23 : vector<2x8x8x4xbf16> to vector<128x4xbf16>
    %c2_36 = arith.constant 2 : index
    %c0_37 = arith.constant 0 : index
    %c0_38 = arith.constant 0 : index
    %25 = vector.load %arg2[%c2_36, %c0_37, %c0_38] : memref<9x4x64xbf16, #tpu.memory_space<vmem>>, vector<1x4x64xbf16>
    %26 = vector.shape_cast %25 : vector<1x4x64xbf16> to vector<4x64xbf16>
    %cst_39 = arith.constant dense<0.000000e+00> : vector<128x64xf32>
    %27 = tpu.matmul %24, %26, %cst_39 {dimension_numbers = #tpu.dot_dimension_numbers<[1], [0], [0], [1], [0, 0, 1, 1], [], []>} : vector<128x4xbf16>, vector<4x64xbf16>, vector<128x64xf32> -> vector<128x64xf32>
    %28 = arith.addf %21, %27 : vector<128x64xf32>
    %c0_40 = arith.constant 0 : index
    %c0_41 = arith.constant 0 : index
    %c1_42 = arith.constant 1 : index
    %c0_43 = arith.constant 0 : index
    %c0_44 = arith.constant 0 : index
    %29 = vector.load %arg6[%c0_40, %c0_41, %c1_42, %c0_43, %c0_44] : memref<1x2x10x10x4xbf16, #tpu.memory_space<vmem>>, vector<1x2x8x8x4xbf16>
    %30 = vector.shape_cast %29 : vector<1x2x8x8x4xbf16> to vector<2x8x8x4xbf16>
    %31 = vector.shape_cast %30 : vector<2x8x8x4xbf16> to vector<128x4xbf16>
    %c3 = arith.constant 3 : index
    %c0_45 = arith.constant 0 : index
    %c0_46 = arith.constant 0 : index
    %32 = vector.load %arg2[%c3, %c0_45, %c0_46] : memref<9x4x64xbf16, #tpu.memory_space<vmem>>, vector<1x4x64xbf16>
    %33 = vector.shape_cast %32 : vector<1x4x64xbf16> to vector<4x64xbf16>
    %cst_47 = arith.constant dense<0.000000e+00> : vector<128x64xf32>
    %34 = tpu.matmul %31, %33, %cst_47 {dimension_numbers = #tpu.dot_dimension_numbers<[1], [0], [0], [1], [0, 0, 1, 1], [], []>} : vector<128x4xbf16>, vector<4x64xbf16>, vector<128x64xf32> -> vector<128x64xf32>
    %35 = arith.addf %28, %34 : vector<128x64xf32>
    %c0_48 = arith.constant 0 : index
    %c0_49 = arith.constant 0 : index
    %c1_50 = arith.constant 1 : index
    %c1_51 = arith.constant 1 : index
    %c0_52 = arith.constant 0 : index
    %36 = vector.load %arg6[%c0_48, %c0_49, %c1_50, %c1_51, %c0_52] : memref<1x2x10x10x4xbf16, #tpu.memory_space<vmem>>, vector<1x2x8x8x4xbf16>
    %37 = vector.shape_cast %36 : vector<1x2x8x8x4xbf16> to vector<2x8x8x4xbf16>
    %38 = vector.shape_cast %37 : vector<2x8x8x4xbf16> to vector<128x4xbf16>
    %c4 = arith.constant 4 : index
    %c0_53 = arith.constant 0 : index
    %c0_54 = arith.constant 0 : index
    %39 = vector.load %arg2[%c4, %c0_53, %c0_54] : memref<9x4x64xbf16, #tpu.memory_space<vmem>>, vector<1x4x64xbf16>
    %40 = vector.shape_cast %39 : vector<1x4x64xbf16> to vector<4x64xbf16>
    %cst_55 = arith.constant dense<0.000000e+00> : vector<128x64xf32>
    %41 = tpu.matmul %38, %40, %cst_55 {dimension_numbers = #tpu.dot_dimension_numbers<[1], [0], [0], [1], [0, 0, 1, 1], [], []>} : vector<128x4xbf16>, vector<4x64xbf16>, vector<128x64xf32> -> vector<128x64xf32>
    %42 = arith.addf %35, %41 : vector<128x64xf32>
    %c0_56 = arith.constant 0 : index
    %c0_57 = arith.constant 0 : index
    %c1_58 = arith.constant 1 : index
    %c2_59 = arith.constant 2 : index
    %c0_60 = arith.constant 0 : index
    %43 = vector.load %arg6[%c0_56, %c0_57, %c1_58, %c2_59, %c0_60] : memref<1x2x10x10x4xbf16, #tpu.memory_space<vmem>>, vector<1x2x8x8x4xbf16>
    %44 = vector.shape_cast %43 : vector<1x2x8x8x4xbf16> to vector<2x8x8x4xbf16>
    %45 = vector.shape_cast %44 : vector<2x8x8x4xbf16> to vector<128x4xbf16>
    %c5 = arith.constant 5 : index
    %c0_61 = arith.constant 0 : index
    %c0_62 = arith.constant 0 : index
    %46 = vector.load %arg2[%c5, %c0_61, %c0_62] : memref<9x4x64xbf16, #tpu.memory_space<vmem>>, vector<1x4x64xbf16>
    %47 = vector.shape_cast %46 : vector<1x4x64xbf16> to vector<4x64xbf16>
    %cst_63 = arith.constant dense<0.000000e+00> : vector<128x64xf32>
    %48 = tpu.matmul %45, %47, %cst_63 {dimension_numbers = #tpu.dot_dimension_numbers<[1], [0], [0], [1], [0, 0, 1, 1], [], []>} : vector<128x4xbf16>, vector<4x64xbf16>, vector<128x64xf32> -> vector<128x64xf32>
    %49 = arith.addf %42, %48 : vector<128x64xf32>
    %c0_64 = arith.constant 0 : index
    %c0_65 = arith.constant 0 : index
    %c2_66 = arith.constant 2 : index
    %c0_67 = arith.constant 0 : index
    %c0_68 = arith.constant 0 : index
    %50 = vector.load %arg6[%c0_64, %c0_65, %c2_66, %c0_67, %c0_68] : memref<1x2x10x10x4xbf16, #tpu.memory_space<vmem>>, vector<1x2x8x8x4xbf16>
    %51 = vector.shape_cast %50 : vector<1x2x8x8x4xbf16> to vector<2x8x8x4xbf16>
    %52 = vector.shape_cast %51 : vector<2x8x8x4xbf16> to vector<128x4xbf16>
    %c6 = arith.constant 6 : index
    %c0_69 = arith.constant 0 : index
    %c0_70 = arith.constant 0 : index
    %53 = vector.load %arg2[%c6, %c0_69, %c0_70] : memref<9x4x64xbf16, #tpu.memory_space<vmem>>, vector<1x4x64xbf16>
    %54 = vector.shape_cast %53 : vector<1x4x64xbf16> to vector<4x64xbf16>
    %cst_71 = arith.constant dense<0.000000e+00> : vector<128x64xf32>
    %55 = tpu.matmul %52, %54, %cst_71 {dimension_numbers = #tpu.dot_dimension_numbers<[1], [0], [0], [1], [0, 0, 1, 1], [], []>} : vector<128x4xbf16>, vector<4x64xbf16>, vector<128x64xf32> -> vector<128x64xf32>
    %56 = arith.addf %49, %55 : vector<128x64xf32>
    %c0_72 = arith.constant 0 : index
    %c0_73 = arith.constant 0 : index
    %c2_74 = arith.constant 2 : index
    %c1_75 = arith.constant 1 : index
    %c0_76 = arith.constant 0 : index
    %57 = vector.load %arg6[%c0_72, %c0_73, %c2_74, %c1_75, %c0_76] : memref<1x2x10x10x4xbf16, #tpu.memory_space<vmem>>, vector<1x2x8x8x4xbf16>
    %58 = vector.shape_cast %57 : vector<1x2x8x8x4xbf16> to vector<2x8x8x4xbf16>
    %59 = vector.shape_cast %58 : vector<2x8x8x4xbf16> to vector<128x4xbf16>
    %c7 = arith.constant 7 : index
    %c0_77 = arith.constant 0 : index
    %c0_78 = arith.constant 0 : index
    %60 = vector.load %arg2[%c7, %c0_77, %c0_78] : memref<9x4x64xbf16, #tpu.memory_space<vmem>>, vector<1x4x64xbf16>
    %61 = vector.shape_cast %60 : vector<1x4x64xbf16> to vector<4x64xbf16>
    %cst_79 = arith.constant dense<0.000000e+00> : vector<128x64xf32>
    %62 = tpu.matmul %59, %61, %cst_79 {dimension_numbers = #tpu.dot_dimension_numbers<[1], [0], [0], [1], [0, 0, 1, 1], [], []>} : vector<128x4xbf16>, vector<4x64xbf16>, vector<128x64xf32> -> vector<128x64xf32>
    %63 = arith.addf %56, %62 : vector<128x64xf32>
    %c0_80 = arith.constant 0 : index
    %c0_81 = arith.constant 0 : index
    %c2_82 = arith.constant 2 : index
    %c2_83 = arith.constant 2 : index
    %c0_84 = arith.constant 0 : index
    %64 = vector.load %arg6[%c0_80, %c0_81, %c2_82, %c2_83, %c0_84] : memref<1x2x10x10x4xbf16, #tpu.memory_space<vmem>>, vector<1x2x8x8x4xbf16>
    %65 = vector.shape_cast %64 : vector<1x2x8x8x4xbf16> to vector<2x8x8x4xbf16>
    %66 = vector.shape_cast %65 : vector<2x8x8x4xbf16> to vector<128x4xbf16>
    %c8 = arith.constant 8 : index
    %c0_85 = arith.constant 0 : index
    %c0_86 = arith.constant 0 : index
    %67 = vector.load %arg2[%c8, %c0_85, %c0_86] : memref<9x4x64xbf16, #tpu.memory_space<vmem>>, vector<1x4x64xbf16>
    %68 = vector.shape_cast %67 : vector<1x4x64xbf16> to vector<4x64xbf16>
    %cst_87 = arith.constant dense<0.000000e+00> : vector<128x64xf32>
    %69 = tpu.matmul %66, %68, %cst_87 {dimension_numbers = #tpu.dot_dimension_numbers<[1], [0], [0], [1], [0, 0, 1, 1], [], []>} : vector<128x4xbf16>, vector<4x64xbf16>, vector<128x64xf32> -> vector<128x64xf32>
    %70 = arith.addf %63, %69 : vector<128x64xf32>
    %cst_88 = arith.constant 0.000000e+00 : f32
    %71 = vector.broadcast %cst_88 : f32 to vector<128x64xf32>
    %72 = arith.maximumf %70, %71 : vector<128x64xf32>
    %cst_89 = arith.constant dense<0.000000e+00> : vector<64xf32>
    %73 = vector.multi_reduction <add>, %72, %cst_89 [0] : vector<128x64xf32> to vector<64xf32>
    %74 = vector.shape_cast %73 : vector<64xf32> to vector<1x64xf32>
    %c0_90 = arith.constant 0 : index
    %c0_91 = arith.constant 0 : index
    %75 = vector.load %arg4[%c0_90, %c0_91] : memref<1x64xf32, #tpu.memory_space<vmem>>, vector<1x64xf32>
    tpu.vector_store %arg4[%c0_90, %c0_91], %74 {strides = array<i32>} : memref<1x64xf32, #tpu.memory_space<vmem>>, vector<1x64xf32>,
    %76 = arith.mulf %72, %72 : vector<128x64xf32>
    %cst_92 = arith.constant dense<0.000000e+00> : vector<64xf32>
    %77 = vector.multi_reduction <add>, %76, %cst_92 [0] : vector<128x64xf32> to vector<64xf32>
    %78 = vector.shape_cast %77 : vector<64xf32> to vector<1x64xf32>
    %c0_93 = arith.constant 0 : index
    %c0_94 = arith.constant 0 : index
    %79 = vector.load %arg5[%c0_93, %c0_94] : memref<1x64xf32, #tpu.memory_space<vmem>>, vector<1x64xf32>
    tpu.vector_store %arg5[%c0_93, %c0_94], %78 {strides = array<i32>} : memref<1x64xf32, #tpu.memory_space<vmem>>, vector<1x64xf32>,
    %80 = arith.truncf %72 : vector<128x64xf32> to vector<128x64xbf16>
    %c0_95 = arith.constant 0 : index
    %c0_96 = arith.constant 0 : index
    %81 = vector.load %arg3[%c0_95, %c0_96] : memref<128x64xbf16, #tpu.memory_space<vmem>>, vector<128x64xbf16>
    tpu.vector_store %arg3[%c0_95, %c0_96], %80 {strides = array<i32>} : memref<128x64xbf16, #tpu.memory_space<vmem>>, vector<128x64xbf16>,
    return
  }
  func.func @transform_0(%arg0: i32) -> (i32, i32, i32, i32, i32) {
    %c0_i32 = arith.constant 0 : i32
    %c0_i32_0 = arith.constant 0 : i32
    %c0_i32_1 = arith.constant 0 : i32
    %c0_i32_2 = arith.constant 0 : i32
    %c0_i32_3 = arith.constant 0 : i32
    %c0_i32_4 = arith.constant 0 : i32
    return %c0_i32, %c0_i32_0, %c0_i32_1, %c0_i32_2, %c0_i32_3 : i32, i32, i32, i32, i32
  }
  func.func @transform_1(%arg0: i32) -> (i32, i32, i32) {
    %c0_i32 = arith.constant 0 : i32
    %c0_i32_0 = arith.constant 0 : i32
    %c0_i32_1 = arith.constant 0 : i32
    return %c0_i32, %c0_i32_0, %arg0 : i32, i32, i32
  }
  func.func @transform_2(%arg0: i32) -> (i32, i32) {
    %c0_i32 = arith.constant 0 : i32
    %c0_i32_0 = arith.constant 0 : i32
    return %c0_i32, %arg0 : i32, i32
  }
  func.func @transform_3(%arg0: i32) -> (i32, i32) {
    %c0_i32 = arith.constant 0 : i32
    %c0_i32_0 = arith.constant 0 : i32
    return %c0_i32, %arg0 : i32, i32
  }
  func.func @transform_4(%arg0: i32) -> (i32, i32) {
    %c0_i32 = arith.constant 0 : i32
    %c0_i32_0 = arith.constant 0 : i32
    return %c0_i32, %arg0 : i32, i32
  }
}

module attributes {stable_mosaic.version = 11 : i64} {
  func.func @kernel(%arg0: i32, %arg1: memref<4x2x4x4x64xbf16, #tpu.memory_space<vmem>>, %arg2: memref<9x64x32xbf16, #tpu.memory_space<vmem>>, %arg3: memref<1x64xf32, #tpu.memory_space<vmem>>, %arg4: memref<1x64xf32, #tpu.memory_space<vmem>>, %arg5: memref<32x32xbf16, #tpu.memory_space<vmem>>, %arg6: memref<1x32xf32, #tpu.memory_space<vmem>>, %arg7: memref<1x32xf32, #tpu.memory_space<vmem>>, %arg8: memref<4x2x5x5x64xbf16, #tpu.memory_space<vmem>>) attributes {dimension_semantics = [#tpu.dimension_semantics<parallel>], iteration_bounds = array<i64: 1>, scalar_prefetch = 0 : i64, scratch_operands = 1 : i64, tpu.core_type = #tpu.core_type<tc>, window_params = [{pipeline_mode = #tpu.pipeline_mode<synchronous>, transform_indices = @transform_0, window_bounds = array<i64: 4, 2, 4, 4, 64>}, {transform_indices = @transform_1, window_bounds = array<i64: 9, 64, 32>}, {pipeline_mode = #tpu.pipeline_mode<synchronous>, transform_indices = @transform_2, window_bounds = array<i64: 1, 64>}, {pipeline_mode = #tpu.pipeline_mode<synchronous>, transform_indices = @transform_3, window_bounds = array<i64: 1, 64>}, {transform_indices = @transform_4, window_bounds = array<i64: 32, 32>}, {transform_indices = @transform_5, window_bounds = array<i64: 1, 32>}, {transform_indices = @transform_6, window_bounds = array<i64: 1, 32>}]} {
    %c0 = arith.constant 0 : index
    %c0_0 = arith.constant 0 : index
    %c0_1 = arith.constant 0 : index
    %c0_2 = arith.constant 0 : index
    %c0_3 = arith.constant 0 : index
    %0 = vector.load %arg1[%c0, %c0_0, %c0_1, %c0_2, %c0_3] : memref<4x2x4x4x64xbf16, #tpu.memory_space<vmem>>, vector<4x2x4x4x64xbf16>
    %1 = arith.extf %0 : vector<4x2x4x4x64xbf16> to vector<4x2x4x4x64xf32>
    %c0_4 = arith.constant 0 : index
    %c0_5 = arith.constant 0 : index
    %2 = vector.load %arg3[%c0_4, %c0_5] : memref<1x64xf32, #tpu.memory_space<vmem>>, vector<1x64xf32>
    %3 = vector.shape_cast %2 : vector<1x64xf32> to vector<1x1x1x1x64xf32>
    %4 = vector.broadcast %3 : vector<1x1x1x1x64xf32> to vector<4x2x4x4x64xf32>
    %5 = arith.mulf %1, %4 : vector<4x2x4x4x64xf32>
    %c0_6 = arith.constant 0 : index
    %c0_7 = arith.constant 0 : index
    %6 = vector.load %arg4[%c0_6, %c0_7] : memref<1x64xf32, #tpu.memory_space<vmem>>, vector<1x64xf32>
    %7 = vector.shape_cast %6 : vector<1x64xf32> to vector<1x1x1x1x64xf32>
    %8 = vector.broadcast %7 : vector<1x1x1x1x64xf32> to vector<4x2x4x4x64xf32>
    %9 = arith.addf %5, %8 : vector<4x2x4x4x64xf32>
    %cst = arith.constant 0.000000e+00 : f32
    %10 = vector.broadcast %cst : f32 to vector<4x2x4x4x64xf32>
    %11 = arith.maximumf %9, %10 : vector<4x2x4x4x64xf32>
    %12 = arith.truncf %11 : vector<4x2x4x4x64xf32> to vector<4x2x4x4x64xbf16>
    %cst_8 = arith.constant 0.000000e+00 : bf16
    %13 = vector.broadcast %cst_8 : bf16 to vector<4x2x5x5x64xbf16>
    %c0_9 = arith.constant 0 : index
    %c0_10 = arith.constant 0 : index
    %c0_11 = arith.constant 0 : index
    %c0_12 = arith.constant 0 : index
    %c0_13 = arith.constant 0 : index
    %14 = vector.load %arg8[%c0_9, %c0_10, %c0_11, %c0_12, %c0_13] : memref<4x2x5x5x64xbf16, #tpu.memory_space<vmem>>, vector<4x2x5x5x64xbf16>
    tpu.vector_store %arg8[%c0_9, %c0_10, %c0_11, %c0_12, %c0_13], %13 {strides = array<i32>} : memref<4x2x5x5x64xbf16, #tpu.memory_space<vmem>>, vector<4x2x5x5x64xbf16>,
    %15 = vector.extract_strided_slice %12 {offsets = [0, 0, 0, 0, 0], sizes = [1, 2, 4, 4, 64], strides = [1, 1, 1, 1, 1]} : vector<4x2x4x4x64xbf16> to vector<1x2x4x4x64xbf16>
    %16 = vector.shape_cast %15 : vector<1x2x4x4x64xbf16> to vector<2x4x4x64xbf16>
    %c3 = arith.constant 3 : index
    %c0_14 = arith.constant 0 : index
    %c0_15 = arith.constant 0 : index
    %c0_16 = arith.constant 0 : index
    %c0_17 = arith.constant 0 : index
    %17 = vector.load %arg8[%c3, %c0_14, %c0_15, %c0_16, %c0_17] : memref<4x2x5x5x64xbf16, #tpu.memory_space<vmem>>, vector<1x2x4x4x64xbf16>
    %18 = vector.shape_cast %17 : vector<1x2x4x4x64xbf16> to vector<2x4x4x64xbf16>
    %19 = vector.shape_cast %16 : vector<2x4x4x64xbf16> to vector<1x2x4x4x64xbf16>
    tpu.vector_store %arg8[%c3, %c0_14, %c0_15, %c0_16, %c0_17], %19 {strides = array<i32>} : memref<4x2x5x5x64xbf16, #tpu.memory_space<vmem>>, vector<1x2x4x4x64xbf16>,
    %20 = vector.extract_strided_slice %12 {offsets = [1, 0, 0, 0, 0], sizes = [1, 2, 4, 4, 64], strides = [1, 1, 1, 1, 1]} : vector<4x2x4x4x64xbf16> to vector<1x2x4x4x64xbf16>
    %21 = vector.shape_cast %20 : vector<1x2x4x4x64xbf16> to vector<2x4x4x64xbf16>
    %c2 = arith.constant 2 : index
    %c0_18 = arith.constant 0 : index
    %c0_19 = arith.constant 0 : index
    %c1 = arith.constant 1 : index
    %c0_20 = arith.constant 0 : index
    %22 = vector.load %arg8[%c2, %c0_18, %c0_19, %c1, %c0_20] : memref<4x2x5x5x64xbf16, #tpu.memory_space<vmem>>, vector<1x2x4x4x64xbf16>
    %23 = vector.shape_cast %22 : vector<1x2x4x4x64xbf16> to vector<2x4x4x64xbf16>
    %24 = vector.shape_cast %21 : vector<2x4x4x64xbf16> to vector<1x2x4x4x64xbf16>
    tpu.vector_store %arg8[%c2, %c0_18, %c0_19, %c1, %c0_20], %24 {strides = array<i32>} : memref<4x2x5x5x64xbf16, #tpu.memory_space<vmem>>, vector<1x2x4x4x64xbf16>,
    %25 = vector.extract_strided_slice %12 {offsets = [2, 0, 0, 0, 0], sizes = [1, 2, 4, 4, 64], strides = [1, 1, 1, 1, 1]} : vector<4x2x4x4x64xbf16> to vector<1x2x4x4x64xbf16>
    %26 = vector.shape_cast %25 : vector<1x2x4x4x64xbf16> to vector<2x4x4x64xbf16>
    %c1_21 = arith.constant 1 : index
    %c0_22 = arith.constant 0 : index
    %c1_23 = arith.constant 1 : index
    %c0_24 = arith.constant 0 : index
    %c0_25 = arith.constant 0 : index
    %27 = vector.load %arg8[%c1_21, %c0_22, %c1_23, %c0_24, %c0_25] : memref<4x2x5x5x64xbf16, #tpu.memory_space<vmem>>, vector<1x2x4x4x64xbf16>
    %28 = vector.shape_cast %27 : vector<1x2x4x4x64xbf16> to vector<2x4x4x64xbf16>
    %29 = vector.shape_cast %26 : vector<2x4x4x64xbf16> to vector<1x2x4x4x64xbf16>
    tpu.vector_store %arg8[%c1_21, %c0_22, %c1_23, %c0_24, %c0_25], %29 {strides = array<i32>} : memref<4x2x5x5x64xbf16, #tpu.memory_space<vmem>>, vector<1x2x4x4x64xbf16>,
    %30 = vector.extract_strided_slice %12 {offsets = [3, 0, 0, 0, 0], sizes = [1, 2, 4, 4, 64], strides = [1, 1, 1, 1, 1]} : vector<4x2x4x4x64xbf16> to vector<1x2x4x4x64xbf16>
    %31 = vector.shape_cast %30 : vector<1x2x4x4x64xbf16> to vector<2x4x4x64xbf16>
    %c0_26 = arith.constant 0 : index
    %c0_27 = arith.constant 0 : index
    %c1_28 = arith.constant 1 : index
    %c1_29 = arith.constant 1 : index
    %c0_30 = arith.constant 0 : index
    %32 = vector.load %arg8[%c0_26, %c0_27, %c1_28, %c1_29, %c0_30] : memref<4x2x5x5x64xbf16, #tpu.memory_space<vmem>>, vector<1x2x4x4x64xbf16>
    %33 = vector.shape_cast %32 : vector<1x2x4x4x64xbf16> to vector<2x4x4x64xbf16>
    %34 = vector.shape_cast %31 : vector<2x4x4x64xbf16> to vector<1x2x4x4x64xbf16>
    tpu.vector_store %arg8[%c0_26, %c0_27, %c1_28, %c1_29, %c0_30], %34 {strides = array<i32>} : memref<4x2x5x5x64xbf16, #tpu.memory_space<vmem>>, vector<1x2x4x4x64xbf16>,
    %cst_31 = arith.constant 0.000000e+00 : f32
    %35 = vector.broadcast %cst_31 : f32 to vector<32x32xf32>
    %c0_32 = arith.constant 0 : index
    %c0_33 = arith.constant 0 : index
    %c0_34 = arith.constant 0 : index
    %c0_35 = arith.constant 0 : index
    %c0_36 = arith.constant 0 : index
    %36 = vector.load %arg8[%c0_32, %c0_33, %c0_34, %c0_35, %c0_36] : memref<4x2x5x5x64xbf16, #tpu.memory_space<vmem>>, vector<1x2x4x4x64xbf16>
    %37 = vector.shape_cast %36 : vector<1x2x4x4x64xbf16> to vector<2x4x4x64xbf16>
    %38 = vector.shape_cast %37 : vector<2x4x4x64xbf16> to vector<32x64xbf16>
    %c0_37 = arith.constant 0 : index
    %c0_38 = arith.constant 0 : index
    %c0_39 = arith.constant 0 : index
    %39 = vector.load %arg2[%c0_37, %c0_38, %c0_39] : memref<9x64x32xbf16, #tpu.memory_space<vmem>>, vector<1x64x32xbf16>
    %40 = vector.shape_cast %39 : vector<1x64x32xbf16> to vector<64x32xbf16>
    %cst_40 = arith.constant dense<0.000000e+00> : vector<32x32xf32>
    %41 = tpu.matmul %38, %40, %cst_40 {dimension_numbers = #tpu.dot_dimension_numbers<[1], [0], [0], [1], [0, 0, 1, 1], [], []>} : vector<32x64xbf16>, vector<64x32xbf16>, vector<32x32xf32> -> vector<32x32xf32>
    %42 = arith.addf %35, %41 : vector<32x32xf32>
    %c1_41 = arith.constant 1 : index
    %c0_42 = arith.constant 0 : index
    %c0_43 = arith.constant 0 : index
    %c0_44 = arith.constant 0 : index
    %c0_45 = arith.constant 0 : index
    %43 = vector.load %arg8[%c1_41, %c0_42, %c0_43, %c0_44, %c0_45] : memref<4x2x5x5x64xbf16, #tpu.memory_space<vmem>>, vector<1x2x4x4x64xbf16>
    %44 = vector.shape_cast %43 : vector<1x2x4x4x64xbf16> to vector<2x4x4x64xbf16>
    %45 = vector.shape_cast %44 : vector<2x4x4x64xbf16> to vector<32x64xbf16>
    %c1_46 = arith.constant 1 : index
    %c0_47 = arith.constant 0 : index
    %c0_48 = arith.constant 0 : index
    %46 = vector.load %arg2[%c1_46, %c0_47, %c0_48] : memref<9x64x32xbf16, #tpu.memory_space<vmem>>, vector<1x64x32xbf16>
    %47 = vector.shape_cast %46 : vector<1x64x32xbf16> to vector<64x32xbf16>
    %cst_49 = arith.constant dense<0.000000e+00> : vector<32x32xf32>
    %48 = tpu.matmul %45, %47, %cst_49 {dimension_numbers = #tpu.dot_dimension_numbers<[1], [0], [0], [1], [0, 0, 1, 1], [], []>} : vector<32x64xbf16>, vector<64x32xbf16>, vector<32x32xf32> -> vector<32x32xf32>
    %49 = arith.addf %42, %48 : vector<32x32xf32>
    %c0_50 = arith.constant 0 : index
    %c0_51 = arith.constant 0 : index
    %c0_52 = arith.constant 0 : index
    %c1_53 = arith.constant 1 : index
    %c0_54 = arith.constant 0 : index
    %50 = vector.load %arg8[%c0_50, %c0_51, %c0_52, %c1_53, %c0_54] : memref<4x2x5x5x64xbf16, #tpu.memory_space<vmem>>, vector<1x2x4x4x64xbf16>
    %51 = vector.shape_cast %50 : vector<1x2x4x4x64xbf16> to vector<2x4x4x64xbf16>
    %52 = vector.shape_cast %51 : vector<2x4x4x64xbf16> to vector<32x64xbf16>
    %c2_55 = arith.constant 2 : index
    %c0_56 = arith.constant 0 : index
    %c0_57 = arith.constant 0 : index
    %53 = vector.load %arg2[%c2_55, %c0_56, %c0_57] : memref<9x64x32xbf16, #tpu.memory_space<vmem>>, vector<1x64x32xbf16>
    %54 = vector.shape_cast %53 : vector<1x64x32xbf16> to vector<64x32xbf16>
    %cst_58 = arith.constant dense<0.000000e+00> : vector<32x32xf32>
    %55 = tpu.matmul %52, %54, %cst_58 {dimension_numbers = #tpu.dot_dimension_numbers<[1], [0], [0], [1], [0, 0, 1, 1], [], []>} : vector<32x64xbf16>, vector<64x32xbf16>, vector<32x32xf32> -> vector<32x32xf32>
    %56 = arith.addf %49, %55 : vector<32x32xf32>
    %c2_59 = arith.constant 2 : index
    %c0_60 = arith.constant 0 : index
    %c0_61 = arith.constant 0 : index
    %c0_62 = arith.constant 0 : index
    %c0_63 = arith.constant 0 : index
    %57 = vector.load %arg8[%c2_59, %c0_60, %c0_61, %c0_62, %c0_63] : memref<4x2x5x5x64xbf16, #tpu.memory_space<vmem>>, vector<1x2x4x4x64xbf16>
    %58 = vector.shape_cast %57 : vector<1x2x4x4x64xbf16> to vector<2x4x4x64xbf16>
    %59 = vector.shape_cast %58 : vector<2x4x4x64xbf16> to vector<32x64xbf16>
    %c3_64 = arith.constant 3 : index
    %c0_65 = arith.constant 0 : index
    %c0_66 = arith.constant 0 : index
    %60 = vector.load %arg2[%c3_64, %c0_65, %c0_66] : memref<9x64x32xbf16, #tpu.memory_space<vmem>>, vector<1x64x32xbf16>
    %61 = vector.shape_cast %60 : vector<1x64x32xbf16> to vector<64x32xbf16>
    %cst_67 = arith.constant dense<0.000000e+00> : vector<32x32xf32>
    %62 = tpu.matmul %59, %61, %cst_67 {dimension_numbers = #tpu.dot_dimension_numbers<[1], [0], [0], [1], [0, 0, 1, 1], [], []>} : vector<32x64xbf16>, vector<64x32xbf16>, vector<32x32xf32> -> vector<32x32xf32>
    %63 = arith.addf %56, %62 : vector<32x32xf32>
    %c3_68 = arith.constant 3 : index
    %c0_69 = arith.constant 0 : index
    %c0_70 = arith.constant 0 : index
    %c0_71 = arith.constant 0 : index
    %c0_72 = arith.constant 0 : index
    %64 = vector.load %arg8[%c3_68, %c0_69, %c0_70, %c0_71, %c0_72] : memref<4x2x5x5x64xbf16, #tpu.memory_space<vmem>>, vector<1x2x4x4x64xbf16>
    %65 = vector.shape_cast %64 : vector<1x2x4x4x64xbf16> to vector<2x4x4x64xbf16>
    %66 = vector.shape_cast %65 : vector<2x4x4x64xbf16> to vector<32x64xbf16>
    %c4 = arith.constant 4 : index
    %c0_73 = arith.constant 0 : index
    %c0_74 = arith.constant 0 : index
    %67 = vector.load %arg2[%c4, %c0_73, %c0_74] : memref<9x64x32xbf16, #tpu.memory_space<vmem>>, vector<1x64x32xbf16>
    %68 = vector.shape_cast %67 : vector<1x64x32xbf16> to vector<64x32xbf16>
    %cst_75 = arith.constant dense<0.000000e+00> : vector<32x32xf32>
    %69 = tpu.matmul %66, %68, %cst_75 {dimension_numbers = #tpu.dot_dimension_numbers<[1], [0], [0], [1], [0, 0, 1, 1], [], []>} : vector<32x64xbf16>, vector<64x32xbf16>, vector<32x32xf32> -> vector<32x32xf32>
    %70 = arith.addf %63, %69 : vector<32x32xf32>
    %c2_76 = arith.constant 2 : index
    %c0_77 = arith.constant 0 : index
    %c0_78 = arith.constant 0 : index
    %c1_79 = arith.constant 1 : index
    %c0_80 = arith.constant 0 : index
    %71 = vector.load %arg8[%c2_76, %c0_77, %c0_78, %c1_79, %c0_80] : memref<4x2x5x5x64xbf16, #tpu.memory_space<vmem>>, vector<1x2x4x4x64xbf16>
    %72 = vector.shape_cast %71 : vector<1x2x4x4x64xbf16> to vector<2x4x4x64xbf16>
    %73 = vector.shape_cast %72 : vector<2x4x4x64xbf16> to vector<32x64xbf16>
    %c5 = arith.constant 5 : index
    %c0_81 = arith.constant 0 : index
    %c0_82 = arith.constant 0 : index
    %74 = vector.load %arg2[%c5, %c0_81, %c0_82] : memref<9x64x32xbf16, #tpu.memory_space<vmem>>, vector<1x64x32xbf16>
    %75 = vector.shape_cast %74 : vector<1x64x32xbf16> to vector<64x32xbf16>
    %cst_83 = arith.constant dense<0.000000e+00> : vector<32x32xf32>
    %76 = tpu.matmul %73, %75, %cst_83 {dimension_numbers = #tpu.dot_dimension_numbers<[1], [0], [0], [1], [0, 0, 1, 1], [], []>} : vector<32x64xbf16>, vector<64x32xbf16>, vector<32x32xf32> -> vector<32x32xf32>
    %77 = arith.addf %70, %76 : vector<32x32xf32>
    %c0_84 = arith.constant 0 : index
    %c0_85 = arith.constant 0 : index
    %c1_86 = arith.constant 1 : index
    %c0_87 = arith.constant 0 : index
    %c0_88 = arith.constant 0 : index
    %78 = vector.load %arg8[%c0_84, %c0_85, %c1_86, %c0_87, %c0_88] : memref<4x2x5x5x64xbf16, #tpu.memory_space<vmem>>, vector<1x2x4x4x64xbf16>
    %79 = vector.shape_cast %78 : vector<1x2x4x4x64xbf16> to vector<2x4x4x64xbf16>
    %80 = vector.shape_cast %79 : vector<2x4x4x64xbf16> to vector<32x64xbf16>
    %c6 = arith.constant 6 : index
    %c0_89 = arith.constant 0 : index
    %c0_90 = arith.constant 0 : index
    %81 = vector.load %arg2[%c6, %c0_89, %c0_90] : memref<9x64x32xbf16, #tpu.memory_space<vmem>>, vector<1x64x32xbf16>
    %82 = vector.shape_cast %81 : vector<1x64x32xbf16> to vector<64x32xbf16>
    %cst_91 = arith.constant dense<0.000000e+00> : vector<32x32xf32>
    %83 = tpu.matmul %80, %82, %cst_91 {dimension_numbers = #tpu.dot_dimension_numbers<[1], [0], [0], [1], [0, 0, 1, 1], [], []>} : vector<32x64xbf16>, vector<64x32xbf16>, vector<32x32xf32> -> vector<32x32xf32>
    %84 = arith.addf %77, %83 : vector<32x32xf32>
    %c1_92 = arith.constant 1 : index
    %c0_93 = arith.constant 0 : index
    %c1_94 = arith.constant 1 : index
    %c0_95 = arith.constant 0 : index
    %c0_96 = arith.constant 0 : index
    %85 = vector.load %arg8[%c1_92, %c0_93, %c1_94, %c0_95, %c0_96] : memref<4x2x5x5x64xbf16, #tpu.memory_space<vmem>>, vector<1x2x4x4x64xbf16>
    %86 = vector.shape_cast %85 : vector<1x2x4x4x64xbf16> to vector<2x4x4x64xbf16>
    %87 = vector.shape_cast %86 : vector<2x4x4x64xbf16> to vector<32x64xbf16>
    %c7 = arith.constant 7 : index
    %c0_97 = arith.constant 0 : index
    %c0_98 = arith.constant 0 : index
    %88 = vector.load %arg2[%c7, %c0_97, %c0_98] : memref<9x64x32xbf16, #tpu.memory_space<vmem>>, vector<1x64x32xbf16>
    %89 = vector.shape_cast %88 : vector<1x64x32xbf16> to vector<64x32xbf16>
    %cst_99 = arith.constant dense<0.000000e+00> : vector<32x32xf32>
    %90 = tpu.matmul %87, %89, %cst_99 {dimension_numbers = #tpu.dot_dimension_numbers<[1], [0], [0], [1], [0, 0, 1, 1], [], []>} : vector<32x64xbf16>, vector<64x32xbf16>, vector<32x32xf32> -> vector<32x32xf32>
    %91 = arith.addf %84, %90 : vector<32x32xf32>
    %c0_100 = arith.constant 0 : index
    %c0_101 = arith.constant 0 : index
    %c1_102 = arith.constant 1 : index
    %c1_103 = arith.constant 1 : index
    %c0_104 = arith.constant 0 : index
    %92 = vector.load %arg8[%c0_100, %c0_101, %c1_102, %c1_103, %c0_104] : memref<4x2x5x5x64xbf16, #tpu.memory_space<vmem>>, vector<1x2x4x4x64xbf16>
    %93 = vector.shape_cast %92 : vector<1x2x4x4x64xbf16> to vector<2x4x4x64xbf16>
    %94 = vector.shape_cast %93 : vector<2x4x4x64xbf16> to vector<32x64xbf16>
    %c8 = arith.constant 8 : index
    %c0_105 = arith.constant 0 : index
    %c0_106 = arith.constant 0 : index
    %95 = vector.load %arg2[%c8, %c0_105, %c0_106] : memref<9x64x32xbf16, #tpu.memory_space<vmem>>, vector<1x64x32xbf16>
    %96 = vector.shape_cast %95 : vector<1x64x32xbf16> to vector<64x32xbf16>
    %cst_107 = arith.constant dense<0.000000e+00> : vector<32x32xf32>
    %97 = tpu.matmul %94, %96, %cst_107 {dimension_numbers = #tpu.dot_dimension_numbers<[1], [0], [0], [1], [0, 0, 1, 1], [], []>} : vector<32x64xbf16>, vector<64x32xbf16>, vector<32x32xf32> -> vector<32x32xf32>
    %98 = arith.addf %91, %97 : vector<32x32xf32>
    %cst_108 = arith.constant dense<0.000000e+00> : vector<32xf32>
    %99 = vector.multi_reduction <add>, %98, %cst_108 [0] : vector<32x32xf32> to vector<32xf32>
    %100 = vector.shape_cast %99 : vector<32xf32> to vector<1x32xf32>
    %c0_109 = arith.constant 0 : index
    %c0_110 = arith.constant 0 : index
    %101 = vector.load %arg6[%c0_109, %c0_110] : memref<1x32xf32, #tpu.memory_space<vmem>>, vector<1x32xf32>
    tpu.vector_store %arg6[%c0_109, %c0_110], %100 {strides = array<i32>} : memref<1x32xf32, #tpu.memory_space<vmem>>, vector<1x32xf32>,
    %102 = arith.mulf %98, %98 : vector<32x32xf32>
    %cst_111 = arith.constant dense<0.000000e+00> : vector<32xf32>
    %103 = vector.multi_reduction <add>, %102, %cst_111 [0] : vector<32x32xf32> to vector<32xf32>
    %104 = vector.shape_cast %103 : vector<32xf32> to vector<1x32xf32>
    %c0_112 = arith.constant 0 : index
    %c0_113 = arith.constant 0 : index
    %105 = vector.load %arg7[%c0_112, %c0_113] : memref<1x32xf32, #tpu.memory_space<vmem>>, vector<1x32xf32>
    tpu.vector_store %arg7[%c0_112, %c0_113], %104 {strides = array<i32>} : memref<1x32xf32, #tpu.memory_space<vmem>>, vector<1x32xf32>,
    %106 = arith.truncf %98 : vector<32x32xf32> to vector<32x32xbf16>
    %c0_114 = arith.constant 0 : index
    %c0_115 = arith.constant 0 : index
    %107 = vector.load %arg5[%c0_114, %c0_115] : memref<32x32xbf16, #tpu.memory_space<vmem>>, vector<32x32xbf16>
    tpu.vector_store %arg5[%c0_114, %c0_115], %106 {strides = array<i32>} : memref<32x32xbf16, #tpu.memory_space<vmem>>, vector<32x32xbf16>,
    return
  }
  func.func @transform_0(%arg0: i32) -> (i32, i32, i32, i32, i32) {
    %c0_i32 = arith.constant 0 : i32
    %c0_i32_0 = arith.constant 0 : i32
    %c0_i32_1 = arith.constant 0 : i32
    %c0_i32_2 = arith.constant 0 : i32
    %c0_i32_3 = arith.constant 0 : i32
    %c0_i32_4 = arith.constant 0 : i32
    return %c0_i32, %c0_i32_0, %c0_i32_1, %c0_i32_2, %c0_i32_3 : i32, i32, i32, i32, i32
  }
  func.func @transform_1(%arg0: i32) -> (i32, i32, i32) {
    %c0_i32 = arith.constant 0 : i32
    %c0_i32_0 = arith.constant 0 : i32
    %c0_i32_1 = arith.constant 0 : i32
    return %c0_i32, %c0_i32_0, %arg0 : i32, i32, i32
  }
  func.func @transform_2(%arg0: i32) -> (i32, i32) {
    %c0_i32 = arith.constant 0 : i32
    %c0_i32_0 = arith.constant 0 : i32
    %c0_i32_1 = arith.constant 0 : i32
    return %c0_i32, %c0_i32_0 : i32, i32
  }
  func.func @transform_3(%arg0: i32) -> (i32, i32) {
    %c0_i32 = arith.constant 0 : i32
    %c0_i32_0 = arith.constant 0 : i32
    %c0_i32_1 = arith.constant 0 : i32
    return %c0_i32, %c0_i32_0 : i32, i32
  }
  func.func @transform_4(%arg0: i32) -> (i32, i32) {
    %c0_i32 = arith.constant 0 : i32
    %c0_i32_0 = arith.constant 0 : i32
    return %c0_i32, %arg0 : i32, i32
  }
  func.func @transform_5(%arg0: i32) -> (i32, i32) {
    %c0_i32 = arith.constant 0 : i32
    %c0_i32_0 = arith.constant 0 : i32
    return %c0_i32, %arg0 : i32, i32
  }
  func.func @transform_6(%arg0: i32) -> (i32, i32) {
    %c0_i32 = arith.constant 0 : i32
    %c0_i32_0 = arith.constant 0 : i32
    return %c0_i32, %arg0 : i32, i32
  }
}

module attributes {stable_mosaic.version = 11 : i64} {
  func.func @kernel(%arg0: i32, %arg1: memref<1x2x4x4x32xbf16, #tpu.memory_space<vmem>>, %arg2: memref<9x32x64xbf16, #tpu.memory_space<vmem>>, %arg3: memref<1x32xf32, #tpu.memory_space<vmem>>, %arg4: memref<1x32xf32, #tpu.memory_space<vmem>>, %arg5: memref<32x64xbf16, #tpu.memory_space<vmem>>, %arg6: memref<32x64xbf16, #tpu.memory_space<vmem>>, %arg7: memref<1x64xf32, #tpu.memory_space<vmem>>, %arg8: memref<1x64xf32, #tpu.memory_space<vmem>>, %arg9: memref<1x2x6x6x32xbf16, #tpu.memory_space<vmem>>) attributes {dimension_semantics = [#tpu.dimension_semantics<parallel>], iteration_bounds = array<i64: 1>, scalar_prefetch = 0 : i64, scratch_operands = 1 : i64, tpu.core_type = #tpu.core_type<tc>, window_params = [{pipeline_mode = #tpu.pipeline_mode<synchronous>, transform_indices = @transform_0, window_bounds = array<i64: 1, 2, 4, 4, 32>}, {transform_indices = @transform_1, window_bounds = array<i64: 9, 32, 64>}, {pipeline_mode = #tpu.pipeline_mode<synchronous>, transform_indices = @transform_2, window_bounds = array<i64: 1, 32>}, {pipeline_mode = #tpu.pipeline_mode<synchronous>, transform_indices = @transform_3, window_bounds = array<i64: 1, 32>}, {transform_indices = @transform_4, window_bounds = array<i64: 32, 64>}, {transform_indices = @transform_5, window_bounds = array<i64: 32, 64>}, {transform_indices = @transform_6, window_bounds = array<i64: 1, 64>}, {transform_indices = @transform_7, window_bounds = array<i64: 1, 64>}]} {
    %c0 = arith.constant 0 : index
    %c0_0 = arith.constant 0 : index
    %c0_1 = arith.constant 0 : index
    %c0_2 = arith.constant 0 : index
    %c0_3 = arith.constant 0 : index
    %0 = vector.load %arg1[%c0, %c0_0, %c0_1, %c0_2, %c0_3] : memref<1x2x4x4x32xbf16, #tpu.memory_space<vmem>>, vector<1x2x4x4x32xbf16>
    %1 = arith.extf %0 : vector<1x2x4x4x32xbf16> to vector<1x2x4x4x32xf32>
    %c0_4 = arith.constant 0 : index
    %c0_5 = arith.constant 0 : index
    %2 = vector.load %arg3[%c0_4, %c0_5] : memref<1x32xf32, #tpu.memory_space<vmem>>, vector<1x32xf32>
    %3 = vector.shape_cast %2 : vector<1x32xf32> to vector<1x1x1x1x32xf32>
    %4 = vector.broadcast %3 : vector<1x1x1x1x32xf32> to vector<1x2x4x4x32xf32>
    %5 = arith.mulf %1, %4 : vector<1x2x4x4x32xf32>
    %c0_6 = arith.constant 0 : index
    %c0_7 = arith.constant 0 : index
    %6 = vector.load %arg4[%c0_6, %c0_7] : memref<1x32xf32, #tpu.memory_space<vmem>>, vector<1x32xf32>
    %7 = vector.shape_cast %6 : vector<1x32xf32> to vector<1x1x1x1x32xf32>
    %8 = vector.broadcast %7 : vector<1x1x1x1x32xf32> to vector<1x2x4x4x32xf32>
    %9 = arith.addf %5, %8 : vector<1x2x4x4x32xf32>
    %cst = arith.constant 0.000000e+00 : f32
    %10 = vector.broadcast %cst : f32 to vector<1x2x4x4x32xf32>
    %11 = arith.maximumf %9, %10 : vector<1x2x4x4x32xf32>
    %12 = arith.truncf %11 : vector<1x2x4x4x32xf32> to vector<1x2x4x4x32xbf16>
    %cst_8 = arith.constant 0.000000e+00 : bf16
    %13 = vector.broadcast %cst_8 : bf16 to vector<1x2x6x6x32xbf16>
    %c0_9 = arith.constant 0 : index
    %c0_10 = arith.constant 0 : index
    %c0_11 = arith.constant 0 : index
    %c0_12 = arith.constant 0 : index
    %c0_13 = arith.constant 0 : index
    %14 = vector.load %arg9[%c0_9, %c0_10, %c0_11, %c0_12, %c0_13] : memref<1x2x6x6x32xbf16, #tpu.memory_space<vmem>>, vector<1x2x6x6x32xbf16>
    tpu.vector_store %arg9[%c0_9, %c0_10, %c0_11, %c0_12, %c0_13], %13 {strides = array<i32>} : memref<1x2x6x6x32xbf16, #tpu.memory_space<vmem>>, vector<1x2x6x6x32xbf16>,
    %15 = vector.shape_cast %12 : vector<1x2x4x4x32xbf16> to vector<2x4x4x32xbf16>
    %c0_14 = arith.constant 0 : index
    %c0_15 = arith.constant 0 : index
    %c1 = arith.constant 1 : index
    %c1_16 = arith.constant 1 : index
    %c0_17 = arith.constant 0 : index
    %16 = vector.load %arg9[%c0_14, %c0_15, %c1, %c1_16, %c0_17] : memref<1x2x6x6x32xbf16, #tpu.memory_space<vmem>>, vector<1x2x4x4x32xbf16>
    %17 = vector.shape_cast %16 : vector<1x2x4x4x32xbf16> to vector<2x4x4x32xbf16>
    %18 = vector.shape_cast %15 : vector<2x4x4x32xbf16> to vector<1x2x4x4x32xbf16>
    tpu.vector_store %arg9[%c0_14, %c0_15, %c1, %c1_16, %c0_17], %18 {strides = array<i32>} : memref<1x2x6x6x32xbf16, #tpu.memory_space<vmem>>, vector<1x2x4x4x32xbf16>,
    %cst_18 = arith.constant 0.000000e+00 : f32
    %19 = vector.broadcast %cst_18 : f32 to vector<32x64xf32>
    %c0_19 = arith.constant 0 : index
    %c0_20 = arith.constant 0 : index
    %c0_21 = arith.constant 0 : index
    %c0_22 = arith.constant 0 : index
    %c0_23 = arith.constant 0 : index
    %20 = vector.load %arg9[%c0_19, %c0_20, %c0_21, %c0_22, %c0_23] : memref<1x2x6x6x32xbf16, #tpu.memory_space<vmem>>, vector<1x2x4x4x32xbf16>
    %21 = vector.shape_cast %20 : vector<1x2x4x4x32xbf16> to vector<2x4x4x32xbf16>
    %22 = vector.shape_cast %21 : vector<2x4x4x32xbf16> to vector<32x32xbf16>
    %c0_24 = arith.constant 0 : index
    %c0_25 = arith.constant 0 : index
    %c0_26 = arith.constant 0 : index
    %23 = vector.load %arg2[%c0_24, %c0_25, %c0_26] : memref<9x32x64xbf16, #tpu.memory_space<vmem>>, vector<1x32x64xbf16>
    %24 = vector.shape_cast %23 : vector<1x32x64xbf16> to vector<32x64xbf16>
    %cst_27 = arith.constant dense<0.000000e+00> : vector<32x64xf32>
    %25 = tpu.matmul %22, %24, %cst_27 {dimension_numbers = #tpu.dot_dimension_numbers<[1], [0], [0], [1], [0, 0, 1, 1], [], []>} : vector<32x32xbf16>, vector<32x64xbf16>, vector<32x64xf32> -> vector<32x64xf32>
    %26 = arith.addf %19, %25 : vector<32x64xf32>
    %c0_28 = arith.constant 0 : index
    %c0_29 = arith.constant 0 : index
    %c0_30 = arith.constant 0 : index
    %c1_31 = arith.constant 1 : index
    %c0_32 = arith.constant 0 : index
    %27 = vector.load %arg9[%c0_28, %c0_29, %c0_30, %c1_31, %c0_32] : memref<1x2x6x6x32xbf16, #tpu.memory_space<vmem>>, vector<1x2x4x4x32xbf16>
    %28 = vector.shape_cast %27 : vector<1x2x4x4x32xbf16> to vector<2x4x4x32xbf16>
    %29 = vector.shape_cast %28 : vector<2x4x4x32xbf16> to vector<32x32xbf16>
    %c1_33 = arith.constant 1 : index
    %c0_34 = arith.constant 0 : index
    %c0_35 = arith.constant 0 : index
    %30 = vector.load %arg2[%c1_33, %c0_34, %c0_35] : memref<9x32x64xbf16, #tpu.memory_space<vmem>>, vector<1x32x64xbf16>
    %31 = vector.shape_cast %30 : vector<1x32x64xbf16> to vector<32x64xbf16>
    %cst_36 = arith.constant dense<0.000000e+00> : vector<32x64xf32>
    %32 = tpu.matmul %29, %31, %cst_36 {dimension_numbers = #tpu.dot_dimension_numbers<[1], [0], [0], [1], [0, 0, 1, 1], [], []>} : vector<32x32xbf16>, vector<32x64xbf16>, vector<32x64xf32> -> vector<32x64xf32>
    %33 = arith.addf %26, %32 : vector<32x64xf32>
    %c0_37 = arith.constant 0 : index
    %c0_38 = arith.constant 0 : index
    %c0_39 = arith.constant 0 : index
    %c2 = arith.constant 2 : index
    %c0_40 = arith.constant 0 : index
    %34 = vector.load %arg9[%c0_37, %c0_38, %c0_39, %c2, %c0_40] : memref<1x2x6x6x32xbf16, #tpu.memory_space<vmem>>, vector<1x2x4x4x32xbf16>
    %35 = vector.shape_cast %34 : vector<1x2x4x4x32xbf16> to vector<2x4x4x32xbf16>
    %36 = vector.shape_cast %35 : vector<2x4x4x32xbf16> to vector<32x32xbf16>
    %c2_41 = arith.constant 2 : index
    %c0_42 = arith.constant 0 : index
    %c0_43 = arith.constant 0 : index
    %37 = vector.load %arg2[%c2_41, %c0_42, %c0_43] : memref<9x32x64xbf16, #tpu.memory_space<vmem>>, vector<1x32x64xbf16>
    %38 = vector.shape_cast %37 : vector<1x32x64xbf16> to vector<32x64xbf16>
    %cst_44 = arith.constant dense<0.000000e+00> : vector<32x64xf32>
    %39 = tpu.matmul %36, %38, %cst_44 {dimension_numbers = #tpu.dot_dimension_numbers<[1], [0], [0], [1], [0, 0, 1, 1], [], []>} : vector<32x32xbf16>, vector<32x64xbf16>, vector<32x64xf32> -> vector<32x64xf32>
    %40 = arith.addf %33, %39 : vector<32x64xf32>
    %c0_45 = arith.constant 0 : index
    %c0_46 = arith.constant 0 : index
    %c1_47 = arith.constant 1 : index
    %c0_48 = arith.constant 0 : index
    %c0_49 = arith.constant 0 : index
    %41 = vector.load %arg9[%c0_45, %c0_46, %c1_47, %c0_48, %c0_49] : memref<1x2x6x6x32xbf16, #tpu.memory_space<vmem>>, vector<1x2x4x4x32xbf16>
    %42 = vector.shape_cast %41 : vector<1x2x4x4x32xbf16> to vector<2x4x4x32xbf16>
    %43 = vector.shape_cast %42 : vector<2x4x4x32xbf16> to vector<32x32xbf16>
    %c3 = arith.constant 3 : index
    %c0_50 = arith.constant 0 : index
    %c0_51 = arith.constant 0 : index
    %44 = vector.load %arg2[%c3, %c0_50, %c0_51] : memref<9x32x64xbf16, #tpu.memory_space<vmem>>, vector<1x32x64xbf16>
    %45 = vector.shape_cast %44 : vector<1x32x64xbf16> to vector<32x64xbf16>
    %cst_52 = arith.constant dense<0.000000e+00> : vector<32x64xf32>
    %46 = tpu.matmul %43, %45, %cst_52 {dimension_numbers = #tpu.dot_dimension_numbers<[1], [0], [0], [1], [0, 0, 1, 1], [], []>} : vector<32x32xbf16>, vector<32x64xbf16>, vector<32x64xf32> -> vector<32x64xf32>
    %47 = arith.addf %40, %46 : vector<32x64xf32>
    %c0_53 = arith.constant 0 : index
    %c0_54 = arith.constant 0 : index
    %c1_55 = arith.constant 1 : index
    %c1_56 = arith.constant 1 : index
    %c0_57 = arith.constant 0 : index
    %48 = vector.load %arg9[%c0_53, %c0_54, %c1_55, %c1_56, %c0_57] : memref<1x2x6x6x32xbf16, #tpu.memory_space<vmem>>, vector<1x2x4x4x32xbf16>
    %49 = vector.shape_cast %48 : vector<1x2x4x4x32xbf16> to vector<2x4x4x32xbf16>
    %50 = vector.shape_cast %49 : vector<2x4x4x32xbf16> to vector<32x32xbf16>
    %c4 = arith.constant 4 : index
    %c0_58 = arith.constant 0 : index
    %c0_59 = arith.constant 0 : index
    %51 = vector.load %arg2[%c4, %c0_58, %c0_59] : memref<9x32x64xbf16, #tpu.memory_space<vmem>>, vector<1x32x64xbf16>
    %52 = vector.shape_cast %51 : vector<1x32x64xbf16> to vector<32x64xbf16>
    %cst_60 = arith.constant dense<0.000000e+00> : vector<32x64xf32>
    %53 = tpu.matmul %50, %52, %cst_60 {dimension_numbers = #tpu.dot_dimension_numbers<[1], [0], [0], [1], [0, 0, 1, 1], [], []>} : vector<32x32xbf16>, vector<32x64xbf16>, vector<32x64xf32> -> vector<32x64xf32>
    %54 = arith.addf %47, %53 : vector<32x64xf32>
    %c0_61 = arith.constant 0 : index
    %c0_62 = arith.constant 0 : index
    %c1_63 = arith.constant 1 : index
    %c2_64 = arith.constant 2 : index
    %c0_65 = arith.constant 0 : index
    %55 = vector.load %arg9[%c0_61, %c0_62, %c1_63, %c2_64, %c0_65] : memref<1x2x6x6x32xbf16, #tpu.memory_space<vmem>>, vector<1x2x4x4x32xbf16>
    %56 = vector.shape_cast %55 : vector<1x2x4x4x32xbf16> to vector<2x4x4x32xbf16>
    %57 = vector.shape_cast %56 : vector<2x4x4x32xbf16> to vector<32x32xbf16>
    %c5 = arith.constant 5 : index
    %c0_66 = arith.constant 0 : index
    %c0_67 = arith.constant 0 : index
    %58 = vector.load %arg2[%c5, %c0_66, %c0_67] : memref<9x32x64xbf16, #tpu.memory_space<vmem>>, vector<1x32x64xbf16>
    %59 = vector.shape_cast %58 : vector<1x32x64xbf16> to vector<32x64xbf16>
    %cst_68 = arith.constant dense<0.000000e+00> : vector<32x64xf32>
    %60 = tpu.matmul %57, %59, %cst_68 {dimension_numbers = #tpu.dot_dimension_numbers<[1], [0], [0], [1], [0, 0, 1, 1], [], []>} : vector<32x32xbf16>, vector<32x64xbf16>, vector<32x64xf32> -> vector<32x64xf32>
    %61 = arith.addf %54, %60 : vector<32x64xf32>
    %c0_69 = arith.constant 0 : index
    %c0_70 = arith.constant 0 : index
    %c2_71 = arith.constant 2 : index
    %c0_72 = arith.constant 0 : index
    %c0_73 = arith.constant 0 : index
    %62 = vector.load %arg9[%c0_69, %c0_70, %c2_71, %c0_72, %c0_73] : memref<1x2x6x6x32xbf16, #tpu.memory_space<vmem>>, vector<1x2x4x4x32xbf16>
    %63 = vector.shape_cast %62 : vector<1x2x4x4x32xbf16> to vector<2x4x4x32xbf16>
    %64 = vector.shape_cast %63 : vector<2x4x4x32xbf16> to vector<32x32xbf16>
    %c6 = arith.constant 6 : index
    %c0_74 = arith.constant 0 : index
    %c0_75 = arith.constant 0 : index
    %65 = vector.load %arg2[%c6, %c0_74, %c0_75] : memref<9x32x64xbf16, #tpu.memory_space<vmem>>, vector<1x32x64xbf16>
    %66 = vector.shape_cast %65 : vector<1x32x64xbf16> to vector<32x64xbf16>
    %cst_76 = arith.constant dense<0.000000e+00> : vector<32x64xf32>
    %67 = tpu.matmul %64, %66, %cst_76 {dimension_numbers = #tpu.dot_dimension_numbers<[1], [0], [0], [1], [0, 0, 1, 1], [], []>} : vector<32x32xbf16>, vector<32x64xbf16>, vector<32x64xf32> -> vector<32x64xf32>
    %68 = arith.addf %61, %67 : vector<32x64xf32>
    %c0_77 = arith.constant 0 : index
    %c0_78 = arith.constant 0 : index
    %c2_79 = arith.constant 2 : index
    %c1_80 = arith.constant 1 : index
    %c0_81 = arith.constant 0 : index
    %69 = vector.load %arg9[%c0_77, %c0_78, %c2_79, %c1_80, %c0_81] : memref<1x2x6x6x32xbf16, #tpu.memory_space<vmem>>, vector<1x2x4x4x32xbf16>
    %70 = vector.shape_cast %69 : vector<1x2x4x4x32xbf16> to vector<2x4x4x32xbf16>
    %71 = vector.shape_cast %70 : vector<2x4x4x32xbf16> to vector<32x32xbf16>
    %c7 = arith.constant 7 : index
    %c0_82 = arith.constant 0 : index
    %c0_83 = arith.constant 0 : index
    %72 = vector.load %arg2[%c7, %c0_82, %c0_83] : memref<9x32x64xbf16, #tpu.memory_space<vmem>>, vector<1x32x64xbf16>
    %73 = vector.shape_cast %72 : vector<1x32x64xbf16> to vector<32x64xbf16>
    %cst_84 = arith.constant dense<0.000000e+00> : vector<32x64xf32>
    %74 = tpu.matmul %71, %73, %cst_84 {dimension_numbers = #tpu.dot_dimension_numbers<[1], [0], [0], [1], [0, 0, 1, 1], [], []>} : vector<32x32xbf16>, vector<32x64xbf16>, vector<32x64xf32> -> vector<32x64xf32>
    %75 = arith.addf %68, %74 : vector<32x64xf32>
    %c0_85 = arith.constant 0 : index
    %c0_86 = arith.constant 0 : index
    %c2_87 = arith.constant 2 : index
    %c2_88 = arith.constant 2 : index
    %c0_89 = arith.constant 0 : index
    %76 = vector.load %arg9[%c0_85, %c0_86, %c2_87, %c2_88, %c0_89] : memref<1x2x6x6x32xbf16, #tpu.memory_space<vmem>>, vector<1x2x4x4x32xbf16>
    %77 = vector.shape_cast %76 : vector<1x2x4x4x32xbf16> to vector<2x4x4x32xbf16>
    %78 = vector.shape_cast %77 : vector<2x4x4x32xbf16> to vector<32x32xbf16>
    %c8 = arith.constant 8 : index
    %c0_90 = arith.constant 0 : index
    %c0_91 = arith.constant 0 : index
    %79 = vector.load %arg2[%c8, %c0_90, %c0_91] : memref<9x32x64xbf16, #tpu.memory_space<vmem>>, vector<1x32x64xbf16>
    %80 = vector.shape_cast %79 : vector<1x32x64xbf16> to vector<32x64xbf16>
    %cst_92 = arith.constant dense<0.000000e+00> : vector<32x64xf32>
    %81 = tpu.matmul %78, %80, %cst_92 {dimension_numbers = #tpu.dot_dimension_numbers<[1], [0], [0], [1], [0, 0, 1, 1], [], []>} : vector<32x32xbf16>, vector<32x64xbf16>, vector<32x64xf32> -> vector<32x64xf32>
    %82 = arith.addf %75, %81 : vector<32x64xf32>
    %c0_93 = arith.constant 0 : index
    %c0_94 = arith.constant 0 : index
    %83 = vector.load %arg5[%c0_93, %c0_94] : memref<32x64xbf16, #tpu.memory_space<vmem>>, vector<32x64xbf16>
    %84 = arith.extf %83 : vector<32x64xbf16> to vector<32x64xf32>
    %85 = arith.addf %82, %84 : vector<32x64xf32>
    %cst_95 = arith.constant dense<0.000000e+00> : vector<64xf32>
    %86 = vector.multi_reduction <add>, %85, %cst_95 [0] : vector<32x64xf32> to vector<64xf32>
    %87 = vector.shape_cast %86 : vector<64xf32> to vector<1x64xf32>
    %c0_96 = arith.constant 0 : index
    %c0_97 = arith.constant 0 : index
    %88 = vector.load %arg7[%c0_96, %c0_97] : memref<1x64xf32, #tpu.memory_space<vmem>>, vector<1x64xf32>
    tpu.vector_store %arg7[%c0_96, %c0_97], %87 {strides = array<i32>} : memref<1x64xf32, #tpu.memory_space<vmem>>, vector<1x64xf32>,
    %89 = arith.mulf %85, %85 : vector<32x64xf32>
    %cst_98 = arith.constant dense<0.000000e+00> : vector<64xf32>
    %90 = vector.multi_reduction <add>, %89, %cst_98 [0] : vector<32x64xf32> to vector<64xf32>
    %91 = vector.shape_cast %90 : vector<64xf32> to vector<1x64xf32>
    %c0_99 = arith.constant 0 : index
    %c0_100 = arith.constant 0 : index
    %92 = vector.load %arg8[%c0_99, %c0_100] : memref<1x64xf32, #tpu.memory_space<vmem>>, vector<1x64xf32>
    tpu.vector_store %arg8[%c0_99, %c0_100], %91 {strides = array<i32>} : memref<1x64xf32, #tpu.memory_space<vmem>>, vector<1x64xf32>,
    %93 = arith.truncf %85 : vector<32x64xf32> to vector<32x64xbf16>
    %c0_101 = arith.constant 0 : index
    %c0_102 = arith.constant 0 : index
    %94 = vector.load %arg6[%c0_101, %c0_102] : memref<32x64xbf16, #tpu.memory_space<vmem>>, vector<32x64xbf16>
    tpu.vector_store %arg6[%c0_101, %c0_102], %93 {strides = array<i32>} : memref<32x64xbf16, #tpu.memory_space<vmem>>, vector<32x64xbf16>,
    return
  }
  func.func @transform_0(%arg0: i32) -> (i32, i32, i32, i32, i32) {
    %c0_i32 = arith.constant 0 : i32
    %c0_i32_0 = arith.constant 0 : i32
    %c0_i32_1 = arith.constant 0 : i32
    %c0_i32_2 = arith.constant 0 : i32
    %c0_i32_3 = arith.constant 0 : i32
    %c0_i32_4 = arith.constant 0 : i32
    return %c0_i32, %c0_i32_0, %c0_i32_1, %c0_i32_2, %c0_i32_3 : i32, i32, i32, i32, i32
  }
  func.func @transform_1(%arg0: i32) -> (i32, i32, i32) {
    %c0_i32 = arith.constant 0 : i32
    %c0_i32_0 = arith.constant 0 : i32
    %c0_i32_1 = arith.constant 0 : i32
    return %c0_i32, %c0_i32_0, %arg0 : i32, i32, i32
  }
  func.func @transform_2(%arg0: i32) -> (i32, i32) {
    %c0_i32 = arith.constant 0 : i32
    %c0_i32_0 = arith.constant 0 : i32
    %c0_i32_1 = arith.constant 0 : i32
    return %c0_i32, %c0_i32_0 : i32, i32
  }
  func.func @transform_3(%arg0: i32) -> (i32, i32) {
    %c0_i32 = arith.constant 0 : i32
    %c0_i32_0 = arith.constant 0 : i32
    %c0_i32_1 = arith.constant 0 : i32
    return %c0_i32, %c0_i32_0 : i32, i32
  }
  func.func @transform_4(%arg0: i32) -> (i32, i32) {
    %c0_i32 = arith.constant 0 : i32
    %c0_i32_0 = arith.constant 0 : i32
    return %c0_i32, %arg0 : i32, i32
  }
  func.func @transform_5(%arg0: i32) -> (i32, i32) {
    %c0_i32 = arith.constant 0 : i32
    %c0_i32_0 = arith.constant 0 : i32
    return %c0_i32, %arg0 : i32, i32
  }
  func.func @transform_6(%arg0: i32) -> (i32, i32) {
    %c0_i32 = arith.constant 0 : i32
    %c0_i32_0 = arith.constant 0 : i32
    return %c0_i32, %arg0 : i32, i32
  }
  func.func @transform_7(%arg0: i32) -> (i32, i32) {
    %c0_i32 = arith.constant 0 : i32
    %c0_i32_0 = arith.constant 0 : i32
    return %c0_i32, %arg0 : i32, i32
  }
}

module attributes {stable_mosaic.version = 11 : i64} {
  func.func @kernel(%arg0: i32, %arg1: memref<4x2x2x2x64xbf16, #tpu.memory_space<vmem>>, %arg2: memref<9x64x32xbf16, #tpu.memory_space<vmem>>, %arg3: memref<1x64xf32, #tpu.memory_space<vmem>>, %arg4: memref<1x64xf32, #tpu.memory_space<vmem>>, %arg5: memref<8x32xbf16, #tpu.memory_space<vmem>>, %arg6: memref<1x32xf32, #tpu.memory_space<vmem>>, %arg7: memref<1x32xf32, #tpu.memory_space<vmem>>, %arg8: memref<4x2x3x3x64xbf16, #tpu.memory_space<vmem>>) attributes {dimension_semantics = [#tpu.dimension_semantics<parallel>], iteration_bounds = array<i64: 1>, scalar_prefetch = 0 : i64, scratch_operands = 1 : i64, tpu.core_type = #tpu.core_type<tc>, window_params = [{pipeline_mode = #tpu.pipeline_mode<synchronous>, transform_indices = @transform_0, window_bounds = array<i64: 4, 2, 2, 2, 64>}, {transform_indices = @transform_1, window_bounds = array<i64: 9, 64, 32>}, {pipeline_mode = #tpu.pipeline_mode<synchronous>, transform_indices = @transform_2, window_bounds = array<i64: 1, 64>}, {pipeline_mode = #tpu.pipeline_mode<synchronous>, transform_indices = @transform_3, window_bounds = array<i64: 1, 64>}, {transform_indices = @transform_4, window_bounds = array<i64: 8, 32>}, {transform_indices = @transform_5, window_bounds = array<i64: 1, 32>}, {transform_indices = @transform_6, window_bounds = array<i64: 1, 32>}]} {
    %c0 = arith.constant 0 : index
    %c0_0 = arith.constant 0 : index
    %c0_1 = arith.constant 0 : index
    %c0_2 = arith.constant 0 : index
    %c0_3 = arith.constant 0 : index
    %0 = vector.load %arg1[%c0, %c0_0, %c0_1, %c0_2, %c0_3] : memref<4x2x2x2x64xbf16, #tpu.memory_space<vmem>>, vector<4x2x2x2x64xbf16>
    %1 = arith.extf %0 : vector<4x2x2x2x64xbf16> to vector<4x2x2x2x64xf32>
    %c0_4 = arith.constant 0 : index
    %c0_5 = arith.constant 0 : index
    %2 = vector.load %arg3[%c0_4, %c0_5] : memref<1x64xf32, #tpu.memory_space<vmem>>, vector<1x64xf32>
    %3 = vector.shape_cast %2 : vector<1x64xf32> to vector<1x1x1x1x64xf32>
    %4 = vector.broadcast %3 : vector<1x1x1x1x64xf32> to vector<4x2x2x2x64xf32>
    %5 = arith.mulf %1, %4 : vector<4x2x2x2x64xf32>
    %c0_6 = arith.constant 0 : index
    %c0_7 = arith.constant 0 : index
    %6 = vector.load %arg4[%c0_6, %c0_7] : memref<1x64xf32, #tpu.memory_space<vmem>>, vector<1x64xf32>
    %7 = vector.shape_cast %6 : vector<1x64xf32> to vector<1x1x1x1x64xf32>
    %8 = vector.broadcast %7 : vector<1x1x1x1x64xf32> to vector<4x2x2x2x64xf32>
    %9 = arith.addf %5, %8 : vector<4x2x2x2x64xf32>
    %cst = arith.constant 0.000000e+00 : f32
    %10 = vector.broadcast %cst : f32 to vector<4x2x2x2x64xf32>
    %11 = arith.maximumf %9, %10 : vector<4x2x2x2x64xf32>
    %12 = arith.truncf %11 : vector<4x2x2x2x64xf32> to vector<4x2x2x2x64xbf16>
    %cst_8 = arith.constant 0.000000e+00 : bf16
    %13 = vector.broadcast %cst_8 : bf16 to vector<4x2x3x3x64xbf16>
    %c0_9 = arith.constant 0 : index
    %c0_10 = arith.constant 0 : index
    %c0_11 = arith.constant 0 : index
    %c0_12 = arith.constant 0 : index
    %c0_13 = arith.constant 0 : index
    %14 = vector.load %arg8[%c0_9, %c0_10, %c0_11, %c0_12, %c0_13] : memref<4x2x3x3x64xbf16, #tpu.memory_space<vmem>>, vector<4x2x3x3x64xbf16>
    tpu.vector_store %arg8[%c0_9, %c0_10, %c0_11, %c0_12, %c0_13], %13 {strides = array<i32>} : memref<4x2x3x3x64xbf16, #tpu.memory_space<vmem>>, vector<4x2x3x3x64xbf16>,
    %15 = vector.extract_strided_slice %12 {offsets = [0, 0, 0, 0, 0], sizes = [1, 2, 2, 2, 64], strides = [1, 1, 1, 1, 1]} : vector<4x2x2x2x64xbf16> to vector<1x2x2x2x64xbf16>
    %16 = vector.shape_cast %15 : vector<1x2x2x2x64xbf16> to vector<2x2x2x64xbf16>
    %c3 = arith.constant 3 : index
    %c0_14 = arith.constant 0 : index
    %c0_15 = arith.constant 0 : index
    %c0_16 = arith.constant 0 : index
    %c0_17 = arith.constant 0 : index
    %17 = vector.load %arg8[%c3, %c0_14, %c0_15, %c0_16, %c0_17] : memref<4x2x3x3x64xbf16, #tpu.memory_space<vmem>>, vector<1x2x2x2x64xbf16>
    %18 = vector.shape_cast %17 : vector<1x2x2x2x64xbf16> to vector<2x2x2x64xbf16>
    %19 = vector.shape_cast %16 : vector<2x2x2x64xbf16> to vector<1x2x2x2x64xbf16>
    tpu.vector_store %arg8[%c3, %c0_14, %c0_15, %c0_16, %c0_17], %19 {strides = array<i32>} : memref<4x2x3x3x64xbf16, #tpu.memory_space<vmem>>, vector<1x2x2x2x64xbf16>,
    %20 = vector.extract_strided_slice %12 {offsets = [1, 0, 0, 0, 0], sizes = [1, 2, 2, 2, 64], strides = [1, 1, 1, 1, 1]} : vector<4x2x2x2x64xbf16> to vector<1x2x2x2x64xbf16>
    %21 = vector.shape_cast %20 : vector<1x2x2x2x64xbf16> to vector<2x2x2x64xbf16>
    %c2 = arith.constant 2 : index
    %c0_18 = arith.constant 0 : index
    %c0_19 = arith.constant 0 : index
    %c1 = arith.constant 1 : index
    %c0_20 = arith.constant 0 : index
    %22 = vector.load %arg8[%c2, %c0_18, %c0_19, %c1, %c0_20] : memref<4x2x3x3x64xbf16, #tpu.memory_space<vmem>>, vector<1x2x2x2x64xbf16>
    %23 = vector.shape_cast %22 : vector<1x2x2x2x64xbf16> to vector<2x2x2x64xbf16>
    %24 = vector.shape_cast %21 : vector<2x2x2x64xbf16> to vector<1x2x2x2x64xbf16>
    tpu.vector_store %arg8[%c2, %c0_18, %c0_19, %c1, %c0_20], %24 {strides = array<i32>} : memref<4x2x3x3x64xbf16, #tpu.memory_space<vmem>>, vector<1x2x2x2x64xbf16>,
    %25 = vector.extract_strided_slice %12 {offsets = [2, 0, 0, 0, 0], sizes = [1, 2, 2, 2, 64], strides = [1, 1, 1, 1, 1]} : vector<4x2x2x2x64xbf16> to vector<1x2x2x2x64xbf16>
    %26 = vector.shape_cast %25 : vector<1x2x2x2x64xbf16> to vector<2x2x2x64xbf16>
    %c1_21 = arith.constant 1 : index
    %c0_22 = arith.constant 0 : index
    %c1_23 = arith.constant 1 : index
    %c0_24 = arith.constant 0 : index
    %c0_25 = arith.constant 0 : index
    %27 = vector.load %arg8[%c1_21, %c0_22, %c1_23, %c0_24, %c0_25] : memref<4x2x3x3x64xbf16, #tpu.memory_space<vmem>>, vector<1x2x2x2x64xbf16>
    %28 = vector.shape_cast %27 : vector<1x2x2x2x64xbf16> to vector<2x2x2x64xbf16>
    %29 = vector.shape_cast %26 : vector<2x2x2x64xbf16> to vector<1x2x2x2x64xbf16>
    tpu.vector_store %arg8[%c1_21, %c0_22, %c1_23, %c0_24, %c0_25], %29 {strides = array<i32>} : memref<4x2x3x3x64xbf16, #tpu.memory_space<vmem>>, vector<1x2x2x2x64xbf16>,
    %30 = vector.extract_strided_slice %12 {offsets = [3, 0, 0, 0, 0], sizes = [1, 2, 2, 2, 64], strides = [1, 1, 1, 1, 1]} : vector<4x2x2x2x64xbf16> to vector<1x2x2x2x64xbf16>
    %31 = vector.shape_cast %30 : vector<1x2x2x2x64xbf16> to vector<2x2x2x64xbf16>
    %c0_26 = arith.constant 0 : index
    %c0_27 = arith.constant 0 : index
    %c1_28 = arith.constant 1 : index
    %c1_29 = arith.constant 1 : index
    %c0_30 = arith.constant 0 : index
    %32 = vector.load %arg8[%c0_26, %c0_27, %c1_28, %c1_29, %c0_30] : memref<4x2x3x3x64xbf16, #tpu.memory_space<vmem>>, vector<1x2x2x2x64xbf16>
    %33 = vector.shape_cast %32 : vector<1x2x2x2x64xbf16> to vector<2x2x2x64xbf16>
    %34 = vector.shape_cast %31 : vector<2x2x2x64xbf16> to vector<1x2x2x2x64xbf16>
    tpu.vector_store %arg8[%c0_26, %c0_27, %c1_28, %c1_29, %c0_30], %34 {strides = array<i32>} : memref<4x2x3x3x64xbf16, #tpu.memory_space<vmem>>, vector<1x2x2x2x64xbf16>,
    %cst_31 = arith.constant 0.000000e+00 : f32
    %35 = vector.broadcast %cst_31 : f32 to vector<8x32xf32>
    %c0_32 = arith.constant 0 : index
    %c0_33 = arith.constant 0 : index
    %c0_34 = arith.constant 0 : index
    %c0_35 = arith.constant 0 : index
    %c0_36 = arith.constant 0 : index
    %36 = vector.load %arg8[%c0_32, %c0_33, %c0_34, %c0_35, %c0_36] : memref<4x2x3x3x64xbf16, #tpu.memory_space<vmem>>, vector<1x2x2x2x64xbf16>
    %37 = vector.shape_cast %36 : vector<1x2x2x2x64xbf16> to vector<2x2x2x64xbf16>
    %38 = vector.shape_cast %37 : vector<2x2x2x64xbf16> to vector<8x64xbf16>
    %c0_37 = arith.constant 0 : index
    %c0_38 = arith.constant 0 : index
    %c0_39 = arith.constant 0 : index
    %39 = vector.load %arg2[%c0_37, %c0_38, %c0_39] : memref<9x64x32xbf16, #tpu.memory_space<vmem>>, vector<1x64x32xbf16>
    %40 = vector.shape_cast %39 : vector<1x64x32xbf16> to vector<64x32xbf16>
    %cst_40 = arith.constant dense<0.000000e+00> : vector<8x32xf32>
    %41 = tpu.matmul %38, %40, %cst_40 {dimension_numbers = #tpu.dot_dimension_numbers<[1], [0], [0], [1], [0, 0, 1, 1], [], []>} : vector<8x64xbf16>, vector<64x32xbf16>, vector<8x32xf32> -> vector<8x32xf32>
    %42 = arith.addf %35, %41 : vector<8x32xf32>
    %c1_41 = arith.constant 1 : index
    %c0_42 = arith.constant 0 : index
    %c0_43 = arith.constant 0 : index
    %c0_44 = arith.constant 0 : index
    %c0_45 = arith.constant 0 : index
    %43 = vector.load %arg8[%c1_41, %c0_42, %c0_43, %c0_44, %c0_45] : memref<4x2x3x3x64xbf16, #tpu.memory_space<vmem>>, vector<1x2x2x2x64xbf16>
    %44 = vector.shape_cast %43 : vector<1x2x2x2x64xbf16> to vector<2x2x2x64xbf16>
    %45 = vector.shape_cast %44 : vector<2x2x2x64xbf16> to vector<8x64xbf16>
    %c1_46 = arith.constant 1 : index
    %c0_47 = arith.constant 0 : index
    %c0_48 = arith.constant 0 : index
    %46 = vector.load %arg2[%c1_46, %c0_47, %c0_48] : memref<9x64x32xbf16, #tpu.memory_space<vmem>>, vector<1x64x32xbf16>
    %47 = vector.shape_cast %46 : vector<1x64x32xbf16> to vector<64x32xbf16>
    %cst_49 = arith.constant dense<0.000000e+00> : vector<8x32xf32>
    %48 = tpu.matmul %45, %47, %cst_49 {dimension_numbers = #tpu.dot_dimension_numbers<[1], [0], [0], [1], [0, 0, 1, 1], [], []>} : vector<8x64xbf16>, vector<64x32xbf16>, vector<8x32xf32> -> vector<8x32xf32>
    %49 = arith.addf %42, %48 : vector<8x32xf32>
    %c0_50 = arith.constant 0 : index
    %c0_51 = arith.constant 0 : index
    %c0_52 = arith.constant 0 : index
    %c1_53 = arith.constant 1 : index
    %c0_54 = arith.constant 0 : index
    %50 = vector.load %arg8[%c0_50, %c0_51, %c0_52, %c1_53, %c0_54] : memref<4x2x3x3x64xbf16, #tpu.memory_space<vmem>>, vector<1x2x2x2x64xbf16>
    %51 = vector.shape_cast %50 : vector<1x2x2x2x64xbf16> to vector<2x2x2x64xbf16>
    %52 = vector.shape_cast %51 : vector<2x2x2x64xbf16> to vector<8x64xbf16>
    %c2_55 = arith.constant 2 : index
    %c0_56 = arith.constant 0 : index
    %c0_57 = arith.constant 0 : index
    %53 = vector.load %arg2[%c2_55, %c0_56, %c0_57] : memref<9x64x32xbf16, #tpu.memory_space<vmem>>, vector<1x64x32xbf16>
    %54 = vector.shape_cast %53 : vector<1x64x32xbf16> to vector<64x32xbf16>
    %cst_58 = arith.constant dense<0.000000e+00> : vector<8x32xf32>
    %55 = tpu.matmul %52, %54, %cst_58 {dimension_numbers = #tpu.dot_dimension_numbers<[1], [0], [0], [1], [0, 0, 1, 1], [], []>} : vector<8x64xbf16>, vector<64x32xbf16>, vector<8x32xf32> -> vector<8x32xf32>
    %56 = arith.addf %49, %55 : vector<8x32xf32>
    %c2_59 = arith.constant 2 : index
    %c0_60 = arith.constant 0 : index
    %c0_61 = arith.constant 0 : index
    %c0_62 = arith.constant 0 : index
    %c0_63 = arith.constant 0 : index
    %57 = vector.load %arg8[%c2_59, %c0_60, %c0_61, %c0_62, %c0_63] : memref<4x2x3x3x64xbf16, #tpu.memory_space<vmem>>, vector<1x2x2x2x64xbf16>
    %58 = vector.shape_cast %57 : vector<1x2x2x2x64xbf16> to vector<2x2x2x64xbf16>
    %59 = vector.shape_cast %58 : vector<2x2x2x64xbf16> to vector<8x64xbf16>
    %c3_64 = arith.constant 3 : index
    %c0_65 = arith.constant 0 : index
    %c0_66 = arith.constant 0 : index
    %60 = vector.load %arg2[%c3_64, %c0_65, %c0_66] : memref<9x64x32xbf16, #tpu.memory_space<vmem>>, vector<1x64x32xbf16>
    %61 = vector.shape_cast %60 : vector<1x64x32xbf16> to vector<64x32xbf16>
    %cst_67 = arith.constant dense<0.000000e+00> : vector<8x32xf32>
    %62 = tpu.matmul %59, %61, %cst_67 {dimension_numbers = #tpu.dot_dimension_numbers<[1], [0], [0], [1], [0, 0, 1, 1], [], []>} : vector<8x64xbf16>, vector<64x32xbf16>, vector<8x32xf32> -> vector<8x32xf32>
    %63 = arith.addf %56, %62 : vector<8x32xf32>
    %c3_68 = arith.constant 3 : index
    %c0_69 = arith.constant 0 : index
    %c0_70 = arith.constant 0 : index
    %c0_71 = arith.constant 0 : index
    %c0_72 = arith.constant 0 : index
    %64 = vector.load %arg8[%c3_68, %c0_69, %c0_70, %c0_71, %c0_72] : memref<4x2x3x3x64xbf16, #tpu.memory_space<vmem>>, vector<1x2x2x2x64xbf16>
    %65 = vector.shape_cast %64 : vector<1x2x2x2x64xbf16> to vector<2x2x2x64xbf16>
    %66 = vector.shape_cast %65 : vector<2x2x2x64xbf16> to vector<8x64xbf16>
    %c4 = arith.constant 4 : index
    %c0_73 = arith.constant 0 : index
    %c0_74 = arith.constant 0 : index
    %67 = vector.load %arg2[%c4, %c0_73, %c0_74] : memref<9x64x32xbf16, #tpu.memory_space<vmem>>, vector<1x64x32xbf16>
    %68 = vector.shape_cast %67 : vector<1x64x32xbf16> to vector<64x32xbf16>
    %cst_75 = arith.constant dense<0.000000e+00> : vector<8x32xf32>
    %69 = tpu.matmul %66, %68, %cst_75 {dimension_numbers = #tpu.dot_dimension_numbers<[1], [0], [0], [1], [0, 0, 1, 1], [], []>} : vector<8x64xbf16>, vector<64x32xbf16>, vector<8x32xf32> -> vector<8x32xf32>
    %70 = arith.addf %63, %69 : vector<8x32xf32>
    %c2_76 = arith.constant 2 : index
    %c0_77 = arith.constant 0 : index
    %c0_78 = arith.constant 0 : index
    %c1_79 = arith.constant 1 : index
    %c0_80 = arith.constant 0 : index
    %71 = vector.load %arg8[%c2_76, %c0_77, %c0_78, %c1_79, %c0_80] : memref<4x2x3x3x64xbf16, #tpu.memory_space<vmem>>, vector<1x2x2x2x64xbf16>
    %72 = vector.shape_cast %71 : vector<1x2x2x2x64xbf16> to vector<2x2x2x64xbf16>
    %73 = vector.shape_cast %72 : vector<2x2x2x64xbf16> to vector<8x64xbf16>
    %c5 = arith.constant 5 : index
    %c0_81 = arith.constant 0 : index
    %c0_82 = arith.constant 0 : index
    %74 = vector.load %arg2[%c5, %c0_81, %c0_82] : memref<9x64x32xbf16, #tpu.memory_space<vmem>>, vector<1x64x32xbf16>
    %75 = vector.shape_cast %74 : vector<1x64x32xbf16> to vector<64x32xbf16>
    %cst_83 = arith.constant dense<0.000000e+00> : vector<8x32xf32>
    %76 = tpu.matmul %73, %75, %cst_83 {dimension_numbers = #tpu.dot_dimension_numbers<[1], [0], [0], [1], [0, 0, 1, 1], [], []>} : vector<8x64xbf16>, vector<64x32xbf16>, vector<8x32xf32> -> vector<8x32xf32>
    %77 = arith.addf %70, %76 : vector<8x32xf32>
    %c0_84 = arith.constant 0 : index
    %c0_85 = arith.constant 0 : index
    %c1_86 = arith.constant 1 : index
    %c0_87 = arith.constant 0 : index
    %c0_88 = arith.constant 0 : index
    %78 = vector.load %arg8[%c0_84, %c0_85, %c1_86, %c0_87, %c0_88] : memref<4x2x3x3x64xbf16, #tpu.memory_space<vmem>>, vector<1x2x2x2x64xbf16>
    %79 = vector.shape_cast %78 : vector<1x2x2x2x64xbf16> to vector<2x2x2x64xbf16>
    %80 = vector.shape_cast %79 : vector<2x2x2x64xbf16> to vector<8x64xbf16>
    %c6 = arith.constant 6 : index
    %c0_89 = arith.constant 0 : index
    %c0_90 = arith.constant 0 : index
    %81 = vector.load %arg2[%c6, %c0_89, %c0_90] : memref<9x64x32xbf16, #tpu.memory_space<vmem>>, vector<1x64x32xbf16>
    %82 = vector.shape_cast %81 : vector<1x64x32xbf16> to vector<64x32xbf16>
    %cst_91 = arith.constant dense<0.000000e+00> : vector<8x32xf32>
    %83 = tpu.matmul %80, %82, %cst_91 {dimension_numbers = #tpu.dot_dimension_numbers<[1], [0], [0], [1], [0, 0, 1, 1], [], []>} : vector<8x64xbf16>, vector<64x32xbf16>, vector<8x32xf32> -> vector<8x32xf32>
    %84 = arith.addf %77, %83 : vector<8x32xf32>
    %c1_92 = arith.constant 1 : index
    %c0_93 = arith.constant 0 : index
    %c1_94 = arith.constant 1 : index
    %c0_95 = arith.constant 0 : index
    %c0_96 = arith.constant 0 : index
    %85 = vector.load %arg8[%c1_92, %c0_93, %c1_94, %c0_95, %c0_96] : memref<4x2x3x3x64xbf16, #tpu.memory_space<vmem>>, vector<1x2x2x2x64xbf16>
    %86 = vector.shape_cast %85 : vector<1x2x2x2x64xbf16> to vector<2x2x2x64xbf16>
    %87 = vector.shape_cast %86 : vector<2x2x2x64xbf16> to vector<8x64xbf16>
    %c7 = arith.constant 7 : index
    %c0_97 = arith.constant 0 : index
    %c0_98 = arith.constant 0 : index
    %88 = vector.load %arg2[%c7, %c0_97, %c0_98] : memref<9x64x32xbf16, #tpu.memory_space<vmem>>, vector<1x64x32xbf16>
    %89 = vector.shape_cast %88 : vector<1x64x32xbf16> to vector<64x32xbf16>
    %cst_99 = arith.constant dense<0.000000e+00> : vector<8x32xf32>
    %90 = tpu.matmul %87, %89, %cst_99 {dimension_numbers = #tpu.dot_dimension_numbers<[1], [0], [0], [1], [0, 0, 1, 1], [], []>} : vector<8x64xbf16>, vector<64x32xbf16>, vector<8x32xf32> -> vector<8x32xf32>
    %91 = arith.addf %84, %90 : vector<8x32xf32>
    %c0_100 = arith.constant 0 : index
    %c0_101 = arith.constant 0 : index
    %c1_102 = arith.constant 1 : index
    %c1_103 = arith.constant 1 : index
    %c0_104 = arith.constant 0 : index
    %92 = vector.load %arg8[%c0_100, %c0_101, %c1_102, %c1_103, %c0_104] : memref<4x2x3x3x64xbf16, #tpu.memory_space<vmem>>, vector<1x2x2x2x64xbf16>
    %93 = vector.shape_cast %92 : vector<1x2x2x2x64xbf16> to vector<2x2x2x64xbf16>
    %94 = vector.shape_cast %93 : vector<2x2x2x64xbf16> to vector<8x64xbf16>
    %c8 = arith.constant 8 : index
    %c0_105 = arith.constant 0 : index
    %c0_106 = arith.constant 0 : index
    %95 = vector.load %arg2[%c8, %c0_105, %c0_106] : memref<9x64x32xbf16, #tpu.memory_space<vmem>>, vector<1x64x32xbf16>
    %96 = vector.shape_cast %95 : vector<1x64x32xbf16> to vector<64x32xbf16>
    %cst_107 = arith.constant dense<0.000000e+00> : vector<8x32xf32>
    %97 = tpu.matmul %94, %96, %cst_107 {dimension_numbers = #tpu.dot_dimension_numbers<[1], [0], [0], [1], [0, 0, 1, 1], [], []>} : vector<8x64xbf16>, vector<64x32xbf16>, vector<8x32xf32> -> vector<8x32xf32>
    %98 = arith.addf %91, %97 : vector<8x32xf32>
    %cst_108 = arith.constant dense<0.000000e+00> : vector<32xf32>
    %99 = vector.multi_reduction <add>, %98, %cst_108 [0] : vector<8x32xf32> to vector<32xf32>
    %100 = vector.shape_cast %99 : vector<32xf32> to vector<1x32xf32>
    %c0_109 = arith.constant 0 : index
    %c0_110 = arith.constant 0 : index
    %101 = vector.load %arg6[%c0_109, %c0_110] : memref<1x32xf32, #tpu.memory_space<vmem>>, vector<1x32xf32>
    tpu.vector_store %arg6[%c0_109, %c0_110], %100 {strides = array<i32>} : memref<1x32xf32, #tpu.memory_space<vmem>>, vector<1x32xf32>,
    %102 = arith.mulf %98, %98 : vector<8x32xf32>
    %cst_111 = arith.constant dense<0.000000e+00> : vector<32xf32>
    %103 = vector.multi_reduction <add>, %102, %cst_111 [0] : vector<8x32xf32> to vector<32xf32>
    %104 = vector.shape_cast %103 : vector<32xf32> to vector<1x32xf32>
    %c0_112 = arith.constant 0 : index
    %c0_113 = arith.constant 0 : index
    %105 = vector.load %arg7[%c0_112, %c0_113] : memref<1x32xf32, #tpu.memory_space<vmem>>, vector<1x32xf32>
    tpu.vector_store %arg7[%c0_112, %c0_113], %104 {strides = array<i32>} : memref<1x32xf32, #tpu.memory_space<vmem>>, vector<1x32xf32>,
    %106 = arith.truncf %98 : vector<8x32xf32> to vector<8x32xbf16>
    %c0_114 = arith.constant 0 : index
    %c0_115 = arith.constant 0 : index
    %107 = vector.load %arg5[%c0_114, %c0_115] : memref<8x32xbf16, #tpu.memory_space<vmem>>, vector<8x32xbf16>
    tpu.vector_store %arg5[%c0_114, %c0_115], %106 {strides = array<i32>} : memref<8x32xbf16, #tpu.memory_space<vmem>>, vector<8x32xbf16>,
    return
  }
  func.func @transform_0(%arg0: i32) -> (i32, i32, i32, i32, i32) {
    %c0_i32 = arith.constant 0 : i32
    %c0_i32_0 = arith.constant 0 : i32
    %c0_i32_1 = arith.constant 0 : i32
    %c0_i32_2 = arith.constant 0 : i32
    %c0_i32_3 = arith.constant 0 : i32
    %c0_i32_4 = arith.constant 0 : i32
    return %c0_i32, %c0_i32_0, %c0_i32_1, %c0_i32_2, %c0_i32_3 : i32, i32, i32, i32, i32
  }
  func.func @transform_1(%arg0: i32) -> (i32, i32, i32) {
    %c0_i32 = arith.constant 0 : i32
    %c0_i32_0 = arith.constant 0 : i32
    %c0_i32_1 = arith.constant 0 : i32
    return %c0_i32, %c0_i32_0, %arg0 : i32, i32, i32
  }
  func.func @transform_2(%arg0: i32) -> (i32, i32) {
    %c0_i32 = arith.constant 0 : i32
    %c0_i32_0 = arith.constant 0 : i32
    %c0_i32_1 = arith.constant 0 : i32
    return %c0_i32, %c0_i32_0 : i32, i32
  }
  func.func @transform_3(%arg0: i32) -> (i32, i32) {
    %c0_i32 = arith.constant 0 : i32
    %c0_i32_0 = arith.constant 0 : i32
    %c0_i32_1 = arith.constant 0 : i32
    return %c0_i32, %c0_i32_0 : i32, i32
  }
  func.func @transform_4(%arg0: i32) -> (i32, i32) {
    %c0_i32 = arith.constant 0 : i32
    %c0_i32_0 = arith.constant 0 : i32
    return %c0_i32, %arg0 : i32, i32
  }
  func.func @transform_5(%arg0: i32) -> (i32, i32) {
    %c0_i32 = arith.constant 0 : i32
    %c0_i32_0 = arith.constant 0 : i32
    return %c0_i32, %arg0 : i32, i32
  }
  func.func @transform_6(%arg0: i32) -> (i32, i32) {
    %c0_i32 = arith.constant 0 : i32
    %c0_i32_0 = arith.constant 0 : i32
    return %c0_i32, %arg0 : i32, i32
  }
}

module attributes {stable_mosaic.version = 11 : i64} {
  func.func @kernel(%arg0: i32, %arg1: memref<1x2x2x2x32xbf16, #tpu.memory_space<vmem>>, %arg2: memref<9x32x128xbf16, #tpu.memory_space<vmem>>, %arg3: memref<1x32xf32, #tpu.memory_space<vmem>>, %arg4: memref<1x32xf32, #tpu.memory_space<vmem>>, %arg5: memref<8x128xbf16, #tpu.memory_space<vmem>>, %arg6: memref<8x128xbf16, #tpu.memory_space<vmem>>, %arg7: memref<1x128xf32, #tpu.memory_space<vmem>>, %arg8: memref<1x128xf32, #tpu.memory_space<vmem>>, %arg9: memref<1x2x4x4x32xbf16, #tpu.memory_space<vmem>>) attributes {dimension_semantics = [#tpu.dimension_semantics<parallel>], iteration_bounds = array<i64: 1>, scalar_prefetch = 0 : i64, scratch_operands = 1 : i64, tpu.core_type = #tpu.core_type<tc>, window_params = [{pipeline_mode = #tpu.pipeline_mode<synchronous>, transform_indices = @transform_0, window_bounds = array<i64: 1, 2, 2, 2, 32>}, {transform_indices = @transform_1, window_bounds = array<i64: 9, 32, 128>}, {pipeline_mode = #tpu.pipeline_mode<synchronous>, transform_indices = @transform_2, window_bounds = array<i64: 1, 32>}, {pipeline_mode = #tpu.pipeline_mode<synchronous>, transform_indices = @transform_3, window_bounds = array<i64: 1, 32>}, {transform_indices = @transform_4, window_bounds = array<i64: 8, 128>}, {transform_indices = @transform_5, window_bounds = array<i64: 8, 128>}, {transform_indices = @transform_6, window_bounds = array<i64: 1, 128>}, {transform_indices = @transform_7, window_bounds = array<i64: 1, 128>}]} {
    %c0 = arith.constant 0 : index
    %c0_0 = arith.constant 0 : index
    %c0_1 = arith.constant 0 : index
    %c0_2 = arith.constant 0 : index
    %c0_3 = arith.constant 0 : index
    %0 = vector.load %arg1[%c0, %c0_0, %c0_1, %c0_2, %c0_3] : memref<1x2x2x2x32xbf16, #tpu.memory_space<vmem>>, vector<1x2x2x2x32xbf16>
    %1 = arith.extf %0 : vector<1x2x2x2x32xbf16> to vector<1x2x2x2x32xf32>
    %c0_4 = arith.constant 0 : index
    %c0_5 = arith.constant 0 : index
    %2 = vector.load %arg3[%c0_4, %c0_5] : memref<1x32xf32, #tpu.memory_space<vmem>>, vector<1x32xf32>
    %3 = vector.shape_cast %2 : vector<1x32xf32> to vector<1x1x1x1x32xf32>
    %4 = vector.broadcast %3 : vector<1x1x1x1x32xf32> to vector<1x2x2x2x32xf32>
    %5 = arith.mulf %1, %4 : vector<1x2x2x2x32xf32>
    %c0_6 = arith.constant 0 : index
    %c0_7 = arith.constant 0 : index
    %6 = vector.load %arg4[%c0_6, %c0_7] : memref<1x32xf32, #tpu.memory_space<vmem>>, vector<1x32xf32>
    %7 = vector.shape_cast %6 : vector<1x32xf32> to vector<1x1x1x1x32xf32>
    %8 = vector.broadcast %7 : vector<1x1x1x1x32xf32> to vector<1x2x2x2x32xf32>
    %9 = arith.addf %5, %8 : vector<1x2x2x2x32xf32>
    %cst = arith.constant 0.000000e+00 : f32
    %10 = vector.broadcast %cst : f32 to vector<1x2x2x2x32xf32>
    %11 = arith.maximumf %9, %10 : vector<1x2x2x2x32xf32>
    %12 = arith.truncf %11 : vector<1x2x2x2x32xf32> to vector<1x2x2x2x32xbf16>
    %cst_8 = arith.constant 0.000000e+00 : bf16
    %13 = vector.broadcast %cst_8 : bf16 to vector<1x2x4x4x32xbf16>
    %c0_9 = arith.constant 0 : index
    %c0_10 = arith.constant 0 : index
    %c0_11 = arith.constant 0 : index
    %c0_12 = arith.constant 0 : index
    %c0_13 = arith.constant 0 : index
    %14 = vector.load %arg9[%c0_9, %c0_10, %c0_11, %c0_12, %c0_13] : memref<1x2x4x4x32xbf16, #tpu.memory_space<vmem>>, vector<1x2x4x4x32xbf16>
    tpu.vector_store %arg9[%c0_9, %c0_10, %c0_11, %c0_12, %c0_13], %13 {strides = array<i32>} : memref<1x2x4x4x32xbf16, #tpu.memory_space<vmem>>, vector<1x2x4x4x32xbf16>,
    %15 = vector.shape_cast %12 : vector<1x2x2x2x32xbf16> to vector<2x2x2x32xbf16>
    %c0_14 = arith.constant 0 : index
    %c0_15 = arith.constant 0 : index
    %c1 = arith.constant 1 : index
    %c1_16 = arith.constant 1 : index
    %c0_17 = arith.constant 0 : index
    %16 = vector.load %arg9[%c0_14, %c0_15, %c1, %c1_16, %c0_17] : memref<1x2x4x4x32xbf16, #tpu.memory_space<vmem>>, vector<1x2x2x2x32xbf16>
    %17 = vector.shape_cast %16 : vector<1x2x2x2x32xbf16> to vector<2x2x2x32xbf16>
    %18 = vector.shape_cast %15 : vector<2x2x2x32xbf16> to vector<1x2x2x2x32xbf16>
    tpu.vector_store %arg9[%c0_14, %c0_15, %c1, %c1_16, %c0_17], %18 {strides = array<i32>} : memref<1x2x4x4x32xbf16, #tpu.memory_space<vmem>>, vector<1x2x2x2x32xbf16>,
    %cst_18 = arith.constant 0.000000e+00 : f32
    %19 = vector.broadcast %cst_18 : f32 to vector<8x128xf32>
    %c0_19 = arith.constant 0 : index
    %c0_20 = arith.constant 0 : index
    %c0_21 = arith.constant 0 : index
    %c0_22 = arith.constant 0 : index
    %c0_23 = arith.constant 0 : index
    %20 = vector.load %arg9[%c0_19, %c0_20, %c0_21, %c0_22, %c0_23] : memref<1x2x4x4x32xbf16, #tpu.memory_space<vmem>>, vector<1x2x2x2x32xbf16>
    %21 = vector.shape_cast %20 : vector<1x2x2x2x32xbf16> to vector<2x2x2x32xbf16>
    %22 = vector.shape_cast %21 : vector<2x2x2x32xbf16> to vector<8x32xbf16>
    %c0_24 = arith.constant 0 : index
    %c0_25 = arith.constant 0 : index
    %c0_26 = arith.constant 0 : index
    %23 = vector.load %arg2[%c0_24, %c0_25, %c0_26] : memref<9x32x128xbf16, #tpu.memory_space<vmem>>, vector<1x32x128xbf16>
    %24 = vector.shape_cast %23 : vector<1x32x128xbf16> to vector<32x128xbf16>
    %cst_27 = arith.constant dense<0.000000e+00> : vector<8x128xf32>
    %25 = tpu.matmul %22, %24, %cst_27 {dimension_numbers = #tpu.dot_dimension_numbers<[1], [0], [0], [1], [0, 0, 1, 1], [], []>} : vector<8x32xbf16>, vector<32x128xbf16>, vector<8x128xf32> -> vector<8x128xf32>
    %26 = arith.addf %19, %25 : vector<8x128xf32>
    %c0_28 = arith.constant 0 : index
    %c0_29 = arith.constant 0 : index
    %c0_30 = arith.constant 0 : index
    %c1_31 = arith.constant 1 : index
    %c0_32 = arith.constant 0 : index
    %27 = vector.load %arg9[%c0_28, %c0_29, %c0_30, %c1_31, %c0_32] : memref<1x2x4x4x32xbf16, #tpu.memory_space<vmem>>, vector<1x2x2x2x32xbf16>
    %28 = vector.shape_cast %27 : vector<1x2x2x2x32xbf16> to vector<2x2x2x32xbf16>
    %29 = vector.shape_cast %28 : vector<2x2x2x32xbf16> to vector<8x32xbf16>
    %c1_33 = arith.constant 1 : index
    %c0_34 = arith.constant 0 : index
    %c0_35 = arith.constant 0 : index
    %30 = vector.load %arg2[%c1_33, %c0_34, %c0_35] : memref<9x32x128xbf16, #tpu.memory_space<vmem>>, vector<1x32x128xbf16>
    %31 = vector.shape_cast %30 : vector<1x32x128xbf16> to vector<32x128xbf16>
    %cst_36 = arith.constant dense<0.000000e+00> : vector<8x128xf32>
    %32 = tpu.matmul %29, %31, %cst_36 {dimension_numbers = #tpu.dot_dimension_numbers<[1], [0], [0], [1], [0, 0, 1, 1], [], []>} : vector<8x32xbf16>, vector<32x128xbf16>, vector<8x128xf32> -> vector<8x128xf32>
    %33 = arith.addf %26, %32 : vector<8x128xf32>
    %c0_37 = arith.constant 0 : index
    %c0_38 = arith.constant 0 : index
    %c0_39 = arith.constant 0 : index
    %c2 = arith.constant 2 : index
    %c0_40 = arith.constant 0 : index
    %34 = vector.load %arg9[%c0_37, %c0_38, %c0_39, %c2, %c0_40] : memref<1x2x4x4x32xbf16, #tpu.memory_space<vmem>>, vector<1x2x2x2x32xbf16>
    %35 = vector.shape_cast %34 : vector<1x2x2x2x32xbf16> to vector<2x2x2x32xbf16>
    %36 = vector.shape_cast %35 : vector<2x2x2x32xbf16> to vector<8x32xbf16>
    %c2_41 = arith.constant 2 : index
    %c0_42 = arith.constant 0 : index
    %c0_43 = arith.constant 0 : index
    %37 = vector.load %arg2[%c2_41, %c0_42, %c0_43] : memref<9x32x128xbf16, #tpu.memory_space<vmem>>, vector<1x32x128xbf16>
    %38 = vector.shape_cast %37 : vector<1x32x128xbf16> to vector<32x128xbf16>
    %cst_44 = arith.constant dense<0.000000e+00> : vector<8x128xf32>
    %39 = tpu.matmul %36, %38, %cst_44 {dimension_numbers = #tpu.dot_dimension_numbers<[1], [0], [0], [1], [0, 0, 1, 1], [], []>} : vector<8x32xbf16>, vector<32x128xbf16>, vector<8x128xf32> -> vector<8x128xf32>
    %40 = arith.addf %33, %39 : vector<8x128xf32>
    %c0_45 = arith.constant 0 : index
    %c0_46 = arith.constant 0 : index
    %c1_47 = arith.constant 1 : index
    %c0_48 = arith.constant 0 : index
    %c0_49 = arith.constant 0 : index
    %41 = vector.load %arg9[%c0_45, %c0_46, %c1_47, %c0_48, %c0_49] : memref<1x2x4x4x32xbf16, #tpu.memory_space<vmem>>, vector<1x2x2x2x32xbf16>
    %42 = vector.shape_cast %41 : vector<1x2x2x2x32xbf16> to vector<2x2x2x32xbf16>
    %43 = vector.shape_cast %42 : vector<2x2x2x32xbf16> to vector<8x32xbf16>
    %c3 = arith.constant 3 : index
    %c0_50 = arith.constant 0 : index
    %c0_51 = arith.constant 0 : index
    %44 = vector.load %arg2[%c3, %c0_50, %c0_51] : memref<9x32x128xbf16, #tpu.memory_space<vmem>>, vector<1x32x128xbf16>
    %45 = vector.shape_cast %44 : vector<1x32x128xbf16> to vector<32x128xbf16>
    %cst_52 = arith.constant dense<0.000000e+00> : vector<8x128xf32>
    %46 = tpu.matmul %43, %45, %cst_52 {dimension_numbers = #tpu.dot_dimension_numbers<[1], [0], [0], [1], [0, 0, 1, 1], [], []>} : vector<8x32xbf16>, vector<32x128xbf16>, vector<8x128xf32> -> vector<8x128xf32>
    %47 = arith.addf %40, %46 : vector<8x128xf32>
    %c0_53 = arith.constant 0 : index
    %c0_54 = arith.constant 0 : index
    %c1_55 = arith.constant 1 : index
    %c1_56 = arith.constant 1 : index
    %c0_57 = arith.constant 0 : index
    %48 = vector.load %arg9[%c0_53, %c0_54, %c1_55, %c1_56, %c0_57] : memref<1x2x4x4x32xbf16, #tpu.memory_space<vmem>>, vector<1x2x2x2x32xbf16>
    %49 = vector.shape_cast %48 : vector<1x2x2x2x32xbf16> to vector<2x2x2x32xbf16>
    %50 = vector.shape_cast %49 : vector<2x2x2x32xbf16> to vector<8x32xbf16>
    %c4 = arith.constant 4 : index
    %c0_58 = arith.constant 0 : index
    %c0_59 = arith.constant 0 : index
    %51 = vector.load %arg2[%c4, %c0_58, %c0_59] : memref<9x32x128xbf16, #tpu.memory_space<vmem>>, vector<1x32x128xbf16>
    %52 = vector.shape_cast %51 : vector<1x32x128xbf16> to vector<32x128xbf16>
    %cst_60 = arith.constant dense<0.000000e+00> : vector<8x128xf32>
    %53 = tpu.matmul %50, %52, %cst_60 {dimension_numbers = #tpu.dot_dimension_numbers<[1], [0], [0], [1], [0, 0, 1, 1], [], []>} : vector<8x32xbf16>, vector<32x128xbf16>, vector<8x128xf32> -> vector<8x128xf32>
    %54 = arith.addf %47, %53 : vector<8x128xf32>
    %c0_61 = arith.constant 0 : index
    %c0_62 = arith.constant 0 : index
    %c1_63 = arith.constant 1 : index
    %c2_64 = arith.constant 2 : index
    %c0_65 = arith.constant 0 : index
    %55 = vector.load %arg9[%c0_61, %c0_62, %c1_63, %c2_64, %c0_65] : memref<1x2x4x4x32xbf16, #tpu.memory_space<vmem>>, vector<1x2x2x2x32xbf16>
    %56 = vector.shape_cast %55 : vector<1x2x2x2x32xbf16> to vector<2x2x2x32xbf16>
    %57 = vector.shape_cast %56 : vector<2x2x2x32xbf16> to vector<8x32xbf16>
    %c5 = arith.constant 5 : index
    %c0_66 = arith.constant 0 : index
    %c0_67 = arith.constant 0 : index
    %58 = vector.load %arg2[%c5, %c0_66, %c0_67] : memref<9x32x128xbf16, #tpu.memory_space<vmem>>, vector<1x32x128xbf16>
    %59 = vector.shape_cast %58 : vector<1x32x128xbf16> to vector<32x128xbf16>
    %cst_68 = arith.constant dense<0.000000e+00> : vector<8x128xf32>
    %60 = tpu.matmul %57, %59, %cst_68 {dimension_numbers = #tpu.dot_dimension_numbers<[1], [0], [0], [1], [0, 0, 1, 1], [], []>} : vector<8x32xbf16>, vector<32x128xbf16>, vector<8x128xf32> -> vector<8x128xf32>
    %61 = arith.addf %54, %60 : vector<8x128xf32>
    %c0_69 = arith.constant 0 : index
    %c0_70 = arith.constant 0 : index
    %c2_71 = arith.constant 2 : index
    %c0_72 = arith.constant 0 : index
    %c0_73 = arith.constant 0 : index
    %62 = vector.load %arg9[%c0_69, %c0_70, %c2_71, %c0_72, %c0_73] : memref<1x2x4x4x32xbf16, #tpu.memory_space<vmem>>, vector<1x2x2x2x32xbf16>
    %63 = vector.shape_cast %62 : vector<1x2x2x2x32xbf16> to vector<2x2x2x32xbf16>
    %64 = vector.shape_cast %63 : vector<2x2x2x32xbf16> to vector<8x32xbf16>
    %c6 = arith.constant 6 : index
    %c0_74 = arith.constant 0 : index
    %c0_75 = arith.constant 0 : index
    %65 = vector.load %arg2[%c6, %c0_74, %c0_75] : memref<9x32x128xbf16, #tpu.memory_space<vmem>>, vector<1x32x128xbf16>
    %66 = vector.shape_cast %65 : vector<1x32x128xbf16> to vector<32x128xbf16>
    %cst_76 = arith.constant dense<0.000000e+00> : vector<8x128xf32>
    %67 = tpu.matmul %64, %66, %cst_76 {dimension_numbers = #tpu.dot_dimension_numbers<[1], [0], [0], [1], [0, 0, 1, 1], [], []>} : vector<8x32xbf16>, vector<32x128xbf16>, vector<8x128xf32> -> vector<8x128xf32>
    %68 = arith.addf %61, %67 : vector<8x128xf32>
    %c0_77 = arith.constant 0 : index
    %c0_78 = arith.constant 0 : index
    %c2_79 = arith.constant 2 : index
    %c1_80 = arith.constant 1 : index
    %c0_81 = arith.constant 0 : index
    %69 = vector.load %arg9[%c0_77, %c0_78, %c2_79, %c1_80, %c0_81] : memref<1x2x4x4x32xbf16, #tpu.memory_space<vmem>>, vector<1x2x2x2x32xbf16>
    %70 = vector.shape_cast %69 : vector<1x2x2x2x32xbf16> to vector<2x2x2x32xbf16>
    %71 = vector.shape_cast %70 : vector<2x2x2x32xbf16> to vector<8x32xbf16>
    %c7 = arith.constant 7 : index
    %c0_82 = arith.constant 0 : index
    %c0_83 = arith.constant 0 : index
    %72 = vector.load %arg2[%c7, %c0_82, %c0_83] : memref<9x32x128xbf16, #tpu.memory_space<vmem>>, vector<1x32x128xbf16>
    %73 = vector.shape_cast %72 : vector<1x32x128xbf16> to vector<32x128xbf16>
    %cst_84 = arith.constant dense<0.000000e+00> : vector<8x128xf32>
    %74 = tpu.matmul %71, %73, %cst_84 {dimension_numbers = #tpu.dot_dimension_numbers<[1], [0], [0], [1], [0, 0, 1, 1], [], []>} : vector<8x32xbf16>, vector<32x128xbf16>, vector<8x128xf32> -> vector<8x128xf32>
    %75 = arith.addf %68, %74 : vector<8x128xf32>
    %c0_85 = arith.constant 0 : index
    %c0_86 = arith.constant 0 : index
    %c2_87 = arith.constant 2 : index
    %c2_88 = arith.constant 2 : index
    %c0_89 = arith.constant 0 : index
    %76 = vector.load %arg9[%c0_85, %c0_86, %c2_87, %c2_88, %c0_89] : memref<1x2x4x4x32xbf16, #tpu.memory_space<vmem>>, vector<1x2x2x2x32xbf16>
    %77 = vector.shape_cast %76 : vector<1x2x2x2x32xbf16> to vector<2x2x2x32xbf16>
    %78 = vector.shape_cast %77 : vector<2x2x2x32xbf16> to vector<8x32xbf16>
    %c8 = arith.constant 8 : index
    %c0_90 = arith.constant 0 : index
    %c0_91 = arith.constant 0 : index
    %79 = vector.load %arg2[%c8, %c0_90, %c0_91] : memref<9x32x128xbf16, #tpu.memory_space<vmem>>, vector<1x32x128xbf16>
    %80 = vector.shape_cast %79 : vector<1x32x128xbf16> to vector<32x128xbf16>
    %cst_92 = arith.constant dense<0.000000e+00> : vector<8x128xf32>
    %81 = tpu.matmul %78, %80, %cst_92 {dimension_numbers = #tpu.dot_dimension_numbers<[1], [0], [0], [1], [0, 0, 1, 1], [], []>} : vector<8x32xbf16>, vector<32x128xbf16>, vector<8x128xf32> -> vector<8x128xf32>
    %82 = arith.addf %75, %81 : vector<8x128xf32>
    %c0_93 = arith.constant 0 : index
    %c0_94 = arith.constant 0 : index
    %83 = vector.load %arg5[%c0_93, %c0_94] : memref<8x128xbf16, #tpu.memory_space<vmem>>, vector<8x128xbf16>
    %84 = arith.extf %83 : vector<8x128xbf16> to vector<8x128xf32>
    %85 = arith.addf %82, %84 : vector<8x128xf32>
    %cst_95 = arith.constant dense<0.000000e+00> : vector<128xf32>
    %86 = vector.multi_reduction <add>, %85, %cst_95 [0] : vector<8x128xf32> to vector<128xf32>
    %87 = vector.shape_cast %86 : vector<128xf32> to vector<1x128xf32>
    %c0_96 = arith.constant 0 : index
    %c0_97 = arith.constant 0 : index
    %88 = vector.load %arg7[%c0_96, %c0_97] : memref<1x128xf32, #tpu.memory_space<vmem>>, vector<1x128xf32>
    tpu.vector_store %arg7[%c0_96, %c0_97], %87 {strides = array<i32>} : memref<1x128xf32, #tpu.memory_space<vmem>>, vector<1x128xf32>,
    %89 = arith.mulf %85, %85 : vector<8x128xf32>
    %cst_98 = arith.constant dense<0.000000e+00> : vector<128xf32>
    %90 = vector.multi_reduction <add>, %89, %cst_98 [0] : vector<8x128xf32> to vector<128xf32>
    %91 = vector.shape_cast %90 : vector<128xf32> to vector<1x128xf32>
    %c0_99 = arith.constant 0 : index
    %c0_100 = arith.constant 0 : index
    %92 = vector.load %arg8[%c0_99, %c0_100] : memref<1x128xf32, #tpu.memory_space<vmem>>, vector<1x128xf32>
    tpu.vector_store %arg8[%c0_99, %c0_100], %91 {strides = array<i32>} : memref<1x128xf32, #tpu.memory_space<vmem>>, vector<1x128xf32>,
    %93 = arith.truncf %85 : vector<8x128xf32> to vector<8x128xbf16>
    %c0_101 = arith.constant 0 : index
    %c0_102 = arith.constant 0 : index
    %94 = vector.load %arg6[%c0_101, %c0_102] : memref<8x128xbf16, #tpu.memory_space<vmem>>, vector<8x128xbf16>
    tpu.vector_store %arg6[%c0_101, %c0_102], %93 {strides = array<i32>} : memref<8x128xbf16, #tpu.memory_space<vmem>>, vector<8x128xbf16>,
    return
  }
  func.func @transform_0(%arg0: i32) -> (i32, i32, i32, i32, i32) {
    %c0_i32 = arith.constant 0 : i32
    %c0_i32_0 = arith.constant 0 : i32
    %c0_i32_1 = arith.constant 0 : i32
    %c0_i32_2 = arith.constant 0 : i32
    %c0_i32_3 = arith.constant 0 : i32
    %c0_i32_4 = arith.constant 0 : i32
    return %c0_i32, %c0_i32_0, %c0_i32_1, %c0_i32_2, %c0_i32_3 : i32, i32, i32, i32, i32
  }
  func.func @transform_1(%arg0: i32) -> (i32, i32, i32) {
    %c0_i32 = arith.constant 0 : i32
    %c0_i32_0 = arith.constant 0 : i32
    %c0_i32_1 = arith.constant 0 : i32
    return %c0_i32, %c0_i32_0, %arg0 : i32, i32, i32
  }
  func.func @transform_2(%arg0: i32) -> (i32, i32) {
    %c0_i32 = arith.constant 0 : i32
    %c0_i32_0 = arith.constant 0 : i32
    %c0_i32_1 = arith.constant 0 : i32
    return %c0_i32, %c0_i32_0 : i32, i32
  }
  func.func @transform_3(%arg0: i32) -> (i32, i32) {
    %c0_i32 = arith.constant 0 : i32
    %c0_i32_0 = arith.constant 0 : i32
    %c0_i32_1 = arith.constant 0 : i32
    return %c0_i32, %c0_i32_0 : i32, i32
  }
  func.func @transform_4(%arg0: i32) -> (i32, i32) {
    %c0_i32 = arith.constant 0 : i32
    %c0_i32_0 = arith.constant 0 : i32
    return %c0_i32, %arg0 : i32, i32
  }
  func.func @transform_5(%arg0: i32) -> (i32, i32) {
    %c0_i32 = arith.constant 0 : i32
    %c0_i32_0 = arith.constant 0 : i32
    return %c0_i32, %arg0 : i32, i32
  }
  func.func @transform_6(%arg0: i32) -> (i32, i32) {
    %c0_i32 = arith.constant 0 : i32
    %c0_i32_0 = arith.constant 0 : i32
    return %c0_i32, %arg0 : i32, i32
  }
  func.func @transform_7(%arg0: i32) -> (i32, i32) {
    %c0_i32 = arith.constant 0 : i32
    %c0_i32_0 = arith.constant 0 : i32
    return %c0_i32, %arg0 : i32, i32
  }
}

module attributes {stable_mosaic.version = 11 : i64} {
  func.func @kernel(%arg0: i32, %arg1: memref<4x2x1x1x128xbf16, #tpu.memory_space<vmem>>, %arg2: memref<9x128x64xbf16, #tpu.memory_space<vmem>>, %arg3: memref<1x128xf32, #tpu.memory_space<vmem>>, %arg4: memref<1x128xf32, #tpu.memory_space<vmem>>, %arg5: memref<2x64xbf16, #tpu.memory_space<vmem>>, %arg6: memref<1x64xf32, #tpu.memory_space<vmem>>, %arg7: memref<1x64xf32, #tpu.memory_space<vmem>>, %arg8: memref<4x2x2x2x128xbf16, #tpu.memory_space<vmem>>) attributes {dimension_semantics = [#tpu.dimension_semantics<parallel>], iteration_bounds = array<i64: 1>, scalar_prefetch = 0 : i64, scratch_operands = 1 : i64, tpu.core_type = #tpu.core_type<tc>, window_params = [{pipeline_mode = #tpu.pipeline_mode<synchronous>, transform_indices = @transform_0, window_bounds = array<i64: 4, 2, 1, 1, 128>}, {transform_indices = @transform_1, window_bounds = array<i64: 9, 128, 64>}, {pipeline_mode = #tpu.pipeline_mode<synchronous>, transform_indices = @transform_2, window_bounds = array<i64: 1, 128>}, {pipeline_mode = #tpu.pipeline_mode<synchronous>, transform_indices = @transform_3, window_bounds = array<i64: 1, 128>}, {transform_indices = @transform_4, window_bounds = array<i64: 2, 64>}, {transform_indices = @transform_5, window_bounds = array<i64: 1, 64>}, {transform_indices = @transform_6, window_bounds = array<i64: 1, 64>}]} {
    %c0 = arith.constant 0 : index
    %c0_0 = arith.constant 0 : index
    %c0_1 = arith.constant 0 : index
    %c0_2 = arith.constant 0 : index
    %c0_3 = arith.constant 0 : index
    %0 = vector.load %arg1[%c0, %c0_0, %c0_1, %c0_2, %c0_3] : memref<4x2x1x1x128xbf16, #tpu.memory_space<vmem>>, vector<4x2x1x1x128xbf16>
    %1 = arith.extf %0 : vector<4x2x1x1x128xbf16> to vector<4x2x1x1x128xf32>
    %c0_4 = arith.constant 0 : index
    %c0_5 = arith.constant 0 : index
    %2 = vector.load %arg3[%c0_4, %c0_5] : memref<1x128xf32, #tpu.memory_space<vmem>>, vector<1x128xf32>
    %3 = vector.shape_cast %2 : vector<1x128xf32> to vector<1x1x1x1x128xf32>
    %4 = vector.broadcast %3 : vector<1x1x1x1x128xf32> to vector<4x2x1x1x128xf32>
    %5 = arith.mulf %1, %4 : vector<4x2x1x1x128xf32>
    %c0_6 = arith.constant 0 : index
    %c0_7 = arith.constant 0 : index
    %6 = vector.load %arg4[%c0_6, %c0_7] : memref<1x128xf32, #tpu.memory_space<vmem>>, vector<1x128xf32>
    %7 = vector.shape_cast %6 : vector<1x128xf32> to vector<1x1x1x1x128xf32>
    %8 = vector.broadcast %7 : vector<1x1x1x1x128xf32> to vector<4x2x1x1x128xf32>
    %9 = arith.addf %5, %8 : vector<4x2x1x1x128xf32>
    %cst = arith.constant 0.000000e+00 : f32
    %10 = vector.broadcast %cst : f32 to vector<4x2x1x1x128xf32>
    %11 = arith.maximumf %9, %10 : vector<4x2x1x1x128xf32>
    %12 = arith.truncf %11 : vector<4x2x1x1x128xf32> to vector<4x2x1x1x128xbf16>
    %cst_8 = arith.constant 0.000000e+00 : bf16
    %13 = vector.broadcast %cst_8 : bf16 to vector<4x2x2x2x128xbf16>
    %c0_9 = arith.constant 0 : index
    %c0_10 = arith.constant 0 : index
    %c0_11 = arith.constant 0 : index
    %c0_12 = arith.constant 0 : index
    %c0_13 = arith.constant 0 : index
    %14 = vector.load %arg8[%c0_9, %c0_10, %c0_11, %c0_12, %c0_13] : memref<4x2x2x2x128xbf16, #tpu.memory_space<vmem>>, vector<4x2x2x2x128xbf16>
    tpu.vector_store %arg8[%c0_9, %c0_10, %c0_11, %c0_12, %c0_13], %13 {strides = array<i32>} : memref<4x2x2x2x128xbf16, #tpu.memory_space<vmem>>, vector<4x2x2x2x128xbf16>,
    %15 = vector.extract_strided_slice %12 {offsets = [0, 0, 0, 0, 0], sizes = [1, 2, 1, 1, 128], strides = [1, 1, 1, 1, 1]} : vector<4x2x1x1x128xbf16> to vector<1x2x1x1x128xbf16>
    %16 = vector.shape_cast %15 : vector<1x2x1x1x128xbf16> to vector<2x1x1x128xbf16>
    %c3 = arith.constant 3 : index
    %c0_14 = arith.constant 0 : index
    %c0_15 = arith.constant 0 : index
    %c0_16 = arith.constant 0 : index
    %c0_17 = arith.constant 0 : index
    %17 = vector.load %arg8[%c3, %c0_14, %c0_15, %c0_16, %c0_17] : memref<4x2x2x2x128xbf16, #tpu.memory_space<vmem>>, vector<1x2x1x1x128xbf16>
    %18 = vector.shape_cast %17 : vector<1x2x1x1x128xbf16> to vector<2x1x1x128xbf16>
    %19 = vector.shape_cast %16 : vector<2x1x1x128xbf16> to vector<1x2x1x1x128xbf16>
    tpu.vector_store %arg8[%c3, %c0_14, %c0_15, %c0_16, %c0_17], %19 {strides = array<i32>} : memref<4x2x2x2x128xbf16, #tpu.memory_space<vmem>>, vector<1x2x1x1x128xbf16>,
    %20 = vector.extract_strided_slice %12 {offsets = [1, 0, 0, 0, 0], sizes = [1, 2, 1, 1, 128], strides = [1, 1, 1, 1, 1]} : vector<4x2x1x1x128xbf16> to vector<1x2x1x1x128xbf16>
    %21 = vector.shape_cast %20 : vector<1x2x1x1x128xbf16> to vector<2x1x1x128xbf16>
    %c2 = arith.constant 2 : index
    %c0_18 = arith.constant 0 : index
    %c0_19 = arith.constant 0 : index
    %c1 = arith.constant 1 : index
    %c0_20 = arith.constant 0 : index
    %22 = vector.load %arg8[%c2, %c0_18, %c0_19, %c1, %c0_20] : memref<4x2x2x2x128xbf16, #tpu.memory_space<vmem>>, vector<1x2x1x1x128xbf16>
    %23 = vector.shape_cast %22 : vector<1x2x1x1x128xbf16> to vector<2x1x1x128xbf16>
    %24 = vector.shape_cast %21 : vector<2x1x1x128xbf16> to vector<1x2x1x1x128xbf16>
    tpu.vector_store %arg8[%c2, %c0_18, %c0_19, %c1, %c0_20], %24 {strides = array<i32>} : memref<4x2x2x2x128xbf16, #tpu.memory_space<vmem>>, vector<1x2x1x1x128xbf16>,
    %25 = vector.extract_strided_slice %12 {offsets = [2, 0, 0, 0, 0], sizes = [1, 2, 1, 1, 128], strides = [1, 1, 1, 1, 1]} : vector<4x2x1x1x128xbf16> to vector<1x2x1x1x128xbf16>
    %26 = vector.shape_cast %25 : vector<1x2x1x1x128xbf16> to vector<2x1x1x128xbf16>
    %c1_21 = arith.constant 1 : index
    %c0_22 = arith.constant 0 : index
    %c1_23 = arith.constant 1 : index
    %c0_24 = arith.constant 0 : index
    %c0_25 = arith.constant 0 : index
    %27 = vector.load %arg8[%c1_21, %c0_22, %c1_23, %c0_24, %c0_25] : memref<4x2x2x2x128xbf16, #tpu.memory_space<vmem>>, vector<1x2x1x1x128xbf16>
    %28 = vector.shape_cast %27 : vector<1x2x1x1x128xbf16> to vector<2x1x1x128xbf16>
    %29 = vector.shape_cast %26 : vector<2x1x1x128xbf16> to vector<1x2x1x1x128xbf16>
    tpu.vector_store %arg8[%c1_21, %c0_22, %c1_23, %c0_24, %c0_25], %29 {strides = array<i32>} : memref<4x2x2x2x128xbf16, #tpu.memory_space<vmem>>, vector<1x2x1x1x128xbf16>,
    %30 = vector.extract_strided_slice %12 {offsets = [3, 0, 0, 0, 0], sizes = [1, 2, 1, 1, 128], strides = [1, 1, 1, 1, 1]} : vector<4x2x1x1x128xbf16> to vector<1x2x1x1x128xbf16>
    %31 = vector.shape_cast %30 : vector<1x2x1x1x128xbf16> to vector<2x1x1x128xbf16>
    %c0_26 = arith.constant 0 : index
    %c0_27 = arith.constant 0 : index
    %c1_28 = arith.constant 1 : index
    %c1_29 = arith.constant 1 : index
    %c0_30 = arith.constant 0 : index
    %32 = vector.load %arg8[%c0_26, %c0_27, %c1_28, %c1_29, %c0_30] : memref<4x2x2x2x128xbf16, #tpu.memory_space<vmem>>, vector<1x2x1x1x128xbf16>
    %33 = vector.shape_cast %32 : vector<1x2x1x1x128xbf16> to vector<2x1x1x128xbf16>
    %34 = vector.shape_cast %31 : vector<2x1x1x128xbf16> to vector<1x2x1x1x128xbf16>
    tpu.vector_store %arg8[%c0_26, %c0_27, %c1_28, %c1_29, %c0_30], %34 {strides = array<i32>} : memref<4x2x2x2x128xbf16, #tpu.memory_space<vmem>>, vector<1x2x1x1x128xbf16>,
    %cst_31 = arith.constant 0.000000e+00 : f32
    %35 = vector.broadcast %cst_31 : f32 to vector<2x64xf32>
    %c0_32 = arith.constant 0 : index
    %c0_33 = arith.constant 0 : index
    %c0_34 = arith.constant 0 : index
    %c0_35 = arith.constant 0 : index
    %c0_36 = arith.constant 0 : index
    %36 = vector.load %arg8[%c0_32, %c0_33, %c0_34, %c0_35, %c0_36] : memref<4x2x2x2x128xbf16, #tpu.memory_space<vmem>>, vector<1x2x1x1x128xbf16>
    %37 = vector.shape_cast %36 : vector<1x2x1x1x128xbf16> to vector<2x1x1x128xbf16>
    %38 = vector.shape_cast %37 : vector<2x1x1x128xbf16> to vector<2x128xbf16>
    %c0_37 = arith.constant 0 : index
    %c0_38 = arith.constant 0 : index
    %c0_39 = arith.constant 0 : index
    %39 = vector.load %arg2[%c0_37, %c0_38, %c0_39] : memref<9x128x64xbf16, #tpu.memory_space<vmem>>, vector<1x128x64xbf16>
    %40 = vector.shape_cast %39 : vector<1x128x64xbf16> to vector<128x64xbf16>
    %cst_40 = arith.constant dense<0.000000e+00> : vector<2x64xf32>
    %41 = tpu.matmul %38, %40, %cst_40 {dimension_numbers = #tpu.dot_dimension_numbers<[1], [0], [0], [1], [0, 0, 1, 1], [], []>} : vector<2x128xbf16>, vector<128x64xbf16>, vector<2x64xf32> -> vector<2x64xf32>
    %42 = arith.addf %35, %41 : vector<2x64xf32>
    %c1_41 = arith.constant 1 : index
    %c0_42 = arith.constant 0 : index
    %c0_43 = arith.constant 0 : index
    %c0_44 = arith.constant 0 : index
    %c0_45 = arith.constant 0 : index
    %43 = vector.load %arg8[%c1_41, %c0_42, %c0_43, %c0_44, %c0_45] : memref<4x2x2x2x128xbf16, #tpu.memory_space<vmem>>, vector<1x2x1x1x128xbf16>
    %44 = vector.shape_cast %43 : vector<1x2x1x1x128xbf16> to vector<2x1x1x128xbf16>
    %45 = vector.shape_cast %44 : vector<2x1x1x128xbf16> to vector<2x128xbf16>
    %c1_46 = arith.constant 1 : index
    %c0_47 = arith.constant 0 : index
    %c0_48 = arith.constant 0 : index
    %46 = vector.load %arg2[%c1_46, %c0_47, %c0_48] : memref<9x128x64xbf16, #tpu.memory_space<vmem>>, vector<1x128x64xbf16>
    %47 = vector.shape_cast %46 : vector<1x128x64xbf16> to vector<128x64xbf16>
    %cst_49 = arith.constant dense<0.000000e+00> : vector<2x64xf32>
    %48 = tpu.matmul %45, %47, %cst_49 {dimension_numbers = #tpu.dot_dimension_numbers<[1], [0], [0], [1], [0, 0, 1, 1], [], []>} : vector<2x128xbf16>, vector<128x64xbf16>, vector<2x64xf32> -> vector<2x64xf32>
    %49 = arith.addf %42, %48 : vector<2x64xf32>
    %c0_50 = arith.constant 0 : index
    %c0_51 = arith.constant 0 : index
    %c0_52 = arith.constant 0 : index
    %c1_53 = arith.constant 1 : index
    %c0_54 = arith.constant 0 : index
    %50 = vector.load %arg8[%c0_50, %c0_51, %c0_52, %c1_53, %c0_54] : memref<4x2x2x2x128xbf16, #tpu.memory_space<vmem>>, vector<1x2x1x1x128xbf16>
    %51 = vector.shape_cast %50 : vector<1x2x1x1x128xbf16> to vector<2x1x1x128xbf16>
    %52 = vector.shape_cast %51 : vector<2x1x1x128xbf16> to vector<2x128xbf16>
    %c2_55 = arith.constant 2 : index
    %c0_56 = arith.constant 0 : index
    %c0_57 = arith.constant 0 : index
    %53 = vector.load %arg2[%c2_55, %c0_56, %c0_57] : memref<9x128x64xbf16, #tpu.memory_space<vmem>>, vector<1x128x64xbf16>
    %54 = vector.shape_cast %53 : vector<1x128x64xbf16> to vector<128x64xbf16>
    %cst_58 = arith.constant dense<0.000000e+00> : vector<2x64xf32>
    %55 = tpu.matmul %52, %54, %cst_58 {dimension_numbers = #tpu.dot_dimension_numbers<[1], [0], [0], [1], [0, 0, 1, 1], [], []>} : vector<2x128xbf16>, vector<128x64xbf16>, vector<2x64xf32> -> vector<2x64xf32>
    %56 = arith.addf %49, %55 : vector<2x64xf32>
    %c2_59 = arith.constant 2 : index
    %c0_60 = arith.constant 0 : index
    %c0_61 = arith.constant 0 : index
    %c0_62 = arith.constant 0 : index
    %c0_63 = arith.constant 0 : index
    %57 = vector.load %arg8[%c2_59, %c0_60, %c0_61, %c0_62, %c0_63] : memref<4x2x2x2x128xbf16, #tpu.memory_space<vmem>>, vector<1x2x1x1x128xbf16>
    %58 = vector.shape_cast %57 : vector<1x2x1x1x128xbf16> to vector<2x1x1x128xbf16>
    %59 = vector.shape_cast %58 : vector<2x1x1x128xbf16> to vector<2x128xbf16>
    %c3_64 = arith.constant 3 : index
    %c0_65 = arith.constant 0 : index
    %c0_66 = arith.constant 0 : index
    %60 = vector.load %arg2[%c3_64, %c0_65, %c0_66] : memref<9x128x64xbf16, #tpu.memory_space<vmem>>, vector<1x128x64xbf16>
    %61 = vector.shape_cast %60 : vector<1x128x64xbf16> to vector<128x64xbf16>
    %cst_67 = arith.constant dense<0.000000e+00> : vector<2x64xf32>
    %62 = tpu.matmul %59, %61, %cst_67 {dimension_numbers = #tpu.dot_dimension_numbers<[1], [0], [0], [1], [0, 0, 1, 1], [], []>} : vector<2x128xbf16>, vector<128x64xbf16>, vector<2x64xf32> -> vector<2x64xf32>
    %63 = arith.addf %56, %62 : vector<2x64xf32>
    %c3_68 = arith.constant 3 : index
    %c0_69 = arith.constant 0 : index
    %c0_70 = arith.constant 0 : index
    %c0_71 = arith.constant 0 : index
    %c0_72 = arith.constant 0 : index
    %64 = vector.load %arg8[%c3_68, %c0_69, %c0_70, %c0_71, %c0_72] : memref<4x2x2x2x128xbf16, #tpu.memory_space<vmem>>, vector<1x2x1x1x128xbf16>
    %65 = vector.shape_cast %64 : vector<1x2x1x1x128xbf16> to vector<2x1x1x128xbf16>
    %66 = vector.shape_cast %65 : vector<2x1x1x128xbf16> to vector<2x128xbf16>
    %c4 = arith.constant 4 : index
    %c0_73 = arith.constant 0 : index
    %c0_74 = arith.constant 0 : index
    %67 = vector.load %arg2[%c4, %c0_73, %c0_74] : memref<9x128x64xbf16, #tpu.memory_space<vmem>>, vector<1x128x64xbf16>
    %68 = vector.shape_cast %67 : vector<1x128x64xbf16> to vector<128x64xbf16>
    %cst_75 = arith.constant dense<0.000000e+00> : vector<2x64xf32>
    %69 = tpu.matmul %66, %68, %cst_75 {dimension_numbers = #tpu.dot_dimension_numbers<[1], [0], [0], [1], [0, 0, 1, 1], [], []>} : vector<2x128xbf16>, vector<128x64xbf16>, vector<2x64xf32> -> vector<2x64xf32>
    %70 = arith.addf %63, %69 : vector<2x64xf32>
    %c2_76 = arith.constant 2 : index
    %c0_77 = arith.constant 0 : index
    %c0_78 = arith.constant 0 : index
    %c1_79 = arith.constant 1 : index
    %c0_80 = arith.constant 0 : index
    %71 = vector.load %arg8[%c2_76, %c0_77, %c0_78, %c1_79, %c0_80] : memref<4x2x2x2x128xbf16, #tpu.memory_space<vmem>>, vector<1x2x1x1x128xbf16>
    %72 = vector.shape_cast %71 : vector<1x2x1x1x128xbf16> to vector<2x1x1x128xbf16>
    %73 = vector.shape_cast %72 : vector<2x1x1x128xbf16> to vector<2x128xbf16>
    %c5 = arith.constant 5 : index
    %c0_81 = arith.constant 0 : index
    %c0_82 = arith.constant 0 : index
    %74 = vector.load %arg2[%c5, %c0_81, %c0_82] : memref<9x128x64xbf16, #tpu.memory_space<vmem>>, vector<1x128x64xbf16>
    %75 = vector.shape_cast %74 : vector<1x128x64xbf16> to vector<128x64xbf16>
    %cst_83 = arith.constant dense<0.000000e+00> : vector<2x64xf32>
    %76 = tpu.matmul %73, %75, %cst_83 {dimension_numbers = #tpu.dot_dimension_numbers<[1], [0], [0], [1], [0, 0, 1, 1], [], []>} : vector<2x128xbf16>, vector<128x64xbf16>, vector<2x64xf32> -> vector<2x64xf32>
    %77 = arith.addf %70, %76 : vector<2x64xf32>
    %c0_84 = arith.constant 0 : index
    %c0_85 = arith.constant 0 : index
    %c1_86 = arith.constant 1 : index
    %c0_87 = arith.constant 0 : index
    %c0_88 = arith.constant 0 : index
    %78 = vector.load %arg8[%c0_84, %c0_85, %c1_86, %c0_87, %c0_88] : memref<4x2x2x2x128xbf16, #tpu.memory_space<vmem>>, vector<1x2x1x1x128xbf16>
    %79 = vector.shape_cast %78 : vector<1x2x1x1x128xbf16> to vector<2x1x1x128xbf16>
    %80 = vector.shape_cast %79 : vector<2x1x1x128xbf16> to vector<2x128xbf16>
    %c6 = arith.constant 6 : index
    %c0_89 = arith.constant 0 : index
    %c0_90 = arith.constant 0 : index
    %81 = vector.load %arg2[%c6, %c0_89, %c0_90] : memref<9x128x64xbf16, #tpu.memory_space<vmem>>, vector<1x128x64xbf16>
    %82 = vector.shape_cast %81 : vector<1x128x64xbf16> to vector<128x64xbf16>
    %cst_91 = arith.constant dense<0.000000e+00> : vector<2x64xf32>
    %83 = tpu.matmul %80, %82, %cst_91 {dimension_numbers = #tpu.dot_dimension_numbers<[1], [0], [0], [1], [0, 0, 1, 1], [], []>} : vector<2x128xbf16>, vector<128x64xbf16>, vector<2x64xf32> -> vector<2x64xf32>
    %84 = arith.addf %77, %83 : vector<2x64xf32>
    %c1_92 = arith.constant 1 : index
    %c0_93 = arith.constant 0 : index
    %c1_94 = arith.constant 1 : index
    %c0_95 = arith.constant 0 : index
    %c0_96 = arith.constant 0 : index
    %85 = vector.load %arg8[%c1_92, %c0_93, %c1_94, %c0_95, %c0_96] : memref<4x2x2x2x128xbf16, #tpu.memory_space<vmem>>, vector<1x2x1x1x128xbf16>
    %86 = vector.shape_cast %85 : vector<1x2x1x1x128xbf16> to vector<2x1x1x128xbf16>
    %87 = vector.shape_cast %86 : vector<2x1x1x128xbf16> to vector<2x128xbf16>
    %c7 = arith.constant 7 : index
    %c0_97 = arith.constant 0 : index
    %c0_98 = arith.constant 0 : index
    %88 = vector.load %arg2[%c7, %c0_97, %c0_98] : memref<9x128x64xbf16, #tpu.memory_space<vmem>>, vector<1x128x64xbf16>
    %89 = vector.shape_cast %88 : vector<1x128x64xbf16> to vector<128x64xbf16>
    %cst_99 = arith.constant dense<0.000000e+00> : vector<2x64xf32>
    %90 = tpu.matmul %87, %89, %cst_99 {dimension_numbers = #tpu.dot_dimension_numbers<[1], [0], [0], [1], [0, 0, 1, 1], [], []>} : vector<2x128xbf16>, vector<128x64xbf16>, vector<2x64xf32> -> vector<2x64xf32>
    %91 = arith.addf %84, %90 : vector<2x64xf32>
    %c0_100 = arith.constant 0 : index
    %c0_101 = arith.constant 0 : index
    %c1_102 = arith.constant 1 : index
    %c1_103 = arith.constant 1 : index
    %c0_104 = arith.constant 0 : index
    %92 = vector.load %arg8[%c0_100, %c0_101, %c1_102, %c1_103, %c0_104] : memref<4x2x2x2x128xbf16, #tpu.memory_space<vmem>>, vector<1x2x1x1x128xbf16>
    %93 = vector.shape_cast %92 : vector<1x2x1x1x128xbf16> to vector<2x1x1x128xbf16>
    %94 = vector.shape_cast %93 : vector<2x1x1x128xbf16> to vector<2x128xbf16>
    %c8 = arith.constant 8 : index
    %c0_105 = arith.constant 0 : index
    %c0_106 = arith.constant 0 : index
    %95 = vector.load %arg2[%c8, %c0_105, %c0_106] : memref<9x128x64xbf16, #tpu.memory_space<vmem>>, vector<1x128x64xbf16>
    %96 = vector.shape_cast %95 : vector<1x128x64xbf16> to vector<128x64xbf16>
    %cst_107 = arith.constant dense<0.000000e+00> : vector<2x64xf32>
    %97 = tpu.matmul %94, %96, %cst_107 {dimension_numbers = #tpu.dot_dimension_numbers<[1], [0], [0], [1], [0, 0, 1, 1], [], []>} : vector<2x128xbf16>, vector<128x64xbf16>, vector<2x64xf32> -> vector<2x64xf32>
    %98 = arith.addf %91, %97 : vector<2x64xf32>
    %cst_108 = arith.constant dense<0.000000e+00> : vector<64xf32>
    %99 = vector.multi_reduction <add>, %98, %cst_108 [0] : vector<2x64xf32> to vector<64xf32>
    %100 = vector.shape_cast %99 : vector<64xf32> to vector<1x64xf32>
    %c0_109 = arith.constant 0 : index
    %c0_110 = arith.constant 0 : index
    %101 = vector.load %arg6[%c0_109, %c0_110] : memref<1x64xf32, #tpu.memory_space<vmem>>, vector<1x64xf32>
    tpu.vector_store %arg6[%c0_109, %c0_110], %100 {strides = array<i32>} : memref<1x64xf32, #tpu.memory_space<vmem>>, vector<1x64xf32>,
    %102 = arith.mulf %98, %98 : vector<2x64xf32>
    %cst_111 = arith.constant dense<0.000000e+00> : vector<64xf32>
    %103 = vector.multi_reduction <add>, %102, %cst_111 [0] : vector<2x64xf32> to vector<64xf32>
    %104 = vector.shape_cast %103 : vector<64xf32> to vector<1x64xf32>
    %c0_112 = arith.constant 0 : index
    %c0_113 = arith.constant 0 : index
    %105 = vector.load %arg7[%c0_112, %c0_113] : memref<1x64xf32, #tpu.memory_space<vmem>>, vector<1x64xf32>
    tpu.vector_store %arg7[%c0_112, %c0_113], %104 {strides = array<i32>} : memref<1x64xf32, #tpu.memory_space<vmem>>, vector<1x64xf32>,
    %106 = arith.truncf %98 : vector<2x64xf32> to vector<2x64xbf16>
    %c0_114 = arith.constant 0 : index
    %c0_115 = arith.constant 0 : index
    %107 = vector.load %arg5[%c0_114, %c0_115] : memref<2x64xbf16, #tpu.memory_space<vmem>>, vector<2x64xbf16>
    tpu.vector_store %arg5[%c0_114, %c0_115], %106 {strides = array<i32>} : memref<2x64xbf16, #tpu.memory_space<vmem>>, vector<2x64xbf16>,
    return
  }
  func.func @transform_0(%arg0: i32) -> (i32, i32, i32, i32, i32) {
    %c0_i32 = arith.constant 0 : i32
    %c0_i32_0 = arith.constant 0 : i32
    %c0_i32_1 = arith.constant 0 : i32
    %c0_i32_2 = arith.constant 0 : i32
    %c0_i32_3 = arith.constant 0 : i32
    %c0_i32_4 = arith.constant 0 : i32
    return %c0_i32, %c0_i32_0, %c0_i32_1, %c0_i32_2, %c0_i32_3 : i32, i32, i32, i32, i32
  }
  func.func @transform_1(%arg0: i32) -> (i32, i32, i32) {
    %c0_i32 = arith.constant 0 : i32
    %c0_i32_0 = arith.constant 0 : i32
    %c0_i32_1 = arith.constant 0 : i32
    return %c0_i32, %c0_i32_0, %arg0 : i32, i32, i32
  }
  func.func @transform_2(%arg0: i32) -> (i32, i32) {
    %c0_i32 = arith.constant 0 : i32
    %c0_i32_0 = arith.constant 0 : i32
    %c0_i32_1 = arith.constant 0 : i32
    return %c0_i32, %c0_i32_0 : i32, i32
  }
  func.func @transform_3(%arg0: i32) -> (i32, i32) {
    %c0_i32 = arith.constant 0 : i32
    %c0_i32_0 = arith.constant 0 : i32
    %c0_i32_1 = arith.constant 0 : i32
    return %c0_i32, %c0_i32_0 : i32, i32
  }
  func.func @transform_4(%arg0: i32) -> (i32, i32) {
    %c0_i32 = arith.constant 0 : i32
    %c0_i32_0 = arith.constant 0 : i32
    return %c0_i32, %arg0 : i32, i32
  }
  func.func @transform_5(%arg0: i32) -> (i32, i32) {
    %c0_i32 = arith.constant 0 : i32
    %c0_i32_0 = arith.constant 0 : i32
    return %c0_i32, %arg0 : i32, i32
  }
  func.func @transform_6(%arg0: i32) -> (i32, i32) {
    %c0_i32 = arith.constant 0 : i32
    %c0_i32_0 = arith.constant 0 : i32
    return %c0_i32, %arg0 : i32, i32
  }
}

module attributes {stable_mosaic.version = 11 : i64} {
  func.func @kernel(%arg0: i32, %arg1: memref<1x2x1x1x64xbf16, #tpu.memory_space<vmem>>, %arg2: memref<9x64x256xbf16, #tpu.memory_space<vmem>>, %arg3: memref<2x256xbf16, #tpu.memory_space<vmem>>, %arg4: memref<2x256xbf16, #tpu.memory_space<vmem>>, %arg5: memref<1x256xf32, #tpu.memory_space<vmem>>, %arg6: memref<1x256xf32, #tpu.memory_space<vmem>>, %arg7: memref<1x2x3x3x64xbf16, #tpu.memory_space<vmem>>) attributes {dimension_semantics = [#tpu.dimension_semantics<parallel>], iteration_bounds = array<i64: 1>, scalar_prefetch = 0 : i64, scratch_operands = 1 : i64, tpu.core_type = #tpu.core_type<tc>, window_params = [{pipeline_mode = #tpu.pipeline_mode<synchronous>, transform_indices = @transform_0, window_bounds = array<i64: 1, 2, 1, 1, 64>}, {transform_indices = @transform_1, window_bounds = array<i64: 9, 64, 256>}, {transform_indices = @transform_2, window_bounds = array<i64: 2, 256>}, {transform_indices = @transform_3, window_bounds = array<i64: 2, 256>}, {transform_indices = @transform_4, window_bounds = array<i64: 1, 256>}, {transform_indices = @transform_5, window_bounds = array<i64: 1, 256>}]} {
    %c0 = arith.constant 0 : index
    %c0_0 = arith.constant 0 : index
    %c0_1 = arith.constant 0 : index
    %c0_2 = arith.constant 0 : index
    %c0_3 = arith.constant 0 : index
    %0 = vector.load %arg1[%c0, %c0_0, %c0_1, %c0_2, %c0_3] : memref<1x2x1x1x64xbf16, #tpu.memory_space<vmem>>, vector<1x2x1x1x64xbf16>
    %1 = arith.extf %0 : vector<1x2x1x1x64xbf16> to vector<1x2x1x1x64xf32>
    %cst = arith.constant 0.000000e+00 : f32
    %2 = vector.broadcast %cst : f32 to vector<1x2x1x1x64xf32>
    %3 = arith.maximumf %1, %2 : vector<1x2x1x1x64xf32>
    %4 = arith.truncf %3 : vector<1x2x1x1x64xf32> to vector<1x2x1x1x64xbf16>
    %cst_4 = arith.constant 0.000000e+00 : bf16
    %5 = vector.broadcast %cst_4 : bf16 to vector<1x2x3x3x64xbf16>
    %c0_5 = arith.constant 0 : index
    %c0_6 = arith.constant 0 : index
    %c0_7 = arith.constant 0 : index
    %c0_8 = arith.constant 0 : index
    %c0_9 = arith.constant 0 : index
    %6 = vector.load %arg7[%c0_5, %c0_6, %c0_7, %c0_8, %c0_9] : memref<1x2x3x3x64xbf16, #tpu.memory_space<vmem>>, vector<1x2x3x3x64xbf16>
    tpu.vector_store %arg7[%c0_5, %c0_6, %c0_7, %c0_8, %c0_9], %5 {strides = array<i32>} : memref<1x2x3x3x64xbf16, #tpu.memory_space<vmem>>, vector<1x2x3x3x64xbf16>,
    %7 = vector.shape_cast %4 : vector<1x2x1x1x64xbf16> to vector<2x1x1x64xbf16>
    %c0_10 = arith.constant 0 : index
    %c0_11 = arith.constant 0 : index
    %c1 = arith.constant 1 : index
    %c1_12 = arith.constant 1 : index
    %c0_13 = arith.constant 0 : index
    %8 = vector.load %arg7[%c0_10, %c0_11, %c1, %c1_12, %c0_13] : memref<1x2x3x3x64xbf16, #tpu.memory_space<vmem>>, vector<1x2x1x1x64xbf16>
    %9 = vector.shape_cast %8 : vector<1x2x1x1x64xbf16> to vector<2x1x1x64xbf16>
    %10 = vector.shape_cast %7 : vector<2x1x1x64xbf16> to vector<1x2x1x1x64xbf16>
    tpu.vector_store %arg7[%c0_10, %c0_11, %c1, %c1_12, %c0_13], %10 {strides = array<i32>} : memref<1x2x3x3x64xbf16, #tpu.memory_space<vmem>>, vector<1x2x1x1x64xbf16>,
    %cst_14 = arith.constant 0.000000e+00 : f32
    %11 = vector.broadcast %cst_14 : f32 to vector<2x256xf32>
    %c0_15 = arith.constant 0 : index
    %c0_16 = arith.constant 0 : index
    %c0_17 = arith.constant 0 : index
    %c0_18 = arith.constant 0 : index
    %c0_19 = arith.constant 0 : index
    %12 = vector.load %arg7[%c0_15, %c0_16, %c0_17, %c0_18, %c0_19] : memref<1x2x3x3x64xbf16, #tpu.memory_space<vmem>>, vector<1x2x1x1x64xbf16>
    %13 = vector.shape_cast %12 : vector<1x2x1x1x64xbf16> to vector<2x1x1x64xbf16>
    %14 = vector.shape_cast %13 : vector<2x1x1x64xbf16> to vector<2x64xbf16>
    %c0_20 = arith.constant 0 : index
    %c0_21 = arith.constant 0 : index
    %c0_22 = arith.constant 0 : index
    %15 = vector.load %arg2[%c0_20, %c0_21, %c0_22] : memref<9x64x256xbf16, #tpu.memory_space<vmem>>, vector<1x64x256xbf16>
    %16 = vector.shape_cast %15 : vector<1x64x256xbf16> to vector<64x256xbf16>
    %cst_23 = arith.constant dense<0.000000e+00> : vector<2x256xf32>
    %17 = tpu.matmul %14, %16, %cst_23 {dimension_numbers = #tpu.dot_dimension_numbers<[1], [0], [0], [1], [0, 0, 1, 1], [], []>} : vector<2x64xbf16>, vector<64x256xbf16>, vector<2x256xf32> -> vector<2x256xf32>
    %18 = arith.addf %11, %17 : vector<2x256xf32>
    %c0_24 = arith.constant 0 : index
    %c0_25 = arith.constant 0 : index
    %c0_26 = arith.constant 0 : index
    %c1_27 = arith.constant 1 : index
    %c0_28 = arith.constant 0 : index
    %19 = vector.load %arg7[%c0_24, %c0_25, %c0_26, %c1_27, %c0_28] : memref<1x2x3x3x64xbf16, #tpu.memory_space<vmem>>, vector<1x2x1x1x64xbf16>
    %20 = vector.shape_cast %19 : vector<1x2x1x1x64xbf16> to vector<2x1x1x64xbf16>
    %21 = vector.shape_cast %20 : vector<2x1x1x64xbf16> to vector<2x64xbf16>
    %c1_29 = arith.constant 1 : index
    %c0_30 = arith.constant 0 : index
    %c0_31 = arith.constant 0 : index
    %22 = vector.load %arg2[%c1_29, %c0_30, %c0_31] : memref<9x64x256xbf16, #tpu.memory_space<vmem>>, vector<1x64x256xbf16>
    %23 = vector.shape_cast %22 : vector<1x64x256xbf16> to vector<64x256xbf16>
    %cst_32 = arith.constant dense<0.000000e+00> : vector<2x256xf32>
    %24 = tpu.matmul %21, %23, %cst_32 {dimension_numbers = #tpu.dot_dimension_numbers<[1], [0], [0], [1], [0, 0, 1, 1], [], []>} : vector<2x64xbf16>, vector<64x256xbf16>, vector<2x256xf32> -> vector<2x256xf32>
    %25 = arith.addf %18, %24 : vector<2x256xf32>
    %c0_33 = arith.constant 0 : index
    %c0_34 = arith.constant 0 : index
    %c0_35 = arith.constant 0 : index
    %c2 = arith.constant 2 : index
    %c0_36 = arith.constant 0 : index
    %26 = vector.load %arg7[%c0_33, %c0_34, %c0_35, %c2, %c0_36] : memref<1x2x3x3x64xbf16, #tpu.memory_space<vmem>>, vector<1x2x1x1x64xbf16>
    %27 = vector.shape_cast %26 : vector<1x2x1x1x64xbf16> to vector<2x1x1x64xbf16>
    %28 = vector.shape_cast %27 : vector<2x1x1x64xbf16> to vector<2x64xbf16>
    %c2_37 = arith.constant 2 : index
    %c0_38 = arith.constant 0 : index
    %c0_39 = arith.constant 0 : index
    %29 = vector.load %arg2[%c2_37, %c0_38, %c0_39] : memref<9x64x256xbf16, #tpu.memory_space<vmem>>, vector<1x64x256xbf16>
    %30 = vector.shape_cast %29 : vector<1x64x256xbf16> to vector<64x256xbf16>
    %cst_40 = arith.constant dense<0.000000e+00> : vector<2x256xf32>
    %31 = tpu.matmul %28, %30, %cst_40 {dimension_numbers = #tpu.dot_dimension_numbers<[1], [0], [0], [1], [0, 0, 1, 1], [], []>} : vector<2x64xbf16>, vector<64x256xbf16>, vector<2x256xf32> -> vector<2x256xf32>
    %32 = arith.addf %25, %31 : vector<2x256xf32>
    %c0_41 = arith.constant 0 : index
    %c0_42 = arith.constant 0 : index
    %c1_43 = arith.constant 1 : index
    %c0_44 = arith.constant 0 : index
    %c0_45 = arith.constant 0 : index
    %33 = vector.load %arg7[%c0_41, %c0_42, %c1_43, %c0_44, %c0_45] : memref<1x2x3x3x64xbf16, #tpu.memory_space<vmem>>, vector<1x2x1x1x64xbf16>
    %34 = vector.shape_cast %33 : vector<1x2x1x1x64xbf16> to vector<2x1x1x64xbf16>
    %35 = vector.shape_cast %34 : vector<2x1x1x64xbf16> to vector<2x64xbf16>
    %c3 = arith.constant 3 : index
    %c0_46 = arith.constant 0 : index
    %c0_47 = arith.constant 0 : index
    %36 = vector.load %arg2[%c3, %c0_46, %c0_47] : memref<9x64x256xbf16, #tpu.memory_space<vmem>>, vector<1x64x256xbf16>
    %37 = vector.shape_cast %36 : vector<1x64x256xbf16> to vector<64x256xbf16>
    %cst_48 = arith.constant dense<0.000000e+00> : vector<2x256xf32>
    %38 = tpu.matmul %35, %37, %cst_48 {dimension_numbers = #tpu.dot_dimension_numbers<[1], [0], [0], [1], [0, 0, 1, 1], [], []>} : vector<2x64xbf16>, vector<64x256xbf16>, vector<2x256xf32> -> vector<2x256xf32>
    %39 = arith.addf %32, %38 : vector<2x256xf32>
    %c0_49 = arith.constant 0 : index
    %c0_50 = arith.constant 0 : index
    %c1_51 = arith.constant 1 : index
    %c1_52 = arith.constant 1 : index
    %c0_53 = arith.constant 0 : index
    %40 = vector.load %arg7[%c0_49, %c0_50, %c1_51, %c1_52, %c0_53] : memref<1x2x3x3x64xbf16, #tpu.memory_space<vmem>>, vector<1x2x1x1x64xbf16>
    %41 = vector.shape_cast %40 : vector<1x2x1x1x64xbf16> to vector<2x1x1x64xbf16>
    %42 = vector.shape_cast %41 : vector<2x1x1x64xbf16> to vector<2x64xbf16>
    %c4 = arith.constant 4 : index
    %c0_54 = arith.constant 0 : index
    %c0_55 = arith.constant 0 : index
    %43 = vector.load %arg2[%c4, %c0_54, %c0_55] : memref<9x64x256xbf16, #tpu.memory_space<vmem>>, vector<1x64x256xbf16>
    %44 = vector.shape_cast %43 : vector<1x64x256xbf16> to vector<64x256xbf16>
    %cst_56 = arith.constant dense<0.000000e+00> : vector<2x256xf32>
    %45 = tpu.matmul %42, %44, %cst_56 {dimension_numbers = #tpu.dot_dimension_numbers<[1], [0], [0], [1], [0, 0, 1, 1], [], []>} : vector<2x64xbf16>, vector<64x256xbf16>, vector<2x256xf32> -> vector<2x256xf32>
    %46 = arith.addf %39, %45 : vector<2x256xf32>
    %c0_57 = arith.constant 0 : index
    %c0_58 = arith.constant 0 : index
    %c1_59 = arith.constant 1 : index
    %c2_60 = arith.constant 2 : index
    %c0_61 = arith.constant 0 : index
    %47 = vector.load %arg7[%c0_57, %c0_58, %c1_59, %c2_60, %c0_61] : memref<1x2x3x3x64xbf16, #tpu.memory_space<vmem>>, vector<1x2x1x1x64xbf16>
    %48 = vector.shape_cast %47 : vector<1x2x1x1x64xbf16> to vector<2x1x1x64xbf16>
    %49 = vector.shape_cast %48 : vector<2x1x1x64xbf16> to vector<2x64xbf16>
    %c5 = arith.constant 5 : index
    %c0_62 = arith.constant 0 : index
    %c0_63 = arith.constant 0 : index
    %50 = vector.load %arg2[%c5, %c0_62, %c0_63] : memref<9x64x256xbf16, #tpu.memory_space<vmem>>, vector<1x64x256xbf16>
    %51 = vector.shape_cast %50 : vector<1x64x256xbf16> to vector<64x256xbf16>
    %cst_64 = arith.constant dense<0.000000e+00> : vector<2x256xf32>
    %52 = tpu.matmul %49, %51, %cst_64 {dimension_numbers = #tpu.dot_dimension_numbers<[1], [0], [0], [1], [0, 0, 1, 1], [], []>} : vector<2x64xbf16>, vector<64x256xbf16>, vector<2x256xf32> -> vector<2x256xf32>
    %53 = arith.addf %46, %52 : vector<2x256xf32>
    %c0_65 = arith.constant 0 : index
    %c0_66 = arith.constant 0 : index
    %c2_67 = arith.constant 2 : index
    %c0_68 = arith.constant 0 : index
    %c0_69 = arith.constant 0 : index
    %54 = vector.load %arg7[%c0_65, %c0_66, %c2_67, %c0_68, %c0_69] : memref<1x2x3x3x64xbf16, #tpu.memory_space<vmem>>, vector<1x2x1x1x64xbf16>
    %55 = vector.shape_cast %54 : vector<1x2x1x1x64xbf16> to vector<2x1x1x64xbf16>
    %56 = vector.shape_cast %55 : vector<2x1x1x64xbf16> to vector<2x64xbf16>
    %c6 = arith.constant 6 : index
    %c0_70 = arith.constant 0 : index
    %c0_71 = arith.constant 0 : index
    %57 = vector.load %arg2[%c6, %c0_70, %c0_71] : memref<9x64x256xbf16, #tpu.memory_space<vmem>>, vector<1x64x256xbf16>
    %58 = vector.shape_cast %57 : vector<1x64x256xbf16> to vector<64x256xbf16>
    %cst_72 = arith.constant dense<0.000000e+00> : vector<2x256xf32>
    %59 = tpu.matmul %56, %58, %cst_72 {dimension_numbers = #tpu.dot_dimension_numbers<[1], [0], [0], [1], [0, 0, 1, 1], [], []>} : vector<2x64xbf16>, vector<64x256xbf16>, vector<2x256xf32> -> vector<2x256xf32>
    %60 = arith.addf %53, %59 : vector<2x256xf32>
    %c0_73 = arith.constant 0 : index
    %c0_74 = arith.constant 0 : index
    %c2_75 = arith.constant 2 : index
    %c1_76 = arith.constant 1 : index
    %c0_77 = arith.constant 0 : index
    %61 = vector.load %arg7[%c0_73, %c0_74, %c2_75, %c1_76, %c0_77] : memref<1x2x3x3x64xbf16, #tpu.memory_space<vmem>>, vector<1x2x1x1x64xbf16>
    %62 = vector.shape_cast %61 : vector<1x2x1x1x64xbf16> to vector<2x1x1x64xbf16>
    %63 = vector.shape_cast %62 : vector<2x1x1x64xbf16> to vector<2x64xbf16>
    %c7 = arith.constant 7 : index
    %c0_78 = arith.constant 0 : index
    %c0_79 = arith.constant 0 : index
    %64 = vector.load %arg2[%c7, %c0_78, %c0_79] : memref<9x64x256xbf16, #tpu.memory_space<vmem>>, vector<1x64x256xbf16>
    %65 = vector.shape_cast %64 : vector<1x64x256xbf16> to vector<64x256xbf16>
    %cst_80 = arith.constant dense<0.000000e+00> : vector<2x256xf32>
    %66 = tpu.matmul %63, %65, %cst_80 {dimension_numbers = #tpu.dot_dimension_numbers<[1], [0], [0], [1], [0, 0, 1, 1], [], []>} : vector<2x64xbf16>, vector<64x256xbf16>, vector<2x256xf32> -> vector<2x256xf32>
    %67 = arith.addf %60, %66 : vector<2x256xf32>
    %c0_81 = arith.constant 0 : index
    %c0_82 = arith.constant 0 : index
    %c2_83 = arith.constant 2 : index
    %c2_84 = arith.constant 2 : index
    %c0_85 = arith.constant 0 : index
    %68 = vector.load %arg7[%c0_81, %c0_82, %c2_83, %c2_84, %c0_85] : memref<1x2x3x3x64xbf16, #tpu.memory_space<vmem>>, vector<1x2x1x1x64xbf16>
    %69 = vector.shape_cast %68 : vector<1x2x1x1x64xbf16> to vector<2x1x1x64xbf16>
    %70 = vector.shape_cast %69 : vector<2x1x1x64xbf16> to vector<2x64xbf16>
    %c8 = arith.constant 8 : index
    %c0_86 = arith.constant 0 : index
    %c0_87 = arith.constant 0 : index
    %71 = vector.load %arg2[%c8, %c0_86, %c0_87] : memref<9x64x256xbf16, #tpu.memory_space<vmem>>, vector<1x64x256xbf16>
    %72 = vector.shape_cast %71 : vector<1x64x256xbf16> to vector<64x256xbf16>
    %cst_88 = arith.constant dense<0.000000e+00> : vector<2x256xf32>
    %73 = tpu.matmul %70, %72, %cst_88 {dimension_numbers = #tpu.dot_dimension_numbers<[1], [0], [0], [1], [0, 0, 1, 1], [], []>} : vector<2x64xbf16>, vector<64x256xbf16>, vector<2x256xf32> -> vector<2x256xf32>
    %74 = arith.addf %67, %73 : vector<2x256xf32>
    %c0_89 = arith.constant 0 : index
    %c0_90 = arith.constant 0 : index
    %75 = vector.load %arg3[%c0_89, %c0_90] : memref<2x256xbf16, #tpu.memory_space<vmem>>, vector<2x256xbf16>
    %76 = arith.extf %75 : vector<2x256xbf16> to vector<2x256xf32>
    %77 = arith.addf %74, %76 : vector<2x256xf32>
    %cst_91 = arith.constant dense<0.000000e+00> : vector<256xf32>
    %78 = vector.multi_reduction <add>, %77, %cst_91 [0] : vector<2x256xf32> to vector<256xf32>
    %79 = vector.shape_cast %78 : vector<256xf32> to vector<1x256xf32>
    %c0_92 = arith.constant 0 : index
    %c0_93 = arith.constant 0 : index
    %80 = vector.load %arg5[%c0_92, %c0_93] : memref<1x256xf32, #tpu.memory_space<vmem>>, vector<1x256xf32>
    tpu.vector_store %arg5[%c0_92, %c0_93], %79 {strides = array<i32>} : memref<1x256xf32, #tpu.memory_space<vmem>>, vector<1x256xf32>,
    %81 = arith.mulf %77, %77 : vector<2x256xf32>
    %cst_94 = arith.constant dense<0.000000e+00> : vector<256xf32>
    %82 = vector.multi_reduction <add>, %81, %cst_94 [0] : vector<2x256xf32> to vector<256xf32>
    %83 = vector.shape_cast %82 : vector<256xf32> to vector<1x256xf32>
    %c0_95 = arith.constant 0 : index
    %c0_96 = arith.constant 0 : index
    %84 = vector.load %arg6[%c0_95, %c0_96] : memref<1x256xf32, #tpu.memory_space<vmem>>, vector<1x256xf32>
    tpu.vector_store %arg6[%c0_95, %c0_96], %83 {strides = array<i32>} : memref<1x256xf32, #tpu.memory_space<vmem>>, vector<1x256xf32>,
    %85 = arith.truncf %77 : vector<2x256xf32> to vector<2x256xbf16>
    %c0_97 = arith.constant 0 : index
    %c0_98 = arith.constant 0 : index
    %86 = vector.load %arg4[%c0_97, %c0_98] : memref<2x256xbf16, #tpu.memory_space<vmem>>, vector<2x256xbf16>
    tpu.vector_store %arg4[%c0_97, %c0_98], %85 {strides = array<i32>} : memref<2x256xbf16, #tpu.memory_space<vmem>>, vector<2x256xbf16>,
    return
  }
  func.func @transform_0(%arg0: i32) -> (i32, i32, i32, i32, i32) {
    %c0_i32 = arith.constant 0 : i32
    %c0_i32_0 = arith.constant 0 : i32
    %c0_i32_1 = arith.constant 0 : i32
    %c0_i32_2 = arith.constant 0 : i32
    %c0_i32_3 = arith.constant 0 : i32
    %c0_i32_4 = arith.constant 0 : i32
    return %c0_i32, %c0_i32_0, %c0_i32_1, %c0_i32_2, %c0_i32_3 : i32, i32, i32, i32, i32
  }
  func.func @transform_1(%arg0: i32) -> (i32, i32, i32) {
    %c0_i32 = arith.constant 0 : i32
    %c0_i32_0 = arith.constant 0 : i32
    %c0_i32_1 = arith.constant 0 : i32
    return %c0_i32, %c0_i32_0, %arg0 : i32, i32, i32
  }
  func.func @transform_2(%arg0: i32) -> (i32, i32) {
    %c0_i32 = arith.constant 0 : i32
    %c0_i32_0 = arith.constant 0 : i32
    return %c0_i32, %arg0 : i32, i32
  }
  func.func @transform_3(%arg0: i32) -> (i32, i32) {
    %c0_i32 = arith.constant 0 : i32
    %c0_i32_0 = arith.constant 0 : i32
    return %c0_i32, %arg0 : i32, i32
  }
  func.func @transform_4(%arg0: i32) -> (i32, i32) {
    %c0_i32 = arith.constant 0 : i32
    %c0_i32_0 = arith.constant 0 : i32
    return %c0_i32, %arg0 : i32, i32
  }
  func.func @transform_5(%arg0: i32) -> (i32, i32) {
    %c0_i32 = arith.constant 0 : i32
    %c0_i32_0 = arith.constant 0 : i32
    return %c0_i32, %arg0 : i32, i32
  }
}

</mosaic_0001>

<bundles_post_ra>
// kernel: _lambda_.9
= control target key start
LH: loop header
LB: loop body
LE: loop exit
PB: predicated region body
PF: predicated region fallthrough
CT: control target
= control target key end

     0   :  { %vm86_vm0 = vcmask 256000   ;;  %v2578_v1 = vmov 0   ;;  %v436_v4 = vlaneseq  ;;  %vm189_vm1 = vsmask.f32 2306  ;;  %s3028_s1 = inlined_call_operand.vmem [shape: bf16[9,32,64], index: 1, kind: input, shape index: {}]   ;;  %s3029_s0 = inlined_call_operand.vmem [shape: bf16[1,2,4,4,32], index: 0, kind: input, shape index: {}]   ;;  %s3030_s2 = inlined_call_operand.vmem [shape: f32[1,32], index: 2, kind: input, shape index: {}]   ;;  %s3031_s3 = inlined_call_operand.vmem [shape: f32[1,32], index: 3, kind: input, shape index: {}]   ;;  %s3032_s4 = inlined_call_operand.vmem [shape: bf16[32,64], index: 4, kind: input, shape index: {}]   ;;  %s3033_s5 = inlined_call_operand.vmem [shape: bf16[32,64], index: 5, kind: output, shape index: {0}]   ;;  %s3034_s6 = inlined_call_operand.vmem [shape: f32[1,64], index: 6, kind: output, shape index: {1}]   ;;  %s3035_s7 = inlined_call_operand.vmem [shape: f32[1,64], index: 7, kind: output, shape index: {2}]  }
   0x1   :  { %v2536_v0 = vld [vmem:[%s3028_s1 + $0x18] sm:$0xff]   ;;  %87 = vst.msk [vmem:[#allocation2] sm:$0x7] %vm86_vm0, %v2578_v1  ;;  %88 = vst.msk [vmem:[#allocation2 + $0x4] sm:$0x7] %vm86_vm0, %v2578_v1  ;;  %v2537_v2 = vld [vmem:[%s3028_s1 + $0x8] sm:$0xff]  }
   0x2   :  { %89 = vst.msk [vmem:[#allocation2 + $0x8] sm:$0x7] %vm86_vm0, %v2578_v1  ;;  %90 = vst.msk [vmem:[#allocation2 + $0xc] sm:$0x7] %vm86_vm0, %v2578_v1  ;;  %2462 = vmatprep.subr.bf16.mxu0 %v2536_v0  ;;  %v2538_v3 = vld [vmem:[%s3028_s1 + $0x10] sm:$0xff]   ;;  %2470 = vmatprep.subr.bf16.mxu1 %v2537_v2  ;;  %v2539_v5 = vld [vmem:[%s3028_s1] sm:$0xff]  }
   0x3   :  { %91 = vst.msk [vmem:[#allocation2 + $0x10] sm:$0x7] %vm86_vm0, %v2578_v1  ;;  %92 = vst.msk [vmem:[#allocation2 + $0x14] sm:$0x7] %vm86_vm0, %v2578_v1  ;;  %2463 = vmatpush3.bf16.msra.mxu0 %v2536_v0  ;;  %2471 = vmatpush3.bf16.msra.mxu1 %v2537_v2  ;;  %v24_v6 = vld [vmem:[%s3029_s0] sm:$0x3] }
   0x4   :  { %93 = vst.msk [vmem:[#allocation2 + $0x18] sm:$0x7] %vm86_vm0, %v2578_v1  ;;  %94 = vst.msk [vmem:[#allocation2 + $0x1c] sm:$0x7] %vm86_vm0, %v2578_v1  ;;  %2464 = vmatprep.subr.bf16.mxu0 %v2538_v3  ;;  %v25_v7 = vld [vmem:[%s3029_s0 + $0x2] sm:$0x3]  ;;  %2472 = vmatprep.subr.bf16.mxu1 %v2539_v5  ;;  %v32_v9 = vunpack.c.l.bf16 %v24_v6 }
   0x5   :  { %95 = vst.msk [vmem:[#allocation2 + $0x20] sm:$0x7] %vm86_vm0, %v2578_v1  ;;  %96 = vst.msk [vmem:[#allocation2 + $0x24] sm:$0x7] %vm86_vm0, %v2578_v1  ;;  %v26_v8 = vld [vmem:[%s3029_s0 + $0x4] sm:$0x3]  ;;  %v33_v10 = vunpack.c.l.bf16 %v25_v7 }
   0x6   :  { %97 = vst.msk [vmem:[#allocation2 + $0x28] sm:$0x7] %vm86_vm0, %v2578_v1  ;;  %98 = vst.msk [vmem:[#allocation2 + $0x2c] sm:$0x7] %vm86_vm0, %v2578_v1  ;;  %v34_v11 = vunpack.c.l.bf16 %v26_v8  ;;  %v2656_v12 = vld [vmem:[%s3030_s2] ss:$0 sm:$0xff] }
   0x7   :  { %v2661_v13 = vld [vmem:[%s3031_s3] ss:$0 sm:$0xff]  ;;  %v437_v14 = vshrl.u32 %v436_v4, 7  ;;  %2465 = vmatpush3.bf16.msra.mxu0 %v2538_v3  ;;  %v47_v15 = vmul.f32 %v2656_v12, %v32_v9  ;;  %v48_v16 = vmul.f32 %v2656_v12, %v33_v10  ;;  %v2579_v18 = vmov 1983009808   ;;  %2473 = vmatpush3.bf16.msra.mxu1 %v2539_v5  ;;  %v2672_v28 = vld [vmem:[%s3028_s1 + $0x28] sm:$0xff]   ;;  %vm2701_vm8 = vmand %vm86_vm0, %vm189_vm1 }
   0x8   :  { %v49_v17 = vmul.f32 %v2656_v12, %v34_v11  ;;  %v434_v19 = vunpack.c.l.s4 %v2579_v18  ;;  %v2261_v20 = vld.sshfl [vmem:[#allocation2] sm:$0x13 pattern:$0x76325410]  ;;  %vm307_vm2 = vsmask.f32 1280  ;;  %2478 = vmatprep.subr.bf16.mxu0 %v2672_v28 }
   0x9   :  { %vm308_vm3 = vsmask.f32 3336  ;;  %v62_v21 = vadd.f32 %v2661_v13, %v47_v15  ;;  %v63_v22 = vadd.f32 %v2661_v13, %v48_v16  ;;  %v250_v24 = vcombine.high %v2261_v20, %v2261_v20  ;;  %v28_v29 = vld [vmem:[%s3029_s0 + $0x8] sm:$0x3]  ;;  %v2680_v30 = vld [vmem:[%s3028_s1 + $0x38] sm:$0xff]  }
   0xa   :  { %v64_v23 = vadd.f32 %v2661_v13, %v49_v17  ;;  %v315_v25 = vshrl.u32 %v2261_v20, 16  ;;  %v318_v26 = vshll.u32 %v2261_v20, 16  ;;  %v435_v27 = vunpack.c.0.s8 %v434_v19  ;;  %v29_v34 = vld [vmem:[%s3029_s0 + $0xa] sm:$0x3]  ;;  %v30_v38 = vld [vmem:[%s3029_s0 + $0xc] sm:$0x3]  ;;  %2486 = vmatprep.subr.bf16.mxu1 %v2680_v30  ;;  %vm2708_vm9 = vmor %vm307_vm2, %vm308_vm3 }
   0xb   :  { %v70_v31 = vmax.f32 %v62_v21, 0.0  ;;  %v71_v32 = vmax.f32 %v63_v22, 0.0  ;;  %vm310_vm4 = vsmask.f32 5392  ;;  %v2685_v37 = vshll.u32 %v250_v24, 16 }
   0xc   :  { %v72_v33 = vmax.f32 %v64_v23, 0.0  ;;  %v317_v35 = vrot.slane %v315_v25, 6  ;;  %v320_v36 = vrot.slane %v318_v26, 7  ;;  %v36_v39 = vunpack.c.l.bf16 %v28_v29  ;;  %v191_v55 = vld [vmem:[#allocation2 + $0x4] sm:$0x7]  ;;  %vm2722_vm10 = vmor %vm2708_vm9, %vm310_vm4 }
   0xd   :  { %v2405_v40 = vpack.c.bf16 %v70_v31, %v70_v31  ;;  %v2406_v41 = vpack.c.bf16 %v71_v32, %v71_v32  ;;  %v2692_v43 = vsub.s32 %v435_v27, %v437_v14  ;;  %vm722_vm5 = vcmask 1040384   ;;  %v2265_v52 = vld.sshfl [vmem:[#allocation2 + $0x18] sm:$0x13 pattern:$0x76325410] }
   0xe   :  { %v2407_v42 = vpack.c.bf16 %v72_v33, %v72_v33  ;;  %vm723_vm6 = vcmask 1042434   ;;  %vm312_vm7 = vsmask.f32 7448  ;;  %v321_v44 = vor.u32 %v320_v36, %v317_v35  ;;  %v194_v56 = vld [vmem:[#allocation2 + $0x8] sm:$0x7] }
   0xf   :  { %v37_v45 = vunpack.c.l.bf16 %v29_v34  ;;  %v38_v46 = vunpack.c.l.bf16 %v30_v38  ;;  %v51_v47 = vmul.f32 %v2656_v12, %v36_v39  ;;  %v124_v48 = vshrl.u32 %v2405_v40, 16  ;;  %v197_v61 = vld [vmem:[#allocation2 + $0xc] sm:$0x7]  ;;  %v2729_v32 = vld [vmem:[%s3029_s0 + $0x6] sm:$0x3]  ;;  %vm2733_vm11 = vmor %vm722_vm5, %vm723_vm6 }
  0x10   :  { %v127_v49 = vshll.u32 %v2405_v40, 16  ;;  %v131_v50 = vshrl.u32 %v2406_v41, 16  ;;  %v134_v51 = vshll.u32 %v2406_v41, 16  ;;  %v138_v53 = vshrl.u32 %v2407_v42, 16  ;;  %v203_v35 = vld [vmem:[#allocation2 + $0x1c] sm:$0x7]  ;;  %vm2742_vm12 = vmor %vm2722_vm10, %vm312_vm7 }
  0x11   :  { %v141_v54 = vshll.u32 %v2407_v42, 16  ;;  %v326_v57 = vrot.slane %v2685_v37, 7  ;;  %v52_v58 = vmul.f32 %v2656_v12, %v37_v45  ;;  %v126_v59 = vrot.slane %v124_v48, 7 }
  0x12   :  { %v133_v60 = vrot.slane %v131_v50, 7  ;;  %v53_v62 = vmul.f32 %v2656_v12, %v38_v46  ;;  %v66_v63 = vadd.f32 %v2661_v13, %v51_v47  ;;  %v140_v0 = vrot.slane %v138_v53, 7  ;;  %v2281_v10 = vld.sshfl [vmem:[#allocation2] sm:$0x12 pattern:$0x76325410] }
  0x13   :  { %v322_v2 = vrot.slane %v321_v44, 2  ;;  %v67_v3 = vadd.f32 %v2661_v13, %v52_v58  ;;  %v282_v4 = vcombine.high %v2265_v52, %v2265_v52  ;;  %v129_v5 = vor.u32 %v127_v49, %v126_v59  ;;  %v2737_v40 = vld.sshfl [vmem:[#allocation2 + $0x18] sm:$0x12 pattern:$0x76325410]  ;;  %v2565_v59 = vld [vmem:[%s3028_s1 + $0x80] sm:$0xff]  }
  0x14   :  { %v136_v6 = vor.u32 %v134_v51, %v133_v60  ;;  %v68_v8 = vadd.f32 %v2661_v13, %v53_v62  ;;  %v74_v9 = vmax.f32 %v66_v63, 0.0  ;;  %v143_v11 = vor.u32 %v141_v54, %v140_v0  ;;  %v206_v46 = vld [vmem:[#allocation2 + $0x20] sm:$0x7]  ;;  %v209_v49 = vld [vmem:[#allocation2 + $0x24] sm:$0x7] }
  0x15   :  { %v75_v14 = vmax.f32 %v67_v3, 0.0  ;;  %v371_v15 = vshrl.u32 %v2265_v52, 16  ;;  %v374_v16 = vshll.u32 %v2265_v52, 16  ;;  %v192_v17 = vsel %vm2701_vm8, %v129_v5, %v191_v55 }
  0x16   :  { %v195_v18 = vsel %vm2701_vm8, %v136_v6, %v194_v56  ;;  %v76_v19 = vmax.f32 %v68_v8, 0.0  ;;  %v2409_v20 = vpack.c.bf16 %v74_v9, %v74_v9  ;;  %193 = vst [vmem:[#allocation2 + $0x4] sm:$0x7] %v192_v17  ;;  %v198_v21 = vsel %vm2701_vm8, %v143_v11, %v197_v61 }
  0x17   :  { %196 = vst [vmem:[#allocation2 + $0x8] sm:$0x7] %v195_v18  ;;  %v2410_v23 = vpack.c.bf16 %v75_v14, %v75_v14  ;;  %v373_v24 = vrot.slane %v371_v15, 6  ;;  %v376_v25 = vrot.slane %v374_v16, 7  ;;  %199 = vst [vmem:[#allocation2 + $0xc] sm:$0x7] %v198_v21  ;;  %v665_v38 = vcombine.high %v2281_v10, %v2281_v10 }
  0x18   :  { %v2411_v26 = vpack.c.bf16 %v76_v19, %v76_v19  ;;  %v152_v27 = vshrl.u32 %v2409_v20, 16  ;;  %v155_v29 = vshll.u32 %v2409_v20, 16  ;;  %v380_v31 = vshll.u32 %v282_v4, 16 }
  0x19   :  { %v159_v33 = vshrl.u32 %v2410_v23, 16  ;;  %v162_v34 = vshll.u32 %v2410_v23, 16  ;;  %v377_v36 = vor.u32 %v376_v25, %v373_v24  ;;  %vm725_vm13 = vcmask 1044484  }
  0x1a   :  { %v154_v42 = vrot.slane %v152_v27, 7  ;;  %v166_v44 = vshrl.u32 %v2411_v26, 16  ;;  %v169_v45 = vshll.u32 %v2411_v26, 16  ;;  %v382_v47 = vrot.slane %v380_v31, 7  ;;  %vm726_vm15 = vmor %vm2733_vm11, %vm725_vm13 }
  0x1b   :  { %v161_v48 = vrot.slane %v159_v33, 7  ;;  %v378_v50 = vrot.slane %v377_v36, 2  ;;  %vm727_vm14 = vcmask 1046534   ;;  %v2289_v53 = vrot.slane %v2281_v10, 9 }
  0x1c   :  { %v157_v51 = vor.u32 %v155_v29, %v154_v42  ;;  %v168_v52 = vrot.slane %v166_v44, 7  ;;  %v731_v54 = vrot.slane %v665_v38, 7  ;;  %v2752_v55 = vsel %vm2742_vm12, %v322_v2, %v326_v57  ;;  %vm2758_vm0 = vmor %vm726_vm15, %vm727_vm14 }
  0x1d   :  { %v164_v56 = vor.u32 %v162_v34, %v161_v48  ;;  %v2756_v58 = vsel %vm2742_vm12, %v378_v50, %v382_v47  ;;  %v35_v60 = vunpack.c.l.bf16 %v2729_v32  ;;  %v2262_v61 = vld.sshfl [vmem:[#allocation2 + $0x4] sm:$0x13 pattern:$0x76325410]  ;;  %v697_v63 = vcombine.high %v2737_v40, %v2737_v40 }
  0x1e   :  { %v171_v62 = vor.u32 %v169_v45, %v168_v52  ;;  %v204_v37 = vsel %vm2701_vm8, %v157_v51, %v203_v35  ;;  %v2767_v57 = vsel %vm2758_vm0, %v2289_v53, %v731_v54  ;;  %v2263_v0 = vld.sshfl [vmem:[#allocation2 + $0x8] sm:$0x13 pattern:$0x76325410]  ;;  %v258_v2 = vcombine.high %v2262_v61, %v2262_v61 }
  0x1f   :  { %v329_v3 = vshrl.u32 %v2262_v61, 16  ;;  %v332_v4 = vshll.u32 %v2262_v61, 16  ;;  %vm477_vm1 = vcmask 261120   ;;  %205 = vst [vmem:[#allocation2 + $0x1c] sm:$0x7] %v204_v37  ;;  %v207_v5 = vsel %vm2701_vm8, %v164_v56, %v206_v46 }
  0x20   :  { %v2264_v6 = vld.sshfl [vmem:[#allocation2 + $0xc] sm:$0x13 pattern:$0x76325410]  ;;  %v266_v7 = vcombine.high %v2263_v0, %v2263_v0  ;;  %v343_v8 = vshrl.u32 %v2263_v0, 16  ;;  %v346_v9 = vshll.u32 %v2263_v0, 16  ;;  %v210_v10 = vsel %vm2701_vm8, %v171_v62, %v209_v49 }
  0x21   :  { %208 = vst [vmem:[#allocation2 + $0x20] sm:$0x7] %v207_v5  ;;  %v274_v11 = vcombine.high %v2264_v6, %v2264_v6  ;;  %v331_v14 = vrot.slane %v329_v3, 6  ;;  %v334_v15 = vrot.slane %v332_v4, 7  ;;  %v338_v16 = vshll.u32 %v258_v2, 16 }
  0x22   :  { %211 = vst [vmem:[#allocation2 + $0x24] sm:$0x7] %v210_v10  ;;  %v345_v17 = vrot.slane %v343_v8, 6  ;;  %v348_v18 = vrot.slane %v346_v9, 7  ;;  %v352_v19 = vshll.u32 %v266_v7, 16  ;;  %v357_v20 = vshrl.u32 %v2264_v6, 16 }
  0x23   :  { %v335_v21 = vor.u32 %v334_v15, %v331_v14  ;;  %v340_v22 = vrot.slane %v338_v16, 7  ;;  %v360_v23 = vshll.u32 %v2264_v6, 16  ;;  %v366_v24 = vshll.u32 %v274_v11, 16 }
  0x24   :  { %v2566_v25 = vld.sshfl [vmem:[#allocation2] sm:$0xf pattern:$0x76325410]  ;;  %v349_v26 = vor.u32 %v348_v18, %v345_v17  ;;  %v354_v27 = vrot.slane %v352_v19, 7  ;;  %v359_v29 = vrot.slane %v357_v20, 6  ;;  %v50_v32 = vmul.f32 %v2656_v12, %v35_v60 }
  0x25   :  { %v2567_v31 = vld.sshfl [vmem:[#allocation2 + $0x8] sm:$0xf pattern:$0x76325410]  ;;  %v336_v33 = vrot.slane %v335_v21, 2  ;;  %v362_v34 = vrot.slane %v360_v23, 7 }
  0x26   :  { %v368_v35 = vrot.slane %v366_v24, 7  ;;  %v350_v36 = vrot.slane %v349_v26, 2  ;;  %v2266_v38 = vld.sshfl [vmem:[#allocation2 + $0x1c] sm:$0x13 pattern:$0x76325410]  ;;  %v2777_v39 = vadd.f32 %v2661_v13, %v50_v32  ;;  %v557_v51 = vcombine.low %v2566_v25, %v2567_v31 }
  0x27   :  { %v2293_v42 = vrot.slane %v2737_v40, 9  ;;  %v2782_v44 = vsel %vm2742_vm12, %v336_v33, %v340_v22  ;;  %v363_v45 = vor.u32 %v362_v34, %v359_v29  ;;  %v290_v47 = vcombine.high %v2266_v38, %v2266_v38  ;;  %v2568_v6 = vld.sshfl [vmem:[#allocation2 + $0x18] sm:$0xf pattern:$0x76325410]  ;;  %v2547_v24 = vld [vmem:[%s3028_s1 + $0x30] sm:$0xff]  }
  0x28   :  { %v2267_v46 = vld.sshfl [vmem:[#allocation2 + $0x20] sm:$0x13 pattern:$0x76325410]  ;;  %v385_v48 = vshrl.u32 %v2266_v38, 16  ;;  %v2786_v49 = vsel %vm2742_vm12, %v350_v36, %v354_v27  ;;  %v431_v50 = vcombine.low %v2752_v55, %v2782_v44  ;;  %v388_v61 = vshll.u32 %v2266_v38, 16  ;;  %2474 = vmatprep.mubr.msk.bf16.mxu1 %vm477_vm1, %v557_v51 }
  0x29   :  { %v2268_v52 = vld.sshfl [vmem:[#allocation2 + $0x24] sm:$0x13 pattern:$0x76325410]  ;;  %v298_v53 = vcombine.high %v2267_v46, %v2267_v46  ;;  %v364_v54 = vrot.slane %v363_v45, 2  ;;  %v394_v37 = vshll.u32 %v290_v47, 16 }
  0x2a   :  { %v306_v56 = vcombine.high %v2268_v52, %v2268_v52  ;;  %v387_v60 = vrot.slane %v385_v48, 6  ;;  %v439_v62 = vrot.slane %v431_v50, %v2692_v43  ;;  %v399_v0 = vshrl.u32 %v2267_v46, 16  ;;  %v2569_v11 = vld.sshfl [vmem:[#allocation2 + $0x20] sm:$0xf pattern:$0x76325410] }
  0x2b   :  { %v402_v2 = vshll.u32 %v2267_v46, 16  ;;  %v2794_v3 = vsel %vm2742_vm12, %v364_v54, %v368_v35  ;;  %v390_v4 = vrot.slane %v388_v61, 7  ;;  %v408_v55 = vshll.u32 %v298_v53, 16  ;;  %v31_v46 = vld [vmem:[%s3029_s0 + $0xe] sm:$0x3] }
  0x2c   :  { %v413_v5 = vshrl.u32 %v2268_v52, 16  ;;  %v432_v7 = vcombine.low %v2786_v49, %v2794_v3  ;;  %v396_v8 = vrot.slane %v394_v37, 7  ;;  %v401_v9 = vrot.slane %v399_v0, 6 }
  0x2d   :  { %v404_v10 = vrot.slane %v402_v2, 7  ;;  %v391_v14 = vor.u32 %v390_v4, %v387_v60  ;;  %v410_v15 = vrot.slane %v408_v55, 7  ;;  %v416_v17 = vshll.u32 %v2268_v52, 16 }
  0x2e   :  { %v415_v16 = vrot.slane %v413_v5, 6  ;;  %v2799_v18 = vrot.slane %v432_v7, %v2692_v43  ;;  %v422_v20 = vshll.u32 %v306_v56, 16  ;;  %v2282_v21 = vld.sshfl [vmem:[#allocation2 + $0x4] sm:$0x12 pattern:$0x76325410]  ;;  %v574_v36 = vcombine.low %v2568_v6, %v2569_v11 }
  0x2f   :  { %v405_v19 = vor.u32 %v404_v10, %v401_v9  ;;  %v392_v22 = vrot.slane %v391_v14, 2  ;;  %v418_v23 = vrot.slane %v416_v17, 7  ;;  %v2283_v25 = vld.sshfl [vmem:[#allocation2 + $0x8] sm:$0x12 pattern:$0x76325410]  ;;  %v673_v26 = vcombine.high %v2282_v21, %v2282_v21 }
  0x30   :  { %v447_v27 = vcombine.low %v439_v62, %v2799_v18  ;;  %v424_v31 = vrot.slane %v422_v20, 7  ;;  %v2284_v32 = vld.sshfl [vmem:[#allocation2 + $0xc] sm:$0x12 pattern:$0x76325410]  ;;  %v681_v33 = vcombine.high %v2283_v25, %v2283_v25  ;;  %v2290_v50 = vrot.slane %v2282_v21, 9  ;;  %2475 = vmatmul.mubr.msk.bf16.vlgmr.msra.gmra.mxu1 %vm477_vm1, %v574_v36 }
  0x31   :  { %v406_v29 = vrot.slane %v405_v19, 2  ;;  %v2807_v34 = vsel %vm2742_vm12, %v392_v22, %v396_v8  ;;  %v419_v35 = vor.u32 %v418_v23, %v415_v16  ;;  %v689_v38 = vcombine.high %v2284_v32, %v2284_v32  ;;  %v2286_v45 = vld.sshfl [vmem:[#allocation2 + $0x1c] sm:$0x12 pattern:$0x76325410]  ;;  %2487 = vmatpush3.bf16.msra.mxu1 %v2680_v30  ;;  %v2546_v19 = vld [vmem:[%s3028_s1 + $0x20] sm:$0xff]  }
  0x32   :  { %2466 = vmatprep.mubr.msk.bf16.mxu0 %vm477_vm1, %v447_v27  ;;  %v448_v48 = vcombine.low %v2756_v58, %v2807_v34  ;;  %v735_v51 = vrot.slane %v673_v26, 7  ;;  %v2287_v52 = vld.sshfl [vmem:[#allocation2 + $0x20] sm:$0x12 pattern:$0x76325410]  ;;  %v2291_v54 = vrot.slane %v2283_v25, 9  ;;  %v39_v58 = vunpack.c.l.bf16 %v31_v46  ;;  %2488 = vmatprep.subr.bf16.mxu1 %v2547_v24 }
  0x33   :  { %v2815_v47 = vsel %vm2742_vm12, %v406_v29, %v410_v15  ;;  %v420_v53 = vrot.slane %v419_v35, 2  ;;  %v739_v56 = vrot.slane %v681_v33, 7  ;;  %v2292_v60 = vrot.slane %v2284_v32, 9  ;;  %v200_v21 = vld [vmem:[#allocation2 + $0x10] sm:$0x7] }
  0x34   :  { %v2823_v61 = vsel %vm2758_vm0, %v2290_v50, %v735_v51  ;;  %v743_v62 = vrot.slane %v689_v38, 7  ;;  %v73_v37 = vmax.f32 %v2777_v39, 0.0  ;;  %v2288_v0 = vld.sshfl [vmem:[#allocation2 + $0x24] sm:$0x12 pattern:$0x76325410]  ;;  %v456_v4 = vrot.slane %v448_v48, %v2692_v43 }
  0x35   :  { %v2828_v2 = vsel %vm2742_vm12, %v420_v53, %v424_v31  ;;  %v2833_v55 = vsel %vm2758_vm0, %v2291_v54, %v739_v56  ;;  %v766_v30 = vcombine.low %v2767_v57, %v2823_v61  ;;  %v2840_v39 = vld [vmem:[%s3028_s1 + $0x58] sm:$0xff]   ;;  %v705_v8 = vcombine.high %v2286_v45, %v2286_v45  ;;  %2489 = vmatpush3.bf16.msra.mxu1 %v2547_v24  ;;  %v2364_v38 = vld.sshfl [vmem:[#allocation2 + $0x14] sm:$0x13 pattern:$0x76325410] }
  0x36   :  { %v449_v5 = vcombine.low %v2815_v47, %v2828_v2  ;;  %v2846_v6 = vsel %vm2758_vm0, %v2292_v60, %v743_v62  ;;  %v2408_v7 = vpack.c.bf16 %v73_v37, %v73_v37  ;;  %v713_v57 = vcombine.high %v2287_v52, %v2287_v52  ;;  %2502 = vmatprep.subr.bf16.mxu1 %v2840_v39  ;;  %v2570_v54 = vld.sshfl [vmem:[#allocation2 + $0x4] sm:$0xf pattern:$0x76325410] }
  0x37   :  { %v767_v9 = vcombine.low %v2833_v55, %v2846_v6  ;;  %v774_v10 = vrot.slane %v766_v30, %v2692_v43  ;;  %v721_v11 = vcombine.high %v2288_v0, %v2288_v0  ;;  %v747_v17 = vrot.slane %v697_v63, 7  ;;  %v2554_v62 = vld [vmem:[%s3028_s1 + $0x40] sm:$0xff]   ;;  %v2907_v30 = vld [vmem:[%s3028_s1 + $0x68] sm:$0xff]  }
  0x38   :  { %v2852_v14 = vrot.slane %v449_v5, %v2692_v43  ;;  %v145_v15 = vshrl.u32 %v2408_v7, 16  ;;  %v148_v16 = vshll.u32 %v2408_v7, 16  ;;  %v2294_v22 = vrot.slane %v2286_v45, 9  ;;  %v2550_v45 = vld [vmem:[%s3028_s1 + $0x48] sm:$0xff]  }
  0x39   :  { %v2861_v20 = vrot.slane %v767_v9, %v2692_v43  ;;  %v751_v23 = vrot.slane %v705_v8, 7  ;;  %v2295_v25 = vrot.slane %v2287_v52, 9  ;;  %v748_v63 = vsel %vm2758_vm0, %v2293_v42, %v747_v17  ;;  %v2576_v41 = vld.sshfl [vmem:[#allocation2 + $0x20] sm:$0xf pattern:$0x76325410] }
  0x3a   :  { %v464_v24 = vcombine.low %v456_v4, %v2852_v14  ;;  %v147_v26 = vrot.slane %v145_v15, 7  ;;  %v755_v27 = vrot.slane %v713_v57, 7  ;;  %v2296_v32 = vrot.slane %v2288_v0, 9  ;;  %v212_v4 = vld [vmem:[#allocation2 + $0x28] sm:$0x7] }
  0x3b   :  { %v782_v29 = vcombine.low %v774_v10, %v2861_v20  ;;  %v2872_v31 = vsel %vm2758_vm0, %v2294_v22, %v751_v23  ;;  %v759_v33 = vrot.slane %v721_v11, 7  ;;  %v54_v42 = vmul.f32 %v2656_v12, %v39_v58  ;;  %v2368_v57 = vld.sshfl [vmem:[#allocation2 + $0x2c] sm:$0x13 pattern:$0x76325410] }
  0x3c   :  { %2467 = vmatmul.mubr.msk.bf16.vlgmr.msra.gmra.mxu0 %vm477_vm1, %v464_v24  ;;  %v150_v35 = vor.u32 %v148_v16, %v147_v26  ;;  %v2877_v36 = vsel %vm2758_vm0, %v2295_v25, %v755_v27  ;;  %v783_v40 = vcombine.low %v748_v63, %v2872_v31  ;;  %v1771_v53 = vshrl.u32 %v2364_v38, 16 }
  0x3d   :  { %2479 = vmatpush3.bf16.msra.mxu0 %v2672_v28  ;;  %2482 = vmatprep.mubr.msk.bf16.mxu0 %vm477_vm1, %v782_v29  ;;  %v2888_v46 = vsel %vm2758_vm0, %v2296_v32, %v759_v33  ;;  %v69_v28 = vadd.f32 %v2661_v13, %v54_v42  ;;  %v1695_v37 = vcombine.high %v2364_v38, %v2364_v38  ;;  %v1774_v0 = vshll.u32 %v2364_v38, 16 }
  0x3e   :  { %2480 = vmatprep.subr.bf16.mxu0 %v2546_v19  ;;  %v201_v48 = vsel %vm2701_vm8, %v150_v35, %v200_v21  ;;  %v784_v12 = vcombine.low %v2877_v36, %v2888_v46  ;;  %v791_v50 = vrot.slane %v783_v40, %v2692_v43  ;;  %v1773_v5 = vrot.slane %v1771_v53, 6  ;;  %v2572_v35 = vld.sshfl [vmem:[#allocation2 + $0x1c] sm:$0xf pattern:$0x76325410] }
  0x3f   :  { %202 = vst [vmem:[#allocation2 + $0x10] sm:$0x7] %v201_v48  ;;  %v77_v52 = vmax.f32 %v69_v28, 0.0  ;;  %v1776_v7 = vrot.slane %v1774_v0, 7  ;;  %v1780_v10 = vshll.u32 %v1695_v37, 16  ;;  %v1416_v15 = vcombine.low %v2823_v61, %v2833_v55 }
  0x40   :  { %v2897_v51 = vrot.slane %v784_v12, %v2692_v43  ;;  %v1827_v55 = vshrl.u32 %v2368_v57, 16  ;;  %v1830_v33 = vshll.u32 %v2368_v57, 16  ;;  %v1194_v38 = vcombine.low %v2782_v44, %v2786_v49 }
  0x41   :  { %2481 = vmatpush3.bf16.msra.mxu0 %v2546_v19  ;;  %v2412_v60 = vpack.c.bf16 %v77_v52, %v77_v52  ;;  %v1777_v24 = vor.u32 %v1776_v7, %v1773_v5  ;;  %v1424_v48 = vrot.slane %v1416_v15, %v2692_v43  ;;  %v1727_v52 = vcombine.high %v2368_v57, %v2368_v57 }
  0x42   :  { %2494 = vmatprep.subr.bf16.mxu0 %v2550_v45  ;;  %v799_v56 = vcombine.low %v791_v50, %v2897_v51  ;;  %v1782_v50 = vrot.slane %v1780_v10, 7  ;;  %v1829_v53 = vrot.slane %v1827_v55, 6  ;;  %v1202_v37 = vrot.slane %v1194_v38, %v2692_v43 }
  0x43   :  { %v173_v13 = vshrl.u32 %v2412_v60, 16  ;;  %v176_v58 = vshll.u32 %v2412_v60, 16  ;;  %v1778_v12 = vrot.slane %v1777_v24, 2  ;;  %v1836_v5 = vshll.u32 %v1727_v52, 16 }
  0x44   :  { %2483 = vmatmul.mubr.msk.bf16.vlgmr.msra.gmra.mxu0 %vm477_vm1, %v799_v56  ;;  %v2380_v60 = vld.sshfl [vmem:[#allocation2 + $0x14] sm:$0x12 pattern:$0x76325410]  ;;  %vm2234_vm2 = vcmask 519168   ;;  %vm2184_vm3 = vcmask 523264  }
  0x45   :  { %2495 = vmatpush3.bf16.msra.mxu0 %v2550_v45  ;;  %v175_v9 = vrot.slane %v173_v13, 7  ;;  %v1783_v0 = vsel %vm2742_vm12, %v1778_v12, %v1782_v50  ;;  %v1997_v7 = vcombine.high %v2380_v60, %v2380_v60  ;;  %v1838_v24 = vrot.slane %v1836_v5, 7 }
  0x46   :  { %v2571_v8 = vld.sshfl [vmem:[#allocation2 + $0xc] sm:$0xf pattern:$0x76325410]  ;;  %2496 = vmatprep.subr.bf16.mxu0 %v2554_v62  ;;  %vm2198_vm4 = vcmask 516096  }
  0x47   :  { %v2316_v11 = vld.sshfl [vmem:[#allocation2 + $0x10] sm:$0x13 pattern:$0x76325410]  ;;  %v178_v16 = vor.u32 %v176_v58, %v175_v9  ;;  %v908_v26 = vcombine.low %v2570_v54, %v2571_v8  ;;  %v1832_v54 = vrot.slane %v1830_v33, 7 }
  0x48   :  { %v1044_v17 = vcombine.high %v2316_v11, %v2316_v11  ;;  %v1120_v19 = vshrl.u32 %v2316_v11, 16  ;;  %v2332_v21 = vld.sshfl [vmem:[#allocation2 + $0x10] sm:$0x12 pattern:$0x76325410]  ;;  %v1123_v22 = vshll.u32 %v2316_v11, 16 }
  0x49   :  { %2497 = vmatpush3.bf16.msra.mxu0 %v2554_v62  ;;  %v1346_v23 = vcombine.high %v2332_v21, %v2332_v21  ;;  %v2340_v25 = vrot.slane %v2332_v21, 9  ;;  %v213_v63 = vsel %vm2701_vm8, %v178_v16, %v212_v4  ;;  %2490 = vmatprep.mubr.msk.bf16.mxu1 %vm477_vm1, %v908_v26  ;;  %v1833_v4 = vor.u32 %v1832_v54, %v1829_v53  ;;  %v2575_v55 = vld.sshfl [vmem:[#allocation2 + $0x10] sm:$0xf pattern:$0x76325410] }
  0x4a   :  { %v1122_v27 = vrot.slane %v1120_v19, 6  ;;  %v1129_v29 = vshll.u32 %v1044_v17, 16  ;;  %2510 = vmatprep.subr.bf16.mxu0 %v2907_v30  ;;  %214 = vst [vmem:[#allocation2 + $0x28] sm:$0x7] %v213_v63  ;;  %v1125_v32 = vrot.slane %v1123_v22, 7  ;;  %v1211_v26 = vcombine.low %v2807_v34, %v2815_v47  ;;  %v2559_v53 = vld [vmem:[%s3028_s1 + $0x70] sm:$0xff]  }
  0x4b   :  { %v1393_v61 = vrot.slane %v1346_v23, 7  ;;  %v2574_v63 = vld.sshfl [vmem:[#allocation2 + $0x8] sm:$0xf pattern:$0x76325410] }
  0x4c   :  { %v1126_v40 = vor.u32 %v1125_v32, %v1122_v27  ;;  %v1131_v42 = vrot.slane %v1129_v29, 7 }
  0x4d   :  { %v2919_v1 = vsel %vm2758_vm0, %v2340_v25, %v1393_v61  ;;  %v1834_v25 = vrot.slane %v1833_v4, 2  ;;  %v2557_v61 = vld [vmem:[%s3028_s1 + $0x78] sm:$0xff]   ;;  %v2562_v4 = vld [vmem:[%s3028_s1 + $0x88] sm:$0xff]  }
  0x4e   :  { %v1417_v45 = vcombine.low %v2846_v6, %v2919_v1  ;;  %v1127_v28 = vrot.slane %v1126_v40, 2  ;;  %v1433_v6 = vcombine.low %v2872_v31, %v2877_v36  ;;  %v2555_v31 = vld [vmem:[%s3028_s1 + $0x50] sm:$0xff]   ;;  %v2384_v40 = vld.sshfl [vmem:[#allocation2 + $0x2c] sm:$0x12 pattern:$0x76325410] }
  0x4f   :  { %v1839_v38 = vsel %vm2742_vm12, %v1834_v25, %v1838_v24 }
  0x50   :  { %v1431_v56 = vrot.slane %v1417_v45, %v2692_v43  ;;  %v1132_v44 = vsel %vm2742_vm12, %v1127_v28, %v1131_v42  ;;  %v1441_v47 = vrot.slane %v1433_v6, %v2692_v43  ;;  %v1219_v45 = vrot.slane %v1211_v26, %v2692_v43  ;;  %v2558_v6 = vld [vmem:[%s3028_s1 + $0x60] sm:$0xff]  }
  0x51   :  { %v2573_v49 = vld.sshfl [vmem:[#allocation2 + $0x24] sm:$0xf pattern:$0x76325410]  ;;  %v1195_v62 = vcombine.low %v2794_v3, %v1132_v44  ;;  %v1846_v16 = vcombine.low %v1132_v44, %v1783_v0  ;;  %v1559_v0 = vcombine.low %v2574_v63, %v2575_v55 }
  0x52   :  { %v1432_v13 = vcombine.low %v1424_v48, %v1431_v56  ;;  %v2320_v58 = vld.sshfl [vmem:[#allocation2 + $0x28] sm:$0x13 pattern:$0x76325410]  ;;  %v925_v17 = vcombine.low %v2572_v35, %v2573_v49  ;;  %v2044_v35 = vrot.slane %v1997_v7, 7  ;;  %v2392_v49 = vrot.slane %v2384_v40, 9 }
  0x53   :  { %v1209_v8 = vrot.slane %v1195_v62, %v2692_v43  ;;  %v1076_v9 = vcombine.high %v2320_v58, %v2320_v58  ;;  %v1176_v10 = vshrl.u32 %v2320_v58, 16  ;;  %v2336_v57 = vld.sshfl [vmem:[#allocation2 + $0x28] sm:$0x12 pattern:$0x76325410]  ;;  %v1179_v11 = vshll.u32 %v2320_v58, 16 }
  0x54   :  { %v1378_v3 = vcombine.high %v2336_v57, %v2336_v57  ;;  %v2344_v15 = vrot.slane %v2336_v57, 9  ;;  %2491 = vmatmul.mubr.msk.bf16.vlgmr.msra.gmra.mxu1 %vm477_vm1, %v925_v17  ;;  %v1860_v33 = vrot.slane %v1846_v16, %v2692_v43  ;;  %v2577_v44 = vld.sshfl [vmem:[#allocation2 + $0x28] sm:$0xf pattern:$0x76325410] }
  0x55   :  { %v1210_v36 = vcombine.low %v1202_v37, %v1209_v8  ;;  %v1178_v19 = vrot.slane %v1176_v10, 6  ;;  %v1185_v21 = vshll.u32 %v1076_v9, 16  ;;  %v1181_v22 = vrot.slane %v1179_v11, 7  ;;  %2503 = vmatpush3.bf16.msra.mxu1 %v2840_v39  ;;  %2506 = vmatprep.mubr.msk.bf16.mxu1 %vm477_vm1, %v1432_v13 }
  0x56   :  { %v1409_v23 = vrot.slane %v1378_v3, 7  ;;  %2504 = vmatprep.subr.bf16.mxu1 %v2555_v31  ;;  %v2388_v39 = vrot.slane %v2380_v60, 9  ;;  %v1861_v50 = vcombine.low %v2799_v18, %v1860_v33  ;;  %v1576_v5 = vcombine.low %v2576_v41, %v2577_v44 }
  0x57   :  { %2498 = vmatprep.mubr.msk.bf16.mxu0 %vm477_vm1, %v1210_v36  ;;  %v1182_v27 = vor.u32 %v1181_v22, %v1178_v19  ;;  %v1187_v29 = vrot.slane %v1185_v21, 7 }
  0x58   :  { %v1410_v32 = vsel %vm2758_vm0, %v2344_v15, %v1409_v23  ;;  %v2045_v56 = vsel %vm2758_vm0, %v2388_v39, %v2044_v35 }
  0x59   :  { %v1434_v34 = vcombine.low %v2888_v46, %v1410_v32  ;;  %v1183_v42 = vrot.slane %v1182_v27, 2  ;;  %2505 = vmatpush3.bf16.msra.mxu1 %v2555_v31  ;;  %v2029_v46 = vcombine.high %v2384_v40, %v2384_v40 }
  0x5a   :  { %2518 = vmatprep.subr.bf16.mxu1 %v2557_v61 }
  0x5b   :  { %v1448_v48 = vrot.slane %v1434_v34, %v2692_v43  ;;  %v1188_v12 = vsel %vm2742_vm12, %v1183_v42, %v1187_v29  ;;  %v2060_v62 = vrot.slane %v2029_v46, 7 }
  0x5c   :  { %v1212_v28 = vcombine.low %v2828_v2, %v1188_v12  ;;  %v1863_v54 = vcombine.low %v1188_v12, %v1839_v38  ;;  %v2068_v2 = vcombine.low %v2919_v1, %v2045_v56 }
  0x5d   :  { %v1449_v52 = vcombine.low %v1441_v47, %v1448_v48  ;;  %v2061_v1 = vsel %vm2758_vm0, %v2392_v49, %v2060_v62 }
  0x5e   :  { %v1226_v60 = vrot.slane %v1212_v28, %v2692_v43  ;;  %v1877_v18 = vrot.slane %v1863_v54, %v2692_v43  ;;  %v2082_v58 = vrot.slane %v2068_v2, %v2692_v43  ;;  %v2085_v7 = vcombine.low %v1410_v32, %v2061_v1 }
  0x5f   :  { %2507 = vmatmul.mubr.msk.bf16.vlgmr.msra.gmra.mxu1 %vm477_vm1, %v1449_v52 }
  0x60   :  { %2519 = vmatpush3.bf16.msra.mxu1 %v2557_v61  ;;  %2522 = vmatprep.mubr.msk.bf16.mxu1 %vm477_vm1, %v1861_v50  ;;  %v1227_v37 = vcombine.low %v1219_v45, %v1226_v60  ;;  %v1878_v13 = vcombine.low %v2852_v14, %v1877_v18  ;;  %v2083_v14 = vcombine.low %v2861_v20, %v2082_v58  ;;  %v2425_v18 = vld [vmem:[%s3032_s4 + $0x8] sm:$0xff]  }
  0x61   :  { %2520 = vmatprep.subr.bf16.mxu1 %v2559_v53 }
  0x62   :  { %2499 = vmatmul.mubr.msk.bf16.vlgmr.msra.gmra.mxu0 %vm477_vm1, %v1227_v37 }
  0x63   :  { %2511 = vmatpush3.bf16.msra.mxu0 %v2907_v30  ;;  %2514 = vmatprep.mubr.msk.bf16.mxu0 %vm477_vm1, %v1559_v0  ;;  %v2099_v30 = vrot.slane %v2085_v7, %v2692_v43 }
  0x64   :  { %2521 = vmatpush3.bf16.msra.mxu1 %v2559_v53  ;;  %2512 = vmatprep.subr.bf16.mxu0 %v2558_v6 }
  0x65   :  { %v2100_v8 = vcombine.low %v2897_v51, %v2099_v30 }
  0x67   :  { %2523 = vmatmul.mubr.msk.bf16.vlgmr.msra.gmra.mxu1 %vm477_vm1, %v1878_v13  ;;  %2513 = vmatpush3.bf16.msra.mxu0 %v2558_v6  ;;  %v2418_v6 = vld [vmem:[%s3032_s4] sm:$0xff]   ;;  %v2423_v13 = vunpack.c.l.bf16 %v2425_v18 }
  0x68   :  { %2526 = vmatprep.subr.bf16.mxu0 %v2562_v4 }
  0x6a   :  { %2515 = vmatmul.mubr.msk.bf16.vlgmr.msra.gmra.mxu0 %vm477_vm1, %v1576_v5 }
  0x6b   :  { %2527 = vmatpush3.bf16.msra.mxu0 %v2562_v4  ;;  %2530 = vmatprep.mubr.msk.bf16.mxu0 %vm477_vm1, %v2083_v14 }
  0x6c   :  { %2528 = vmatprep.subr.bf16.mxu0 %v2565_v59 }
  0x6f   :  { %2529 = vmatpush3.bf16.msra.mxu0 %v2565_v59  ;;  %v2419_v59 = vunpack.c.l.bf16 %v2418_v6 }
  0x72   :  { %2531 = vmatmul.mubr.msk.bf16.vlgmr.msra.gmra.mxu0 %vm477_vm1, %v2100_v8 }
  0xf0   :  { %v2476_v20 = vpop.f32.mrf.mxu1 }
  0xf2   :  { %v627_v57 = vpop.f32.mrf.mxu1 }
  0xf4   :  { %v2477_v3 = vpop.f32.mrf.mxu1 }
  0xf6   :  { %v630_v16 = vpop.f32.mrf.mxu1 }
  0xfc   :  { %v2468_v9 = vpop.f32.mrf.mxu0 }
  0xfd   :  { %v636_v25 = vadd.f32 %v2476_v20, %v2468_v9 }
  0xfe   :  { %v518_v10 = vpop.f32.mrf.mxu0 }
  0xff   :  { %v628_v26 = vadd.f32 %v627_v57, %v518_v10 }
 0x100   :  { %v2469_v11 = vpop.f32.mrf.mxu0 }
 0x101   :  { %v639_v61 = vadd.f32 %v2477_v3, %v2469_v11  ;;  %v2424_v11 = vunpack.c.h.bf16 %v2425_v18 }
 0x102   :  { %v521_v15 = vpop.f32.mrf.mxu0 }
 0x103   :  { %v631_v34 = vadd.f32 %v630_v16, %v521_v15 }
 0x104   :  { %v2484_v17 = vpop.f32.mrf.mxu0 }
 0x105   :  { %v869_v63 = vadd.f32 %v2484_v17, %v636_v25 }
 0x106   :  { %v852_v43 = vpop.f32.mrf.mxu0 }
 0x107   :  { %v867_v29 = vadd.f32 %v852_v43, %v628_v26 }
 0x108   :  { %v2485_v19 = vpop.f32.mrf.mxu0 }
 0x109   :  { %v870_v47 = vadd.f32 %v2485_v19, %v639_v61 }
 0x10a   :  { %v855_v23 = vpop.f32.mrf.mxu0 }
 0x10b   :  { %v868_v38 = vadd.f32 %v855_v23, %v631_v34 }
 0x114   :  { %v2492_v31 = vpop.f32.mrf.mxu1 }
 0x115   :  { %v995_v33 = vadd.f32 %v2492_v31, %v869_v63 }
 0x116   :  { %v978_v36 = vpop.f32.mrf.mxu1 }
 0x117   :  { %v993_v35 = vadd.f32 %v978_v36, %v867_v29  ;;  %v2420_v36 = vunpack.c.h.bf16 %v2418_v6 }
 0x118   :  { %v2493_v21 = vpop.f32.mrf.mxu1 }
 0x119   :  { %v996_v12 = vadd.f32 %v2493_v21, %v870_v47 }
 0x11a   :  { %v981_v22 = vpop.f32.mrf.mxu1 }
 0x11b   :  { %v994_v52 = vadd.f32 %v981_v22, %v868_v38 }
 0x11f   :  { %v2508_v51 = vpop.f32.mrf.mxu1 }
 0x121   :  { %v1502_v24 = vpop.f32.mrf.mxu1 }
 0x122   :  { %v2500_v27 = vpop.f32.mrf.mxu0 }
 0x123   :  { %v2509_v32 = vpop.f32.mrf.mxu1  ;;  %v1297_v40 = vadd.f32 %v2500_v27, %v995_v33 }
 0x124   :  { %v1280_v55 = vpop.f32.mrf.mxu0 }
 0x125   :  { %v1505_v42 = vpop.f32.mrf.mxu1  ;;  %v1295_v48 = vadd.f32 %v1280_v55, %v993_v35  ;;  %v1519_v46 = vadd.f32 %v2508_v51, %v1297_v40 }
 0x126   :  { %v2501_v39 = vpop.f32.mrf.mxu0 }
 0x127   :  { %v2524_v28 = vpop.f32.mrf.mxu1  ;;  %v1298_v53 = vadd.f32 %v2501_v39, %v996_v12  ;;  %v1517_v56 = vadd.f32 %v1502_v24, %v1295_v48 }
 0x128   :  { %v1283_v45 = vpop.f32.mrf.mxu0 }
 0x129   :  { %v1296_v41 = vadd.f32 %v1283_v45, %v994_v52  ;;  %v1931_v49 = vpop.f32.mrf.mxu1  ;;  %v1520_v62 = vadd.f32 %v2509_v32, %v1298_v53 }
 0x12a   :  { %v2516_v50 = vpop.f32.mrf.mxu0 }
 0x12b   :  { %v1646_v60 = vadd.f32 %v2516_v50, %v1519_v46  ;;  %v1518_v58 = vadd.f32 %v1505_v42, %v1296_v41  ;;  %v2525_v7 = vpop.f32.mrf.mxu1 }
 0x12c   :  { %v1629_v54 = vpop.f32.mrf.mxu0 }
 0x12d   :  { %v1644_v2 = vadd.f32 %v1629_v54, %v1517_v56  ;;  %v1948_v0 = vadd.f32 %v2524_v28, %v1646_v60  ;;  %v1934_v3 = vpop.f32.mrf.mxu1 }
 0x12e   :  { %v2517_v44 = vpop.f32.mrf.mxu0 }
 0x12f   :  { %v1647_v1 = vadd.f32 %v2517_v44, %v1520_v62  ;;  %v1946_v5 = vadd.f32 %v1931_v49, %v1644_v2 }
 0x130   :  { %v1632_v37 = vpop.f32.mrf.mxu0 }
 0x131   :  { %v1645_v30 = vadd.f32 %v1632_v37, %v1518_v58  ;;  %v1949_v10 = vadd.f32 %v2525_v7, %v1647_v1 }
 0x132   :  { %v2532_v4 = vpop.f32.mrf.mxu0 }
 0x133   :  { %v2170_v14 = vadd.f32 %v2532_v4, %v1948_v0  ;;  %v1947_v17 = vadd.f32 %v1934_v3, %v1645_v30 }
 0x134   :  { %v2153_v8 = vpop.f32.mrf.mxu0 }
 0x135   :  { %v2182_v9 = vadd.f32 %v2423_v13, %v2170_v14  ;;  %v2168_v20 = vadd.f32 %v2153_v8, %v1946_v5 }
 0x136   :  { %v2533_v57 = vpop.f32.mrf.mxu0 }
 0x137   :  { %v2415_v15 = vpack.c.bf16 %v2182_v9, %v2182_v9  ;;  %v2180_v16 = vadd.f32 %v2419_v59, %v2168_v20  ;;  %v2171_v31 = vadd.f32 %v2533_v57, %v1949_v10  ;;  %v2202_v24 = vmul.f32 %v2182_v9, %v2182_v9 }
 0x138   :  { %v2156_v43 = vpop.f32.mrf.mxu0  ;;  %v2188_v61 = vsel %vm2184_vm3, %v2182_v9, 0.0 }
 0x139   :  { %2237 = vst.msk [vmem:[%s3033_s5 + $0x8] sm:$0xf] %vm2234_vm2, %v2415_v15  ;;  %v2413_v19 = vpack.c.bf16 %v2180_v16, %v2180_v16  ;;  %v2183_v21 = vadd.f32 %v2424_v11, %v2171_v31  ;;  %v2169_v22 = vadd.f32 %v2156_v43, %v1947_v17  ;;  %v2200_v23 = vmul.f32 %v2180_v16, %v2180_v16 }
 0x13a   :  { %v2185_v26 = vsel %vm2184_vm3, %v2180_v16, 0.0  ;;  %v2207_v35 = vsel %vm2184_vm3, %v2202_v24, 0.0 }
 0x13b   :  { %2235 = vst.msk [vmem:[%s3033_s5] sm:$0xf] %vm2234_vm2, %v2413_v19  ;;  %v2416_v51 = vpack.c.bf16 %v2183_v21, %v2183_v21  ;;  %v2181_v25 = vadd.f32 %v2420_v36, %v2169_v22  ;;  %v2204_v55 = vsel %vm2184_vm3, %v2200_v23, 0.0  ;;  %v2203_v33 = vmul.f32 %v2183_v21, %v2183_v21 }
 0x13c   :  { %v2190_v40 = vsel %vm2184_vm3, %v2183_v21, 0.0 }
 0x13d   :  { %2238 = vst.msk [vmem:[%s3033_s5 + $0xc] sm:$0xf] %vm2234_vm2, %v2416_v51  ;;  %v2186_v63 = vsel %vm2184_vm3, %v2181_v25, 0.0  ;;  %v2201_v27 = vmul.f32 %v2181_v25, %v2181_v25  ;;  %v2414_v29 = vpack.c.bf16 %v2181_v25, %v2181_v25  ;;  %v2209_v45 = vsel %vm2184_vm3, %v2203_v33, 0.0 }
 0x13e   :  { %v2187_v32 = vadd.f32 %v2186_v63, %v2185_v26 }
 0x13f   :  { %v2205_v34 = vsel %vm2184_vm3, %v2201_v27, 0.0  ;;  %2236 = vst.msk [vmem:[%s3033_s5 + $0x4] sm:$0xf] %vm2234_vm2, %v2414_v29 }
 0x140   :  { %v2189_v47 = vadd.f32 %v2188_v61, %v2187_v32  ;;  %v2206_v39 = vadd.f32 %v2205_v34, %v2204_v55 }
 0x142   :  { %v2191_v42 = vadd.f32 %v2190_v40, %v2189_v47  ;;  %v2208_v38 = vadd.f32 %v2207_v35, %v2206_v39 }
 0x144   :  { %v2192_v48 = vrot.slane %v2191_v42, 4  ;;  %v2210_v12 = vadd.f32 %v2209_v45, %v2208_v38 }
 0x146   :  { %v2193_v50 = vadd.f32 %v2192_v48, %v2191_v42  ;;  %v2211_v46 = vrot.slane %v2210_v12, 4 }
 0x148   :  { %v2194_v28 = vrot.slane %v2193_v50, 2  ;;  %v2212_v52 = vadd.f32 %v2211_v46, %v2210_v12 }
 0x14a   :  { %v2195_v53 = vadd.f32 %v2194_v28, %v2193_v50  ;;  %v2213_v54 = vrot.slane %v2212_v52, 2 }
 0x14c   :  { %v2196_v56 = vrot.slane %v2195_v53, 1  ;;  %v2214_v60 = vadd.f32 %v2213_v54, %v2212_v52 }
 0x14e   :  { %v2197_v41 = vadd.f32 %v2196_v56, %v2195_v53  ;;  %v2215_v44 = vrot.slane %v2214_v60, 1 }
 0x150   :  { %2199 = vst.msk [vmem:[%s3034_s6] sm:$0x1] %vm2198_vm4, %v2197_v41  ;;  %v2216_v18 = vadd.f32 %v2215_v44, %v2214_v60 }
 0x152   :  { %2217 = vst.msk [vmem:[%s3035_s7] sm:$0x1] %vm2198_vm4, %v2216_v18 }

// kernel: _lambda_.7
= control target key start
LH: loop header
LB: loop body
LE: loop exit
PB: predicated region body
PF: predicated region fallthrough
CT: control target
= control target key end

     0   :  { %vm647_vm0 = vcmask 1041408   ;;  %vm31_vm1 = vcmask 27648   ;;  %vm33_vm2 = vcmask 24576   ;;  %v3704_v2 = vmov 0   ;;  %s5016_s1 = inlined_call_operand.vmem [shape: bf16[9,4,64], index: 1, kind: input, shape index: {}]   ;;  %s5017_s0 = inlined_call_operand.vmem [shape: bf16[1,2,8,8,4], index: 0, kind: input, shape index: {}]   ;;  %s5018_s2 = inlined_call_operand.vmem [shape: bf16[128,64], index: 2, kind: output, shape index: {0}]   ;;  %s5019_s3 = inlined_call_operand.vmem [shape: f32[1,64], index: 3, kind: output, shape index: {1}]   ;;  %s5020_s4 = inlined_call_operand.vmem [shape: f32[1,64], index: 4, kind: output, shape index: {2}]  }
   0x1   :  { %v3193_v0 = vld [vmem:[%s5016_s1 + $0x2] sm:$0x3]  ;;  %32 = vst.msk [vmem:[#allocation2] sm:$0xf] %vm31_vm1, %v3704_v2  ;;  %35 = vst.msk [vmem:[#allocation2 + $0x8] sm:$0xf] %vm31_vm1, %v3704_v2 }
   0x2   :  { %v15_v1 = vld [vmem:[%s5017_s0] sm:$0xf]  ;;  %34 = vst.msk [vmem:[#allocation2 + $0x4] sm:$0x1] %vm33_vm2, %v3704_v2  ;;  %36 = vst.msk [vmem:[#allocation2 + $0xc] sm:$0x1] %vm33_vm2, %v3704_v2  ;;  %3671 = vmatprep.subr.msk.bf16.mxu1 %vm647_vm0, %v3193_v0  ;;  %3670 = vmatprep.subr.msk.bf16.mxu0 %vm647_vm0, %v3193_v0 }
   0x3   :  { %37 = vst.msk [vmem:[#allocation2 + $0x10] sm:$0xf] %vm31_vm1, %v3704_v2  ;;  %39 = vst.msk [vmem:[#allocation2 + $0x18] sm:$0xf] %vm31_vm1, %v3704_v2  ;;  %v649_v3 = vsel %vm647_vm0, %v3193_v0, 0  ;;  %v74_v4 = vshrl.u32 %v15_v1, 16 }
   0x4   :  { %38 = vst.msk [vmem:[#allocation2 + $0x14] sm:$0x1] %vm33_vm2, %v3704_v2  ;;  %40 = vst.msk [vmem:[#allocation2 + $0x1c] sm:$0x1] %vm33_vm2, %v3704_v2  ;;  %v77_v5 = vshll.u32 %v15_v1, 16  ;;  %3669 = vmatpush3.bf16.msra.mxu1 %v649_v3  ;;  %3507 = vmatpush3.bf16.msra.mxu0 %v649_v3  ;;  %vm622_vm10 = vcmask 31744  }
   0x5   :  { %41 = vst.msk [vmem:[#allocation2 + $0x20] sm:$0xf] %vm31_vm1, %v3704_v2  ;;  %43 = vst.msk [vmem:[#allocation2 + $0x28] sm:$0xf] %vm31_vm1, %v3704_v2  ;;  %vm235_vm3 = vsmask.f32 7938 }
   0x6   :  { %42 = vst.msk [vmem:[#allocation2 + $0x24] sm:$0x1] %vm33_vm2, %v3704_v2  ;;  %44 = vst.msk [vmem:[#allocation2 + $0x2c] sm:$0x1] %vm33_vm2, %v3704_v2  ;;  %vm241_vm4 = vsmask.f32 256 }
   0x7   :  { %45 = vst.msk [vmem:[#allocation2 + $0x30] sm:$0xf] %vm31_vm1, %v3704_v2  ;;  %47 = vst.msk [vmem:[#allocation2 + $0x38] sm:$0xf] %vm31_vm1, %v3704_v2  ;;  %vm369_vm5 = vsmask.f32 3328 }
   0x8   :  { %46 = vst.msk [vmem:[#allocation2 + $0x34] sm:$0x1] %vm33_vm2, %v3704_v2  ;;  %48 = vst.msk [vmem:[#allocation2 + $0x3c] sm:$0x1] %vm33_vm2, %v3704_v2  ;;  %v76_v6 = vrot.slane %v74_v4, 7  ;;  %vm960_vm11 = vcmask 1042432  }
   0x9   :  { %49 = vst.msk [vmem:[#allocation2 + $0x40] sm:$0xf] %vm31_vm1, %v3704_v2  ;;  %51 = vst.msk [vmem:[#allocation2 + $0x48] sm:$0xf] %vm31_vm1, %v3704_v2  ;;  %v23_v7 = vld [vmem:[%s5017_s0 + $0x20] sm:$0xf] }
   0xa   :  { %50 = vst.msk [vmem:[#allocation2 + $0x44] sm:$0x1] %vm33_vm2, %v3704_v2  ;;  %52 = vst.msk [vmem:[#allocation2 + $0x4c] sm:$0x1] %vm33_vm2, %v3704_v2  ;;  %v3785_v8 = vld [vmem:[%s5016_s1] sm:$0x3]  ;;  %v79_v13 = vor.u32 %v77_v5, %v76_v6 }
   0xb   :  { %53 = vst.msk [vmem:[#allocation2 + $0x50] sm:$0xf] %vm31_vm1, %v3704_v2  ;;  %55 = vst.msk [vmem:[#allocation2 + $0x58] sm:$0xf] %vm31_vm1, %v3704_v2  ;;  %v138_v10 = vshrl.u32 %v23_v7, 16  ;;  %3672 = vmatprep.subr.msk.bf16.mxu1 %vm647_vm0, %v3785_v8  ;;  %v80_v14 = vrot.slane %v76_v6, 4 }
   0xc   :  { %54 = vst.msk [vmem:[#allocation2 + $0x54] sm:$0x1] %vm33_vm2, %v3704_v2  ;;  %56 = vst.msk [vmem:[#allocation2 + $0x5c] sm:$0x1] %vm33_vm2, %v3704_v2  ;;  %v16_v11 = vld [vmem:[%s5017_s0 + $0x4] sm:$0xf] }
   0xd   :  { %57 = vst.msk [vmem:[#allocation2 + $0x60] sm:$0xf] %vm31_vm1, %v3704_v2  ;;  %59 = vst.msk [vmem:[#allocation2 + $0x68] sm:$0xf] %vm31_vm1, %v3704_v2  ;;  %v17_v12 = vld [vmem:[%s5017_s0 + $0x8] sm:$0xf] }
   0xe   :  { %58 = vst.msk [vmem:[#allocation2 + $0x64] sm:$0x1] %vm33_vm2, %v3704_v2  ;;  %60 = vst.msk [vmem:[#allocation2 + $0x6c] sm:$0x1] %vm33_vm2, %v3704_v2  ;;  %vm370_vm8 = vsmask.f32 7440 }
   0xf   :  { %61 = vst.msk [vmem:[#allocation2 + $0x70] sm:$0xf] %vm31_vm1, %v3704_v2  ;;  %63 = vst.msk [vmem:[#allocation2 + $0x78] sm:$0xf] %vm31_vm1, %v3704_v2  ;;  %v141_v16 = vshll.u32 %v23_v7, 16  ;;  %v140_v17 = vrot.slane %v138_v10, 7 }
  0x10   :  { %62 = vst.msk [vmem:[#allocation2 + $0x74] sm:$0x1] %vm33_vm2, %v3704_v2  ;;  %64 = vst.msk [vmem:[#allocation2 + $0x7c] sm:$0x1] %vm33_vm2, %v3704_v2  ;;  %v82_v18 = vshrl.u32 %v16_v11, 16  ;;  %v85_v19 = vshll.u32 %v16_v11, 16 }
  0x11   :  { %65 = vst.msk [vmem:[#allocation2 + $0x80] sm:$0xf] %vm31_vm1, %v3704_v2  ;;  %67 = vst.msk [vmem:[#allocation2 + $0x88] sm:$0xf] %vm31_vm1, %v3704_v2  ;;  %v90_v20 = vshrl.u32 %v17_v12, 16  ;;  %v143_v32 = vor.u32 %v141_v16, %v140_v17  ;;  %v144_v33 = vrot.slane %v140_v17, 4 }
  0x12   :  { %66 = vst.msk [vmem:[#allocation2 + $0x84] sm:$0x1] %vm33_vm2, %v3704_v2  ;;  %68 = vst.msk [vmem:[#allocation2 + $0x8c] sm:$0x1] %vm33_vm2, %v3704_v2  ;;  %v24_v21 = vld [vmem:[%s5017_s0 + $0x24] sm:$0xf] }
  0x13   :  { %69 = vst.msk [vmem:[#allocation2 + $0x90] sm:$0xf] %vm31_vm1, %v3704_v2  ;;  %71 = vst.msk [vmem:[#allocation2 + $0x98] sm:$0xf] %vm31_vm1, %v3704_v2  ;;  %v237_v22 = vld [vmem:[#allocation2 + $0x8] sm:$0xf] }
  0x14   :  { %70 = vst.msk [vmem:[#allocation2 + $0x94] sm:$0x1] %vm33_vm2, %v3704_v2  ;;  %72 = vst.msk [vmem:[#allocation2 + $0x9c] sm:$0x1] %vm33_vm2, %v3704_v2  ;;  %v243_v23 = vld [vmem:[#allocation2 + $0xc] sm:$0x1] }
  0x15   :  { %vm3788_vm6 = vmand %vm31_vm1, %vm235_vm3  ;;  %v3808_v24 = vld [vmem:[#allocation2] sm:$0xf]  ;;  %v3814_v27 = vld [vmem:[#allocation2 + $0x4] sm:$0x1]  ;;  %v146_v35 = vshrl.u32 %v24_v21, 16  ;;  %v93_v43 = vshll.u32 %v17_v12, 16 }
  0x16   :  { %vm3801_vm7 = vmand %vm33_vm2, %vm241_vm4  ;;  %v238_v25 = vsel %vm3788_vm6, %v79_v13, %v237_v22  ;;  %v373_v28 = vshrl.u32 %v3808_v24, 16  ;;  %v376_v29 = vshll.u32 %v3808_v24, 16  ;;  %v288_v30 = vld [vmem:[#allocation2 + $0x58] sm:$0xf]  ;;  %v382_v31 = vshll.u32 %v3814_v27, 16 }
  0x17   :  { %v244_v26 = vsel %vm3801_vm7, %v80_v14, %v243_v23  ;;  %239 = vst [vmem:[#allocation2 + $0x8] sm:$0xf] %v238_v25  ;;  %v291_v34 = vld [vmem:[#allocation2 + $0x5c] sm:$0x1]  ;;  %v3819_v38 = vld [vmem:[#allocation2 + $0x50] sm:$0xf]  ;;  %v289_v40 = vsel %vm3788_vm6, %v143_v32, %v288_v30  ;;  %vm3834_vm9 = vmor %vm369_vm5, %vm370_vm8 }
  0x18   :  { %245 = vst [vmem:[#allocation2 + $0xc] sm:$0x1] %v244_v26  ;;  %v375_v36 = vrot.slane %v373_v28, 4  ;;  %v378_v37 = vrot.slane %v376_v29, 5  ;;  %v3821_v39 = vld [vmem:[#allocation2 + $0x54] sm:$0x1]  ;;  %v292_v41 = vsel %vm3801_vm7, %v144_v33, %v291_v34 }
  0x19   :  { %v485_v42 = vshrl.u32 %v3819_v38, 16  ;;  %v3828_v45 = vrot.slane %v382_v31, 5  ;;  %290 = vst [vmem:[#allocation2 + $0x58] sm:$0xf] %v289_v40  ;;  %293 = vst [vmem:[#allocation2 + $0x5c] sm:$0x1] %v292_v41 }
  0x1a   :  { %v379_v44 = vor.u32 %v378_v37, %v375_v36  ;;  %v488_v46 = vshll.u32 %v3819_v38, 16  ;;  %v494_v47 = vshll.u32 %v3821_v39, 16  ;;  %v84_v50 = vrot.slane %v82_v18, 7  ;;  %v246_v52 = vld [vmem:[#allocation2 + $0x10] sm:$0xf] }
  0x1b   :  { %v487_v49 = vrot.slane %v485_v42, 4  ;;  %v92_v51 = vrot.slane %v90_v20, 7  ;;  %v148_v53 = vrot.slane %v146_v35, 7  ;;  %v965_v55 = vrot.slane %v3814_v27, 5  ;;  %v249_v57 = vld [vmem:[#allocation2 + $0x14] sm:$0x1] }
  0x1c   :  { %v3838_v54 = vrot.slane %v379_v44, 4  ;;  %v490_v56 = vrot.slane %v488_v46, 5  ;;  %v149_v58 = vshll.u32 %v24_v21, 16  ;;  %v87_v59 = vor.u32 %v85_v19, %v84_v50  ;;  %v252_v63 = vld [vmem:[#allocation2 + $0x18] sm:$0xf] }
  0x1d   :  { %v88_v60 = vrot.slane %v84_v50, 4  ;;  %v95_v61 = vor.u32 %v93_v43, %v92_v51  ;;  %v96_v62 = vrot.slane %v92_v51, 4  ;;  %v255_v0 = vld [vmem:[#allocation2 + $0x1c] sm:$0x1]  ;;  %v25_v1 = vld [vmem:[%s5017_s0 + $0x28] sm:$0xf] }
  0x1e   :  { %v3844_v2 = vld [vmem:[#allocation2 + $0x8] sm:$0xf]  ;;  %v385_v4 = vsel %vm3834_vm9, %v3838_v54, %v3828_v45  ;;  %v491_v5 = vor.u32 %v490_v56, %v487_v49  ;;  %v3852_v6 = vrot.slane %v494_v47, 5  ;;  %v151_v7 = vor.u32 %v149_v58, %v148_v53  ;;  %v294_v14 = vld [vmem:[#allocation2 + $0x60] sm:$0xf] }
  0x1f   :  { %v3846_v3 = vld [vmem:[#allocation2 + $0xc] sm:$0x1]  ;;  %v387_v10 = vshrl.u32 %v3844_v2, 16  ;;  %v390_v11 = vshll.u32 %v3844_v2, 16  ;;  %v152_v13 = vrot.slane %v148_v53, 4  ;;  %v247_v17 = vsel %vm3788_vm6, %v87_v59, %v246_v52 }
  0x20   :  { %v396_v12 = vshll.u32 %v3846_v3, 16  ;;  %v3857_v16 = vrot.slane %v491_v5, 4  ;;  %v250_v18 = vsel %vm3801_vm7, %v88_v60, %v249_v57  ;;  %v253_v19 = vsel %vm3788_vm6, %v95_v61, %v252_v63  ;;  %v297_v20 = vld [vmem:[#allocation2 + $0x64] sm:$0x1]  ;;  %v3869_v26 = vld [vmem:[#allocation2 + $0x58] sm:$0xf] }
  0x21   :  { %v3242_v21 = vld [vmem:[%s5016_s1 + $0x4] sm:$0x3]  ;;  %v389_v22 = vrot.slane %v387_v10, 4  ;;  %v392_v23 = vrot.slane %v390_v11, 5  ;;  %248 = vst [vmem:[#allocation2 + $0x10] sm:$0xf] %v247_v17  ;;  %v256_v28 = vsel %vm3801_vm7, %v96_v62, %v255_v0  ;;  %v295_v45 = vsel %vm3788_vm6, %v151_v7, %v294_v14 }
  0x22   :  { %251 = vst [vmem:[#allocation2 + $0x14] sm:$0x1] %v250_v18  ;;  %254 = vst [vmem:[#allocation2 + $0x18] sm:$0xf] %v253_v19  ;;  %3673 = vmatprep.subr.msk.bf16.mxu0 %vm647_vm0, %v3242_v21  ;;  %v398_v29 = vrot.slane %v396_v12, 5  ;;  %v499_v31 = vshrl.u32 %v3869_v26, 16  ;;  %v497_v35 = vsel %vm3834_vm9, %v3857_v16, %v3852_v6  ;;  %v298_v50 = vsel %vm3801_vm7, %v152_v13, %v297_v20 }
  0x23   :  { %v3874_v30 = vld [vmem:[#allocation2 + $0x5c] sm:$0x1]  ;;  %v502_v32 = vshll.u32 %v3869_v26, 16  ;;  %257 = vst [vmem:[#allocation2 + $0x1c] sm:$0x1] %v256_v28  ;;  %v154_v33 = vshrl.u32 %v25_v1, 16  ;;  %v393_v34 = vor.u32 %v392_v23, %v389_v22 }
  0x24   :  { %v508_v36 = vshll.u32 %v3874_v30, 16  ;;  %v157_v37 = vshll.u32 %v25_v1, 16  ;;  %v300_v40 = vld [vmem:[#allocation2 + $0x68] sm:$0xf]  ;;  %v3886_v41 = vld [vmem:[%s5017_s0 + $0xc] sm:$0xf] }
  0x25   :  { %v501_v42 = vrot.slane %v499_v31, 4  ;;  %v504_v43 = vrot.slane %v502_v32, 5  ;;  %v156_v44 = vrot.slane %v154_v33, 7  ;;  %v3893_v46 = vld [vmem:[%s5017_s0 + $0x10] sm:$0xf]  ;;  %v394_v47 = vrot.slane %v393_v34, 4 }
  0x26   :  { %v510_v49 = vrot.slane %v508_v36, 5  ;;  %296 = vst [vmem:[#allocation2 + $0x60] sm:$0xf] %v295_v45  ;;  %v303_v51 = vld [vmem:[#allocation2 + $0x6c] sm:$0x1]  ;;  %v3899_v52 = vsel %vm647_vm0, %v3785_v8, 0 }
  0x27   :  { %v505_v53 = vor.u32 %v504_v43, %v501_v42  ;;  %v159_v54 = vor.u32 %v157_v37, %v156_v44  ;;  %v160_v56 = vrot.slane %v156_v44, 4  ;;  %299 = vst [vmem:[#allocation2 + $0x64] sm:$0x1] %v298_v50  ;;  %v3902_v57 = vsel %vm647_vm0, %v3242_v21, 0 }
  0x28   :  { %v399_v58 = vsel %vm3834_vm9, %v394_v47, %v398_v29  ;;  %v98_v59 = vshrl.u32 %v3886_v41, 16  ;;  %v101_v60 = vshll.u32 %v3886_v41, 16  ;;  %v106_v61 = vshrl.u32 %v3893_v46, 16  ;;  %v3909_v8 = vld [vmem:[#allocation2 + $0x10] sm:$0xf] }
  0x29   :  { %v3194_v62 = vcombine.low %v385_v4, %v399_v58  ;;  %v506_v63 = vrot.slane %v505_v53, 4  ;;  %v3911_v0 = vld [vmem:[#allocation2 + $0x18] sm:$0xf]  ;;  %v301_v1 = vsel %vm3788_vm6, %v159_v54, %v300_v40  ;;  %v304_v5 = vsel %vm3801_vm7, %v160_v56, %v303_v51  ;;  %v3917_v6 = vld [vmem:[#allocation2 + $0x14] sm:$0x1] }
  0x2a   :  { %v3919_v7 = vld [vmem:[#allocation2 + $0x1c] sm:$0x1]  ;;  %v401_v10 = vshrl.u32 %v3909_v8, 16  ;;  %v404_v11 = vshll.u32 %v3909_v8, 16  ;;  %302 = vst [vmem:[#allocation2 + $0x68] sm:$0xf] %v301_v1 }
  0x2b   :  { %305 = vst [vmem:[#allocation2 + $0x6c] sm:$0x1] %v304_v5  ;;  %3508 = vmatprep.mubr.msk.bf16.mxu0 %vm622_vm10, %v3194_v62  ;;  %v511_v12 = vsel %vm3834_vm9, %v506_v63, %v510_v49  ;;  %v410_v13 = vshll.u32 %v3917_v6, 16  ;;  %v415_v14 = vshrl.u32 %v3911_v0, 16  ;;  %v418_v16 = vshll.u32 %v3911_v0, 16 }
  0x2c   :  { %v3198_v17 = vcombine.low %v497_v35, %v511_v12  ;;  %v403_v18 = vrot.slane %v401_v10, 4  ;;  %v406_v19 = vrot.slane %v404_v11, 5  ;;  %v424_v20 = vshll.u32 %v3919_v7, 16  ;;  %v258_v47 = vld [vmem:[#allocation2 + $0x20] sm:$0xf] }
  0x2d   :  { %v412_v21 = vrot.slane %v410_v13, 5  ;;  %v417_v22 = vrot.slane %v415_v14, 4  ;;  %v420_v23 = vrot.slane %v418_v16, 5  ;;  %v3933_v29 = vld [vmem:[#allocation2 + $0x60] sm:$0xf]  ;;  %v100_v41 = vrot.slane %v98_v59, 7 }
  0x2e   :  { %5029 = vst [vmem:[#allocation3_spill] sm:$0xff] %v3933_v29  ;;  %3516 = vmatprep.mubr.msk.bf16.mxu1 %vm622_vm10, %v3198_v17  ;;  %v407_v31 = vor.u32 %v406_v19, %v403_v18  ;;  %v426_v32 = vrot.slane %v424_v20, 5  ;;  %v3937_v34 = vld [vmem:[#allocation2 + $0x64] sm:$0x1]  ;;  %v513_v35 = vshrl.u32 %v3933_v29, 16  ;;  %v516_v37 = vshll.u32 %v3933_v29, 16 }
  0x2f   :  { %v421_v36 = vor.u32 %v420_v23, %v417_v22  ;;  %v522_v40 = vshll.u32 %v3937_v34, 16  ;;  %v108_v44 = vrot.slane %v106_v61, 7  ;;  %v109_v45 = vshll.u32 %v3893_v46, 16  ;;  %v261_v46 = vld [vmem:[#allocation2 + $0x24] sm:$0x1] }
  0x30   :  { %v408_v42 = vrot.slane %v407_v31, 4  ;;  %v515_v43 = vrot.slane %v513_v35, 4  ;;  %v518_v53 = vrot.slane %v516_v37, 5  ;;  %v103_v54 = vor.u32 %v101_v60, %v100_v41  ;;  %v264_v60 = vld [vmem:[#allocation2 + $0x28] sm:$0xf] }
  0x31   :  { %v422_v49 = vrot.slane %v421_v36, 4  ;;  %v3943_v50 = vld [vmem:[#allocation2 + $0x68] sm:$0xf]  ;;  %v524_v59 = vrot.slane %v522_v40, 5  ;;  %v104_v10 = vrot.slane %v100_v41, 4  ;;  %v111_v16 = vor.u32 %v109_v45, %v108_v44 }
  0x32   :  { %5030 = vst [vmem:[#allocation4_spill] sm:$0xff] %v3943_v50  ;;  %v3945_v51 = vld [vmem:[#allocation2 + $0x6c] sm:$0x1]  ;;  %v413_v58 = vsel %vm3834_vm9, %v408_v42, %v412_v21  ;;  %v527_v62 = vshrl.u32 %v3943_v50, 16  ;;  %v530_v61 = vshll.u32 %v3943_v50, 16  ;;  %v519_v1 = vor.u32 %v518_v53, %v515_v43 }
  0x33   :  { %v427_v63 = vsel %vm3834_vm9, %v422_v49, %v426_v32  ;;  %v536_v5 = vshll.u32 %v3945_v51, 16  ;;  %v26_v11 = vld [vmem:[%s5017_s0 + $0x2c] sm:$0xf]  ;;  %v27_v18 = vld [vmem:[%s5017_s0 + $0x30] sm:$0xf]  ;;  %v112_v21 = vrot.slane %v108_v44, 4  ;;  %v259_v22 = vsel %vm3788_vm6, %v103_v54, %v258_v47 }
  0x34   :  { %v3195_v12 = vcombine.low %v413_v58, %v427_v63  ;;  %v529_v13 = vrot.slane %v527_v62, 4  ;;  %v532_v14 = vrot.slane %v530_v61, 5  ;;  %v267_v17 = vld [vmem:[#allocation2 + $0x2c] sm:$0x1]  ;;  %v520_v19 = vrot.slane %v519_v1, 4 }
  0x35   :  { %v538_v20 = vrot.slane %v536_v5, 5  ;;  %v20_v23 = vld [vmem:[%s5017_s0 + $0x14] sm:$0xf]  ;;  %260 = vst [vmem:[#allocation2 + $0x20] sm:$0xf] %v259_v22  ;;  %v262_v32 = vsel %vm3801_vm7, %v104_v10, %v261_v46  ;;  %v265_v35 = vsel %vm3788_vm6, %v111_v16, %v264_v60  ;;  %v162_v36 = vshrl.u32 %v26_v11, 16 }
  0x36   :  { %3509 = vmatmul.mubr.msk.bf16.vlgmr.msra.gmra.mxu0 %vm622_vm10, %v3195_v12  ;;  %v533_v31 = vor.u32 %v532_v14, %v529_v13  ;;  %v21_v37 = vld [vmem:[%s5017_s0 + $0x18] sm:$0xf]  ;;  %v525_v40 = vsel %vm3834_vm9, %v520_v19, %v524_v59  ;;  %263 = vst [vmem:[#allocation2 + $0x24] sm:$0x1] %v262_v32  ;;  %266 = vst [vmem:[#allocation2 + $0x28] sm:$0xf] %v265_v35  ;;  %v268_v41 = vsel %vm3801_vm7, %v112_v21, %v267_v17 }
  0x37   :  { %3543 = vmatpush3.bf16.msra.mxu0 %v3902_v57  ;;  %v165_v42 = vshll.u32 %v26_v11, 16  ;;  %v170_v43 = vshrl.u32 %v27_v18, 16  ;;  %v306_v44 = vld [vmem:[#allocation2 + $0x70] sm:$0xf]  ;;  %v309_v45 = vld [vmem:[#allocation2 + $0x74] sm:$0x1] }
  0x38   :  { %vm961_vm12 = vcmask 1046532   ;;  %v534_v47 = vrot.slane %v533_v31, 4  ;;  %269 = vst [vmem:[#allocation2 + $0x2c] sm:$0x1] %v268_v41  ;;  %v164_v49 = vrot.slane %v162_v36, 7  ;;  %v173_v53 = vshll.u32 %v27_v18, 16 }
  0x39   :  { %v312_v54 = vld [vmem:[#allocation2 + $0x78] sm:$0xf]  ;;  %v114_v58 = vshrl.u32 %v20_v23, 16  ;;  %v172_v59 = vrot.slane %v170_v43, 7  ;;  %v315_v62 = vld [vmem:[#allocation2 + $0x7c] sm:$0x1]  ;;  %vm4039_vm13 = vmor %vm960_vm11, %vm961_vm12 }
  0x3a   :  { %v117_v57 = vshll.u32 %v20_v23, 16  ;;  %v122_v61 = vshrl.u32 %v21_v37, 16  ;;  %v125_v46 = vshll.u32 %v21_v37, 16  ;;  %v539_v63 = vsel %vm3834_vm9, %v534_v47, %v538_v20  ;;  %v270_v60 = vld [vmem:[#allocation2 + $0x30] sm:$0xf] }
  0x3b   :  { %v167_v1 = vor.u32 %v165_v42, %v164_v49  ;;  %v168_v5 = vrot.slane %v164_v49, 4  ;;  %v116_v10 = vrot.slane %v114_v58, 7  ;;  %v273_v11 = vld [vmem:[#allocation2 + $0x34] sm:$0x1]  ;;  %v3199_v12 = vcombine.low %v525_v40, %v539_v63  ;;  %v276_v17 = vld [vmem:[#allocation2 + $0x38] sm:$0xf] }
  0x3c   :  { %v175_v13 = vor.u32 %v173_v53, %v172_v59  ;;  %v176_v14 = vrot.slane %v172_v59, 4  ;;  %v124_v16 = vrot.slane %v122_v61, 7  ;;  %v279_v18 = vld [vmem:[#allocation2 + $0x3c] sm:$0x1]  ;;  %v28_v20 = vld [vmem:[%s5017_s0 + $0x34] sm:$0xf] }
  0x3d   :  { %v307_v19 = vsel %vm3788_vm6, %v167_v1, %v306_v44  ;;  %v310_v21 = vsel %vm3801_vm7, %v168_v5, %v309_v45  ;;  %v119_v22 = vor.u32 %v117_v57, %v116_v10  ;;  %v120_v23 = vrot.slane %v116_v10, 4  ;;  %v3992_v31 = vld [vmem:[%s5016_s1 + $0x6] sm:$0x3]  ;;  %3517 = vmatmul.mubr.msk.bf16.vlgmr.msra.gmra.mxu1 %vm622_vm10, %v3199_v12  ;;  %v3995_v32 = vld [vmem:[#allocation2 + $0x20] sm:$0xf] }
  0x3e   :  { %308 = vst [vmem:[#allocation2 + $0x70] sm:$0xf] %v307_v19  ;;  %311 = vst [vmem:[#allocation2 + $0x74] sm:$0x1] %v310_v21  ;;  %v313_v35 = vsel %vm3788_vm6, %v175_v13, %v312_v54  ;;  %v316_v36 = vsel %vm3801_vm7, %v176_v14, %v315_v62  ;;  %v127_v37 = vor.u32 %v125_v46, %v124_v16  ;;  %v128_v40 = vrot.slane %v124_v16, 4 }
  0x3f   :  { %v4004_v41 = vld [vmem:[%s5017_s0 + $0x38] sm:$0xf]  ;;  %v4009_v42 = vld [vmem:[%s5016_s1 + $0x8] sm:$0x3]  ;;  %3525 = vmatpush3.bf16.msra.mxu1 %v3899_v52  ;;  %v4014_v44 = vld [vmem:[#allocation2 + $0x24] sm:$0x1]  ;;  %v271_v49 = vsel %vm3788_vm6, %v119_v22, %v270_v60  ;;  %v274_v53 = vsel %vm3801_vm7, %v120_v23, %v273_v11 }
  0x40   :  { %v4012_v43 = vld [vmem:[#allocation2 + $0x28] sm:$0xf]  ;;  %v429_v45 = vshrl.u32 %v3995_v32, 16  ;;  %v432_v47 = vshll.u32 %v3995_v32, 16  ;;  %314 = vst [vmem:[#allocation2 + $0x78] sm:$0xf] %v313_v35  ;;  %3675 = vmatprep.subr.msk.bf16.mxu0 %vm647_vm0, %v4009_v42  ;;  %v277_v62 = vsel %vm3788_vm6, %v127_v37, %v276_v17  ;;  %3674 = vmatprep.subr.msk.bf16.mxu1 %vm647_vm0, %v3992_v31  ;;  %v280_v63 = vsel %vm3801_vm7, %v128_v40, %v279_v18 }
  0x41   :  { %317 = vst [vmem:[#allocation2 + $0x7c] sm:$0x1] %v316_v36  ;;  %v4024_v52 = vld [vmem:[#allocation2 + $0x2c] sm:$0x1]  ;;  %v438_v54 = vshll.u32 %v4014_v44, 16  ;;  %v443_v58 = vshrl.u32 %v4012_v43, 16 }
  0x42   :  { %v446_v59 = vshll.u32 %v4012_v43, 16  ;;  %272 = vst [vmem:[#allocation2 + $0x30] sm:$0xf] %v271_v49  ;;  %275 = vst [vmem:[#allocation2 + $0x34] sm:$0x1] %v274_v53  ;;  %v431_v57 = vrot.slane %v429_v45, 4 }
  0x43   :  { %v434_v61 = vrot.slane %v432_v47, 5  ;;  %v452_v46 = vshll.u32 %v4024_v52, 16  ;;  %278 = vst [vmem:[#allocation2 + $0x38] sm:$0xf] %v277_v62  ;;  %v912_v1 = vld [vmem:[#allocation2] sm:$0xe] }
  0x44   :  { %v440_v5 = vrot.slane %v438_v54, 5  ;;  %v445_v10 = vrot.slane %v443_v58, 4  ;;  %v448_v60 = vrot.slane %v446_v59, 5  ;;  %281 = vst [vmem:[#allocation2 + $0x3c] sm:$0x1] %v280_v63  ;;  %v178_v11 = vshrl.u32 %v28_v20, 16 }
  0x45   :  { %v435_v12 = vor.u32 %v434_v61, %v431_v57  ;;  %v454_v13 = vrot.slane %v452_v46, 5  ;;  %v181_v14 = vshll.u32 %v28_v20, 16  ;;  %v186_v16 = vshrl.u32 %v4004_v41, 16  ;;  %v4046_v35 = vld [vmem:[#allocation2 + $0x70] sm:$0xf] }
  0x46   :  { %v449_v19 = vor.u32 %v448_v60, %v445_v10  ;;  %v4043_v21 = vrot.slane %v178_v11, 7  ;;  %v189_v18 = vshll.u32 %v4004_v41, 16  ;;  %v3226_v22 = vrot.slane %v912_v1, 9  ;;  %v4048_v36 = vld [vmem:[#allocation2 + $0x74] sm:$0x1] }
  0x47   :  { %v436_v23 = vrot.slane %v435_v12, 4  ;;  %v4050_v20 = vrot.slane %v186_v16, 7  ;;  %v4054_v45 = vld [vmem:[#allocation2 + $0x78] sm:$0xf]  ;;  %v541_v49 = vshrl.u32 %v4046_v35, 16  ;;  %v544_v58 = vshll.u32 %v4046_v35, 16 }
  0x48   :  { %v450_v40 = vrot.slane %v449_v19, 4  ;;  %v4056_v47 = vld [vmem:[#allocation2 + $0x7c] sm:$0x1]  ;;  %v183_v41 = vor.u32 %v181_v14, %v4043_v21  ;;  %v4064_v53 = vsel %vm4039_vm13, %v3226_v22, %v965_v55  ;;  %v550_v59 = vshll.u32 %v4048_v36, 16  ;;  %v913_v50 = vld [vmem:[#allocation2 + $0x8] sm:$0xe] }
  0x49   :  { %v441_v54 = vsel %vm3834_vm9, %v436_v23, %v440_v5  ;;  %v555_v62 = vshrl.u32 %v4054_v45, 16  ;;  %v4071_v57 = vld [vmem:[#allocation2 + $0x30] sm:$0xf]  ;;  %v543_v46 = vrot.slane %v541_v49, 4  ;;  %v558_v27 = vshll.u32 %v4054_v45, 16 }
  0x4a   :  { %v455_v61 = vsel %vm3834_vm9, %v450_v40, %v454_v13  ;;  %v564_v55 = vshll.u32 %v4056_v47, 16  ;;  %v4077_v63 = vld [vmem:[#allocation2 + $0x38] sm:$0xf]  ;;  %v546_v5 = vrot.slane %v544_v58, 5  ;;  %v552_v10 = vrot.slane %v550_v59, 5 }
  0x4b   :  { %v3196_v1 = vcombine.low %v441_v54, %v455_v61  ;;  %v557_v60 = vrot.slane %v555_v62, 4  ;;  %v4079_v11 = vld [vmem:[#allocation2 + $0x34] sm:$0x1]  ;;  %v560_v12 = vrot.slane %v558_v27, 5  ;;  %v4081_v16 = vld [vmem:[#allocation2 + $0x3c] sm:$0x1] }
  0x4c   :  { %v566_v14 = vrot.slane %v564_v55, 5  ;;  %v457_v19 = vshrl.u32 %v4071_v57, 16  ;;  %v460_v13 = vshll.u32 %v4071_v57, 16  ;;  %v547_v22 = vor.u32 %v546_v5, %v543_v46  ;;  %v318_v54 = vld [vmem:[#allocation2 + $0x80] sm:$0xf] }
  0x4d   :  { %3512 = vmatprep.mubr.msk.bf16.mxu0 %vm622_vm10, %v3196_v1  ;;  %v466_v23 = vshll.u32 %v4079_v11, 16  ;;  %v471_v40 = vshrl.u32 %v4077_v63, 16  ;;  %v474_v49 = vshll.u32 %v4077_v63, 16  ;;  %v321_v58 = vld [vmem:[#allocation2 + $0x84] sm:$0x1]  ;;  %v561_v59 = vor.u32 %v560_v12, %v557_v60 }
  0x4e   :  { %v459_v62 = vrot.slane %v457_v19, 4  ;;  %v462_v61 = vrot.slane %v460_v13, 5  ;;  %v480_v27 = vshll.u32 %v4081_v16, 16  ;;  %v324_v55 = vld [vmem:[#allocation2 + $0x88] sm:$0xf]  ;;  %v548_v37 = vrot.slane %v547_v22, 4 }
  0x4f   :  { %v468_v56 = vrot.slane %v466_v23, 5  ;;  %v473_v4 = vrot.slane %v471_v40, 4  ;;  %v476_v33 = vrot.slane %v474_v49, 5  ;;  %v327_v1 = vld [vmem:[#allocation2 + $0x8c] sm:$0x1]  ;;  %v562_v46 = vrot.slane %v561_v59, 4 }
  0x50   :  { %v463_v5 = vor.u32 %v462_v61, %v459_v62  ;;  %v482_v28 = vrot.slane %v480_v27, 5  ;;  %v184_v25 = vrot.slane %v4043_v21, 4  ;;  %v553_v29 = vsel %vm3834_vm9, %v548_v37, %v552_v10  ;;  %v914_v13 = vld [vmem:[#allocation2 + $0x10] sm:$0xe]  ;;  %v915_v22 = vld [vmem:[#allocation2 + $0x18] sm:$0xe] }
  0x51   :  { %v477_v60 = vor.u32 %v476_v33, %v473_v4  ;;  %v191_v12 = vor.u32 %v189_v18, %v4050_v20  ;;  %v192_v19 = vrot.slane %v4050_v20, 4  ;;  %v567_v23 = vsel %vm3834_vm9, %v562_v46, %v566_v14  ;;  %v916_v18 = vld [vmem:[#allocation2 + $0x20] sm:$0xe]  ;;  %v4112_v61 = vld [vmem:[#allocation2 + $0x50] sm:$0xe] }
  0x52   :  { %v464_v40 = vrot.slane %v463_v5, 4  ;;  %v319_v49 = vsel %vm3788_vm6, %v183_v41, %v318_v54  ;;  %v322_v21 = vsel %vm3801_vm7, %v184_v25, %v321_v58  ;;  %v3200_v59 = vcombine.low %v553_v29, %v567_v23  ;;  %v917_v25 = vld [vmem:[#allocation2 + $0x28] sm:$0xe]  ;;  %v918_v58 = vld [vmem:[#allocation2 + $0x30] sm:$0xe] }
  0x53   :  { %v478_v62 = vrot.slane %v477_v60, 4  ;;  %320 = vst [vmem:[#allocation2 + $0x80] sm:$0xf] %v319_v49  ;;  %323 = vst [vmem:[#allocation2 + $0x84] sm:$0x1] %v322_v21  ;;  %v325_v4 = vsel %vm3788_vm6, %v191_v12, %v324_v55  ;;  %v328_v33 = vsel %vm3801_vm7, %v192_v19, %v327_v1  ;;  %v3227_v37 = vrot.slane %v913_v50, 9 }
  0x54   :  { %v469_v20 = vsel %vm3834_vm9, %v464_v40, %v468_v56  ;;  %326 = vst [vmem:[#allocation2 + $0x88] sm:$0xf] %v325_v4  ;;  %329 = vst [vmem:[#allocation2 + $0x8c] sm:$0x1] %v328_v33  ;;  %v3228_v41 = vrot.slane %v914_v13, 9  ;;  %v3229_v10 = vrot.slane %v915_v22, 9  ;;  %3520 = vmatprep.mubr.msk.bf16.mxu1 %vm622_vm10, %v3200_v59  ;;  %v3211_v55 = vcombine.low %v3909_v8, %v3911_v0 }
  0x55   :  { %v997_v29 = vrot.slane %v3821_v39, 5  ;;  %v1001_v14 = vrot.slane %v3874_v30, 5  ;;  %v483_v54 = vsel %vm3834_vm9, %v478_v62, %v482_v28  ;;  %v5033_v56 = vrot.slane %v3846_v3, 5  ;;  %v919_v46 = vld [vmem:[#allocation2 + $0x38] sm:$0xe] }
  0x56   :  { %v3197_v27 = vcombine.low %v469_v20, %v483_v54  ;;  %v3230_v1 = vrot.slane %v916_v18, 9  ;;  %v5034_v60 = vrot.slane %v3917_v6, 5  ;;  %v981_v12 = vrot.slane %v4014_v44, 5  ;;  %v921_v13 = vld [vmem:[#allocation2 + $0x58] sm:$0xe] }
  0x57   :  { %v970_v50 = vsel %vm4039_vm13, %v3227_v37, %v5033_v56  ;;  %v3231_v19 = vrot.slane %v917_v25, 9  ;;  %v5035_v3 = vrot.slane %v3919_v7, 5  ;;  %v985_v23 = vrot.slane %v4024_v52, 5  ;;  %v922_v21 = vld [vmem:[#allocation2 + $0x60] sm:$0xe] }
  0x58   :  { %v3243_v5 = vcombine.low %v4064_v53, %v970_v50  ;;  %v974_v28 = vsel %vm4039_vm13, %v3228_v41, %v5034_v60  ;;  %3513 = vmatmul.mubr.msk.bf16.gmra.mxu0 %vm622_vm10, %v3197_v27  ;;  %v3232_v40 = vrot.slane %v918_v58, 9  ;;  %v989_v53 = vrot.slane %v4079_v11, 5  ;;  %v923_v58 = vld [vmem:[#allocation2 + $0x68] sm:$0xe] }
  0x59   :  { %v978_v22 = vsel %vm4039_vm13, %v3229_v10, %v5035_v3  ;;  %v4136_v6 = vsel %vm647_vm0, %v3992_v31, 0  ;;  %v1698_v44 = vsel %vm647_vm0, %v4009_v42, 0  ;;  %v3233_v49 = vrot.slane %v919_v46, 9 }
  0x5a   :  { %3544 = vmatprep.mubr.msk.bf16.mxu0 %vm622_vm10, %v3243_v5  ;;  %v993_v7 = vrot.slane %v4081_v16, 5  ;;  %v4141_v59 = vld [vmem:[#allocation2 + $0x80] sm:$0xf]  ;;  %v4143_v62 = vld [vmem:[#allocation2 + $0x84] sm:$0x1]  ;;  %v982_v52 = vsel %vm4039_vm13, %v3230_v1, %v981_v12  ;;  %v986_v11 = vsel %vm4039_vm13, %v3231_v19, %v985_v23  ;;  %v3234_v31 = vrot.slane %v4112_v61, 9 }
  0x5b   :  { %v3235_v4 = vrot.slane %v921_v13, 9  ;;  %v4150_v33 = vld [vmem:[#allocation2 + $0x88] sm:$0xf]  ;;  %v4152_v42 = vld [vmem:[#allocation2 + $0x8c] sm:$0x1]  ;;  %v569_v16 = vshrl.u32 %v4141_v59, 16  ;;  %v3244_v20 = vcombine.low %v974_v28, %v978_v22  ;;  %v4158_v37 = vsel %vm4039_vm13, %v3232_v40, %v989_v53 }
  0x5c   :  { %v572_v18 = vshll.u32 %v4141_v59, 16  ;;  %v578_v41 = vshll.u32 %v4143_v62, 16  ;;  %v583_v10 = vshrl.u32 %v4150_v33, 16  ;;  %v586_v25 = vshll.u32 %v4150_v33, 16  ;;  %v924_v28 = vld [vmem:[#allocation2 + $0x70] sm:$0xe] }
  0x5d   :  { %v592_v54 = vshll.u32 %v4152_v42, 16  ;;  %v571_v61 = vrot.slane %v569_v16, 4  ;;  %v3245_v56 = vcombine.low %v982_v52, %v986_v11  ;;  %v3236_v50 = vrot.slane %v922_v21, 9  ;;  %v4172_v22 = vld [vmem:[%s5016_s1 + $0xc] sm:$0x3] }
  0x5e   :  { %v574_v27 = vrot.slane %v572_v18, 5  ;;  %v580_v1 = vrot.slane %v578_v41, 5  ;;  %v585_v46 = vrot.slane %v583_v10, 4  ;;  %v588_v5 = vrot.slane %v586_v25, 5  ;;  %v926_v16 = vld [vmem:[#allocation2 + $0x80] sm:$0xe] }
  0x5f   :  { %v994_v60 = vsel %vm4039_vm13, %v3233_v49, %v993_v7  ;;  %v3212_v19 = vcombine.low %v3995_v32, %v4012_v43  ;;  %v1005_v13 = vrot.slane %v3937_v34, 5  ;;  %v3237_v3 = vrot.slane %v923_v58, 9  ;;  %v925_v7 = vld [vmem:[#allocation2 + $0x78] sm:$0xe]  ;;  %v4392_v9 = vld [vmem:[#allocation2 + $0x8c] sm:$0x1] }
  0x60   :  { %v575_v12 = vor.u32 %v574_v27, %v571_v61  ;;  %v589_v23 = vor.u32 %v588_v5, %v585_v46  ;;  %v594_v40 = vrot.slane %v592_v54, 5  ;;  %3545 = vmatmul.mubr.msk.bf16.vlgmr.msra.gmra.mxu0 %vm622_vm10, %v3244_v20  ;;  %v3213_v53 = vcombine.low %v4071_v57, %v4077_v63  ;;  %v1393_v54 = vld [vmem:[#allocation2 + $0x10] sm:$0xf]  ;;  %v4303_v63 = vld [vmem:[#allocation2 + $0x64] sm:$0x1] }
  0x61   :  { %v1009_v49 = vrot.slane %v3945_v51, 5  ;;  %3579 = vmatpush3.bf16.msra.mxu0 %v1698_v44  ;;  %3548 = vmatprep.mubr.msk.bf16.mxu0 %vm622_vm10, %v3245_v56  ;;  %v3246_v34 = vcombine.low %v4158_v37, %v994_v60  ;;  %v998_v52 = vsel %vm4039_vm13, %v3234_v31, %v997_v29  ;;  %v1002_v11 = vsel %vm4039_vm13, %v3235_v4, %v1001_v14  ;;  %v927_v37 = vld [vmem:[#allocation2 + $0x88] sm:$0xe]  ;;  %v4202_v4 = vld [vmem:[#allocation2 + $0xc] sm:$0x1] }
  0x62   :  { %v576_v21 = vrot.slane %v575_v12, 4  ;;  %v590_v18 = vrot.slane %v589_v23, 4  ;;  %v4190_v51 = vsel %vm4039_vm13, %v3236_v50, %v1005_v13  ;;  %v3238_v44 = vrot.slane %v924_v28, 9  ;;  %3677 = vmatprep.subr.msk.bf16.mxu0 %vm647_vm0, %v4172_v22  ;;  %v1391_v31 = vld [vmem:[#allocation2 + $0x8] sm:$0xf] }
  0x63   :  { %v1013_v20 = vrot.slane %v4048_v36, 5  ;;  %v4199_v30 = vsel %vm4039_vm13, %v3237_v3, %v1009_v49  ;;  %v3239_v29 = vrot.slane %v925_v7, 9  ;;  %v1017_v14 = vrot.slane %v4056_v47, 5  ;;  %v4210_v50 = vld [vmem:[#allocation2 + $0x14] sm:$0x1] }
  0x64   :  { %v581_v39 = vsel %vm3834_vm9, %v576_v21, %v580_v1  ;;  %v595_v36 = vsel %vm3834_vm9, %v590_v18, %v594_v40  ;;  %v3247_v41 = vcombine.low %v998_v52, %v1002_v11  ;;  %v3240_v10 = vrot.slane %v926_v16, 9  ;;  %v1395_v47 = vld [vmem:[#allocation2 + $0x18] sm:$0xf]  ;;  %v4218_v60 = vld [vmem:[#allocation2 + $0x1c] sm:$0x1] }
  0x65   :  { %v1021_v25 = vrot.slane %v4143_v62, 5  ;;  %v3201_v58 = vcombine.low %v581_v39, %v595_v36  ;;  %v3216_v61 = vcombine.low %v4046_v35, %v4054_v45  ;;  %v3241_v27 = vrot.slane %v927_v37, 9  ;;  %v1397_v28 = vld [vmem:[#allocation2 + $0x20] sm:$0xf]  ;;  %v4239_v18 = vld [vmem:[#allocation2 + $0x24] sm:$0x1] }
  0x66   :  { %v1025_v56 = vrot.slane %v4152_v42, 5  ;;  %v3248_v1 = vcombine.low %v4190_v51, %v4199_v30  ;;  %v4216_v46 = vsel %vm4039_vm13, %v3238_v44, %v1013_v20  ;;  %v1424_v5 = vshrl.u32 %v1391_v31, 16  ;;  %v4245_v36 = vld [vmem:[%s5016_s1 + $0xa] sm:$0x3] }
  0x67   :  { %v1427_v62 = vshll.u32 %v1391_v31, 16  ;;  %3521 = vmatmul.mubr.msk.bf16.gmra.mxu1 %vm622_vm10, %v3201_v58  ;;  %v1018_v42 = vsel %vm4039_vm13, %v3239_v29, %v1017_v14  ;;  %v1433_v12 = vshll.u32 %v4202_v4, 16  ;;  %v1438_v13 = vshrl.u32 %v1393_v54, 16  ;;  %v1399_v29 = vld [vmem:[#allocation2 + $0x28] sm:$0xf] }
  0x68   :  { %v1441_v3 = vshll.u32 %v1393_v54, 16  ;;  %v5036_v23 = vcombine.low %v3808_v24, %v3844_v2  ;;  %3549 = vmatmul.mubr.msk.bf16.gmra.mxu0 %vm622_vm10, %v3246_v34  ;;  %v4231_v40 = vsel %vm4039_vm13, %v3240_v10, %v1021_v25  ;;  %v1426_v49 = vrot.slane %v1424_v5, 4  ;;  %v4247_v25 = vld [vmem:[#allocation2 + $0x2c] sm:$0x1] }
  0x69   :  { %v1429_v7 = vrot.slane %v1427_v62, 5  ;;  %v1447_v21 = vshll.u32 %v4210_v50, 16  ;;  %3552 = vmatprep.mubr.msk.bf16.mxu0 %vm622_vm10, %v3247_v41  ;;  %v4237_v52 = vsel %vm4039_vm13, %v3241_v27, %v1025_v56  ;;  %v1440_v11 = vrot.slane %v1438_v13, 4  ;;  %v4261_v13 = vld [vmem:[#allocation2 + $0x34] sm:$0x1] }
  0x6a   :  { %3526 = vmatprep.mubr.msk.bf16.mxu1 %vm622_vm10, %v5036_v23  ;;  %v1443_v24 = vrot.slane %v1441_v3, 5  ;;  %v1452_v2 = vshrl.u32 %v1395_v47, 16  ;;  %v1455_v34 = vshll.u32 %v1395_v47, 16  ;;  %v1461_v51 = vshll.u32 %v4218_v60, 16  ;;  %v1401_v47 = vld [vmem:[#allocation2 + $0x30] sm:$0xf] }
  0x6b   :  { %v1430_v16 = vor.u32 %v1429_v7, %v1426_v49  ;;  %v1466_v44 = vshrl.u32 %v1397_v28, 16  ;;  %v1435_v20 = vrot.slane %v1433_v12, 5  ;;  %v1469_v30 = vshll.u32 %v1397_v28, 16  ;;  %v22_v49 = vld [vmem:[%s5017_s0 + $0x1c] sm:$0xf] }
  0x6c   :  { %v1444_v37 = vor.u32 %v1443_v24, %v1440_v11  ;;  %v1454_v39 = vrot.slane %v1452_v2, 4  ;;  %v1449_v31 = vrot.slane %v1447_v21, 5  ;;  %v1457_v41 = vrot.slane %v1455_v34, 5  ;;  %v1403_v21 = vld [vmem:[#allocation2 + $0x38] sm:$0xf] }
  0x6d   :  { %v1431_v14 = vrot.slane %v1430_v16, 4  ;;  %v1468_v10 = vrot.slane %v1466_v44, 4  ;;  %v3249_v54 = vcombine.low %v4216_v46, %v1018_v42  ;;  %v1471_v27 = vrot.slane %v1469_v30, 5  ;;  %v4277_v16 = vld [vmem:[#allocation2 + $0x3c] sm:$0x1] }
  0x6e   :  { %v1445_v58 = vrot.slane %v1444_v37, 4  ;;  %v1475_v56 = vshll.u32 %v4239_v18, 16  ;;  %v3250_v5 = vcombine.low %v4231_v40, %v4237_v52  ;;  %v1458_v62 = vor.u32 %v1457_v41, %v1454_v39  ;;  %v282_v39 = vld [vmem:[#allocation2 + $0x40] sm:$0xf]  ;;  %v1413_v52 = vld [vmem:[#allocation2 + $0x70] sm:$0xf] }
  0x6f   :  { %v4253_v28 = vrot.slane %v1461_v51, 5  ;;  %v1480_v12 = vshrl.u32 %v1399_v29, 16  ;;  %3527 = vmatmul.mubr.msk.bf16.vlgmr.msra.gmra.mxu1 %vm622_vm10, %v3211_v55  ;;  %v1436_v46 = vsel %vm3834_vm9, %v1431_v14, %v1435_v20  ;;  %v1472_v42 = vor.u32 %v1471_v27, %v1468_v10  ;;  %v1407_v51 = vld [vmem:[#allocation2 + $0x58] sm:$0xf] }
  0x70   :  { %v1483_v3 = vshll.u32 %v1399_v29, 16  ;;  %v1489_v23 = vshll.u32 %v4247_v25, 16  ;;  %3561 = vmatpush3.bf16.msra.mxu1 %v4136_v6  ;;  %3530 = vmatprep.mubr.msk.bf16.mxu1 %vm622_vm10, %v3212_v19  ;;  %v1450_v8 = vsel %vm3834_vm9, %v1445_v58, %v1449_v31  ;;  %v1459_v0 = vrot.slane %v1458_v62, 4  ;;  %v285_v31 = vld [vmem:[#allocation2 + $0x44] sm:$0x1] }
  0x71   :  { %v1482_v55 = vrot.slane %v1480_v12, 4  ;;  %v1494_v7 = vshrl.u32 %v1401_v47, 16  ;;  %3553 = vmatmul.mubr.msk.bf16.gmra.mxu0 %vm622_vm10, %v3248_v1  ;;  %3676 = vmatprep.subr.msk.bf16.mxu1 %vm647_vm0, %v4245_v36  ;;  %v1473_v11 = vrot.slane %v1472_v42, 4  ;;  %v1477_v24 = vrot.slane %v1475_v56, 5  ;;  %v4285_v56 = vld [vmem:[#allocation2 + $0x5c] sm:$0x1] }
  0x72   :  { %v1485_v6 = vrot.slane %v1483_v3, 5  ;;  %v1497_v2 = vshll.u32 %v1401_v47, 16  ;;  %3556 = vmatprep.mubr.msk.bf16.mxu0 %vm622_vm10, %v3249_v54  ;;  %v1491_v32 = vrot.slane %v1489_v23, 5  ;;  %v1503_v19 = vshll.u32 %v4261_v13, 16 }
  0x73   :  { %v1496_v43 = vrot.slane %v1494_v7, 4  ;;  %v130_v34 = vshrl.u32 %v22_v49, 16  ;;  %v3277_v44 = vcombine.low %v1436_v46, %v1450_v8  ;;  %v133_v37 = vshll.u32 %v22_v49, 16  ;;  %v1409_v46 = vld [vmem:[#allocation2 + $0x60] sm:$0xf] }
  0x74   :  { %v1486_v20 = vor.u32 %v1485_v6, %v1482_v55  ;;  %v1499_v1 = vrot.slane %v1497_v2, 5  ;;  %v1464_v30 = vsel %vm3834_vm9, %v1459_v0, %v4253_v28  ;;  %v1505_v29 = vrot.slane %v1503_v19, 5  ;;  %v1411_v7 = vld [vmem:[#allocation2 + $0x68] sm:$0xf] }
  0x75   :  { %v132_v14 = vrot.slane %v130_v34, 7  ;;  %v1508_v41 = vshrl.u32 %v1403_v21, 16  ;;  %v1511_v58 = vshll.u32 %v1403_v21, 16  ;;  %v1517_v27 = vshll.u32 %v4277_v16, 16 }
  0x76   :  { %v1487_v10 = vrot.slane %v1486_v20, 4  ;;  %v1500_v54 = vor.u32 %v1499_v1, %v1496_v43  ;;  %v1536_v42 = vshrl.u32 %v1407_v51, 16  ;;  %v1478_v28 = vsel %vm3834_vm9, %v1473_v11, %v1477_v24  ;;  %v4312_v24 = vld [vmem:[#allocation2 + $0x6c] sm:$0x1] }
  0x77   :  { %v135_v47 = vor.u32 %v133_v37, %v132_v14  ;;  %v136_v62 = vrot.slane %v132_v14, 4  ;;  %v1510_v12 = vrot.slane %v1508_v41, 4  ;;  %3531 = vmatmul.mubr.msk.bf16.gmra.mxu1 %vm622_vm10, %v3213_v53  ;;  %v1513_v49 = vrot.slane %v1511_v58, 5  ;;  %v4320_v37 = vld [vmem:[#allocation2 + $0x74] sm:$0x1] }
  0x78   :  { %v1492_v3 = vsel %vm3834_vm9, %v1487_v10, %v1491_v32  ;;  %v1501_v23 = vrot.slane %v1500_v54, 4  ;;  %v5037_v8 = vcombine.low %v3819_v38, %v3869_v26  ;;  %v1538_v53 = vrot.slane %v1536_v42, 4 }
  0x79   :  { %v283_v0 = vsel %vm3788_vm6, %v135_v47, %v282_v39  ;;  %v286_v57 = vsel %vm3801_vm7, %v136_v62, %v285_v31  ;;  %v1539_v55 = vshll.u32 %v1407_v51, 16  ;;  %3557 = vmatmul.mubr.msk.bf16.gmra.mxu0 %vm622_vm10, %v3250_v5  ;;  %v1514_v26 = vor.u32 %v1513_v49, %v1510_v12  ;;  %v1415_v31 = vld [vmem:[#allocation2 + $0x78] sm:$0xf]  ;;  %v5039_v47 = vld [vmem:[#allocation4_spill] sm:$0xff] }
  0x7a   :  { %3534 = vmatprep.mubr.msk.bf16.mxu1 %vm622_vm10, %v5037_v8  ;;  %v1506_v38 = vsel %vm3834_vm9, %v1501_v23, %v1505_v29  ;;  %284 = vst [vmem:[#allocation2 + $0x40] sm:$0xf] %v283_v0  ;;  %287 = vst [vmem:[#allocation2 + $0x44] sm:$0x1] %v286_v57  ;;  %v1545_v21 = vshll.u32 %v4285_v56, 16  ;;  %v1550_v11 = vshrl.u32 %v1409_v46, 16  ;;  %3580 = vmatprep.mubr.msk.bf16.mxu0 %vm622_vm10, %v3277_v44 }
  0x7b   :  { %v3278_v6 = vcombine.low %v1464_v30, %v1478_v28  ;;  %v4315_v2 = vrot.slane %v1517_v27, 5  ;;  %v1541_v32 = vrot.slane %v1539_v55, 5  ;;  %v1553_v40 = vshll.u32 %v1409_v46, 16  ;;  %v5038_v27 = vld [vmem:[#allocation3_spill] sm:$0xff]  ;;  %v4336_v8 = vld [vmem:[#allocation2 + $0x7c] sm:$0x1] }
  0x7c   :  { %v3279_v5 = vcombine.low %v1492_v3, %v1506_v38  ;;  %v1552_v43 = vrot.slane %v1550_v11, 4  ;;  %v1559_v19 = vshll.u32 %v4303_v63, 16  ;;  %v1564_v34 = vshrl.u32 %v1411_v7, 16  ;;  %v1417_v0 = vld [vmem:[#allocation2 + $0x80] sm:$0xf] }
  0x7d   :  { %v4318_v51 = vrot.slane %v1514_v26, 4  ;;  %v1542_v20 = vor.u32 %v1541_v32, %v1538_v53  ;;  %v1555_v1 = vrot.slane %v1553_v40, 5  ;;  %v1567_v39 = vshll.u32 %v1411_v7, 16  ;;  %v4351_v26 = vld [vmem:[#allocation2 + $0x84] sm:$0x1] }
  0x7e   :  { %v1547_v29 = vrot.slane %v1545_v21, 5  ;;  %v1566_v44 = vrot.slane %v1564_v34, 4  ;;  %v1573_v30 = vshll.u32 %v4312_v24, 16  ;;  %v1578_v14 = vshrl.u32 %v1413_v52, 16  ;;  %v30_v40 = vld [vmem:[%s5017_s0 + $0x3c] sm:$0xf] }
  0x7f   :  { %v1543_v41 = vrot.slane %v1542_v20, 4  ;;  %v1556_v10 = vor.u32 %v1555_v1, %v1552_v43  ;;  %v1569_v54 = vrot.slane %v1567_v39, 5  ;;  %v1581_v58 = vshll.u32 %v1413_v52, 16 }
  0x80   :  { %v5040_v62 = vcombine.low %v5038_v27, %v5039_v47  ;;  %v2175_v12 = vsel %vm647_vm0, %v4172_v22, 0  ;;  %v1561_v46 = vrot.slane %v1559_v19, 5  ;;  %v1580_v42 = vrot.slane %v1578_v14, 4  ;;  %v1419_v19 = vld [vmem:[#allocation2 + $0x88] sm:$0xf] }
  0x81   :  { %v3217_v28 = vcombine.low %v4141_v59, %v4150_v33  ;;  %v1405_v3 = vld [vmem:[#allocation2 + $0x40] sm:$0xf]  ;;  %v1570_v23 = vor.u32 %v1569_v54, %v1566_v44  ;;  %v1587_v49 = vshll.u32 %v4320_v37, 16  ;;  %v1592_v57 = vshrl.u32 %v1415_v31, 16  ;;  %3581 = vmatmul.mubr.msk.bf16.vlgmr.msra.gmra.mxu0 %vm622_vm10, %v3278_v6  ;;  %v4339_v22 = vld [vmem:[#allocation2 + $0x44] sm:$0x1] }
  0x82   :  { %3535 = vmatmul.mubr.msk.bf16.gmra.mxu1 %vm622_vm10, %v5040_v62  ;;  %v1522_v53 = vshrl.u32 %v1405_v3, 16  ;;  %v1525_v55 = vshll.u32 %v1405_v3, 16  ;;  %v1557_v35 = vrot.slane %v1556_v10, 4  ;;  %v1583_v45 = vrot.slane %v1581_v58, 5  ;;  %3615 = vmatpush3.bf16.msra.mxu0 %v2175_v12  ;;  %v330_v62 = vld [vmem:[#allocation2 + $0x90] sm:$0xf] }
  0x83   :  { %3538 = vmatprep.mubr.msk.bf16.mxu1 %vm622_vm10, %v3216_v61  ;;  %v3688_v61 = vld [vmem:[#allocation2 + $0x8] ss:$8 sps:$4 sm:$0xff]   ;;  %3584 = vmatprep.mubr.msk.bf16.mxu0 %vm622_vm10, %v3279_v5  ;;  %v1520_v59 = vsel %vm3834_vm9, %v4318_v51, %v4315_v2  ;;  %v1531_v33 = vshll.u32 %v4339_v22, 16  ;;  %v1548_v7 = vsel %vm3834_vm9, %v1543_v41, %v1547_v29  ;;  %v4349_v38 = vrot.slane %v1573_v30, 5  ;;  %v333_v3 = vld [vmem:[#allocation2 + $0x94] sm:$0x1] }
  0x84   :  { %v1524_v21 = vrot.slane %v1522_v53, 4  ;;  %v1527_v11 = vrot.slane %v1525_v55, 5  ;;  %v1571_v6 = vrot.slane %v1570_v23, 4  ;;  %v1584_v32 = vor.u32 %v1583_v45, %v1580_v42  ;;  %v4365_v12 = vld [vmem:[%s5016_s1 + $0x10] sm:$0x3] }
  0x85   :  { %v1562_v2 = vsel %vm3834_vm9, %v1557_v35, %v1561_v46  ;;  %v1589_v52 = vrot.slane %v1587_v49, 5  ;;  %v1594_v5 = vrot.slane %v1592_v57, 4  ;;  %v1595_v43 = vshll.u32 %v1415_v31, 16  ;;  %3679 = vmatprep.subr.msk.bf16.mxu0 %vm647_vm0, %v4365_v12  ;;  %v3689_v55 = vld [vmem:[#allocation2 + $0x18] ss:$8 sps:$4 sm:$0xff]  }
  0x86   :  { %v1528_v34 = vor.u32 %v1527_v11, %v1524_v21  ;;  %v1533_v51 = vrot.slane %v1531_v33, 5  ;;  %v1601_v20 = vshll.u32 %v4336_v8, 16  ;;  %v1606_v1 = vshrl.u32 %v1417_v0, 16  ;;  %v3690_v33 = vld [vmem:[#allocation2 + $0x28] ss:$8 sps:$4 sm:$0xff]  }
  0x87   :  { %v1597_v39 = vrot.slane %v1595_v43, 5  ;;  %v1609_v29 = vshll.u32 %v1417_v0, 16  ;;  %v1615_v44 = vshll.u32 %v4351_v26, 16  ;;  %v194_v30 = vshrl.u32 %v30_v40, 16  ;;  %v3692_v43 = vld [vmem:[#allocation2 + $0x58] ss:$8 sps:$4 sm:$0xff]  }
  0x88   :  { %v1529_v14 = vrot.slane %v1528_v34, 4  ;;  %v3281_v41 = vcombine.low %v1548_v7, %v1562_v2  ;;  %v1585_v10 = vrot.slane %v1584_v32, 4  ;;  %v1608_v54 = vrot.slane %v1606_v1, 4 }
  0x89   :  { %v1598_v31 = vor.u32 %v1597_v39, %v1594_v5  ;;  %v1603_v58 = vrot.slane %v1601_v20, 5  ;;  %v1611_v27 = vrot.slane %v1609_v29, 5  ;;  %v1617_v47 = vrot.slane %v1615_v44, 5  ;;  %v3691_v20 = vld [vmem:[#allocation2 + $0x38] ss:$8 sps:$4 sm:$0xff]  }
  0x8a   :  { %3539 = vmatmul.mubr.msk.bf16.gmra.mxu1 %vm622_vm10, %v3217_v28  ;;  %v1534_v46 = vsel %vm3834_vm9, %v1529_v14, %v1533_v51  ;;  %v196_v42 = vrot.slane %v194_v30, 7  ;;  %v197_v28 = vshll.u32 %v30_v40, 16  ;;  %v1620_v23 = vshrl.u32 %v1419_v19, 16  ;;  %v1814_v51 = vld [vmem:[#allocation2 + $0x10] sm:$0xe] }
  0x8b   :  { %3562 = vmatprep.mubr.msk.bf16.mxu1 %vm622_vm10, %v3688_v61  ;;  %v3280_v49 = vcombine.low %v1520_v59, %v1534_v46  ;;  %v1599_v0 = vrot.slane %v1598_v31, 4  ;;  %v1612_v57 = vor.u32 %v1611_v27, %v1608_v54  ;;  %v1623_v53 = vshll.u32 %v1419_v19, 16  ;;  %v1815_v29 = vld [vmem:[#allocation2 + $0x18] sm:$0xe]  ;;  %v1816_v44 = vld [vmem:[#allocation2 + $0x20] sm:$0xe] }
  0x8c   :  { %v199_v35 = vor.u32 %v197_v28, %v196_v42  ;;  %v200_v45 = vrot.slane %v196_v42, 4  ;;  %v1976_v61 = vsel %vm647_vm0, %v4245_v36, 0  ;;  %v1576_v21 = vsel %vm3834_vm9, %v1571_v6, %v4349_v38  ;;  %v3343_v38 = vld [vmem:[%s5016_s1 + $0xe] sm:$0x3]  ;;  %v1813_v6 = vld [vmem:[#allocation2 + $0x8] sm:$0xe] }
  0x8d   :  { %3585 = vmatmul.mubr.msk.bf16.gmra.mxu0 %vm622_vm10, %v3280_v49  ;;  %v1613_v7 = vrot.slane %v1612_v57, 4  ;;  %v1590_v59 = vsel %vm3834_vm9, %v1585_v10, %v1589_v52  ;;  %v1604_v36 = vsel %vm3834_vm9, %v1599_v0, %v1603_v58  ;;  %v1622_v2 = vrot.slane %v1620_v23, 4  ;;  %v1817_v10 = vld [vmem:[#allocation2 + $0x28] sm:$0xe]  ;;  %v1818_v46 = vld [vmem:[#allocation2 + $0x30] sm:$0xe] }
  0x8e   :  { %3588 = vmatprep.mubr.msk.bf16.mxu0 %vm622_vm10, %v3281_v41  ;;  %v331_v11 = vsel %vm3788_vm6, %v199_v35, %v330_v62  ;;  %v334_v32 = vsel %vm3801_vm7, %v200_v45, %v333_v3  ;;  %v1625_v5 = vrot.slane %v1623_v53, 5  ;;  %v3282_v15 = vcombine.low %v1576_v21, %v1590_v59  ;;  %v1819_v42 = vld [vmem:[#allocation2 + $0x38] sm:$0xe]  ;;  %v1820_v49 = vld [vmem:[#allocation2 + $0x40] sm:$0xe] }
  0x8f   :  { %v1618_v40 = vsel %vm3834_vm9, %v1613_v7, %v1617_v47  ;;  %332 = vst [vmem:[#allocation2 + $0x90] sm:$0xf] %v331_v11  ;;  %335 = vst [vmem:[#allocation2 + $0x94] sm:$0x1] %v334_v32  ;;  %v1629_v34 = vshll.u32 %v4392_v9, 16  ;;  %v3293_v1 = vrot.slane %v1813_v6, 9 }
  0x90   :  { %v3283_v52 = vcombine.low %v1604_v36, %v1618_v40  ;;  %v1626_v19 = vor.u32 %v1625_v5, %v1622_v2  ;;  %v1863_v39 = vrot.slane %v4202_v4, 5  ;;  %v3294_v14 = vrot.slane %v1814_v51, 9  ;;  %v3693_v0 = vld [vmem:[#allocation2 + $0x68] ss:$8 sps:$4 sm:$0xff]   ;;  %v1821_v21 = vld [vmem:[#allocation2 + $0x58] sm:$0xe] }
  0x91   :  { %v1867_v41 = vrot.slane %v4210_v50, 5  ;;  %v1631_v58 = vrot.slane %v1629_v34, 5  ;;  %v3295_v3 = vrot.slane %v1815_v29, 9  ;;  %v1871_v23 = vrot.slane %v4218_v60, 5  ;;  %v1822_v36 = vld [vmem:[#allocation2 + $0x60] sm:$0xe] }
  0x92   :  { %3563 = vmatmul.mubr.msk.bf16.vlgmr.msra.gmra.mxu1 %vm622_vm10, %v3689_v55  ;;  %v1627_v31 = vrot.slane %v1626_v19, 4  ;;  %v4407_v62 = vsel %vm4039_vm13, %v3293_v1, %v1863_v39  ;;  %v3296_v53 = vrot.slane %v1816_v44, 9  ;;  %v1875_v55 = vrot.slane %v4239_v18, 5  ;;  %v3694_v40 = vld [vmem:[#allocation2 + $0x78] ss:$8 sps:$4 sm:$0xff]  }
  0x93   :  { %3597 = vmatpush3.bf16.msra.mxu1 %v1976_v61  ;;  %3566 = vmatprep.mubr.msk.bf16.mxu1 %vm622_vm10, %v3690_v33  ;;  %v4413_v57 = vsel %vm4039_vm13, %v3294_v14, %v1867_v41  ;;  %v4417_v35 = vsel %vm647_vm0, %v3343_v38, 0  ;;  %v3297_v7 = vrot.slane %v1817_v10, 9  ;;  %v1879_v60 = vrot.slane %v4247_v25, 5  ;;  %v1823_v34 = vld [vmem:[#allocation2 + $0x68] sm:$0xe] }
  0x94   :  { %3678 = vmatprep.subr.msk.bf16.mxu1 %vm647_vm0, %v3343_v38  ;;  %v1632_v45 = vsel %vm3834_vm9, %v1627_v31, %v1631_v58  ;;  %v3298_v59 = vrot.slane %v1818_v46, 9  ;;  %v1883_v11 = vrot.slane %v4261_v13, 5  ;;  %v3299_v32 = vrot.slane %v1819_v42, 9  ;;  %v2290_v51 = vld [vmem:[#allocation2 + $0x10] sm:$0xf] }
  0x95   :  { %3589 = vmatmul.mubr.msk.bf16.gmra.mxu0 %vm622_vm10, %v3282_v15  ;;  %v1887_v18 = vrot.slane %v4277_v16, 5  ;;  %v3300_v5 = vrot.slane %v1820_v49, 9  ;;  %v1891_v38 = vrot.slane %v4339_v22, 5  ;;  %v3301_v15 = vrot.slane %v1821_v21, 9  ;;  %v1824_v29 = vld [vmem:[#allocation2 + $0x70] sm:$0xe] }
  0x96   :  { %3592 = vmatprep.mubr.msk.bf16.mxu0 %vm622_vm10, %v3283_v52  ;;  %v1421_v30 = vld [vmem:[#allocation2 + $0x90] sm:$0xf]  ;;  %v4401_v54 = vld [vmem:[#allocation2 + $0x94] sm:$0x1]  ;;  %v1895_v6 = vrot.slane %v4285_v56, 5  ;;  %v4430_v25 = vsel %vm647_vm0, %v4365_v12, 0  ;;  %v3310_v22 = vcombine.low %v4407_v62, %v4413_v57  ;;  %v4438_v56 = vsel %vm4039_vm13, %v3295_v3, %v1871_v23 }
  0x97   :  { %v1634_v27 = vshrl.u32 %v1421_v30, 16  ;;  %v1637_v47 = vshll.u32 %v1421_v30, 16  ;;  %v1643_v4 = vshll.u32 %v4401_v54, 16  ;;  %v3302_v13 = vrot.slane %v1822_v36, 9  ;;  %v1825_v44 = vld [vmem:[#allocation2 + $0x78] sm:$0xe] }
  0x98   :  { %v1899_v19 = vrot.slane %v4303_v63, 5  ;;  %v4443_v12 = vsel %vm4039_vm13, %v3296_v53, %v1875_v55  ;;  %v4447_v63 = vsel %vm4039_vm13, %v3297_v7, %v1879_v60  ;;  %v4451_v1 = vsel %vm4039_vm13, %v3298_v59, %v1883_v11  ;;  %v1826_v41 = vld [vmem:[#allocation2 + $0x80] sm:$0xe]  ;;  %v3695_v58 = vld [vmem:[#allocation2 + $0x88] ss:$8 sps:$4 sm:$0xff]  }
  0x99   :  { %v1636_v50 = vrot.slane %v1634_v27, 4  ;;  %v1639_v28 = vrot.slane %v1637_v47, 5  ;;  %v1645_v33 = vrot.slane %v1643_v4, 5  ;;  %v4455_v39 = vsel %vm4039_vm13, %v3299_v32, %v1887_v18  ;;  %v3697_v46 = vld [vmem:[#allocation2 + $0x20] ss:$8 sps:$4 sm:$0xff]  }
  0x9a   :  { %3567 = vmatmul.mubr.msk.bf16.gmra.mxu1 %vm622_vm10, %v3691_v20  ;;  %v2292_v20 = vld [vmem:[#allocation2 + $0x18] sm:$0xf]  ;;  %v4460_v30 = vsel %vm4039_vm13, %v3300_v5, %v1891_v38  ;;  %v4464_v14 = vsel %vm4039_vm13, %v3301_v15, %v1895_v6  ;;  %v2323_v10 = vshrl.u32 %v2290_v51, 16  ;;  %v2326_v31 = vshll.u32 %v2290_v51, 16  ;;  %v1827_v23 = vld [vmem:[#allocation2 + $0x88] sm:$0xe] }
  0x9b   :  { %3570 = vmatprep.mubr.msk.bf16.mxu1 %vm622_vm10, %v3692_v43  ;;  %v1640_v61 = vor.u32 %v1639_v28, %v1636_v50  ;;  %v3696_v43 = vld [vmem:[#allocation2 + $0x10] ss:$8 sps:$4 sm:$0xff]   ;;  %v4469_v27 = vsel %vm4039_vm13, %v3302_v13, %v1899_v19  ;;  %v3303_v47 = vrot.slane %v1823_v34, 9  ;;  %v2337_v4 = vshrl.u32 %v2292_v20, 16  ;;  %v2293_v5 = vld [vmem:[#allocation2 + $0x1c] sm:$0x1] }
  0x9c   :  { %v2340_v62 = vshll.u32 %v2292_v20, 16  ;;  %v1903_v42 = vrot.slane %v4312_v24, 5  ;;  %v3304_v50 = vrot.slane %v1824_v29, 9  ;;  %v1907_v28 = vrot.slane %v4320_v37, 5  ;;  %v3698_v57 = vld [vmem:[#allocation2 + $0x30] ss:$8 sps:$4 sm:$0xff]  }
  0x9d   :  { %v1641_v2 = vrot.slane %v1640_v61, 4  ;;  %v3305_v3 = vrot.slane %v1825_v44, 9  ;;  %v3311_v49 = vcombine.low %v4438_v56, %v4443_v12  ;;  %v1911_v53 = vrot.slane %v4336_v8, 5  ;;  %v2291_v61 = vld [vmem:[#allocation2 + $0x14] sm:$0x1] }
  0x9e   :  { %v3306_v55 = vrot.slane %v1826_v41, 9  ;;  %v3313_v24 = vcombine.low %v4455_v39, %v4460_v30  ;;  %v3314_v37 = vcombine.low %v4464_v14, %v4469_v27  ;;  %v2328_v7 = vrot.slane %v2326_v31, 5  ;;  %v2712_v21 = vld [vmem:[#allocation2 + $0x10] sm:$0xe]  ;;  %v2713_v60 = vld [vmem:[#allocation2 + $0x18] sm:$0xe] }
  0x9f   :  { %v1646_v52 = vsel %vm3834_vm9, %v1641_v2, %v1645_v33  ;;  %v2325_v33 = vrot.slane %v2323_v10, 4  ;;  %v1915_v59 = vrot.slane %v4351_v26, 5  ;;  %v3307_v11 = vrot.slane %v1827_v23, 9  ;;  %v2296_v19 = vld [vmem:[#allocation2 + $0x28] sm:$0xf] }
  0xa0   :  { %v3284_v16 = vcombine.low %v1632_v45, %v1646_v52  ;;  %v1828_v45 = vld [vmem:[#allocation2 + $0x90] sm:$0xe]  ;;  %v2339_v32 = vrot.slane %v2337_v4, 4  ;;  %v2342_v36 = vrot.slane %v2340_v62, 5  ;;  %v1919_v8 = vrot.slane %v4392_v9, 5 }
  0xa1   :  { %v3308_v2 = vrot.slane %v1828_v45, 9  ;;  %v1923_v18 = vrot.slane %v4401_v54, 5  ;;  %v2332_v38 = vshll.u32 %v2291_v61, 16  ;;  %v3360_v15 = vrot.slane %v2712_v21, 9  ;;  %v4502_v20 = vld [vmem:[#allocation2 + $0x24] sm:$0x1] }
  0xa2   :  { %3571 = vmatmul.mubr.msk.bf16.gmra.mxu1 %vm622_vm10, %v3693_v0  ;;  %3593 = vmatmul.mubr.msk.bf16.gmra.mxu0 %vm622_vm10, %v3284_v16  ;;  %v3312_v0 = vcombine.low %v4447_v63, %v4451_v1  ;;  %v2762_v6 = vrot.slane %v2291_v61, 5  ;;  %v3361_v52 = vrot.slane %v2713_v60, 9  ;;  %v4490_v26 = vsel %vm4039_vm13, %v3303_v47, %v1903_v42  ;;  %v2298_v10 = vld [vmem:[#allocation2 + $0x30] sm:$0xf]  ;;  %v3699_v31 = vld [vmem:[#allocation2 + $0x40] ss:$8 sps:$4 sm:$0xff]  }
  0xa3   :  { %3574 = vmatprep.mubr.msk.bf16.mxu1 %vm622_vm10, %v3694_v40  ;;  %3616 = vmatprep.mubr.msk.bf16.mxu0 %vm622_vm10, %v3696_v43  ;;  %v2294_v40 = vld [vmem:[#allocation2 + $0x20] sm:$0xf]  ;;  %v2766_v43 = vrot.slane %v2293_v5, 5  ;;  %v2329_v13 = vor.u32 %v2328_v7, %v2325_v33  ;;  %v4496_v54 = vsel %vm4039_vm13, %v3304_v50, %v1907_v28  ;;  %v2343_v34 = vor.u32 %v2342_v36, %v2339_v32  ;;  %v2304_v36 = vld [vmem:[#allocation2 + $0x48] sm:$0xf] }
  0xa4   :  { %v2351_v9 = vshrl.u32 %v2294_v40, 16  ;;  %v2354_v16 = vshll.u32 %v2294_v40, 16  ;;  %v2346_v51 = vshll.u32 %v2293_v5, 16  ;;  %v4506_v29 = vsel %vm4039_vm13, %v3306_v55, %v1915_v59  ;;  %v3700_v42 = vld [vmem:[#allocation2 + $0x60] ss:$8 sps:$4 sm:$0xff]  }
  0xa5   :  { %v4514_v44 = vsel %vm4039_vm13, %v3308_v2, %v1923_v18  ;;  %v2334_v41 = vrot.slane %v2332_v38, 5  ;;  %v4522_v47 = vsel %vm4039_vm13, %v3361_v52, %v2766_v43  ;;  %v2365_v4 = vshrl.u32 %v2296_v19, 16  ;;  %v4525_v55 = vld [vmem:[#allocation2 + $0x2c] sm:$0x1]  ;;  %v2302_v59 = vld [vmem:[#allocation2 + $0x40] sm:$0xf] }
  0xa6   :  { %v2368_v62 = vshll.u32 %v2296_v19, 16  ;;  %v2330_v50 = vrot.slane %v2329_v13, 4  ;;  %v2353_v28 = vrot.slane %v2351_v9, 4  ;;  %v2360_v23 = vshll.u32 %v4502_v20, 16  ;;  %v4544_v32 = vld [vmem:[#allocation2 + $0x20] sm:$0xe] }
  0xa7   :  { %v2379_v45 = vshrl.u32 %v2298_v10, 16  ;;  %v2382_v61 = vshll.u32 %v2298_v10, 16  ;;  %v3315_v33 = vcombine.low %v4490_v26, %v4496_v54  ;;  %v2374_v1 = vshll.u32 %v4525_v55, 16  ;;  %v4559_v18 = vld [vmem:[#allocation2 + $0x3c] sm:$0x1] }
  0xa8   :  { %v4549_v63 = vrot.slane %v2360_v23, 5  ;;  %v2410_v13 = vshll.u32 %v2302_v59, 16  ;;  %v2421_v19 = vshrl.u32 %v2304_v36, 16  ;;  %v3702_v9 = vld [vmem:[#allocation2 + $0x80] ss:$8 sps:$4 sm:$0xff]   ;;  %v2424_v10 = vshll.u32 %v2304_v36, 16 }
  0xa9   :  { %v2381_v5 = vrot.slane %v2379_v45, 4  ;;  %v2384_v38 = vrot.slane %v2382_v61, 5  ;;  %v2308_v27 = vld [vmem:[#allocation2 + $0x68] sm:$0xf]  ;;  %v2309_v26 = vld [vmem:[#allocation2 + $0x6c] sm:$0x1] }
  0xaa   :  { %3575 = vmatmul.mubr.msk.bf16.gmra.mxu1 %vm622_vm10, %v3695_v58  ;;  %3617 = vmatmul.mubr.msk.bf16.vlgmr.msra.gmra.mxu0 %vm622_vm10, %v3697_v46  ;;  %v4518_v58 = vsel %vm4039_vm13, %v3360_v15, %v2762_v6  ;;  %v2300_v46 = vld [vmem:[#allocation2 + $0x38] sm:$0xf]  ;;  %v2407_v15 = vshrl.u32 %v2302_v59, 16  ;;  %v2423_v23 = vrot.slane %v2421_v19, 4  ;;  %vm3164_vm14 = vcmask 519168  }
  0xab   :  { %3598 = vmatprep.mubr.msk.bf16.mxu1 %vm622_vm10, %v3310_v22  ;;  %3651 = vmatpush3.bf16.msra.mxu0 %v4430_v25  ;;  %v4500_v22 = vsel %vm4039_vm13, %v3305_v3, %v1911_v53  ;;  %v4510_v25 = vsel %vm4039_vm13, %v3307_v11, %v1919_v8  ;;  %v2356_v3 = vrot.slane %v2354_v16, 5  ;;  %v2348_v53 = vrot.slane %v2346_v51, 5  ;;  %v4554_v8 = vld [vmem:[#allocation2 + $0x34] sm:$0x1]  ;;  %v3701_v6 = vld [vmem:[#allocation2 + $0x70] ss:$8 sps:$4 sm:$0xff]  }
  0xac   :  { %3620 = vmatprep.mubr.msk.bf16.mxu0 %vm622_vm10, %v3698_v57  ;;  %v2344_v57 = vrot.slane %v2343_v34, 4  ;;  %v3316_v7 = vcombine.low %v4500_v22, %v4506_v29  ;;  %v2393_v21 = vshrl.u32 %v2300_v46, 16  ;;  %v2396_v60 = vshll.u32 %v2300_v46, 16 }
  0xad   :  { %v3317_v56 = vcombine.low %v4510_v25, %v4514_v44  ;;  %v3377_v12 = vcombine.low %v4518_v58, %v4522_v47  ;;  %v2370_v11 = vrot.slane %v2368_v62, 5  ;;  %v2357_v40 = vor.u32 %v2356_v3, %v2353_v28  ;;  %v2313_v25 = vld [vmem:[#allocation2 + $0x7c] sm:$0x1] }
  0xae   :  { %v2349_v2 = vsel %vm3834_vm9, %v2344_v57, %v2348_v53  ;;  %v2395_v52 = vrot.slane %v2393_v21, 4  ;;  %v2398_v43 = vrot.slane %v2396_v60, 5  ;;  %v3362_v34 = vrot.slane %v4544_v32, 9  ;;  %v2717_v21 = vld [vmem:[#allocation2 + $0x38] sm:$0xe] }
  0xaf   :  { %v2388_v51 = vshll.u32 %v4554_v8, 16  ;;  %v2402_v46 = vshll.u32 %v4559_v18, 16  ;;  %v2409_v28 = vrot.slane %v2407_v15, 4  ;;  %v2412_v3 = vrot.slane %v2410_v13, 5  ;;  %v2306_v60 = vld [vmem:[#allocation2 + $0x60] sm:$0xf] }
  0xb0   :  { %v2426_v57 = vrot.slane %v2424_v10, 5  ;;  %v4578_v53 = vrot.slane %v2357_v40, 4  ;;  %v2385_v45 = vor.u32 %v2384_v38, %v2381_v5  ;;  %v2399_v61 = vor.u32 %v2398_v43, %v2395_v52 }
  0xb1   :  { %v4589_v39 = vrot.slane %v2388_v51, 5  ;;  %v2778_v36 = vrot.slane %v4554_v8, 5  ;;  %v2435_v40 = vshrl.u32 %v2306_v60, 16  ;;  %v3365_v5 = vrot.slane %v2717_v21, 9  ;;  %v3703_v8 = vld [vmem:[#allocation2 + $0x90] ss:$8 sps:$4 sm:$0xff]  }
  0xb2   :  { %3599 = vmatmul.mubr.msk.bf16.vlgmr.msra.gmra.mxu1 %vm622_vm10, %v3311_v49  ;;  %v2367_v49 = vrot.slane %v2365_v4, 4  ;;  %3621 = vmatmul.mubr.msk.bf16.gmra.mxu0 %vm622_vm10, %v3699_v31  ;;  %v2770_v4 = vrot.slane %v4502_v20, 5  ;;  %v4580_v20 = vrot.slane %v2374_v1, 5  ;;  %v2438_v1 = vshll.u32 %v2306_v60, 16 }
  0xb3   :  { %3633 = vmatpush3.bf16.msra.mxu1 %v4417_v35  ;;  %3602 = vmatprep.mubr.msk.bf16.mxu1 %vm622_vm10, %v3312_v0  ;;  %v2335_v35 = vsel %vm3834_vm9, %v2330_v50, %v2334_v41  ;;  %v4552_v0 = vld [vmem:[#allocation2 + $0x28] sm:$0xe]  ;;  %v4563_v41 = vld [vmem:[#allocation2 + $0x30] sm:$0xe]  ;;  %v4572_v50 = vld [vmem:[#allocation2 + $0x4c] sm:$0x1] }
  0xb4   :  { %3624 = vmatprep.mubr.msk.bf16.mxu0 %vm622_vm10, %v3700_v42  ;;  %v2371_v16 = vor.u32 %v2370_v11, %v2367_v49  ;;  %v4565_v31 = vcombine.low %v2335_v35, %v2349_v2  ;;  %v3363_v62 = vrot.slane %v4552_v0, 9  ;;  %v4570_v42 = vld [vmem:[#allocation2 + $0x44] sm:$0x1]  ;;  %v2774_v49 = vrot.slane %v4525_v55, 5  ;;  %v2719_v35 = vld [vmem:[#allocation2 + $0x48] sm:$0xe] }
  0xb5   :  { %v2416_v30 = vshll.u32 %v4570_v42, 16  ;;  %v4593_v11 = vrot.slane %v2402_v46, 5  ;;  %v3364_v32 = vrot.slane %v4563_v41, 9  ;;  %v2430_v14 = vshll.u32 %v4572_v50, 16 }
  0xb6   :  { %v4586_v59 = vrot.slane %v2371_v16, 4  ;;  %v2427_v55 = vor.u32 %v2426_v57, %v2423_v23  ;;  %v2386_v0 = vrot.slane %v2385_v45, 4  ;;  %v2400_v2 = vrot.slane %v2399_v61, 4  ;;  %v2310_v57 = vld [vmem:[#allocation2 + $0x70] sm:$0xf] }
  0xb7   :  { %v2782_v38 = vrot.slane %v4559_v18, 5  ;;  %v2418_v15 = vrot.slane %v2416_v30, 5  ;;  %v2449_v52 = vshrl.u32 %v2308_v27, 16  ;;  %v2452_v43 = vshll.u32 %v2308_v27, 16 }
  0xb8   :  { %v2432_v13 = vrot.slane %v2430_v14, 5  ;;  %v2786_v19 = vrot.slane %v4570_v42, 5  ;;  %v3367_v16 = vrot.slane %v2719_v35, 9  ;;  %v2428_v41 = vrot.slane %v2427_v55, 4  ;;  %v4649_v14 = vld [vmem:[#allocation2 + $0x74] sm:$0x1] }
  0xb9   :  { %v2437_v10 = vrot.slane %v2435_v40, 4  ;;  %v2440_v46 = vrot.slane %v2438_v1, 5  ;;  %v2363_v18 = vsel %vm3834_vm9, %v4578_v53, %v4549_v63  ;;  %v2377_v42 = vsel %vm3834_vm9, %v4586_v59, %v4580_v20  ;;  %v2314_v40 = vld [vmem:[#allocation2 + $0x80] sm:$0xf]  ;;  %v2316_v1 = vld [vmem:[#allocation2 + $0x88] sm:$0xf] }
  0xba   :  { %3603 = vmatmul.mubr.msk.bf16.gmra.mxu1 %vm622_vm10, %v3313_v24  ;;  %v2718_v24 = vld [vmem:[#allocation2 + $0x40] sm:$0xe]  ;;  %3625 = vmatmul.mubr.msk.bf16.gmra.mxu0 %vm622_vm10, %v3701_v6  ;;  %v2391_v54 = vsel %vm3834_vm9, %v2386_v0, %v4589_v39  ;;  %v2451_v63 = vrot.slane %v2449_v52, 4  ;;  %v2454_v23 = vrot.slane %v2452_v43, 5  ;;  %v2783_v22 = vsel %vm4039_vm13, %v3365_v5, %v2782_v38 }
  0xbb   :  { %3606 = vmatprep.mubr.msk.bf16.mxu1 %vm622_vm10, %v3314_v37  ;;  %3628 = vmatprep.mubr.msk.bf16.mxu0 %vm622_vm10, %v3702_v9  ;;  %v2413_v37 = vor.u32 %v2412_v3, %v2409_v28  ;;  %v3366_v6 = vrot.slane %v2718_v24, 9  ;;  %v2790_v9 = vrot.slane %v4572_v50, 5  ;;  %v2771_v50 = vsel %vm4039_vm13, %v3362_v34, %v2770_v4  ;;  %v2307_v3 = vld [vmem:[#allocation2 + $0x64] sm:$0x1]  ;;  %v2720_v34 = vld [vmem:[#allocation2 + $0x60] sm:$0xe] }
  0xbc   :  { %v2775_v28 = vsel %vm4039_vm13, %v3363_v62, %v2774_v49  ;;  %v2721_v4 = vld [vmem:[#allocation2 + $0x68] sm:$0xe]  ;;  %v2405_v62 = vsel %vm3834_vm9, %v2400_v2, %v4593_v11  ;;  %v2433_v20 = vsel %vm3834_vm9, %v2428_v41, %v2432_v13  ;;  %v2441_v45 = vor.u32 %v2440_v46, %v2437_v10  ;;  %v2312_v24 = vld [vmem:[#allocation2 + $0x78] sm:$0xf]  ;;  %v2315_v10 = vld [vmem:[#allocation2 + $0x84] sm:$0x1] }
  0xbd   :  { %v2414_v51 = vrot.slane %v2413_v37, 4  ;;  %v4635_v29 = vsel %vm4039_vm13, %v3366_v6, %v2786_v19  ;;  %v2444_v61 = vshll.u32 %v2307_v3, 16  ;;  %v2458_v21 = vshll.u32 %v2309_v26, 16  ;;  %v2723_v13 = vld [vmem:[#allocation2 + $0x78] sm:$0xe] }
  0xbe   :  { %v3368_v60 = vrot.slane %v2720_v34, 9  ;;  %v2794_v59 = vrot.slane %v2307_v3, 5  ;;  %v3369_v49 = vrot.slane %v2721_v4, 9  ;;  %v2455_v39 = vor.u32 %v2454_v23, %v2451_v63  ;;  %v2724_v46 = vld [vmem:[#allocation2 + $0x80] sm:$0xe] }
  0xbf   :  { %v2419_v53 = vsel %vm3834_vm9, %v2414_v51, %v2418_v15  ;;  %v2798_v30 = vrot.slane %v2309_v26, 5  ;;  %v2463_v11 = vshrl.u32 %v2310_v57, 16  ;;  %v3345_v58 = vcombine.low %v2363_v18, %v2377_v42  ;;  %v2722_v15 = vld [vmem:[#allocation2 + $0x70] sm:$0xe]  ;;  %v2725_v3 = vld [vmem:[#allocation2 + $0x88] sm:$0xe] }
  0xc0   :  { %v3378_v47 = vcombine.low %v2771_v50, %v2775_v28  ;;  %v4651_v27 = vcombine.low %v2419_v53, %v2433_v20  ;;  %v4655_v55 = vrot.slane %v2441_v45, 4  ;;  %v4657_v35 = vrot.slane %v2444_v61, 5  ;;  %v2317_v23 = vld [vmem:[#allocation2 + $0x8c] sm:$0x1]  ;;  %v2318_v34 = vld [vmem:[#allocation2 + $0x90] sm:$0xf] }
  0xc1   :  { %v2460_v0 = vrot.slane %v2458_v21, 5  ;;  %v2795_v2 = vsel %vm4039_vm13, %v3368_v60, %v2794_v59  ;;  %v2477_v5 = vshrl.u32 %v2312_v24, 16  ;;  %v2480_v38 = vshll.u32 %v2312_v24, 16 }
  0xc2   :  { %3607 = vmatmul.mubr.msk.bf16.gmra.mxu1 %vm622_vm10, %v3315_v33  ;;  %v2779_v33 = vsel %vm4039_vm13, %v3364_v32, %v2778_v36  ;;  %3629 = vmatmul.mubr.msk.bf16.gmra.mxu0 %vm622_vm10, %v3703_v8  ;;  %v2466_v32 = vshll.u32 %v2310_v57, 16  ;;  %v2456_v6 = vrot.slane %v2455_v39, 4  ;;  %v2799_v52 = vsel %vm4039_vm13, %v3369_v49, %v2798_v30 }
  0xc3   :  { %3610 = vmatprep.mubr.msk.bf16.mxu1 %vm622_vm10, %v3316_v7  ;;  %v4639_v7 = vsel %vm4039_vm13, %v3367_v16, %v2790_v9  ;;  %3652 = vmatprep.mubr.msk.bf16.mxu0 %vm622_vm10, %v3377_v12  ;;  %v3346_v12 = vcombine.low %v2391_v54, %v2405_v62  ;;  %v3379_v36 = vcombine.low %v2779_v33, %v2783_v22  ;;  %v2465_v43 = vrot.slane %v2463_v11, 4 }
  0xc4   :  { %v3380_v37 = vcombine.low %v4635_v29, %v4639_v7  ;;  %v2468_v8 = vrot.slane %v2466_v32, 5  ;;  %v2491_v44 = vshrl.u32 %v2314_v40, 16  ;;  %v2505_v19 = vshrl.u32 %v2316_v1, 16  ;;  %v2320_v7 = vld [vmem:[#allocation2 + $0x98] sm:$0xf] }
  0xc5   :  { %v2508_v16 = vshll.u32 %v2316_v1, 16  ;;  %v2472_v9 = vshll.u32 %v4649_v14, 16  ;;  %v3370_v51 = vrot.slane %v2722_v15, 9  ;;  %v2802_v41 = vrot.slane %v4649_v14, 5 }
  0xc6   :  { %v2479_v18 = vrot.slane %v2477_v5, 4  ;;  %v2482_v42 = vrot.slane %v2480_v38, 5  ;;  %v3371_v50 = vrot.slane %v2723_v13, 9  ;;  %v2806_v28 = vrot.slane %v2313_v25, 5  ;;  %v2319_v5 = vld [vmem:[#allocation2 + $0x94] sm:$0x1] }
  0xc7   :  { %v2461_v26 = vsel %vm3834_vm9, %v2456_v6, %v2460_v0  ;;  %v3381_v54 = vcombine.low %v2795_v2, %v2799_v52  ;;  %v2469_v33 = vor.u32 %v2468_v8, %v2465_v43  ;;  %v2486_v63 = vshll.u32 %v2313_v25, 16 }
  0xc8   :  { %v2493_v4 = vrot.slane %v2491_v44, 4  ;;  %v2507_v22 = vrot.slane %v2505_v19, 4  ;;  %v2510_v29 = vrot.slane %v2508_v16, 5  ;;  %v3372_v57 = vrot.slane %v2724_v46, 9  ;;  %v2321_v44 = vld [vmem:[#allocation2 + $0x9c] sm:$0x1] }
  0xc9   :  { %v2810_v53 = vrot.slane %v2315_v10, 5  ;;  %v3373_v20 = vrot.slane %v2725_v3, 9  ;;  %v2814_v45 = vrot.slane %v2317_v23, 5  ;;  %v2483_v61 = vor.u32 %v2482_v42, %v2479_v18 }
  0xca   :  { %3611 = vmatmul.mubr.msk.bf16.gmra.mxu1 %vm622_vm10, %v3317_v56  ;;  %3653 = vmatmul.mubr.msk.bf16.vlgmr.msra.gmra.mxu0 %vm622_vm10, %v3378_v47  ;;  %v2494_v56 = vshll.u32 %v2314_v40, 16  ;;  %v2803_v21 = vsel %vm4039_vm13, %v3370_v51, %v2802_v41  ;;  %v2807_v60 = vsel %vm4039_vm13, %v3371_v50, %v2806_v28  ;;  %v2500_v59 = vshll.u32 %v2315_v10, 16 }
  0xcb   :  { %3634 = vmatprep.mubr.msk.bf16.mxu1 %vm622_vm10, %v4565_v31  ;;  %3656 = vmatprep.mubr.msk.bf16.mxu0 %vm622_vm10, %v3379_v36  ;;  %v2447_v31 = vsel %vm3834_vm9, %v4655_v55, %v4657_v35  ;;  %v2519_v49 = vshrl.u32 %v2318_v34, 16  ;;  %v2522_v39 = vshll.u32 %v2318_v34, 16  ;;  %v2533_v30 = vshrl.u32 %v2320_v7, 16  ;;  %v2726_v35 = vld [vmem:[#allocation2 + $0x90] sm:$0xe] }
  0xcc   :  { %v2496_v62 = vrot.slane %v2494_v56, 5  ;;  %v2536_v24 = vshll.u32 %v2320_v7, 16  ;;  %v2474_v11 = vrot.slane %v2472_v9, 5  ;;  %v2511_v47 = vor.u32 %v2510_v29, %v2507_v22 }
  0xcd   :  { %v3348_v36 = vcombine.low %v2447_v31, %v2461_v26  ;;  %v2470_v14 = vrot.slane %v2469_v33, 4  ;;  %v2811_v55 = vsel %vm4039_vm13, %v3372_v57, %v2810_v53  ;;  %v2484_v40 = vrot.slane %v2483_v61, 4 }
  0xce   :  { %v2497_v32 = vor.u32 %v2496_v62, %v2493_v4  ;;  %v2488_v1 = vrot.slane %v2486_v63, 5  ;;  %v3382_v0 = vcombine.low %v2803_v21, %v2807_v60  ;;  %v2502_v2 = vrot.slane %v2500_v59, 5 }
  0xcf   :  { %v2521_v38 = vrot.slane %v2519_v49, 4  ;;  %v2524_v15 = vrot.slane %v2522_v39, 5  ;;  %v2535_v6 = vrot.slane %v2533_v30, 4  ;;  %v2538_v52 = vrot.slane %v2536_v24, 5 }
  0xd0   :  { %v2498_v43 = vrot.slane %v2497_v32, 4  ;;  %v2512_v8 = vrot.slane %v2511_v47, 4  ;;  %v3374_v56 = vrot.slane %v2726_v35, 9  ;;  %v2818_v19 = vrot.slane %v2319_v5, 5 }
  0xd1   :  { %v2822_v31 = vrot.slane %v2321_v44, 5  ;;  %v2475_v9 = vsel %vm3834_vm9, %v2470_v14, %v2474_v11  ;;  %v2528_v51 = vshll.u32 %v2319_v5, 16  ;;  %v2489_v41 = vsel %vm3834_vm9, %v2484_v40, %v2488_v1 }
  0xd2   :  { %3635 = vmatmul.mubr.msk.bf16.vlgmr.msra.gmra.mxu1 %vm622_vm10, %v3345_v58  ;;  %3657 = vmatmul.mubr.msk.bf16.gmra.mxu0 %vm622_vm10, %v3380_v37  ;;  %v2514_v58 = vshll.u32 %v2317_v23, 16  ;;  %v2727_v37 = vld [vmem:[#allocation2 + $0x98] sm:$0xe]  ;;  %v2525_v10 = vor.u32 %v2524_v15, %v2521_v38  ;;  %v2539_v46 = vor.u32 %v2538_v52, %v2535_v6  ;;  %v2542_v18 = vshll.u32 %v2321_v44, 16 }
  0xd3   :  { %3638 = vmatprep.mubr.msk.bf16.mxu1 %vm622_vm10, %v3346_v12  ;;  %3660 = vmatprep.mubr.msk.bf16.mxu0 %vm622_vm10, %v3381_v54  ;;  %v2815_v12 = vsel %vm4039_vm13, %v3373_v20, %v2814_v45  ;;  %v3375_v16 = vrot.slane %v2727_v37, 9  ;;  %v2503_v42 = vsel %vm3834_vm9, %v2498_v43, %v2502_v2  ;;  %v2819_v50 = vsel %vm4039_vm13, %v3374_v56, %v2818_v19 }
  0xd4   :  { %v2516_v13 = vrot.slane %v2514_v58, 5  ;;  %v3383_v25 = vcombine.low %v2811_v55, %v2815_v12  ;;  %v3349_v3 = vcombine.low %v2475_v9, %v2489_v41  ;;  %v2530_v26 = vrot.slane %v2528_v51, 5 }
  0xd5   :  { %v2823_v28 = vsel %vm4039_vm13, %v3375_v16, %v2822_v31  ;;  %v2526_v33 = vrot.slane %v2525_v10, 4  ;;  %v2540_v63 = vrot.slane %v2539_v46, 4  ;;  %v2544_v23 = vrot.slane %v2542_v18, 5 }
  0xd6   :  { %v3384_v34 = vcombine.low %v2819_v50, %v2823_v28  ;;  %vm3006_vm15 = vcmask 523264   ;;  %vm3044_vm0 = vcmask 516096  }
  0xd7   :  { %v2531_v4 = vsel %vm3834_vm9, %v2526_v33, %v2530_v26  ;;  %v2545_v62 = vsel %vm3834_vm9, %v2540_v63, %v2544_v23 }
  0xd8   :  { %v3351_v17 = vcombine.low %v2531_v4, %v2545_v62 }
  0xda   :  { %3639 = vmatmul.mubr.msk.bf16.gmra.mxu1 %vm622_vm10, %v4651_v27  ;;  %3661 = vmatmul.mubr.msk.bf16.gmra.mxu0 %vm622_vm10, %v3382_v0  ;;  %v2517_v27 = vsel %vm3834_vm9, %v2512_v8, %v2516_v13 }
  0xdb   :  { %3642 = vmatprep.mubr.msk.bf16.mxu1 %vm622_vm10, %v3348_v36  ;;  %3664 = vmatprep.mubr.msk.bf16.mxu0 %vm622_vm10, %v3383_v25  ;;  %v3350_v54 = vcombine.low %v2503_v42, %v2517_v27 }
  0xe2   :  { %3643 = vmatmul.mubr.msk.bf16.gmra.mxu1 %vm622_vm10, %v3349_v3  ;;  %3665 = vmatmul.mubr.msk.bf16.gmra.mxu0 %vm622_vm10, %v3384_v34 }
  0xe3   :  { %3646 = vmatprep.mubr.msk.bf16.mxu1 %vm622_vm10, %v3350_v54 }
  0xea   :  { %3647 = vmatmul.mubr.msk.bf16.gmra.mxu1 %vm622_vm10, %v3351_v17 }
  0xf6   :  { %v3510_v22 = vpop.f32.mrf.mxu0 }
  0xf8   :  { %v685_v29 = vpop.f32.mrf.mxu0 }
  0xfa   :  { %v3511_v7 = vpop.f32.mrf.mxu0 }
  0xfc   :  { %v688_v57 = vpop.f32.mrf.mxu0 }
  0xfd   :  { %v3518_v53 = vpop.f32.mrf.mxu1 }
  0xff   :  { %v717_v61 = vpop.f32.mrf.mxu1 }
 0x101   :  { %v3519_v59 = vpop.f32.mrf.mxu1 }
 0x103   :  { %v720_v48 = vpop.f32.mrf.mxu1 }
 0x118   :  { %v3514_v20 = vpop.f32.mrf.mxu0 }
 0x11a   :  { %v701_v45 = vpop.f32.mrf.mxu0 }
 0x11c   :  { %v3515_v21 = vpop.f32.mrf.mxu0 }
 0x11e   :  { %v704_v60 = vpop.f32.mrf.mxu0 }
 0x120   :  { %v3546_v49 = vpop.f32.mrf.mxu0 }
 0x122   :  { %v1114_v39 = vpop.f32.mrf.mxu0 }
 0x124   :  { %v3547_v30 = vpop.f32.mrf.mxu0 }
 0x126   :  { %v1117_v24 = vpop.f32.mrf.mxu0 }
 0x127   :  { %v3522_v11 = vpop.f32.mrf.mxu1 }
 0x128   :  { %v3550_v32 = vpop.f32.mrf.mxu0 }
 0x129   :  { %v733_v47 = vpop.f32.mrf.mxu1 }
 0x12a   :  { %v1130_v58 = vpop.f32.mrf.mxu0 }
 0x12b   :  { %v3523_v36 = vpop.f32.mrf.mxu1 }
 0x12c   :  { %v3551_v14 = vpop.f32.mrf.mxu0 }
 0x12d   :  { %v736_v55 = vpop.f32.mrf.mxu1 }
 0x12e   :  { %v1133_v12 = vpop.f32.mrf.mxu0 }
 0x12f   :  { %v3528_v35 = vpop.f32.mrf.mxu1 }
 0x130   :  { %v858_v40 = vadd.f32 %v3528_v35, %v3510_v22 }
 0x131   :  { %v849_v1 = vpop.f32.mrf.mxu1  ;;  %v3554_v0 = vpop.f32.mrf.mxu0 }
 0x132   :  { %v4716_v2 = vadd.f32 %v3546_v49, %v858_v40  ;;  %v850_v37 = vadd.f32 %v849_v1, %v685_v29 }
 0x133   :  { %v3529_v5 = vpop.f32.mrf.mxu1  ;;  %v1146_v38 = vpop.f32.mrf.mxu0 }
 0x134   :  { %v4718_v15 = vadd.f32 %v1114_v39, %v850_v37  ;;  %v861_v6 = vadd.f32 %v3529_v5, %v3511_v7 }
 0x135   :  { %v852_v52 = vpop.f32.mrf.mxu1  ;;  %v3555_v43 = vpop.f32.mrf.mxu0 }
 0x136   :  { %v4720_v8 = vadd.f32 %v3547_v30, %v861_v6  ;;  %v853_v13 = vadd.f32 %v852_v52, %v688_v57 }
 0x137   :  { %v3532_v25 = vpop.f32.mrf.mxu1  ;;  %v1149_v44 = vpop.f32.mrf.mxu0 }
 0x138   :  { %v4722_v56 = vadd.f32 %v1117_v24, %v853_v13  ;;  %v874_v19 = vadd.f32 %v3532_v25, %v3514_v20 }
 0x139   :  { %v865_v16 = vpop.f32.mrf.mxu1  ;;  %v3558_v31 = vpop.f32.mrf.mxu0 }
 0x13a   :  { %v4724_v9 = vadd.f32 %v3550_v32, %v874_v19  ;;  %v866_v51 = vadd.f32 %v865_v16, %v701_v45 }
 0x13b   :  { %v3533_v41 = vpop.f32.mrf.mxu1  ;;  %v1162_v10 = vpop.f32.mrf.mxu0 }
 0x13c   :  { %v4726_v46 = vadd.f32 %v1130_v58, %v866_v51  ;;  %v877_v18 = vadd.f32 %v3533_v41, %v3515_v21 }
 0x13d   :  { %v868_v42 = vpop.f32.mrf.mxu1  ;;  %v3559_v27 = vpop.f32.mrf.mxu0 }
 0x13e   :  { %v4728_v50 = vadd.f32 %v3551_v14, %v877_v18  ;;  %v869_v28 = vadd.f32 %v868_v42, %v704_v60 }
 0x13f   :  { %v1165_v26 = vpop.f32.mrf.mxu0 }
 0x140   :  { %v4730_v54 = vadd.f32 %v1133_v12, %v869_v28 }
 0x141   :  { %v4732_v23 = vpop.f32.mrf.mxu0 }
 0x142   :  { %v3536_v3 = vpop.f32.mrf.mxu1 }
 0x143   :  { %v890_v33 = vadd.f32 %v3536_v3, %v3518_v53  ;;  %v4736_v17 = vpop.f32.mrf.mxu0 }
 0x144   :  { %v881_v63 = vpop.f32.mrf.mxu1 }
 0x145   :  { %v4734_v34 = vadd.f32 %v3554_v0, %v890_v33  ;;  %v882_v4 = vadd.f32 %v881_v63, %v717_v61  ;;  %v4740_v57 = vpop.f32.mrf.mxu0 }
 0x146   :  { %v3537_v62 = vpop.f32.mrf.mxu1 }
 0x147   :  { %v4738_v22 = vadd.f32 %v1146_v38, %v882_v4  ;;  %v893_v29 = vadd.f32 %v3537_v62, %v3519_v59  ;;  %v4746_v49 = vpop.f32.mrf.mxu0 }
 0x148   :  { %v884_v7 = vpop.f32.mrf.mxu1 }
 0x149   :  { %v4742_v20 = vadd.f32 %v3555_v43, %v893_v29  ;;  %v885_v45 = vadd.f32 %v884_v7, %v720_v48 }
 0x14a   :  { %v3540_v21 = vpop.f32.mrf.mxu1 }
 0x14b   :  { %v4744_v53 = vadd.f32 %v1149_v44, %v885_v45  ;;  %v906_v60 = vadd.f32 %v3540_v21, %v3522_v11 }
 0x14c   :  { %v897_v39 = vpop.f32.mrf.mxu1 }
 0x14d   :  { %v4748_v61 = vadd.f32 %v3558_v31, %v906_v60  ;;  %v898_v30 = vadd.f32 %v897_v39, %v733_v47  ;;  %v4752_v58 = vpop.f32.mrf.mxu0 }
 0x14e   :  { %v3541_v24 = vpop.f32.mrf.mxu1 }
 0x14f   :  { %v4750_v32 = vadd.f32 %v1162_v10, %v898_v30  ;;  %v909_v59 = vadd.f32 %v3541_v24, %v3523_v36  ;;  %v4756_v35 = vpop.f32.mrf.mxu0 }
 0x150   :  { %v900_v14 = vpop.f32.mrf.mxu1 }
 0x151   :  { %v4754_v12 = vadd.f32 %v3559_v27, %v909_v59  ;;  %v901_v48 = vadd.f32 %v900_v14, %v736_v55  ;;  %v4760_v1 = vpop.f32.mrf.mxu0 }
 0x152   :  { %v3564_v40 = vpop.f32.mrf.mxu1 }
 0x153   :  { %v4758_v11 = vadd.f32 %v1165_v26, %v901_v48  ;;  %v4762_v37 = vpop.f32.mrf.mxu0 }
 0x154   :  { %v1312_v0 = vpop.f32.mrf.mxu1 }
 0x155   :  { %v4764_v5 = vpop.f32.mrf.mxu0 }
 0x156   :  { %v3565_v47 = vpop.f32.mrf.mxu1 }
 0x157   :  { %v4766_v38 = vpop.f32.mrf.mxu0 }
 0x158   :  { %v1315_v36 = vpop.f32.mrf.mxu1 }
 0x159   :  { %v4768_v43 = vpop.f32.mrf.mxu0 }
 0x15a   :  { %v3568_v6 = vpop.f32.mrf.mxu1 }
 0x15b   :  { %v4770_v25 = vpop.f32.mrf.mxu0 }
 0x15c   :  { %v1328_v52 = vpop.f32.mrf.mxu1 }
 0x15e   :  { %v3569_v55 = vpop.f32.mrf.mxu1 }
 0x160   :  { %v1331_v13 = vpop.f32.mrf.mxu1 }
 0x162   :  { %v3572_v44 = vpop.f32.mrf.mxu1  ;;  %v4772_v16 = vpop.f32.mrf.mxu0 }
 0x164   :  { %v1344_v19 = vpop.f32.mrf.mxu1  ;;  %v4774_v51 = vpop.f32.mrf.mxu0 }
 0x166   :  { %v3573_v31 = vpop.f32.mrf.mxu1  ;;  %v4776_v10 = vpop.f32.mrf.mxu0 }
 0x168   :  { %v1347_v41 = vpop.f32.mrf.mxu1  ;;  %v4778_v42 = vpop.f32.mrf.mxu0 }
 0x169   :  { %5041 = vst [vmem:[#allocation3_spill] sm:$0xff] %v4778_v42 }
 0x16a   :  { %v3576_v18 = vpop.f32.mrf.mxu1  ;;  %v4780_v28 = vpop.f32.mrf.mxu0 }
 0x16c   :  { %v1360_v27 = vpop.f32.mrf.mxu1  ;;  %v4782_v26 = vpop.f32.mrf.mxu0 }
 0x16e   :  { %v3577_v3 = vpop.f32.mrf.mxu1  ;;  %v4784_v63 = vpop.f32.mrf.mxu0 }
 0x16f   :  { %5042 = vst [vmem:[#allocation4_spill] sm:$0xff] %v4784_v63 }
 0x170   :  { %v1363_v33 = vpop.f32.mrf.mxu1  ;;  %v4786_v62 = vpop.f32.mrf.mxu0 }
 0x171   :  { %5043 = vst [vmem:[#allocation5_spill] sm:$0xff] %v4786_v62 }
 0x172   :  { %v3600_v4 = vpop.f32.mrf.mxu1  ;;  %v4788_v7 = vpop.f32.mrf.mxu0 }
 0x173   :  { %5044 = vst [vmem:[#allocation6_spill] sm:$0xff] %v4788_v7 }
 0x174   :  { %v2012_v29 = vpop.f32.mrf.mxu1  ;;  %v4790_v21 = vpop.f32.mrf.mxu0 }
 0x175   :  { %5045 = vst [vmem:[#allocation7_spill] sm:$0xff] %v4790_v21 }
 0x176   :  { %v3601_v45 = vpop.f32.mrf.mxu1  ;;  %v4792_v39 = vpop.f32.mrf.mxu0 }
 0x177   :  { %5046 = vst [vmem:[#allocation8_spill] sm:$0xff] %v4792_v39 }
 0x178   :  { %v2015_v60 = vpop.f32.mrf.mxu1  ;;  %v4796_v24 = vpop.f32.mrf.mxu0 }
 0x179   :  { %5048 = vst [vmem:[#allocation10_spill] sm:$0xff] %v4796_v24 }
 0x17a   :  { %v4794_v30 = vpop.f32.mrf.mxu1  ;;  %v4800_v14 = vpop.f32.mrf.mxu0 }
 0x17b   :  { %5047 = vst [vmem:[#allocation9_spill] sm:$0xff] %v4794_v30  ;;  %5050 = vst [vmem:[#allocation12_spill] sm:$0xff] %v4800_v14  ;;  %v1377_v14 = vadd.f32 %v3564_v40, %v4716_v2  ;;  %v1382_v40 = vadd.f32 %v3569_v55, %v4728_v50  ;;  %v1389_v50 = vadd.f32 %v3576_v18, %v4748_v61 }
 0x17c   :  { %v4798_v59 = vpop.f32.mrf.mxu1  ;;  %v4804_v62 = vpop.f32.mrf.mxu0  ;;  %v1387_v55 = vadd.f32 %v1360_v27, %v4750_v32  ;;  %v5061_v27 = vld [vmem:[#allocation3_spill] sm:$0xff] }
 0x17d   :  { %5049 = vst [vmem:[#allocation11_spill] sm:$0xff] %v4798_v59  ;;  %5052 = vst [vmem:[#allocation14_spill] sm:$0xff] %v4804_v62  ;;  %v1375_v62 = vadd.f32 %v1312_v0, %v4718_v15  ;;  %v1379_v15 = vadd.f32 %v1328_v52, %v4726_v46  ;;  %v1380_v0 = vadd.f32 %v1331_v13, %v4730_v54 }
 0x17e   :  { %v4802_v48 = vpop.f32.mrf.mxu1  ;;  %v4808_v7 = vpop.f32.mrf.mxu0  ;;  %v1384_v46 = vadd.f32 %v1347_v41, %v4744_v53  ;;  %v1804_v13 = vadd.f32 %v4760_v1, %v1382_v40  ;;  %v1809_v41 = vadd.f32 %v4774_v51, %v1387_v55 }
 0x17f   :  { %5051 = vst [vmem:[#allocation13_spill] sm:$0xff] %v4802_v48  ;;  %5054 = vst [vmem:[#allocation16_spill] sm:$0xff] %v4808_v7  ;;  %v1378_v7 = vadd.f32 %v3565_v47, %v4720_v8  ;;  %v1797_v2 = vadd.f32 %v4736_v17, %v1375_v62  ;;  %v1386_v17 = vadd.f32 %v3573_v31, %v4742_v20 }
 0x180   :  { %v4806_v63 = vpop.f32.mrf.mxu1  ;;  %v4812_v42 = vpop.f32.mrf.mxu0  ;;  %v1388_v20 = vadd.f32 %v1363_v33, %v4758_v11  ;;  %v1806_v1 = vadd.f32 %v4770_v25, %v1384_v46 }
 0x181   :  { %5053 = vst [vmem:[#allocation15_spill] sm:$0xff] %v4806_v63  ;;  %5056 = vst [vmem:[#allocation18_spill] sm:$0xff] %v4812_v42  ;;  %v1376_v42 = vadd.f32 %v1315_v36, %v4722_v56  ;;  %v1800_v56 = vadd.f32 %v4740_v57, %v1378_v7  ;;  %v1385_v36 = vadd.f32 %v3572_v44, %v4734_v34 }
 0x182   :  { %v4810_v21 = vpop.f32.mrf.mxu1  ;;  %v4816_v30 = vpop.f32.mrf.mxu0  ;;  %v1390_v57 = vadd.f32 %v3577_v3, %v4754_v12  ;;  %v1801_v34 = vadd.f32 %v4756_v35, %v1379_v15  ;;  %v1808_v35 = vadd.f32 %v4768_v43, %v1386_v17  ;;  %v5062_v3 = vld [vmem:[#allocation9_spill] sm:$0xff]  ;;  %v5070_v17 = vld [vmem:[#allocation6_spill] sm:$0xff] }
 0x183   :  { %5055 = vst [vmem:[#allocation17_spill] sm:$0xff] %v4810_v21  ;;  %5058 = vst [vmem:[#allocation20_spill] sm:$0xff] %v4816_v30  ;;  %v1799_v30 = vadd.f32 %v4732_v23, %v1377_v14  ;;  %v1798_v47 = vadd.f32 %v4746_v49, %v1376_v42  ;;  %v2075_v49 = vadd.f32 %v2012_v29, %v1797_v2 }
 0x184   :  { %v4814_v39 = vpop.f32.mrf.mxu1  ;;  %v4820_v59 = vpop.f32.mrf.mxu0  ;;  %v1807_v44 = vadd.f32 %v4764_v5, %v1385_v36  ;;  %v2078_v32 = vadd.f32 %v3601_v45, %v1800_v56  ;;  %v1812_v18 = vadd.f32 %v4776_v10, %v1390_v57  ;;  %v5066_v45 = vld [vmem:[#allocation5_spill] sm:$0xff] }
 0x185   :  { %5057 = vst [vmem:[#allocation19_spill] sm:$0xff] %v4814_v39  ;;  %5059 = vst [vmem:[#allocation21_spill] sm:$0xff] %v4820_v59  ;;  %v1381_v59 = vadd.f32 %v3568_v6, %v4724_v9  ;;  %v2077_v23 = vadd.f32 %v3600_v4, %v1799_v30  ;;  %v1383_v9 = vadd.f32 %v1344_v19, %v4738_v22 }
 0x186   :  { %v4818_v24 = vpop.f32.mrf.mxu1  ;;  %v4826_v63 = vpop.f32.mrf.mxu0  ;;  %v1802_v22 = vadd.f32 %v4762_v37, %v1380_v0  ;;  %v2076_v19 = vadd.f32 %v2015_v60, %v1798_v47  ;;  %v1811_v37 = vadd.f32 %v4772_v16, %v1389_v50  ;;  %v2274_v5 = vadd.f32 %v4782_v26, %v2075_v49  ;;  %v5064_v43 = vld [vmem:[#allocation13_spill] sm:$0xff]  ;;  %v5065_v16 = vld [vmem:[#allocation4_spill] sm:$0xff] }
 0x187   :  { %5060 = vst [vmem:[#allocation22_spill] sm:$0xff] %v4826_v63  ;;  %v1803_v52 = vadd.f32 %v4752_v58, %v1381_v59  ;;  %v2276_v58 = vadd.f32 %v4780_v28, %v2077_v23  ;;  %v1805_v12 = vadd.f32 %v4766_v38, %v1383_v9  ;;  %v1810_v28 = vadd.f32 %v5061_v27, %v1388_v20  ;;  %v5063_v38 = vld [vmem:[#allocation11_spill] sm:$0xff] }
 0x188   :  { %v4824_v48 = vpop.f32.mrf.mxu1  ;;  %v4832_v39 = vpop.f32.mrf.mxu0  ;;  %v2079_v4 = vadd.f32 %v5063_v38, %v1801_v34  ;;  %v2082_v62 = vadd.f32 %v5064_v43, %v1804_v13  ;;  %v2277_v7 = vadd.f32 %v5065_v16, %v2078_v32  ;;  %v2275_v60 = vadd.f32 %v5066_v45, %v2076_v19  ;;  %v5067_v10 = vld [vmem:[#allocation15_spill] sm:$0xff] }
 0x189   :  { %v2081_v33 = vadd.f32 %v5062_v3, %v1803_v52  ;;  %v2080_v59 = vadd.f32 %v5067_v10, %v1802_v22  ;;  %v2086_v40 = vadd.f32 %v4818_v24, %v1808_v35  ;;  %v2084_v47 = vadd.f32 %v4824_v48, %v1806_v1  ;;  %v5072_v52 = vld [vmem:[#allocation8_spill] sm:$0xff]  ;;  %v5075_v1 = vld [vmem:[#allocation14_spill] sm:$0xff] }
 0x18a   :  { %v4830_v21 = vpop.f32.mrf.mxu1  ;;  %v3654_v8 = vpop.f32.mrf.mxu0  ;;  %v5068_v26 = vld [vmem:[#allocation17_spill] sm:$0xff]  ;;  %v2281_v55 = vadd.f32 %v5072_v52, %v2082_v62 }
 0x18b   :  { %v2085_v14 = vadd.f32 %v5068_v26, %v1807_v44  ;;  %v2280_v46 = vadd.f32 %v5070_v17, %v2081_v33  ;;  %v2089_v57 = vadd.f32 %v4830_v21, %v1811_v37  ;;  %v5073_v44 = vld [vmem:[#allocation10_spill] sm:$0xff] }
 0x18c   :  { %v4840_v63 = vpop.f32.mrf.mxu1  ;;  %v2911_v54 = vpop.f32.mrf.mxu0  ;;  %v5069_v2 = vld [vmem:[#allocation19_spill] sm:$0xff]  ;;  %v2279_v48 = vadd.f32 %v5073_v44, %v2080_v59  ;;  %v5077_v37 = vld [vmem:[#allocation18_spill] sm:$0xff]  ;;  %v5079_v38 = vld [vmem:[#allocation21_spill] sm:$0xff] }
 0x18d   :  { %v2083_v15 = vadd.f32 %v5069_v2, %v1805_v12  ;;  %v2087_v24 = vadd.f32 %v4840_v63, %v1809_v41 }
 0x18e   :  { %v3613_v6 = vpop.f32.mrf.mxu1  ;;  %v3655_v61 = vpop.f32.mrf.mxu0  ;;  %v5080_v43 = vld [vmem:[#allocation22_spill] sm:$0xff] }
 0x18f   :  { %v2090_v13 = vadd.f32 %v3613_v6, %v1812_v18  ;;  %v5078_v6 = vld [vmem:[#allocation20_spill] sm:$0xff] }
 0x190   :  { %v4856_v53 = vpop.f32.mrf.mxu1  ;;  %v2914_v11 = vpop.f32.mrf.mxu0  ;;  %v4899_v41 = vadd.f32 %v5078_v6, %v2089_v57 }
 0x191   :  { %v4905_v62 = vadd.f32 %v5080_v43, %v2090_v13 }
 0x192   :  { %v3636_v31 = vpop.f32.mrf.mxu1  ;;  %v3658_v29 = vpop.f32.mrf.mxu0 }
 0x193   :  { %v2698_v42 = vadd.f32 %v3636_v31, %v2276_v58  ;;  %v5074_v58 = vld [vmem:[#allocation12_spill] sm:$0xff]  ;;  %v2282_v31 = vadd.f32 %v5075_v1, %v2083_v15 }
 0x194   :  { %v2633_v25 = vpop.f32.mrf.mxu1  ;;  %v2927_v56 = vpop.f32.mrf.mxu0 }
 0x195   :  { %v2976_v51 = vadd.f32 %v3654_v8, %v2698_v42  ;;  %v2696_v30 = vadd.f32 %v2633_v25, %v2274_v5  ;;  %v5071_v8 = vld [vmem:[#allocation7_spill] sm:$0xff]  ;;  %v5076_v5 = vld [vmem:[#allocation16_spill] sm:$0xff]  ;;  %v4892_v42 = vadd.f32 %v5077_v37, %v2084_v47  ;;  %v2088_v25 = vadd.f32 %v4856_v53, %v1810_v28 }
 0x196   :  { %v3637_v0 = vpop.f32.mrf.mxu1  ;;  %v2278_v50 = vadd.f32 %v5071_v8, %v2079_v4  ;;  %v3659_v34 = vpop.f32.mrf.mxu0  ;;  %v4889_v21 = vadd.f32 %v5076_v5, %v2086_v40  ;;  %v4902_v4 = vadd.f32 %v5079_v38, %v2087_v24 }
 0x197   :  { %v2992_v36 = vmax.f32 %v2976_v51, 0.0  ;;  %v2974_v23 = vadd.f32 %v2911_v54, %v2696_v30  ;;  %v2699_v9 = vadd.f32 %v3637_v0, %v2277_v7  ;;  %v4885_v54 = vadd.f32 %v5074_v58, %v2085_v14 }
 0x198   :  { %v2636_v49 = vpop.f32.mrf.mxu1  ;;  %v2930_v35 = vpop.f32.mrf.mxu0  ;;  %v4926_v52 = vadd.f32 %v4832_v39, %v2088_v25 }
 0x199   :  { %v3411_v22 = vpack.c.bf16 %v2992_v36, %v2992_v36  ;;  %v2990_v20 = vmax.f32 %v2974_v23, 0.0  ;;  %v2977_v32 = vadd.f32 %v3655_v61, %v2699_v9  ;;  %v2697_v19 = vadd.f32 %v2636_v49, %v2275_v60 }
 0x19a   :  { %v3640_v12 = vpop.f32.mrf.mxu1  ;;  %v3662_v33 = vpop.f32.mrf.mxu0  ;;  %v3048_v7 = vmul.f32 %v2992_v36, %v2992_v36 }
 0x19b   :  { %3167 = vst.msk [vmem:[%s5018_s2 + $0x8] sm:$0xf] %vm3164_vm14, %v3411_v22  ;;  %v3409_v63 = vpack.c.bf16 %v2990_v20, %v2990_v20  ;;  %v2993_v61 = vmax.f32 %v2977_v32, 0.0  ;;  %v2975_v18 = vadd.f32 %v2914_v11, %v2697_v19  ;;  %v2702_v27 = vadd.f32 %v3640_v12, %v2280_v46 }
 0x19c   :  { %v2649_v3 = vpop.f32.mrf.mxu1  ;;  %v3046_v45 = vmul.f32 %v2990_v20, %v2990_v20  ;;  %v2943_v30 = vpop.f32.mrf.mxu0  ;;  %v3007_v10 = vsel %vm3006_vm15, %v2990_v20, 0.0 }
 0x19d   :  { %3165 = vst.msk [vmem:[%s5018_s2] sm:$0xf] %vm3164_vm14, %v3409_v63  ;;  %v2700_v16 = vadd.f32 %v2649_v3, %v2278_v50  ;;  %v3412_v11 = vpack.c.bf16 %v2993_v61, %v2993_v61  ;;  %v2991_v60 = vmax.f32 %v2975_v18, 0.0  ;;  %v2980_v59 = vadd.f32 %v3658_v29, %v2702_v27 }
 0x19e   :  { %v3641_v51 = vpop.f32.mrf.mxu1  ;;  %v3049_v2 = vmul.f32 %v2993_v61, %v2993_v61  ;;  %v3663_v0 = vpop.f32.mrf.mxu0  ;;  %v3010_v29 = vsel %vm3006_vm15, %v2992_v36, 0.0  ;;  %v3012_v36 = vsel %vm3006_vm15, %v2993_v61, 0.0 }
 0x19f   :  { %v2978_v26 = vadd.f32 %v2927_v56, %v2700_v16  ;;  %v2703_v14 = vadd.f32 %v3641_v51, %v2281_v55  ;;  %3168 = vst.msk [vmem:[%s5018_s2 + $0xc] sm:$0xf] %vm3164_vm14, %v3412_v11  ;;  %v3008_v53 = vsel %vm3006_vm15, %v2991_v60, 0.0  ;;  %v3047_v28 = vmul.f32 %v2991_v60, %v2991_v60 }
 0x1a0   :  { %v3410_v15 = vpack.c.bf16 %v2991_v60, %v2991_v60  ;;  %v2652_v40 = vpop.f32.mrf.mxu1  ;;  %v3009_v47 = vadd.f32 %v3008_v53, %v3007_v10  ;;  %v2996_v23 = vmax.f32 %v2980_v59, 0.0  ;;  %v3062_v56 = vsel %vm3006_vm15, %v3046_v45, 0.0  ;;  %v2946_v20 = vpop.f32.mrf.mxu0 }
 0x1a1   :  { %v2994_v9 = vmax.f32 %v2978_v26, 0.0  ;;  %v2981_v17 = vadd.f32 %v3659_v34, %v2703_v14  ;;  %v3063_v46 = vsel %vm3006_vm15, %v3047_v28, 0.0  ;;  %v2701_v8 = vadd.f32 %v2652_v40, %v2279_v48 }
 0x1a2   :  { %3166 = vst.msk [vmem:[%s5018_s2 + $0x4] sm:$0xf] %vm3164_vm14, %v3410_v15  ;;  %v3644_v50 = vpop.f32.mrf.mxu1  ;;  %v3065_v55 = vsel %vm3006_vm15, %v3048_v7, 0.0  ;;  %v3011_v57 = vadd.f32 %v3010_v29, %v3009_v47  ;;  %v3064_v49 = vadd.f32 %v3063_v46, %v3062_v56  ;;  %v3415_v34 = vpack.c.bf16 %v2996_v23, %v2996_v23  ;;  %v3666_v25 = vpop.f32.mrf.mxu0 }
 0x1a3   :  { %v3050_v24 = vmul.f32 %v2994_v9, %v2994_v9  ;;  %v3413_v13 = vpack.c.bf16 %v2994_v9, %v2994_v9  ;;  %v3067_v44 = vsel %vm3006_vm15, %v3049_v2, 0.0  ;;  %v2997_v48 = vmax.f32 %v2981_v17, 0.0 }
 0x1a4   :  { %v2665_v22 = vpop.f32.mrf.mxu1  ;;  %v3066_v58 = vadd.f32 %v3065_v55, %v3064_v49  ;;  %v3013_v32 = vadd.f32 %v3012_v36, %v3011_v57  ;;  %3171 = vst.msk [vmem:[%s5018_s2 + $0x18] sm:$0xf] %vm3164_vm14, %v3415_v34  ;;  %v3014_v39 = vsel %vm3006_vm15, %v2994_v9, 0.0  ;;  %v2979_v19 = vadd.f32 %v2930_v35, %v2701_v8  ;;  %v2959_v53 = vpop.f32.mrf.mxu0 }
 0x1a5   :  { %3169 = vst.msk [vmem:[%s5018_s2 + $0x10] sm:$0xf] %vm3164_vm14, %v3413_v13  ;;  %v2706_v12 = vadd.f32 %v3644_v50, %v4885_v54  ;;  %v2704_v1 = vadd.f32 %v2665_v22, %v2282_v31  ;;  %v3052_v37 = vmul.f32 %v2996_v23, %v2996_v23  ;;  %v3069_v61 = vsel %vm3006_vm15, %v3050_v24, 0.0 }
 0x1a6   :  { %v3645_v5 = vpop.f32.mrf.mxu1  ;;  %v3015_v63 = vadd.f32 %v3014_v39, %v3013_v32  ;;  %v3068_v6 = vadd.f32 %v3067_v44, %v3066_v58  ;;  %v3416_v18 = vpack.c.bf16 %v2997_v48, %v2997_v48  ;;  %v2995_v27 = vmax.f32 %v2979_v19, 0.0  ;;  %v3667_v34 = vpop.f32.mrf.mxu0 }
 0x1a7   :  { %v2984_v3 = vadd.f32 %v3662_v33, %v2706_v12  ;;  %v2982_v38 = vadd.f32 %v2943_v30, %v2704_v1  ;;  %v3053_v7 = vmul.f32 %v2997_v48, %v2997_v48  ;;  %v2707_v45 = vadd.f32 %v3645_v5, %v4889_v21 }
 0x1a8   :  { %v2668_v43 = vpop.f32.mrf.mxu1  ;;  %v3070_v16 = vadd.f32 %v3069_v61, %v3068_v6  ;;  %3172 = vst.msk [vmem:[%s5018_s2 + $0x1c] sm:$0xf] %vm3164_vm14, %v3416_v18  ;;  %v3016_v54 = vsel %vm3006_vm15, %v2995_v27, 0.0  ;;  %v3051_v31 = vmul.f32 %v2995_v27, %v2995_v27  ;;  %v3414_v11 = vpack.c.bf16 %v2995_v27, %v2995_v27  ;;  %v2962_v61 = vpop.f32.mrf.mxu0 }
 0x1a9   :  { %v2705_v35 = vadd.f32 %v2668_v43, %v4892_v42  ;;  %v3000_v60 = vmax.f32 %v2984_v3, 0.0  ;;  %v3017_v51 = vadd.f32 %v3016_v54, %v3015_v63  ;;  %v2998_v30 = vmax.f32 %v2982_v38, 0.0 }
 0x1aa   :  { %v3648_v33 = vpop.f32.mrf.mxu1  ;;  %v2985_v10 = vadd.f32 %v3663_v0, %v2707_v45  ;;  %v3018_v26 = vsel %vm3006_vm15, %v2996_v23, 0.0  ;;  %v3073_v21 = vsel %vm3006_vm15, %v3052_v37, 0.0  ;;  %v3071_v42 = vsel %vm3006_vm15, %v3051_v31, 0.0  ;;  %3170 = vst.msk [vmem:[%s5018_s2 + $0x14] sm:$0xf] %vm3164_vm14, %v3414_v11 }
 0x1ab   :  { %v2983_v59 = vadd.f32 %v2946_v20, %v2705_v35  ;;  %v3419_v14 = vpack.c.bf16 %v3000_v60, %v3000_v60  ;;  %v3020_v28 = vsel %vm3006_vm15, %v2997_v48, 0.0  ;;  %v3075_v15 = vsel %vm3006_vm15, %v3053_v7, 0.0 }
 0x1ac   :  { %v2681_v2 = vpop.f32.mrf.mxu1  ;;  %v3019_v40 = vadd.f32 %v3018_v26, %v3017_v51  ;;  %v3072_v0 = vadd.f32 %v3071_v42, %v3070_v16  ;;  %v3054_v47 = vmul.f32 %v2998_v30, %v2998_v30  ;;  %v3417_v23 = vpack.c.bf16 %v2998_v30, %v2998_v30 }
 0x1ad   :  { %3175 = vst.msk [vmem:[%s5018_s2 + $0x28] sm:$0xf] %vm3164_vm14, %v3419_v14  ;;  %v3001_v9 = vmax.f32 %v2985_v10, 0.0  ;;  %v2999_v17 = vmax.f32 %v2983_v59, 0.0  ;;  %v3026_v46 = vsel %vm3006_vm15, %v3000_v60, 0.0  ;;  %v2710_v50 = vadd.f32 %v3648_v33, %v4899_v41 }
 0x1ae   :  { %v3649_v29 = vpop.f32.mrf.mxu1  ;;  %v3074_v56 = vadd.f32 %v3073_v21, %v3072_v0  ;;  %v3021_v8 = vadd.f32 %v3020_v28, %v3019_v40  ;;  %v3056_v55 = vmul.f32 %v3000_v60, %v3000_v60  ;;  %v3022_v57 = vsel %vm3006_vm15, %v2998_v30, 0.0  ;;  %3173 = vst.msk [vmem:[%s5018_s2 + $0x20] sm:$0xf] %vm3164_vm14, %v3417_v23 }
 0x1af   :  { %v3420_v49 = vpack.c.bf16 %v3001_v9, %v3001_v9  ;;  %v3024_v36 = vsel %vm3006_vm15, %v2999_v17, 0.0  ;;  %v3055_v20 = vmul.f32 %v2999_v17, %v2999_v17  ;;  %v3418_v44 = vpack.c.bf16 %v2999_v17, %v2999_v17 }
 0x1b0   :  { %v2684_v24 = vpop.f32.mrf.mxu1  ;;  %v3023_v13 = vadd.f32 %v3022_v57, %v3021_v8  ;;  %v3076_v22 = vadd.f32 %v3075_v15, %v3074_v56  ;;  %v3077_v58 = vsel %vm3006_vm15, %v3054_v47, 0.0  ;;  %v2988_v41 = vadd.f32 %v3666_v25, %v2710_v50 }
 0x1b1   :  { %3176 = vst.msk [vmem:[%s5018_s2 + $0x2c] sm:$0xf] %vm3164_vm14, %v3420_v49  ;;  %v2708_v32 = vadd.f32 %v2681_v2, %v4902_v4  ;;  %v2711_v48 = vadd.f32 %v3649_v29, %v4905_v62  ;;  %v3079_v12 = vsel %vm3006_vm15, %v3055_v20, 0.0  ;;  %3174 = vst.msk [vmem:[%s5018_s2 + $0x24] sm:$0xf] %vm3164_vm14, %v3418_v44  ;;  %v2709_v1 = vadd.f32 %v2684_v24, %v4926_v52 }
 0x1b2   :  { %v3078_v39 = vadd.f32 %v3077_v58, %v3076_v22  ;;  %v3025_v19 = vadd.f32 %v3024_v36, %v3023_v13  ;;  %v3057_v5 = vmul.f32 %v3001_v9, %v3001_v9  ;;  %v3004_v37 = vmax.f32 %v2988_v41, 0.0 }
 0x1b3   :  { %v2986_v63 = vadd.f32 %v2959_v53, %v2708_v32  ;;  %v2989_v6 = vadd.f32 %v3667_v34, %v2711_v48  ;;  %v2987_v27 = vadd.f32 %v2962_v61, %v2709_v1  ;;  %v3081_v62 = vsel %vm3006_vm15, %v3056_v55, 0.0 }
 0x1b4   :  { %v3027_v18 = vadd.f32 %v3026_v46, %v3025_v19  ;;  %v3080_v4 = vadd.f32 %v3079_v12, %v3078_v39  ;;  %v3028_v3 = vsel %vm3006_vm15, %v3001_v9, 0.0  ;;  %v3423_v38 = vpack.c.bf16 %v3004_v37, %v3004_v37 }
 0x1b5   :  { %v3002_v43 = vmax.f32 %v2986_v63, 0.0  ;;  %v3005_v7 = vmax.f32 %v2989_v6, 0.0  ;;  %v3003_v45 = vmax.f32 %v2987_v27, 0.0  ;;  %v3083_v52 = vsel %vm3006_vm15, %v3057_v5, 0.0 }
 0x1b6   :  { %v3082_v25 = vadd.f32 %v3081_v62, %v3080_v4  ;;  %v3029_v16 = vadd.f32 %v3028_v3, %v3027_v18  ;;  %3179 = vst.msk [vmem:[%s5018_s2 + $0x38] sm:$0xf] %vm3164_vm14, %v3423_v38  ;;  %v3060_v11 = vmul.f32 %v3004_v37, %v3004_v37  ;;  %v3034_v14 = vsel %vm3006_vm15, %v3004_v37, 0.0 }
 0x1b7   :  { %v3030_v35 = vsel %vm3006_vm15, %v3002_v43, 0.0  ;;  %v3058_v54 = vmul.f32 %v3002_v43, %v3002_v43  ;;  %v3421_v31 = vpack.c.bf16 %v3002_v43, %v3002_v43  ;;  %v3424_v30 = vpack.c.bf16 %v3005_v7, %v3005_v7 }
 0x1b8   :  { %v3031_v60 = vadd.f32 %v3030_v35, %v3029_v16  ;;  %v3084_v33 = vadd.f32 %v3083_v52, %v3082_v25  ;;  %v3032_v10 = vsel %vm3006_vm15, %v3003_v45, 0.0  ;;  %v3059_v59 = vmul.f32 %v3003_v45, %v3003_v45 }
 0x1b9   :  { %v3085_v51 = vsel %vm3006_vm15, %v3058_v54, 0.0  ;;  %3177 = vst.msk [vmem:[%s5018_s2 + $0x30] sm:$0xf] %vm3164_vm14, %v3421_v31  ;;  %v3422_v42 = vpack.c.bf16 %v3003_v45, %v3003_v45  ;;  %v3061_v2 = vmul.f32 %v3005_v7, %v3005_v7  ;;  %3180 = vst.msk [vmem:[%s5018_s2 + $0x3c] sm:$0xf] %vm3164_vm14, %v3424_v30  ;;  %v3089_v40 = vsel %vm3006_vm15, %v3060_v11, 0.0 }
 0x1ba   :  { %v3086_v26 = vadd.f32 %v3085_v51, %v3084_v33  ;;  %v3033_v21 = vadd.f32 %v3032_v10, %v3031_v60  ;;  %v3087_v53 = vsel %vm3006_vm15, %v3059_v59, 0.0  ;;  %v3036_v0 = vsel %vm3006_vm15, %v3005_v7, 0.0 }
 0x1bb   :  { %3178 = vst.msk [vmem:[%s5018_s2 + $0x34] sm:$0xf] %vm3164_vm14, %v3422_v42  ;;  %v3091_v9 = vsel %vm3006_vm15, %v3061_v2, 0.0 }
 0x1bc   :  { %v3035_v28 = vadd.f32 %v3034_v14, %v3033_v21  ;;  %v3088_v15 = vadd.f32 %v3087_v53, %v3086_v26 }
 0x1be   :  { %v3037_v47 = vadd.f32 %v3036_v0, %v3035_v28  ;;  %v3090_v23 = vadd.f32 %v3089_v40, %v3088_v15 }
 0x1c0   :  { %v3038_v17 = vrot.slane %v3037_v47, 4  ;;  %v3092_v29 = vadd.f32 %v3091_v9, %v3090_v23 }
 0x1c2   :  { %v3039_v56 = vadd.f32 %v3038_v17, %v3037_v47  ;;  %v3093_v46 = vrot.slane %v3092_v29, 4 }
 0x1c4   :  { %v3040_v8 = vrot.slane %v3039_v56, 2  ;;  %v3094_v50 = vadd.f32 %v3093_v46, %v3092_v29 }
 0x1c6   :  { %v3041_v55 = vadd.f32 %v3040_v8, %v3039_v56  ;;  %v3095_v57 = vrot.slane %v3094_v50, 2 }
 0x1c8   :  { %v3042_v49 = vrot.slane %v3041_v55, 1  ;;  %v3096_v36 = vadd.f32 %v3095_v57, %v3094_v50 }
 0x1ca   :  { %v3043_v34 = vadd.f32 %v3042_v49, %v3041_v55  ;;  %v3097_v24 = vrot.slane %v3096_v36, 1 }
 0x1cc   :  { %3045 = vst.msk [vmem:[%s5019_s3] sm:$0x1] %vm3044_vm0, %v3043_v34  ;;  %v3098_v13 = vadd.f32 %v3097_v24, %v3096_v36 }
 0x1ce   :  { %3099 = vst.msk [vmem:[%s5020_s4] sm:$0x1] %vm3044_vm0, %v3098_v13 }

// kernel: _lambda_.8
= control target key start
LH: loop header
LB: loop body
LE: loop exit
PB: predicated region body
PF: predicated region fallthrough
CT: control target
= control target key end

     0   :  { %v644_v3 = vlaneseq  ;;  %vm227_vm0 = vcmask 518144   ;;  %v302_v6 = vld [vmem:[#allocation2 + $0x60] sm:$0x7]  ;;  %vm351_vm1 = vcmask 517120   ;;  %v317_v12 = vld [vmem:[#allocation2 + $0x74] sm:$0x7]  ;;  %s3572_s1 = inlined_call_operand.vmem [shape: bf16[9,64,32], index: 1, kind: input, shape index: {}]   ;;  %s3573_s0 = inlined_call_operand.vmem [shape: bf16[4,2,4,4,64], index: 0, kind: input, shape index: {}]   ;;  %s3574_s2 = inlined_call_operand.vmem [shape: f32[1,64], index: 2, kind: input, shape index: {}]   ;;  %s3575_s3 = inlined_call_operand.vmem [shape: f32[1,64], index: 3, kind: input, shape index: {}]   ;;  %s3576_s4 = inlined_call_operand.vmem [shape: bf16[32,32], index: 4, kind: output, shape index: {0}]   ;;  %s3577_s5 = inlined_call_operand.vmem [shape: f32[1,32], index: 5, kind: output, shape index: {1}]   ;;  %s3578_s6 = inlined_call_operand.vmem [shape: f32[1,32], index: 6, kind: output, shape index: {2}]  }
   0x1   :  { %v2817_v0 = vld [vmem:[%s3572_s1 + $0x38] sm:$0xff]   ;;  %v2818_v1 = vld [vmem:[%s3572_s1 + $0x30] sm:$0xff]   ;;  %v2820_v4 = vld [vmem:[%s3572_s1 + $0x28] sm:$0xff]   ;;  %vm228_vm2 = vsmask.f32 2304  ;;  %vm697_vm4 = vcmask 523264  }
   0x2   :  { %2708 = vmatprep.subr.bf16.mxu0 %v2817_v0  ;;  %v2819_v2 = vld [vmem:[%s3572_s1 + $0x18] sm:$0xff]   ;;  %v2821_v5 = vld [vmem:[%s3572_s1 + $0x10] sm:$0xff]   ;;  %v2957_v7 = vld [vmem:[%s3572_s1 + $0x20] sm:$0xff]   ;;  %v2968_v11 = vshrl.u32 %v644_v3, 7  ;;  %v2903_v46 = vmov 1983009808  }
   0x3   :  { %2709 = vmatpush3.bf16.msra.mxu0 %v2817_v0  ;;  %2720 = vmatprep.subr.bf16.mxu1 %v2819_v2  ;;  %v2823_v8 = vld [vmem:[%s3572_s1 + $0x8] sm:$0xff]   ;;  %v37_v9 = vld [vmem:[%s3573_s0 + $0x20] sm:$0x3]  ;;  %v38_v10 = vld [vmem:[%s3573_s0 + $0x22] sm:$0x3]  ;;  %v642_v47 = vunpack.c.l.s4 %v2903_v46  ;;  %vm2453_vm14 = vcmask 257024  }
   0x4   :  { %2710 = vmatprep.subr.bf16.mxu0 %v2818_v1  ;;  %2721 = vmatpush3.bf16.msra.mxu1 %v2819_v2  ;;  %v332_v13 = vld [vmem:[#allocation2 + $0x88] sm:$0x7]  ;;  %v347_v14 = vld [vmem:[#allocation2 + $0x9c] sm:$0x7]  ;;  %v39_v15 = vld [vmem:[%s3573_s0 + $0x24] sm:$0x3]  ;;  %v69_v16 = vunpack.c.l.bf16 %v37_v9  ;;  %v70_v17 = vunpack.c.l.bf16 %v38_v10 }
   0x5   :  { %2722 = vmatprep.subr.bf16.mxu1 %v2821_v5  ;;  %v2976_v18 = vld [vmem:[%s3574_s2] ss:$0 sm:$0xff]  ;;  %v71_v20 = vunpack.c.l.bf16 %v39_v15  ;;  %v260_v21 = vld [vmem:[#allocation2 + $0x28] sm:$0x7]  ;;  %v263_v22 = vld [vmem:[#allocation2 + $0x2c] sm:$0x7]  ;;  %v643_v59 = vunpack.c.0.s8 %v642_v47 }
   0x6   :  { %v2981_v19 = vld [vmem:[%s3575_s3] ss:$0 sm:$0xff]  ;;  %v108_v23 = vmul.f32 %v2976_v18, %v69_v16  ;;  %v109_v24 = vmul.f32 %v2976_v18, %v70_v17  ;;  %vm2986_vm3 = vmand %vm227_vm0, %vm228_vm2  ;;  %v266_v26 = vld [vmem:[#allocation2 + $0x30] sm:$0x7]  ;;  %vm449_vm5 = vsmask.f32 2306 }
   0x7   :  { %2711 = vmatpush3.bf16.msra.mxu0 %v2818_v1  ;;  %v269_v27 = vld [vmem:[#allocation2 + $0x34] sm:$0x7]  ;;  %v110_v28 = vmul.f32 %v2976_v18, %v71_v20  ;;  %v261_v29 = vsel %vm2986_vm3, 0, %v260_v21  ;;  %v264_v30 = vsel %vm2986_vm3, 0, %v263_v22  ;;  %v267_v31 = vsel %vm2986_vm3, 0, %v266_v26  ;;  %v3000_v32 = vld [vmem:[%s3572_s1 + $0x58] sm:$0xff]   ;;  %vm3105_vm6 = vmand %vm227_vm0, %vm449_vm5 }
   0x8   :  { %2712 = vmatprep.subr.bf16.mxu0 %v2820_v4  ;;  %2723 = vmatpush3.bf16.msra.mxu1 %v2821_v5  ;;  %v147_v33 = vadd.f32 %v2981_v19, %v108_v23  ;;  %v148_v34 = vadd.f32 %v2981_v19, %v109_v24  ;;  %262 = vst [vmem:[#allocation2 + $0x28] sm:$0x7] %v261_v29  ;;  %265 = vst [vmem:[#allocation2 + $0x2c] sm:$0x7] %v264_v30  ;;  %v270_v35 = vsel %vm2986_vm3, 0, %v269_v27  ;;  %v2829_v43 = vld [vmem:[%s3572_s1] sm:$0xff]  }
   0x9   :  { %2724 = vmatprep.subr.bf16.mxu1 %v2823_v8  ;;  %268 = vst [vmem:[#allocation2 + $0x30] sm:$0x7] %v267_v31  ;;  %v303_v36 = vsel %vm2986_vm3, 0, %v302_v6  ;;  %v41_v37 = vld [vmem:[%s3573_s0 + $0x28] sm:$0x3]  ;;  %v149_v38 = vadd.f32 %v2981_v19, %v110_v28  ;;  %v318_v39 = vsel %vm2986_vm3, 0, %v317_v12 }
   0xa   :  { %271 = vst [vmem:[#allocation2 + $0x34] sm:$0x7] %v270_v35  ;;  %304 = vst [vmem:[#allocation2 + $0x60] sm:$0x7] %v303_v36  ;;  %v333_v40 = vsel %vm2986_vm3, 0, %v332_v13  ;;  %v348_v41 = vsel %vm2986_vm3, 0, %v347_v14  ;;  %v73_v49 = vunpack.c.l.bf16 %v41_v37  ;;  %v3057_v14 = vsub.s32 %v643_v59, %v2968_v11 }
   0xb   :  { %2713 = vmatpush3.bf16.msra.mxu0 %v2820_v4  ;;  %v42_v42 = vld [vmem:[%s3573_s0 + $0x2a] sm:$0x3]  ;;  %v179_v44 = vmax.f32 %v147_v33, 0.0  ;;  %v180_v45 = vmax.f32 %v148_v34, 0.0  ;;  %319 = vst [vmem:[#allocation2 + $0x74] sm:$0x7] %v318_v39 }
   0xc   :  { %2714 = vmatprep.subr.bf16.mxu0 %v2957_v7  ;;  %334 = vst [vmem:[#allocation2 + $0x88] sm:$0x7] %v333_v40  ;;  %349 = vst [vmem:[#allocation2 + $0x9c] sm:$0x7] %v348_v41  ;;  %2725 = vmatpush3.bf16.msra.mxu1 %v2823_v8  ;;  %v43_v48 = vld [vmem:[%s3573_s0 + $0x2c] sm:$0x3]  ;;  %v74_v52 = vunpack.c.l.bf16 %v42_v42  ;;  %v112_v60 = vmul.f32 %v2976_v18, %v73_v49 }
   0xd   :  { %v275_v50 = vld [vmem:[#allocation2 + $0x3c] sm:$0x7]  ;;  %v181_v51 = vmax.f32 %v149_v38, 0.0  ;;  %v75_v53 = vunpack.c.l.bf16 %v43_v48  ;;  %v278_v55 = vld [vmem:[#allocation2 + $0x40] sm:$0x7]  ;;  %2726 = vmatprep.subr.bf16.mxu1 %v2829_v43  ;;  %v211_v57 = vpack.c.bf16 %v179_v44, %v179_v44  ;;  %v212_v58 = vpack.c.bf16 %v180_v45, %v180_v45 }
   0xe   :  { %v276_v54 = vsel %vm2986_vm3, 0, %v275_v50  ;;  %v281_v56 = vld [vmem:[#allocation2 + $0x44] sm:$0x7]  ;;  %v284_v61 = vld [vmem:[#allocation2 + $0x48] sm:$0x7]  ;;  %v113_v63 = vmul.f32 %v2976_v18, %v74_v52  ;;  %v279_v1 = vsel %vm2986_vm3, 0, %v278_v55  ;;  %v151_v2 = vadd.f32 %v2981_v19, %v112_v60 }
   0xf   :  { %2715 = vmatpush3.bf16.msra.mxu0 %v2957_v7  ;;  %277 = vst [vmem:[#allocation2 + $0x3c] sm:$0x7] %v276_v54  ;;  %v213_v62 = vpack.c.bf16 %v181_v51, %v181_v51  ;;  %v114_v0 = vmul.f32 %v2976_v18, %v75_v53  ;;  %476 = vst.msk [vmem:[#allocation2 + $0x2c] sm:$0x3] %vm351_vm1, %v211_v57  ;;  %v282_v3 = vsel %vm2986_vm3, 0, %v281_v56  ;;  %v285_v4 = vsel %vm2986_vm3, 0, %v284_v61 }
  0x10   :  { %2732 = vmatprep.subr.bf16.mxu0 %v3000_v32  ;;  %477 = vst.msk [vmem:[#allocation2 + $0x30] sm:$0x3] %vm351_vm1, %v212_v58  ;;  %280 = vst [vmem:[#allocation2 + $0x40] sm:$0x7] %v279_v1  ;;  %2727 = vmatpush3.bf16.msra.mxu1 %v2829_v43  ;;  %v45_v5 = vld [vmem:[%s3573_s0 + $0x30] sm:$0x3]  ;;  %v152_v7 = vadd.f32 %v2981_v19, %v113_v63 }
  0x11   :  { %v46_v6 = vld [vmem:[%s3573_s0 + $0x32] sm:$0x3]  ;;  %478 = vst.msk [vmem:[#allocation2 + $0x34] sm:$0x3] %vm351_vm1, %v213_v62  ;;  %v153_v8 = vadd.f32 %v2981_v19, %v114_v0  ;;  %283 = vst [vmem:[#allocation2 + $0x44] sm:$0x7] %v282_v3  ;;  %v77_v10 = vunpack.c.l.bf16 %v45_v5 }
  0x12   :  { %286 = vst [vmem:[#allocation2 + $0x48] sm:$0x7] %v285_v4  ;;  %v47_v9 = vld [vmem:[%s3573_s0 + $0x34] sm:$0x3]  ;;  %v78_v12 = vunpack.c.l.bf16 %v46_v6  ;;  %v230_v13 = vld [vmem:[#allocation2] sm:$0x7] }
  0x13   :  { %v183_v15 = vmax.f32 %v151_v2, 0.0  ;;  %v79_v16 = vunpack.c.l.bf16 %v47_v9  ;;  %v231_v17 = vsel %vm2986_vm3, 0, %v230_v13  ;;  %v233_v20 = vld [vmem:[#allocation2 + $0x4] sm:$0x7]  ;;  %v236_v21 = vld [vmem:[#allocation2 + $0x8] sm:$0x7]  ;;  %v116_v24 = vmul.f32 %v2976_v18, %v77_v10 }
  0x14   :  { %v184_v22 = vmax.f32 %v152_v7, 0.0  ;;  %v185_v23 = vmax.f32 %v153_v8, 0.0  ;;  %v117_v26 = vmul.f32 %v2976_v18, %v78_v12  ;;  %232 = vst [vmem:[#allocation2] sm:$0x7] %v231_v17  ;;  %v239_v27 = vld [vmem:[#allocation2 + $0xc] sm:$0x7] }
  0x15   :  { %v215_v28 = vpack.c.bf16 %v183_v15, %v183_v15  ;;  %v118_v29 = vmul.f32 %v2976_v18, %v79_v16  ;;  %v234_v11 = vsel %vm2986_vm3, 0, %v233_v20  ;;  %v237_v30 = vsel %vm2986_vm3, 0, %v236_v21  ;;  %v3071_v31 = vld [vmem:[%s3572_s1 + $0x78] sm:$0xff]   ;;  %v245_v53 = vld [vmem:[#allocation2 + $0x14] sm:$0x7]  ;;  %v2865_v16 = vld [vmem:[%s3572_s1 + $0xe8] sm:$0xff]  }
  0x16   :  { %v216_v33 = vpack.c.bf16 %v184_v22, %v184_v22  ;;  %v217_v34 = vpack.c.bf16 %v185_v23, %v185_v23  ;;  %v155_v35 = vadd.f32 %v2981_v19, %v116_v24  ;;  %v156_v36 = vadd.f32 %v2981_v19, %v117_v26  ;;  %235 = vst [vmem:[#allocation2 + $0x4] sm:$0x7] %v234_v11  ;;  %v49_v37 = vld [vmem:[%s3573_s0 + $0x38] sm:$0x3]  ;;  %v50_v38 = vld [vmem:[%s3573_s0 + $0x3a] sm:$0x3] }
  0x17   :  { %238 = vst [vmem:[#allocation2 + $0x8] sm:$0x7] %v237_v30  ;;  %480 = vst.msk [vmem:[#allocation2 + $0x40] sm:$0x3] %vm351_vm1, %v215_v28  ;;  %v157_v39 = vadd.f32 %v2981_v19, %v118_v29  ;;  %v240_v40 = vsel %vm2986_vm3, 0, %v239_v27  ;;  %2744 = vmatprep.subr.bf16.mxu1 %v3071_v31  ;;  %v81_v42 = vunpack.c.l.bf16 %v49_v37  ;;  %v82_v44 = vunpack.c.l.bf16 %v50_v38  ;;  %v2830_v15 = vld [vmem:[%s3572_s1 + $0x50] sm:$0xff]  }
  0x18   :  { %v51_v41 = vld [vmem:[%s3573_s0 + $0x3c] sm:$0x3]  ;;  %v2879_v43 = vld.sshfl [vmem:[#allocation2 + $0x28] sm:$0xf pattern:$0x76325410] }
  0x19   :  { %481 = vst.msk [vmem:[#allocation2 + $0x44] sm:$0x3] %vm351_vm1, %v216_v33  ;;  %482 = vst.msk [vmem:[#allocation2 + $0x48] sm:$0x3] %vm351_vm1, %v217_v34  ;;  %v83_v45 = vunpack.c.l.bf16 %v51_v41  ;;  %v187_v47 = vmax.f32 %v155_v35, 0.0  ;;  %v188_v48 = vmax.f32 %v156_v36, 0.0  ;;  %v120_v49 = vmul.f32 %v2976_v18, %v81_v42 }
  0x1a   :  { %241 = vst [vmem:[#allocation2 + $0xc] sm:$0x7] %v240_v40  ;;  %v2880_v46 = vld.sshfl [vmem:[#allocation2 + $0x30] sm:$0xf pattern:$0x76325410]  ;;  %v121_v51 = vmul.f32 %v2976_v18, %v82_v44 }
  0x1b   :  { %v189_v50 = vmax.f32 %v157_v39, 0.0  ;;  %v122_v52 = vmul.f32 %v2976_v18, %v83_v45  ;;  %v2642_v54 = vpack.c.bf16 %v187_v47, %v187_v47  ;;  %v2643_v55 = vpack.c.bf16 %v188_v48, %v188_v48  ;;  %v248_v0 = vld [vmem:[#allocation2 + $0x18] sm:$0x7]  ;;  %v251_v5 = vld [vmem:[#allocation2 + $0x1c] sm:$0x7]  ;;  %v2836_v39 = vld [vmem:[%s3572_s1 + $0x48] sm:$0xff]  }
  0x1c   :  { %v159_v57 = vadd.f32 %v2981_v19, %v120_v49  ;;  %v160_v58 = vadd.f32 %v2981_v19, %v121_v51  ;;  %v246_v59 = vsel %vm2986_vm3, 0, %v245_v53  ;;  %v655_v60 = vcombine.low %v2879_v43, %v2880_v46  ;;  %v254_v6 = vld [vmem:[#allocation2 + $0x20] sm:$0x7] }
  0x1d   :  { %v2644_v56 = vpack.c.bf16 %v189_v50, %v189_v50  ;;  %v509_v61 = vshrl.u32 %v2642_v54, 16  ;;  %v512_v62 = vshll.u32 %v2642_v54, 16  ;;  %v516_v63 = vshrl.u32 %v2643_v55, 16  ;;  %247 = vst [vmem:[#allocation2 + $0x14] sm:$0x7] %v246_v59  ;;  %v2838_v51 = vld [vmem:[%s3572_s1 + $0x40] sm:$0xff]  }
  0x1e   :  { %v2881_v1 = vld.sshfl [vmem:[#allocation2 + $0x3c] sm:$0xf pattern:$0x76325410]  ;;  %v519_v2 = vshll.u32 %v2643_v55, 16  ;;  %v161_v4 = vadd.f32 %v2981_v19, %v122_v52  ;;  %2716 = vmatprep.mubr.msk.bf16.mxu0 %vm697_vm4, %v655_v60  ;;  %v191_v21 = vmax.f32 %v159_v57, 0.0 }
  0x1f   :  { %v523_v3 = vshrl.u32 %v2644_v56, 16  ;;  %v573_v8 = vld [vmem:[#allocation2 + $0x4] sm:$0x7]  ;;  %v511_v9 = vrot.slane %v509_v61, 7  ;;  %v518_v10 = vrot.slane %v516_v63, 7  ;;  %v526_v17 = vshll.u32 %v2644_v56, 16 }
  0x20   :  { %v2882_v7 = vld.sshfl [vmem:[#allocation2 + $0x44] sm:$0xf pattern:$0x76325410]  ;;  %v192_v22 = vmax.f32 %v160_v58, 0.0  ;;  %v193_v26 = vmax.f32 %v161_v4, 0.0  ;;  %v2646_v35 = vpack.c.bf16 %v191_v21, %v191_v21 }
  0x21   :  { %v525_v12 = vrot.slane %v523_v3, 7  ;;  %v576_v13 = vld [vmem:[#allocation2 + $0x8] sm:$0x7]  ;;  %v579_v20 = vld [vmem:[#allocation2 + $0xc] sm:$0x7]  ;;  %v514_v23 = vor.u32 %v512_v62, %v511_v9  ;;  %v521_v24 = vor.u32 %v519_v2, %v518_v10  ;;  %v249_v27 = vsel %vm2986_vm3, 0, %v248_v0 }
  0x22   :  { %v672_v28 = vcombine.low %v2881_v1, %v2882_v7  ;;  %250 = vst [vmem:[#allocation2 + $0x18] sm:$0x7] %v249_v27  ;;  %v252_v11 = vsel %vm2986_vm3, 0, %v251_v5  ;;  %v255_v30 = vsel %vm2986_vm3, 0, %v254_v6  ;;  %v2647_v36 = vpack.c.bf16 %v192_v22, %v192_v22 }
  0x23   :  { %v528_v29 = vor.u32 %v526_v17, %v525_v12  ;;  %v574_v33 = vsel %vm3105_vm6, %v514_v23, %v573_v8  ;;  %v577_v34 = vsel %vm3105_vm6, %v521_v24, %v576_v13  ;;  %253 = vst [vmem:[#allocation2 + $0x1c] sm:$0x7] %v252_v11  ;;  %256 = vst [vmem:[#allocation2 + $0x20] sm:$0x7] %v255_v30  ;;  %vm954_vm7 = vsmask.f32 1280 }
  0x24   :  { %2717 = vmatmul.mubr.msk.bf16.vlgmr.msra.gmra.mxu0 %vm697_vm4, %v672_v28  ;;  %575 = vst [vmem:[#allocation2 + $0x4] sm:$0x7] %v574_v33  ;;  %578 = vst [vmem:[#allocation2 + $0x8] sm:$0x7] %v577_v34  ;;  %v2648_v38 = vpack.c.bf16 %v193_v26, %v193_v26  ;;  %v537_v41 = vshrl.u32 %v2646_v35, 16  ;;  %v540_v42 = vshll.u32 %v2646_v35, 16 }
  0x25   :  { %v580_v37 = vsel %vm3105_vm6, %v528_v29, %v579_v20  ;;  %v2508_v40 = vld.sshfl [vmem:[#allocation2] sm:$0x13 pattern:$0x76325410]  ;;  %2733 = vmatpush3.bf16.msra.mxu0 %v3000_v32  ;;  %v544_v43 = vshrl.u32 %v2647_v36, 16  ;;  %v547_v44 = vshll.u32 %v2647_v36, 16 }
  0x26   :  { %581 = vst [vmem:[#allocation2 + $0xc] sm:$0x7] %v580_v37  ;;  %2734 = vmatprep.subr.bf16.mxu0 %v2830_v15  ;;  %v551_v45 = vshrl.u32 %v2648_v38, 16  ;;  %v554_v46 = vshll.u32 %v2648_v38, 16  ;;  %v897_v47 = vcombine.high %v2508_v40, %v2508_v40  ;;  %vm955_vm8 = vsmask.f32 3336 }
  0x27   :  { %v539_v48 = vrot.slane %v537_v41, 7  ;;  %v546_v49 = vrot.slane %v544_v43, 7  ;;  %vm957_vm9 = vsmask.f32 5392  ;;  %vm959_vm10 = vsmask.f32 7448  ;;  %vm3133_vm11 = vmor %vm954_vm7, %vm955_vm8 }
  0x28   :  { %v553_v50 = vrot.slane %v551_v45, 7  ;;  %v962_v32 = vshrl.u32 %v2508_v40, 16  ;;  %v965_v52 = vshll.u32 %v2508_v40, 16  ;;  %v971_v53 = vshll.u32 %v897_v47, 16  ;;  %v3148_v8 = vld [vmem:[%s3572_s1 + $0x98] sm:$0xff]   ;;  %vm958_vm12 = vmor %vm3133_vm11, %vm957_vm9 }
  0x29   :  { %2735 = vmatpush3.bf16.msra.mxu0 %v2830_v15  ;;  %v542_v54 = vor.u32 %v540_v42, %v539_v48  ;;  %v549_v55 = vor.u32 %v547_v44, %v546_v49  ;;  %v585_v56 = vld [vmem:[#allocation2 + $0x18] sm:$0x7]  ;;  %v3129_v57 = vld.sshfl [vmem:[#allocation2 + $0x14] sm:$0x13 pattern:$0x76325410]  ;;  %vm3158_vm13 = vmor %vm958_vm12, %vm959_vm10 }
  0x2a   :  { %v556_v58 = vor.u32 %v554_v46, %v553_v50  ;;  %v588_v59 = vld [vmem:[#allocation2 + $0x1c] sm:$0x7]  ;;  %v591_v60 = vld [vmem:[#allocation2 + $0x20] sm:$0x7]  ;;  %2736 = vmatprep.subr.bf16.mxu0 %v2836_v39  ;;  %v964_v62 = vrot.slane %v962_v32, 6  ;;  %v967_v63 = vrot.slane %v965_v52, 7  ;;  %v929_v0 = vcombine.high %v3129_v57, %v3129_v57 }
  0x2b   :  { %v2883_v1 = vld.sshfl [vmem:[#allocation2] sm:$0xf pattern:$0x76325410]  ;;  %v586_v2 = vsel %vm3105_vm6, %v542_v54, %v585_v56  ;;  %v589_v3 = vsel %vm3105_vm6, %v549_v55, %v588_v59  ;;  %v973_v7 = vrot.slane %v971_v53, 7  ;;  %v1018_v10 = vshrl.u32 %v3129_v57, 16 }
  0x2c   :  { %587 = vst [vmem:[#allocation2 + $0x18] sm:$0x7] %v586_v2  ;;  %590 = vst [vmem:[#allocation2 + $0x1c] sm:$0x7] %v589_v3  ;;  %v592_v5 = vsel %vm3105_vm6, %v556_v58, %v591_v60  ;;  %v968_v6 = vor.u32 %v967_v63, %v964_v62  ;;  %v1021_v12 = vshll.u32 %v3129_v57, 16  ;;  %v3155_v20 = vshll.u32 %v929_v0, 16 }
  0x2d   :  { %v2884_v4 = vld.sshfl [vmem:[#allocation2 + $0x8] sm:$0xf pattern:$0x76325410]  ;;  %593 = vst [vmem:[#allocation2 + $0x20] sm:$0x7] %v592_v5  ;;  %2737 = vmatpush3.bf16.msra.mxu0 %v2836_v39 }
  0x2e   :  { %v2509_v9 = vld.sshfl [vmem:[#allocation2 + $0x4] sm:$0x13 pattern:$0x76325410]  ;;  %2738 = vmatprep.subr.bf16.mxu0 %v2838_v51  ;;  %v777_v26 = vcombine.low %v2883_v1, %v2884_v4  ;;  %v969_v28 = vrot.slane %v968_v6, 2  ;;  %v1020_v57 = vrot.slane %v1018_v10, 6 }
  0x2f   :  { %v2510_v13 = vld.sshfl [vmem:[#allocation2 + $0x8] sm:$0x13 pattern:$0x76325410]  ;;  %v905_v15 = vcombine.high %v2509_v9, %v2509_v9  ;;  %v976_v17 = vshrl.u32 %v2509_v9, 16  ;;  %v979_v23 = vshll.u32 %v2509_v9, 16 }
  0x30   :  { %v2511_v21 = vld.sshfl [vmem:[#allocation2 + $0xc] sm:$0x13 pattern:$0x76325410]  ;;  %v913_v22 = vcombine.high %v2510_v13, %v2510_v13  ;;  %v990_v24 = vshrl.u32 %v2510_v13, 16  ;;  %v993_v35 = vshll.u32 %v2510_v13, 16  ;;  %2728 = vmatprep.mubr.msk.bf16.mxu1 %vm697_vm4, %v777_v26  ;;  %v974_v44 = vsel %vm3158_vm13, %v969_v28, %v973_v7 }
  0x31   :  { %v921_v27 = vcombine.high %v2511_v21, %v2511_v21  ;;  %v978_v29 = vrot.slane %v976_v17, 6  ;;  %2739 = vmatpush3.bf16.msra.mxu0 %v2838_v51  ;;  %v981_v30 = vrot.slane %v979_v23, 7  ;;  %v985_v33 = vshll.u32 %v905_v15, 16  ;;  %v3167_v40 = vld [vmem:[%s3573_s0 + $0x10] sm:$0x3]  ;;  %v2839_v17 = vld [vmem:[%s3572_s1 + $0x68] sm:$0xff]  }
  0x32   :  { %v992_v34 = vrot.slane %v990_v24, 6  ;;  %v999_v36 = vshll.u32 %v913_v22, 16  ;;  %v1004_v37 = vshrl.u32 %v2511_v21, 16  ;;  %v1007_v38 = vshll.u32 %v2511_v21, 16  ;;  %2756 = vmatprep.subr.bf16.mxu0 %v3148_v8  ;;  %v2837_v60 = vld [vmem:[%s3572_s1 + $0x70] sm:$0xff]  }
  0x33   :  { %v1013_v39 = vshll.u32 %v921_v27, 16  ;;  %v2885_v41 = vld.sshfl [vmem:[#allocation2 + $0x14] sm:$0xf pattern:$0x76325410]  ;;  %v982_v42 = vor.u32 %v981_v30, %v978_v29  ;;  %v987_v45 = vrot.slane %v985_v33, 7  ;;  %v61_v47 = vunpack.c.l.bf16 %v3167_v40 }
  0x34   :  { %v2886_v43 = vld.sshfl [vmem:[#allocation2 + $0x1c] sm:$0xf pattern:$0x76325410]  ;;  %v995_v46 = vrot.slane %v993_v35, 7  ;;  %v1001_v49 = vrot.slane %v999_v36, 7 }
  0x35   :  { %v983_v48 = vrot.slane %v982_v42, 2  ;;  %v1006_v50 = vrot.slane %v1004_v37, 6  ;;  %v1009_v32 = vrot.slane %v1007_v38, 7  ;;  %v1015_v52 = vrot.slane %v1013_v39, 7  ;;  %v30_v28 = vld [vmem:[%s3573_s0 + $0x12] sm:$0x3] }
  0x36   :  { %v996_v51 = vor.u32 %v995_v46, %v992_v34  ;;  %v2513_v53 = vld.sshfl [vmem:[#allocation2 + $0x18] sm:$0x13 pattern:$0x76325410]  ;;  %v1023_v58 = vrot.slane %v1021_v12, 7  ;;  %v794_v59 = vcombine.low %v2885_v41, %v2886_v43  ;;  %v1029_v4 = vrot.slane %v3155_v20, 7 }
  0x37   :  { %v988_v54 = vsel %vm3158_vm13, %v983_v48, %v987_v45  ;;  %v2514_v55 = vld.sshfl [vmem:[#allocation2 + $0x1c] sm:$0x13 pattern:$0x76325410]  ;;  %v937_v56 = vcombine.high %v2513_v53, %v2513_v53  ;;  %v1010_v62 = vor.u32 %v1009_v32, %v1006_v50  ;;  %v1032_v9 = vshrl.u32 %v2513_v53, 16 }
  0x38   :  { %v997_v61 = vrot.slane %v996_v51, 2  ;;  %v1082_v63 = vcombine.low %v974_v44, %v988_v54  ;;  %v2515_v0 = vld.sshfl [vmem:[#allocation2 + $0x20] sm:$0x13 pattern:$0x76325410]  ;;  %v945_v1 = vcombine.high %v2514_v55, %v2514_v55  ;;  %v1024_v3 = vor.u32 %v1023_v58, %v1020_v57  ;;  %2729 = vmatmul.mubr.msk.bf16.vlgmr.msra.gmra.mxu1 %vm697_vm4, %v794_v59  ;;  %v3216_v40 = vld [vmem:[%s3572_s1 + $0xb8] sm:$0xff]  }
  0x39   :  { %v953_v2 = vcombine.high %v2515_v0, %v2515_v0  ;;  %v1011_v6 = vrot.slane %v1010_v62, 2  ;;  %2745 = vmatpush3.bf16.msra.mxu1 %v3071_v31  ;;  %v1035_v12 = vshll.u32 %v2513_v53, 16  ;;  %v1041_v13 = vshll.u32 %v937_v56, 16  ;;  %v31_v29 = vld [vmem:[%s3573_s0 + $0x14] sm:$0x3]  ;;  %v2841_v44 = vld [vmem:[%s3572_s1 + $0x60] sm:$0xff]  }
  0x3a   :  { %v1002_v5 = vsel %vm3158_vm13, %v997_v61, %v1001_v49  ;;  %v1090_v7 = vrot.slane %v1082_v63, %v3057_v14  ;;  %v1025_v10 = vrot.slane %v1024_v3, 2  ;;  %v1046_v15 = vshrl.u32 %v2514_v55, 16  ;;  %2746 = vmatprep.subr.bf16.mxu1 %v2837_v60  ;;  %v32_v41 = vld [vmem:[%s3573_s0 + $0x16] sm:$0x3]  ;;  %v290_v48 = vld [vmem:[#allocation2 + $0x50] sm:$0x7] }
  0x3b   :  { %v1016_v20 = vsel %vm3158_vm13, %v1011_v6, %v1015_v52  ;;  %v1034_v21 = vrot.slane %v1032_v9, 6  ;;  %v1049_v22 = vshll.u32 %v2514_v55, 16  ;;  %v1055_v23 = vshll.u32 %v945_v1, 16  ;;  %v293_v49 = vld [vmem:[#allocation2 + $0x54] sm:$0x7] }
  0x3c   :  { %v1083_v24 = vcombine.low %v1002_v5, %v1016_v20  ;;  %v1030_v26 = vsel %vm3158_vm13, %v1025_v10, %v1029_v4  ;;  %v1037_v31 = vrot.slane %v1035_v12, 7  ;;  %v1043_v27 = vrot.slane %v1041_v13, 7  ;;  %v296_v53 = vld [vmem:[#allocation2 + $0x58] sm:$0x7]  ;;  %v299_v58 = vld [vmem:[#allocation2 + $0x5c] sm:$0x7] }
  0x3d   :  { %v1048_v30 = vrot.slane %v1046_v15, 6  ;;  %v1051_v33 = vrot.slane %v1049_v22, 7  ;;  %v1057_v34 = vrot.slane %v1055_v23, 7  ;;  %v1060_v35 = vshrl.u32 %v2515_v0, 16  ;;  %2747 = vmatpush3.bf16.msra.mxu1 %v2837_v60  ;;  %v33_v6 = vld [vmem:[%s3573_s0 + $0x18] sm:$0x3] }
  0x3e   :  { %v1097_v36 = vrot.slane %v1083_v24, %v3057_v14  ;;  %v1038_v37 = vor.u32 %v1037_v31, %v1034_v21  ;;  %v1063_v38 = vshll.u32 %v2515_v0, 16  ;;  %v1069_v39 = vshll.u32 %v953_v2, 16  ;;  %2748 = vmatprep.subr.bf16.mxu1 %v2839_v17  ;;  %v34_v13 = vld [vmem:[%s3573_s0 + $0x1a] sm:$0x3]  ;;  %v35_v15 = vld [vmem:[%s3573_s0 + $0x1c] sm:$0x3] }
  0x3f   :  { %v1052_v42 = vor.u32 %v1051_v33, %v1048_v30  ;;  %v1062_v43 = vrot.slane %v1060_v35, 6  ;;  %v62_v45 = vunpack.c.l.bf16 %v30_v28  ;;  %v63_v46 = vunpack.c.l.bf16 %v31_v29 }
  0x40   :  { %v1098_v50 = vcombine.low %v1090_v7, %v1097_v36  ;;  %v1039_v51 = vrot.slane %v1038_v37, 2  ;;  %v1065_v32 = vrot.slane %v1063_v38, 7  ;;  %v1071_v52 = vrot.slane %v1069_v39, 7  ;;  %v36_v37 = vld [vmem:[%s3573_s0 + $0x1e] sm:$0x3] }
  0x41   :  { %v1053_v54 = vrot.slane %v1052_v42, 2  ;;  %v64_v55 = vunpack.c.l.bf16 %v32_v41  ;;  %v100_v56 = vmul.f32 %v2976_v18, %v61_v47  ;;  %v101_v57 = vmul.f32 %v2976_v18, %v62_v45  ;;  %2749 = vmatpush3.bf16.msra.mxu1 %v2839_v17 }
  0x42   :  { %2740 = vmatprep.mubr.msk.bf16.mxu0 %vm697_vm4, %v1098_v50  ;;  %v1044_v59 = vsel %vm3158_vm13, %v1039_v51, %v1043_v27  ;;  %v1066_v60 = vor.u32 %v1065_v32, %v1062_v43  ;;  %v102_v61 = vmul.f32 %v2976_v18, %v63_v46  ;;  %v291_v62 = vsel %vm2986_vm3, 0, %v290_v48  ;;  %2750 = vmatprep.subr.bf16.mxu1 %v2841_v44 }
  0x43   :  { %v1058_v47 = vsel %vm3158_vm13, %v1053_v54, %v1057_v34  ;;  %v1099_v63 = vcombine.low %v1030_v26, %v1044_v59  ;;  %v103_v0 = vmul.f32 %v2976_v18, %v64_v55  ;;  %v139_v1 = vadd.f32 %v2981_v19, %v100_v56  ;;  %292 = vst [vmem:[#allocation2 + $0x50] sm:$0x7] %v291_v62  ;;  %v2848_v62 = vld [vmem:[%s3572_s1 + $0x88] sm:$0xff]  }
  0x44   :  { %v1067_v2 = vrot.slane %v1066_v60, 2  ;;  %v140_v3 = vadd.f32 %v2981_v19, %v101_v57  ;;  %v141_v4 = vadd.f32 %v2981_v19, %v102_v61  ;;  %v294_v5 = vsel %vm2986_vm3, 0, %v293_v49  ;;  %v308_v60 = vld [vmem:[#allocation2 + $0x68] sm:$0x7]  ;;  %v311_v61 = vld [vmem:[#allocation2 + $0x6c] sm:$0x7] }
  0x45   :  { %v1107_v7 = vrot.slane %v1099_v63, %v3057_v14  ;;  %v142_v9 = vadd.f32 %v2981_v19, %v103_v0  ;;  %v171_v10 = vmax.f32 %v139_v1, 0.0  ;;  %295 = vst [vmem:[#allocation2 + $0x54] sm:$0x7] %v294_v5  ;;  %v297_v12 = vsel %vm2986_vm3, 0, %v296_v53  ;;  %2751 = vmatpush3.bf16.msra.mxu1 %v2841_v44  ;;  %v2842_v44 = vld [vmem:[%s3572_s1 + $0x90] sm:$0xff]  }
  0x46   :  { %v1072_v17 = vsel %vm3158_vm13, %v1067_v2, %v1071_v52  ;;  %v172_v20 = vmax.f32 %v140_v3, 0.0  ;;  %v173_v21 = vmax.f32 %v141_v4, 0.0  ;;  %298 = vst [vmem:[#allocation2 + $0x58] sm:$0x7] %v297_v12  ;;  %v300_v22 = vsel %vm2986_vm3, 0, %v299_v58  ;;  %2768 = vmatprep.subr.bf16.mxu1 %v3216_v40 }
  0x47   :  { %v1100_v23 = vcombine.low %v1058_v47, %v1072_v17  ;;  %v174_v24 = vmax.f32 %v142_v9, 0.0  ;;  %301 = vst [vmem:[#allocation2 + $0x5c] sm:$0x7] %v300_v22  ;;  %v2634_v26 = vpack.c.bf16 %v171_v10, %v171_v10  ;;  %v65_v31 = vunpack.c.l.bf16 %v33_v6  ;;  %v305_v53 = vld [vmem:[#allocation2 + $0x64] sm:$0x7] }
  0x48   :  { %v2635_v27 = vpack.c.bf16 %v172_v20, %v172_v20  ;;  %v2636_v28 = vpack.c.bf16 %v173_v21, %v173_v21  ;;  %v66_v29 = vunpack.c.l.bf16 %v34_v13  ;;  %v67_v30 = vunpack.c.l.bf16 %v35_v15  ;;  %v314_v3 = vld [vmem:[#allocation2 + $0x70] sm:$0x7]  ;;  %v21_v4 = vld [vmem:[%s3573_s0] sm:$0x3]  ;;  %v23_v9 = vld [vmem:[%s3573_s0 + $0x4] sm:$0x3] }
  0x49   :  { %v1114_v33 = vrot.slane %v1100_v23, %v3057_v14  ;;  %v2637_v34 = vpack.c.bf16 %v174_v24, %v174_v24  ;;  %v385_v35 = vshrl.u32 %v2634_v26, 16  ;;  %v388_v36 = vshll.u32 %v2634_v26, 16  ;;  %v24_v10 = vld [vmem:[%s3573_s0 + $0x6] sm:$0x3] }
  0x4a   :  { %v392_v38 = vshrl.u32 %v2635_v27, 16  ;;  %v395_v39 = vshll.u32 %v2635_v27, 16  ;;  %v399_v41 = vshrl.u32 %v2636_v28, 16  ;;  %v402_v42 = vshll.u32 %v2636_v28, 16  ;;  %v451_v51 = vld [vmem:[#allocation2 + $0x50] sm:$0x7] }
  0x4b   :  { %v1115_v43 = vcombine.low %v1107_v7, %v1114_v33  ;;  %v387_v45 = vrot.slane %v385_v35, 7  ;;  %v406_v46 = vshrl.u32 %v2637_v34, 16  ;;  %v409_v48 = vshll.u32 %v2637_v34, 16  ;;  %v2850_v24 = vld [vmem:[%s3572_s1 + $0x80] sm:$0xff]   ;;  %v3298_v34 = vld [vmem:[%s3573_s0 + $0x8] sm:$0x3] }
  0x4c   :  { %v394_v49 = vrot.slane %v392_v38, 7  ;;  %v401_v50 = vrot.slane %v399_v41, 7  ;;  %v68_v32 = vunpack.c.l.bf16 %v36_v37  ;;  %v104_v52 = vmul.f32 %v2976_v18, %v65_v31  ;;  %v454_v56 = vld [vmem:[#allocation2 + $0x54] sm:$0x7]  ;;  %v3303_v35 = vld [vmem:[%s3573_s0 + $0xa] sm:$0x3] }
  0x4d   :  { %2741 = vmatmul.mubr.msk.bf16.vlgmr.msra.gmra.mxu0 %vm697_vm4, %v1115_v43  ;;  %v390_v54 = vor.u32 %v388_v36, %v387_v45  ;;  %v408_v55 = vrot.slane %v406_v46, 7  ;;  %v457_v57 = vld [vmem:[#allocation2 + $0x58] sm:$0x7]  ;;  %v105_v58 = vmul.f32 %v2976_v18, %v66_v29  ;;  %v106_v59 = vmul.f32 %v2976_v18, %v67_v30 }
  0x4e   :  { %2757 = vmatpush3.bf16.msra.mxu0 %v3148_v8  ;;  %v397_v47 = vor.u32 %v395_v39, %v394_v49  ;;  %v404_v63 = vor.u32 %v402_v42, %v401_v50  ;;  %v460_v0 = vld [vmem:[#allocation2 + $0x5c] sm:$0x7]  ;;  %v107_v1 = vmul.f32 %v2976_v18, %v68_v32  ;;  %v143_v2 = vadd.f32 %v2981_v19, %v104_v52  ;;  %v22_v18 = vld [vmem:[%s3573_s0 + $0x2] sm:$0x3]  ;;  %v3313_v52 = vld [vmem:[%s3574_s2] ss:$0 sm:$0xff] }
  0x4f   :  { %2758 = vmatprep.subr.bf16.mxu0 %v2842_v44  ;;  %v411_v5 = vor.u32 %v409_v48, %v408_v55  ;;  %v452_v6 = vsel %vm3105_vm6, %v390_v54, %v451_v51  ;;  %v144_v7 = vadd.f32 %v2981_v19, %v105_v58  ;;  %v145_v8 = vadd.f32 %v2981_v19, %v106_v59  ;;  %v3308_v45 = vld [vmem:[%s3572_s1 + $0xd8] sm:$0xff]  }
  0x50   :  { %453 = vst [vmem:[#allocation2 + $0x50] sm:$0x7] %v452_v6  ;;  %v455_v12 = vsel %vm3105_vm6, %v397_v47, %v454_v56  ;;  %v458_v13 = vsel %vm3105_vm6, %v404_v63, %v457_v57  ;;  %v146_v15 = vadd.f32 %v2981_v19, %v107_v1  ;;  %v175_v17 = vmax.f32 %v143_v2, 0.0 }
  0x51   :  { %456 = vst [vmem:[#allocation2 + $0x54] sm:$0x7] %v455_v12  ;;  %459 = vst [vmem:[#allocation2 + $0x58] sm:$0x7] %v458_v13  ;;  %v461_v20 = vsel %vm3105_vm6, %v411_v5, %v460_v0  ;;  %v176_v21 = vmax.f32 %v144_v7, 0.0  ;;  %v177_v22 = vmax.f32 %v145_v8, 0.0  ;;  %v53_v33 = vunpack.c.l.bf16 %v21_v4 }
  0x52   :  { %v306_v23 = vsel %vm2986_vm3, 0, %v305_v53  ;;  %2759 = vmatpush3.bf16.msra.mxu0 %v2842_v44  ;;  %462 = vst [vmem:[#allocation2 + $0x5c] sm:$0x7] %v461_v20  ;;  %v178_v26 = vmax.f32 %v146_v15, 0.0  ;;  %v309_v19 = vsel %vm2986_vm3, 0, %v308_v60  ;;  %v312_v31 = vsel %vm2986_vm3, 0, %v311_v61 }
  0x53   :  { %307 = vst [vmem:[#allocation2 + $0x64] sm:$0x7] %v306_v23  ;;  %v315_v27 = vsel %vm2986_vm3, 0, %v314_v3  ;;  %310 = vst [vmem:[#allocation2 + $0x68] sm:$0x7] %v309_v19  ;;  %v2638_v28 = vpack.c.bf16 %v175_v17, %v175_v17  ;;  %v2639_v29 = vpack.c.bf16 %v176_v21, %v176_v21  ;;  %v2640_v30 = vpack.c.bf16 %v177_v22, %v177_v22 }
  0x54   :  { %313 = vst [vmem:[#allocation2 + $0x6c] sm:$0x7] %v312_v31  ;;  %316 = vst [vmem:[#allocation2 + $0x70] sm:$0x7] %v315_v27  ;;  %2760 = vmatprep.subr.bf16.mxu0 %v2848_v62  ;;  %v2641_v36 = vpack.c.bf16 %v178_v26, %v178_v26  ;;  %v54_v37 = vunpack.c.l.bf16 %v22_v18  ;;  %v55_v38 = vunpack.c.l.bf16 %v23_v9  ;;  %v56_v39 = vunpack.c.l.bf16 %v24_v10  ;;  %v320_v0 = vld [vmem:[#allocation2 + $0x78] sm:$0x7] }
  0x55   :  { %v413_v41 = vshrl.u32 %v2638_v28, 16  ;;  %v416_v42 = vshll.u32 %v2638_v28, 16  ;;  %v420_v43 = vshrl.u32 %v2639_v29, 16  ;;  %v423_v44 = vshll.u32 %v2639_v29, 16  ;;  %v3324_v4 = vld [vmem:[%s3575_s3] ss:$0 sm:$0xff] }
  0x56   :  { %v427_v46 = vshrl.u32 %v2640_v30, 16  ;;  %v430_v48 = vshll.u32 %v2640_v30, 16  ;;  %v434_v49 = vshrl.u32 %v2641_v36, 16  ;;  %v437_v50 = vshll.u32 %v2641_v36, 16  ;;  %2761 = vmatpush3.bf16.msra.mxu0 %v2848_v62  ;;  %v323_v12 = vld [vmem:[#allocation2 + $0x7c] sm:$0x7] }
  0x57   :  { %v415_v51 = vrot.slane %v413_v41, 7  ;;  %v422_v32 = vrot.slane %v420_v43, 7  ;;  %2762 = vmatprep.subr.bf16.mxu0 %v2850_v24  ;;  %v92_v53 = vmul.f32 %v3313_v52, %v53_v33  ;;  %v93_v54 = vmul.f32 %v3313_v52, %v54_v37  ;;  %v326_v13 = vld [vmem:[#allocation2 + $0x80] sm:$0x7]  ;;  %v329_v22 = vld [vmem:[#allocation2 + $0x84] sm:$0x7] }
  0x58   :  { %v2887_v55 = vld.sshfl [vmem:[#allocation2 + $0x50] sm:$0xf pattern:$0x76325410]  ;;  %v94_v56 = vmul.f32 %v3313_v52, %v55_v38  ;;  %v95_v57 = vmul.f32 %v3313_v52, %v56_v39  ;;  %v57_v58 = vunpack.c.l.bf16 %v3298_v34  ;;  %v58_v59 = vunpack.c.l.bf16 %v3303_v35  ;;  %v27_v23 = vld [vmem:[%s3573_s0 + $0xc] sm:$0x3] }
  0x59   :  { %v2888_v60 = vld.sshfl [vmem:[#allocation2 + $0x58] sm:$0xf pattern:$0x76325410]  ;;  %v418_v61 = vor.u32 %v416_v42, %v415_v51  ;;  %v425_v62 = vor.u32 %v423_v44, %v422_v32  ;;  %v429_v47 = vrot.slane %v427_v46, 7  ;;  %v436_v63 = vrot.slane %v434_v49, 7 }
  0x5a   :  { %v463_v1 = vld [vmem:[#allocation2 + $0x64] sm:$0x7]  ;;  %v466_v2 = vld [vmem:[#allocation2 + $0x68] sm:$0x7]  ;;  %2763 = vmatpush3.bf16.msra.mxu0 %v2850_v24  ;;  %v131_v5 = vadd.f32 %v3324_v4, %v92_v53  ;;  %v132_v6 = vadd.f32 %v3324_v4, %v93_v54  ;;  %v133_v7 = vadd.f32 %v3324_v4, %v94_v56  ;;  %v134_v17 = vadd.f32 %v3324_v4, %v95_v57  ;;  %v28_v27 = vld [vmem:[%s3573_s0 + $0xe] sm:$0x3] }
  0x5b   :  { %v469_v3 = vld [vmem:[#allocation2 + $0x6c] sm:$0x7]  ;;  %v432_v8 = vor.u32 %v430_v48, %v429_v47  ;;  %v439_v18 = vor.u32 %v437_v50, %v436_v63  ;;  %v464_v9 = vsel %vm3105_vm6, %v418_v61, %v463_v1  ;;  %v472_v10 = vld [vmem:[#allocation2 + $0x70] sm:$0x7]  ;;  %2780 = vmatprep.subr.bf16.mxu0 %v3308_v45  ;;  %v467_v15 = vsel %vm3105_vm6, %v425_v62, %v466_v2  ;;  %v341_v36 = vld [vmem:[#allocation2 + $0x94] sm:$0x7] }
  0x5c   :  { %465 = vst [vmem:[#allocation2 + $0x64] sm:$0x7] %v464_v9  ;;  %v163_v20 = vmax.f32 %v131_v5, 0.0  ;;  %v164_v21 = vmax.f32 %v132_v6, 0.0  ;;  %v1240_v24 = vcombine.low %v2887_v55, %v2888_v60  ;;  %468 = vst [vmem:[#allocation2 + $0x68] sm:$0x7] %v467_v15  ;;  %v59_v44 = vunpack.c.l.bf16 %v27_v23 }
  0x5d   :  { %v470_v26 = vsel %vm3105_vm6, %v432_v8, %v469_v3  ;;  %v473_v19 = vsel %vm3105_vm6, %v439_v18, %v472_v10  ;;  %v165_v31 = vmax.f32 %v133_v7, 0.0  ;;  %v335_v28 = vld [vmem:[#allocation2 + $0x8c] sm:$0x7]  ;;  %v166_v29 = vmax.f32 %v134_v17, 0.0  ;;  %v338_v35 = vld [vmem:[#allocation2 + $0x90] sm:$0x7] }
  0x5e   :  { %471 = vst [vmem:[#allocation2 + $0x6c] sm:$0x7] %v470_v26  ;;  %474 = vst [vmem:[#allocation2 + $0x70] sm:$0x7] %v473_v19  ;;  %v195_v30 = vpack.c.bf16 %v163_v20, %v163_v20  ;;  %v196_v33 = vpack.c.bf16 %v164_v21, %v164_v21  ;;  %v321_v34 = vsel %vm2986_vm3, 0, %v320_v0  ;;  %2752 = vmatprep.mubr.msk.bf16.mxu1 %vm697_vm4, %v1240_v24  ;;  %v324_v38 = vsel %vm2986_vm3, 0, %v323_v12 }
  0x5f   :  { %v197_v37 = vpack.c.bf16 %v165_v31, %v165_v31  ;;  %322 = vst [vmem:[#allocation2 + $0x78] sm:$0x7] %v321_v34  ;;  %v327_v39 = vsel %vm2986_vm3, 0, %v326_v13  ;;  %v330_v41 = vsel %vm2986_vm3, 0, %v329_v22  ;;  %v344_v42 = vld [vmem:[#allocation2 + $0x98] sm:$0x7]  ;;  %v198_v43 = vpack.c.bf16 %v166_v29, %v166_v29 }
  0x60   :  { %325 = vst [vmem:[#allocation2 + $0x7c] sm:$0x7] %v324_v38  ;;  %328 = vst [vmem:[#allocation2 + $0x80] sm:$0x7] %v327_v39  ;;  %v60_v46 = vunpack.c.l.bf16 %v28_v27  ;;  %v96_v48 = vmul.f32 %v3313_v52, %v57_v58  ;;  %v97_v49 = vmul.f32 %v3313_v52, %v58_v59  ;;  %v336_v50 = vsel %vm2986_vm3, 0, %v335_v28  ;;  %v2849_v12 = vld [vmem:[%s3572_s1 + $0xb0] sm:$0xff]  }
  0x61   :  { %331 = vst [vmem:[#allocation2 + $0x84] sm:$0x7] %v330_v41  ;;  %352 = vst.msk [vmem:[#allocation2 + $0x78] sm:$0x3] %vm351_vm1, %v195_v30  ;;  %v339_v51 = vsel %vm2986_vm3, 0, %v338_v35  ;;  %v342_v32 = vsel %vm2986_vm3, 0, %v341_v36  ;;  %v98_v54 = vmul.f32 %v3313_v52, %v59_v44 }
  0x62   :  { %353 = vst.msk [vmem:[#allocation2 + $0x7c] sm:$0x3] %vm351_vm1, %v196_v33  ;;  %354 = vst.msk [vmem:[#allocation2 + $0x80] sm:$0x3] %vm351_vm1, %v197_v37  ;;  %v99_v55 = vmul.f32 %v3313_v52, %v60_v46  ;;  %v135_v56 = vadd.f32 %v3324_v4, %v96_v48  ;;  %v345_v57 = vsel %vm2986_vm3, 0, %v344_v42  ;;  %v136_v61 = vadd.f32 %v3324_v4, %v97_v49  ;;  %v2853_v44 = vld [vmem:[%s3572_s1 + $0xa8] sm:$0xff]  }
  0x63   :  { %v2558_v53 = vld.sshfl [vmem:[#allocation2 + $0x50] sm:$0x13 pattern:$0x76325410]  ;;  %355 = vst.msk [vmem:[#allocation2 + $0x84] sm:$0x3] %vm351_vm1, %v198_v43  ;;  %v137_v63 = vadd.f32 %v3324_v4, %v98_v54 }
  0x64   :  { %337 = vst [vmem:[#allocation2 + $0x8c] sm:$0x7] %v336_v50  ;;  %340 = vst [vmem:[#allocation2 + $0x90] sm:$0x7] %v339_v51  ;;  %v48_v60 = vld [vmem:[%s3573_s0 + $0x36] sm:$0x3]  ;;  %v138_v0 = vadd.f32 %v3324_v4, %v99_v55  ;;  %v1506_v2 = vcombine.high %v2558_v53, %v2558_v53 }
  0x65   :  { %343 = vst [vmem:[#allocation2 + $0x94] sm:$0x7] %v342_v32  ;;  %v2559_v58 = vld.sshfl [vmem:[#allocation2 + $0x54] sm:$0x13 pattern:$0x76325410]  ;;  %v80_v8 = vunpack.c.l.bf16 %v48_v60 }
  0x66   :  { %v2560_v59 = vld.sshfl [vmem:[#allocation2 + $0x58] sm:$0x13 pattern:$0x76325410]  ;;  %346 = vst [vmem:[#allocation2 + $0x98] sm:$0x7] %v345_v57  ;;  %v1514_v5 = vcombine.high %v2559_v58, %v2559_v58 }
  0x67   :  { %v3375_v62 = vld.sshfl [vmem:[#allocation2 + $0x5c] sm:$0x13 pattern:$0x76325410]  ;;  %v167_v1 = vmax.f32 %v135_v56, 0.0  ;;  %v1522_v6 = vcombine.high %v2560_v59, %v2560_v59  ;;  %v168_v18 = vmax.f32 %v136_v61, 0.0  ;;  %v119_v26 = vmul.f32 %v3313_v52, %v80_v8 }
  0x68   :  { %v2889_v47 = vld.sshfl [vmem:[#allocation2 + $0x64] sm:$0xf pattern:$0x76325410]  ;;  %v1530_v7 = vcombine.high %v3375_v62, %v3375_v62  ;;  %v169_v9 = vmax.f32 %v137_v63, 0.0  ;;  %v170_v10 = vmax.f32 %v138_v0, 0.0 }
  0x69   :  { %v2890_v3 = vld.sshfl [vmem:[#allocation2 + $0x6c] sm:$0xf pattern:$0x76325410]  ;;  %v199_v13 = vpack.c.bf16 %v167_v1, %v167_v1  ;;  %v1564_v15 = vshrl.u32 %v2558_v53, 16  ;;  %v1567_v17 = vshll.u32 %v2558_v53, 16  ;;  %v200_v22 = vpack.c.bf16 %v168_v18, %v168_v18 }
  0x6a   :  { %v52_v20 = vld [vmem:[%s3573_s0 + $0x3e] sm:$0x3]  ;;  %v2891_v21 = vld.sshfl [vmem:[#allocation2 + $0x78] sm:$0xf pattern:$0x76325410]  ;;  %v201_v23 = vpack.c.bf16 %v169_v9, %v169_v9  ;;  %v202_v24 = vpack.c.bf16 %v170_v10, %v170_v10  ;;  %v1257_v19 = vcombine.low %v2889_v47, %v2890_v3  ;;  %v3409_v18 = vadd.f32 %v3324_v4, %v119_v26 }
  0x6b   :  { %v2892_v31 = vld.sshfl [vmem:[#allocation2 + $0x80] sm:$0xf pattern:$0x76325410]  ;;  %356 = vst.msk [vmem:[#allocation2 + $0x8c] sm:$0x3] %vm351_vm1, %v199_v13  ;;  %v84_v29 = vunpack.c.l.bf16 %v52_v20 }
  0x6c   :  { %v1566_v27 = vrot.slane %v1564_v15, 6  ;;  %v1569_v28 = vrot.slane %v1567_v17, 7  ;;  %357 = vst.msk [vmem:[#allocation2 + $0x90] sm:$0x3] %vm351_vm1, %v200_v22  ;;  %358 = vst.msk [vmem:[#allocation2 + $0x94] sm:$0x3] %vm351_vm1, %v201_v23  ;;  %2753 = vmatmul.mubr.msk.bf16.vlgmr.msra.gmra.mxu1 %vm697_vm4, %v1257_v19  ;;  %v1382_v43 = vcombine.low %v2891_v21, %v2892_v31 }
  0x6d   :  { %359 = vst.msk [vmem:[#allocation2 + $0x98] sm:$0x3] %vm351_vm1, %v202_v24  ;;  %v1573_v30 = vshll.u32 %v1506_v2, 16  ;;  %v1578_v33 = vshrl.u32 %v2559_v58, 16  ;;  %v1581_v34 = vshll.u32 %v2559_v58, 16  ;;  %v1587_v36 = vshll.u32 %v1514_v5, 16  ;;  %2769 = vmatpush3.bf16.msra.mxu1 %v3216_v40 }
  0x6e   :  { %v1570_v35 = vor.u32 %v1569_v28, %v1566_v27  ;;  %v1592_v37 = vshrl.u32 %v2560_v59, 16  ;;  %v1595_v42 = vshll.u32 %v2560_v59, 16  ;;  %2770 = vmatprep.subr.bf16.mxu1 %v2849_v12  ;;  %v1601_v32 = vshll.u32 %v1522_v6, 16  ;;  %2764 = vmatprep.mubr.msk.bf16.mxu0 %vm697_vm4, %v1382_v43  ;;  %v2857_v59 = vld [vmem:[%s3572_s1 + $0xa0] sm:$0xff]   ;;  %v3419_v21 = vld [vmem:[%s3572_s1 + $0xf8] sm:$0xff]   ;;  %v2858_v31 = vld [vmem:[%s3572_s1 + $0xd0] sm:$0xff]  }
  0x6f   :  { %v1575_v38 = vrot.slane %v1573_v30, 7  ;;  %v1580_v39 = vrot.slane %v1578_v33, 6  ;;  %v1583_v41 = vrot.slane %v1581_v34, 7  ;;  %v1589_v48 = vrot.slane %v1587_v36, 7 }
  0x70   :  { %v1571_v46 = vrot.slane %v1570_v35, 2  ;;  %v1594_v49 = vrot.slane %v1592_v37, 6  ;;  %v1597_v51 = vrot.slane %v1595_v42, 7  ;;  %v1606_v53 = vshrl.u32 %v3375_v62, 16 }
  0x71   :  { %v1584_v50 = vor.u32 %v1583_v41, %v1580_v39  ;;  %v2562_v54 = vld.sshfl [vmem:[#allocation2 + $0x64] sm:$0x13 pattern:$0x76325410]  ;;  %v1609_v56 = vshll.u32 %v3375_v62, 16  ;;  %v1615_v57 = vshll.u32 %v1530_v7, 16  ;;  %2771 = vmatpush3.bf16.msra.mxu1 %v2849_v12  ;;  %v123_v3 = vmul.f32 %v3313_v52, %v84_v29 }
  0x72   :  { %v2563_v40 = vld.sshfl [vmem:[#allocation2 + $0x68] sm:$0x13 pattern:$0x76325410]  ;;  %v1576_v55 = vsel %vm3158_vm13, %v1571_v46, %v1575_v38  ;;  %v1598_v61 = vor.u32 %v1597_v51, %v1594_v49  ;;  %v1603_v47 = vrot.slane %v1601_v32, 7  ;;  %v1608_v63 = vrot.slane %v1606_v53, 6  ;;  %2772 = vmatprep.subr.bf16.mxu1 %v2853_v44 }
  0x73   :  { %v2564_v58 = vld.sshfl [vmem:[#allocation2 + $0x6c] sm:$0x13 pattern:$0x76325410]  ;;  %v1585_v60 = vrot.slane %v1584_v50, 2  ;;  %v1538_v0 = vcombine.high %v2562_v54, %v2562_v54  ;;  %v1546_v1 = vcombine.high %v2563_v40, %v2563_v40  ;;  %v1611_v8 = vrot.slane %v1609_v56, 7 }
  0x74   :  { %v1554_v2 = vcombine.high %v2564_v58, %v2564_v58  ;;  %v2893_v5 = vld.sshfl [vmem:[#allocation2 + $0x8c] sm:$0xf pattern:$0x76325410]  ;;  %v1599_v7 = vrot.slane %v1598_v61, 2  ;;  %v1617_v9 = vrot.slane %v1615_v57, 7  ;;  %v3412_v15 = vadd.f32 %v3324_v4, %v123_v3 }
  0x75   :  { %v2894_v6 = vld.sshfl [vmem:[#allocation2 + $0x94] sm:$0xf pattern:$0x76325410]  ;;  %v1590_v62 = vsel %vm3158_vm13, %v1585_v60, %v1589_v48  ;;  %v1620_v13 = vshrl.u32 %v2562_v54, 16  ;;  %2773 = vmatpush3.bf16.msra.mxu1 %v2853_v44  ;;  %v1612_v20 = vor.u32 %v1611_v8, %v1608_v63  ;;  %v1623_v26 = vshll.u32 %v2562_v54, 16 }
  0x76   :  { %v1684_v10 = vcombine.low %v1576_v55, %v1590_v62  ;;  %v2565_v12 = vld.sshfl [vmem:[#allocation2 + $0x70] sm:$0x13 pattern:$0x76325410]  ;;  %v1604_v17 = vsel %vm3158_vm13, %v1599_v7, %v1603_v47  ;;  %2774 = vmatprep.subr.bf16.mxu1 %v2857_v59  ;;  %v1399_v19 = vcombine.low %v2893_v5, %v2894_v6  ;;  %v1629_v28 = vshll.u32 %v1538_v0, 16  ;;  %v2860_v41 = vld [vmem:[%s3572_s1 + $0xc8] sm:$0xff]  }
  0x77   :  { %v1562_v23 = vcombine.high %v2565_v12, %v2565_v12  ;;  %v1622_v24 = vrot.slane %v1620_v13, 6  ;;  %v1613_v27 = vrot.slane %v1612_v20, 2  ;;  %v1634_v29 = vshrl.u32 %v2563_v40, 16  ;;  %v242_v48 = vld [vmem:[#allocation2 + $0x10] sm:$0x7]  ;;  %v2862_v60 = vld [vmem:[%s3572_s1 + $0xc0] sm:$0xff]  }
  0x78   :  { %v1692_v22 = vrot.slane %v1684_v10, %v3057_v14  ;;  %v1625_v30 = vrot.slane %v1623_v26, 7  ;;  %v1637_v33 = vshll.u32 %v2563_v40, 16  ;;  %v1643_v34 = vshll.u32 %v1546_v1, 16  ;;  %2765 = vmatmul.mubr.msk.bf16.vlgmr.msra.gmra.mxu0 %vm697_vm4, %v1399_v19  ;;  %v257_v56 = vld [vmem:[#allocation2 + $0x24] sm:$0x7] }
  0x79   :  { %v1648_v35 = vshrl.u32 %v2564_v58, 16  ;;  %2775 = vmatpush3.bf16.msra.mxu1 %v2857_v59  ;;  %v1618_v36 = vsel %vm3158_vm13, %v1613_v27, %v1617_v9  ;;  %v1631_v37 = vrot.slane %v1629_v28, 7  ;;  %v1636_v38 = vrot.slane %v1634_v29, 6  ;;  %2781 = vmatpush3.bf16.msra.mxu0 %v3308_v45  ;;  %v40_v61 = vld [vmem:[%s3573_s0 + $0x26] sm:$0x3]  ;;  %v3462_v27 = vld [vmem:[%s3572_s1 + $0x118] sm:$0xff]  }
  0x7a   :  { %v1651_v39 = vshll.u32 %v2564_v58, 16  ;;  %v1685_v42 = vcombine.low %v1604_v17, %v1618_v36  ;;  %v1626_v43 = vor.u32 %v1625_v30, %v1622_v24  ;;  %v1639_v44 = vrot.slane %v1637_v33, 7  ;;  %2792 = vmatprep.subr.bf16.mxu1 %v3419_v21  ;;  %2782 = vmatprep.subr.bf16.mxu0 %v2858_v31  ;;  %v287_v24 = vld [vmem:[#allocation2 + $0x4c] sm:$0x7] }
  0x7b   :  { %v1645_v46 = vrot.slane %v1643_v34, 7  ;;  %v1650_v49 = vrot.slane %v1648_v35, 6  ;;  %v1657_v51 = vshll.u32 %v1554_v2, 16  ;;  %v1662_v32 = vshrl.u32 %v2565_v12, 16  ;;  %v272_v2 = vld [vmem:[#allocation2 + $0x38] sm:$0x7] }
  0x7c   :  { %v1653_v50 = vrot.slane %v1651_v39, 7  ;;  %v1699_v53 = vrot.slane %v1685_v42, %v3057_v14  ;;  %v1627_v54 = vrot.slane %v1626_v43, 2  ;;  %v1640_v40 = vor.u32 %v1639_v44, %v1636_v38  ;;  %v2608_v38 = vld.sshfl [vmem:[#allocation2 + $0x4] sm:$0x13 pattern:$0x76325410] }
  0x7d   :  { %v1665_v55 = vshll.u32 %v2565_v12, 16  ;;  %v1659_v45 = vrot.slane %v1657_v51, 7  ;;  %v1664_v58 = vrot.slane %v1662_v32, 6  ;;  %v1671_v59 = vshll.u32 %v1562_v23, 16  ;;  %2783 = vmatpush3.bf16.msra.mxu0 %v2858_v31  ;;  %v44_v12 = vld [vmem:[%s3573_s0 + $0x2e] sm:$0x3] }
  0x7e   :  { %v1654_v57 = vor.u32 %v1653_v50, %v1650_v49  ;;  %v1700_v47 = vcombine.low %v1692_v22, %v1699_v53  ;;  %v1632_v63 = vsel %vm3158_vm13, %v1627_v54, %v1631_v37  ;;  %v1641_v0 = vrot.slane %v1640_v40, 2  ;;  %2784 = vmatprep.subr.bf16.mxu0 %v2860_v41  ;;  %v2609_v42 = vld.sshfl [vmem:[#allocation2 + $0x8] sm:$0x13 pattern:$0x76325410] }
  0x7f   :  { %v1667_v1 = vrot.slane %v1665_v55, 7  ;;  %v1673_v5 = vrot.slane %v1671_v59, 7  ;;  %v190_v6 = vmax.f32 %v3409_v18, 0.0  ;;  %v243_v62 = vsel %vm2986_vm3, 0, %v242_v48 }
  0x80   :  { %v1655_v3 = vrot.slane %v1654_v57, 2  ;;  %2776 = vmatprep.mubr.msk.bf16.mxu1 %vm697_vm4, %v1700_v47  ;;  %v1646_v7 = vsel %vm3158_vm13, %v1641_v0, %v1645_v46  ;;  %244 = vst [vmem:[#allocation2 + $0x10] sm:$0x7] %v243_v62  ;;  %v194_v9 = vmax.f32 %v3412_v15, 0.0  ;;  %v258_v10 = vsel %vm2986_vm3, 0, %v257_v56  ;;  %v2861_v56 = vld [vmem:[%s3572_s1 + $0xf0] sm:$0xff]  }
  0x81   :  { %v1668_v8 = vor.u32 %v1667_v1, %v1664_v58  ;;  %v1701_v13 = vcombine.low %v1632_v63, %v1646_v7  ;;  %v2645_v17 = vpack.c.bf16 %v190_v6, %v190_v6  ;;  %259 = vst [vmem:[#allocation2 + $0x24] sm:$0x7] %v258_v10  ;;  %2785 = vmatpush3.bf16.msra.mxu0 %v2860_v41  ;;  %v72_v23 = vunpack.c.l.bf16 %v40_v61  ;;  %v2610_v50 = vld.sshfl [vmem:[#allocation2 + $0xc] sm:$0x13 pattern:$0x76325410] }
  0x82   :  { %v1660_v18 = vsel %vm3158_vm13, %v1655_v3, %v1659_v45  ;;  %v2649_v22 = vpack.c.bf16 %v194_v9, %v194_v9  ;;  %v273_v15 = vsel %vm2986_vm3, 0, %v272_v2  ;;  %2786 = vmatprep.subr.bf16.mxu0 %v2862_v60  ;;  %v76_v36 = vunpack.c.l.bf16 %v44_v12  ;;  %v3486_v0 = vld.sshfl [vmem:[#allocation2 + $0x2c] sm:$0xf pattern:$0x76325410] }
  0x83   :  { %v1669_v20 = vrot.slane %v1668_v8, 2  ;;  %v1709_v26 = vrot.slane %v1701_v13, %v3057_v14  ;;  %v530_v19 = vshrl.u32 %v2645_v17, 16  ;;  %v533_v31 = vshll.u32 %v2645_v17, 16  ;;  %274 = vst [vmem:[#allocation2 + $0x38] sm:$0x7] %v273_v15 }
  0x84   :  { %v558_v29 = vshrl.u32 %v2649_v22, 16  ;;  %v561_v30 = vshll.u32 %v2649_v22, 16  ;;  %v111_v33 = vmul.f32 %v3313_v52, %v72_v23  ;;  %v288_v37 = vsel %vm2986_vm3, 0, %v287_v24  ;;  %v2869_v24 = vld [vmem:[%s3572_s1 + $0xe0] sm:$0xff]  }
  0x85   :  { %v1674_v28 = vsel %vm3158_vm13, %v1669_v20, %v1673_v5  ;;  %v532_v35 = vrot.slane %v530_v19, 7  ;;  %2787 = vmatpush3.bf16.msra.mxu0 %v2862_v60  ;;  %289 = vst [vmem:[#allocation2 + $0x4c] sm:$0x7] %v288_v37  ;;  %v2108_v43 = vcombine.high %v2608_v38, %v2608_v38  ;;  %v115_v49 = vmul.f32 %v3313_v52, %v76_v36 }
  0x86   :  { %v1702_v34 = vcombine.low %v1660_v18, %v1674_v28  ;;  %v560_v39 = vrot.slane %v558_v29, 7  ;;  %v150_v41 = vadd.f32 %v3324_v4, %v111_v33  ;;  %2804 = vmatprep.subr.bf16.mxu0 %v3462_v27  ;;  %v2116_v51 = vcombine.high %v2609_v42, %v2609_v42  ;;  %v3479_v52 = vld.sshfl [vmem:[#allocation2 + $0x4] sm:$0xf pattern:$0x76325410] }
  0x87   :  { %v535_v46 = vor.u32 %v533_v31, %v532_v35  ;;  %v582_v48 = vld [vmem:[#allocation2 + $0x10] sm:$0x7]  ;;  %v2124_v54 = vcombine.high %v2610_v50, %v2610_v50  ;;  %v2166_v40 = vshrl.u32 %v2608_v38, 16  ;;  %v154_v45 = vadd.f32 %v3324_v4, %v115_v49 }
  0x88   :  { %v1716_v44 = vrot.slane %v1702_v34, %v3057_v14  ;;  %v563_v25 = vor.u32 %v561_v30, %v560_v39  ;;  %v594_v32 = vld [vmem:[#allocation2 + $0x24] sm:$0x7]  ;;  %v182_v53 = vmax.f32 %v150_v41, 0.0  ;;  %v2169_v58 = vshll.u32 %v2608_v38, 16 }
  0x89   :  { %v583_v57 = vsel %vm3105_vm6, %v535_v46, %v582_v48  ;;  %v3483_v60 = vld.sshfl [vmem:[#allocation2 + $0x18] sm:$0xf pattern:$0x76325410]  ;;  %v2168_v47 = vrot.slane %v2166_v40, 6  ;;  %v2175_v63 = vshll.u32 %v2108_v43, 16 }
  0x8a   :  { %v1717_v55 = vcombine.low %v1709_v26, %v1716_v44  ;;  %584 = vst [vmem:[#allocation2 + $0x10] sm:$0x7] %v583_v57  ;;  %v595_v59 = vsel %vm3105_vm6, %v563_v25, %v594_v32  ;;  %v214_v61 = vpack.c.bf16 %v182_v53, %v182_v53  ;;  %v186_v1 = vmax.f32 %v154_v45, 0.0  ;;  %v2870_v40 = vld [vmem:[%s3572_s1 + $0x110] sm:$0xff]  }
  0x8b   :  { %596 = vst [vmem:[#allocation2 + $0x24] sm:$0x7] %v595_v59  ;;  %v2171_v2 = vrot.slane %v2169_v58, 7  ;;  %v2180_v4 = vshrl.u32 %v2609_v42, 16  ;;  %v2183_v3 = vshll.u32 %v2609_v42, 16  ;;  %v2189_v6 = vshll.u32 %v2116_v51, 16 }
  0x8c   :  { %2777 = vmatmul.mubr.msk.bf16.vlgmr.msra.gmra.mxu1 %vm697_vm4, %v1717_v55  ;;  %479 = vst.msk [vmem:[#allocation2 + $0x38] sm:$0x3] %vm351_vm1, %v214_v61  ;;  %v3493_v5 = vld.sshfl [vmem:[#allocation2 + $0x40] sm:$0xf pattern:$0x76325410]  ;;  %v218_v8 = vpack.c.bf16 %v186_v1, %v186_v1 }
  0x8d   :  { %2793 = vmatpush3.bf16.msra.mxu1 %v3419_v21  ;;  %v2194_v62 = vshrl.u32 %v2610_v50, 16  ;;  %v2197_v7 = vshll.u32 %v2610_v50, 16  ;;  %v2172_v9 = vor.u32 %v2171_v2, %v2168_v47  ;;  %v2182_v10 = vrot.slane %v2180_v4, 6 }
  0x8e   :  { %2794 = vmatprep.subr.bf16.mxu1 %v2861_v56  ;;  %v2185_v12 = vrot.slane %v2183_v3, 7  ;;  %v2612_v18 = vld.sshfl [vmem:[#allocation2 + $0x18] sm:$0x13 pattern:$0x76325410]  ;;  %v2177_v13 = vrot.slane %v2175_v63, 7 }
  0x8f   :  { %v2196_v17 = vrot.slane %v2194_v62, 6  ;;  %v2199_v21 = vrot.slane %v2197_v7, 7  ;;  %v3495_v20 = vshll.u32 %v2124_v54, 16  ;;  %483 = vst.msk [vmem:[#allocation2 + $0x4c] sm:$0x3] %vm351_vm1, %v218_v8  ;;  %v2173_v22 = vrot.slane %v2172_v9, 2 }
  0x90   :  { %v2186_v23 = vor.u32 %v2185_v12, %v2182_v10  ;;  %v2191_v15 = vrot.slane %v2189_v6, 7  ;;  %v2613_v19 = vld.sshfl [vmem:[#allocation2 + $0x1c] sm:$0x13 pattern:$0x76325410]  ;;  %v2140_v31 = vcombine.high %v2612_v18, %v2612_v18  ;;  %v2222_v28 = vshrl.u32 %v2612_v18, 16 }
  0x91   :  { %2795 = vmatpush3.bf16.msra.mxu1 %v2861_v56  ;;  %v2200_v26 = vor.u32 %v2199_v21, %v2196_v17  ;;  %v2899_v29 = vld.sshfl [vmem:[#allocation2 + $0xc] sm:$0xf pattern:$0x76325410]  ;;  %v2225_v34 = vshll.u32 %v2612_v18, 16  ;;  %v2178_v36 = vsel %vm3158_vm13, %v2173_v22, %v2177_v13  ;;  %v2205_v38 = vrot.slane %v3495_v20, 7 }
  0x92   :  { %2796 = vmatprep.subr.bf16.mxu1 %v2865_v16  ;;  %v2187_v30 = vrot.slane %v2186_v23, 2  ;;  %v2614_v33 = vld.sshfl [vmem:[#allocation2 + $0x20] sm:$0x13 pattern:$0x76325410]  ;;  %v2148_v39 = vcombine.high %v2613_v19, %v2613_v19  ;;  %v2224_v43 = vrot.slane %v2222_v28, 6  ;;  %v1842_v51 = vcombine.low %v3479_v52, %v2899_v29 }
  0x93   :  { %v2900_v35 = vld.sshfl [vmem:[#allocation2 + $0x20] sm:$0xf pattern:$0x76325410]  ;;  %v2201_v37 = vrot.slane %v2200_v26, 2  ;;  %v2227_v44 = vrot.slane %v2225_v34, 7  ;;  %v2156_v48 = vcombine.high %v2614_v33, %v2614_v33 }
  0x94   :  { %v2901_v41 = vld.sshfl [vmem:[#allocation2 + $0x34] sm:$0xf pattern:$0x76325410]  ;;  %v2192_v42 = vsel %vm3158_vm13, %v2187_v30, %v2191_v15  ;;  %v2231_v49 = vshll.u32 %v2140_v31, 16  ;;  %v2236_v50 = vshrl.u32 %v2613_v19, 16  ;;  %v1859_v54 = vcombine.low %v3483_v60, %v2900_v35  ;;  %2788 = vmatprep.mubr.msk.bf16.mxu0 %vm697_vm4, %v1842_v51 }
  0x95   :  { %2797 = vmatpush3.bf16.msra.mxu1 %v2865_v16  ;;  %v2611_v46 = vld.sshfl [vmem:[#allocation2 + $0x10] sm:$0x13 pattern:$0x76325410]  ;;  %v2286_v57 = vcombine.low %v2178_v36, %v2192_v42  ;;  %v1984_v58 = vcombine.low %v3486_v0, %v2901_v41  ;;  %v2228_v61 = vor.u32 %v2227_v44, %v2224_v43  ;;  %v2239_v4 = vshll.u32 %v2613_v19, 16  ;;  %v2875_v16 = vld [vmem:[%s3572_s1 + $0x108] sm:$0xff]  }
  0x96   :  { %2798 = vmatprep.subr.bf16.mxu1 %v2869_v24  ;;  %v2132_v25 = vcombine.high %v2611_v46, %v2611_v46  ;;  %v2208_v32 = vshrl.u32 %v2611_v46, 16  ;;  %v2615_v53 = vld.sshfl [vmem:[#allocation2 + $0x24] sm:$0x13 pattern:$0x76325410]  ;;  %v2211_v56 = vshll.u32 %v2611_v46, 16  ;;  %2789 = vmatmul.mubr.msk.bf16.vlgmr.msra.gmra.mxu0 %vm697_vm4, %v1859_v54  ;;  %v2206_v8 = vsel %vm3158_vm13, %v2201_v37, %v2205_v38 }
  0x97   :  { %v2902_v55 = vld.sshfl [vmem:[#allocation2 + $0x48] sm:$0xf pattern:$0x76325410]  ;;  %v2164_v45 = vcombine.high %v2615_v53, %v2615_v53  ;;  %v2233_v60 = vrot.slane %v2231_v49, 7  ;;  %v2238_v63 = vrot.slane %v2236_v50, 6  ;;  %2805 = vmatpush3.bf16.msra.mxu0 %v3462_v27  ;;  %2800 = vmatprep.mubr.msk.bf16.mxu1 %vm697_vm4, %v1984_v58  ;;  %v2294_v27 = vrot.slane %v2286_v57, %v3057_v14 }
  0x98   :  { %v2210_v59 = vrot.slane %v2208_v32, 6  ;;  %v2217_v52 = vshll.u32 %v2132_v25, 16  ;;  %v2213_v47 = vrot.slane %v2211_v56, 7  ;;  %v2229_v2 = vrot.slane %v2228_v61, 2  ;;  %2806 = vmatprep.subr.bf16.mxu0 %v2870_v40  ;;  %v2876_v23 = vld [vmem:[%s3572_s1 + $0x100] sm:$0xff]  }
  0x99   :  { %2799 = vmatpush3.bf16.msra.mxu1 %v2869_v24  ;;  %v2245_v3 = vshll.u32 %v2148_v39, 16  ;;  %v2001_v0 = vcombine.low %v3493_v5, %v2902_v55  ;;  %v2250_v62 = vshrl.u32 %v2614_v33, 16  ;;  %v2253_v7 = vshll.u32 %v2614_v33, 16 }
  0x9a   :  { %v2219_v1 = vrot.slane %v2217_v52, 7  ;;  %v2214_v6 = vor.u32 %v2213_v47, %v2210_v59  ;;  %v2241_v9 = vrot.slane %v2239_v4, 7  ;;  %v2259_v10 = vshll.u32 %v2156_v48, 16 }
  0x9b   :  { %v2252_v18 = vrot.slane %v2250_v62, 6  ;;  %v2255_v13 = vrot.slane %v2253_v7, 7  ;;  %v2264_v5 = vshrl.u32 %v2615_v53, 16  ;;  %2807 = vmatpush3.bf16.msra.mxu0 %v2870_v40  ;;  %v2247_v21 = vrot.slane %v2245_v3, 7 }
  0x9c   :  { %2801 = vmatmul.mubr.msk.bf16.vlgmr.msra.gmra.mxu1 %vm697_vm4, %v2001_v0  ;;  %v2215_v12 = vrot.slane %v2214_v6, 2  ;;  %v2242_v17 = vor.u32 %v2241_v9, %v2238_v63  ;;  %v2267_v20 = vshll.u32 %v2615_v53, 16  ;;  %v2273_v22 = vshll.u32 %v2164_v45, 16  ;;  %2808 = vmatprep.subr.bf16.mxu0 %v2875_v16 }
  0x9d   :  { %v2234_v24 = vsel %vm3158_vm13, %v2229_v2, %v2233_v60  ;;  %v2256_v26 = vor.u32 %v2255_v13, %v2252_v18  ;;  %v2266_v19 = vrot.slane %v2264_v5, 6  ;;  %v2261_v29 = vrot.slane %v2259_v10, 7 }
  0x9e   :  { %v2220_v15 = vsel %vm3158_vm13, %v2215_v12, %v2219_v1  ;;  %v2243_v28 = vrot.slane %v2242_v17, 2  ;;  %v2269_v30 = vrot.slane %v2267_v20, 7  ;;  %v2275_v37 = vrot.slane %v2273_v22, 7 }
  0x9f   :  { %v2287_v31 = vcombine.low %v2206_v8, %v2220_v15  ;;  %v2257_v33 = vrot.slane %v2256_v26, 2  ;;  %2809 = vmatpush3.bf16.msra.mxu0 %v2875_v16  ;;  %vm2403_vm15 = vcmask 261120   ;;  %vm2417_vm0 = vcmask 253952  }
  0xa0   :  { %v2248_v35 = vsel %vm3158_vm13, %v2243_v28, %v2247_v21  ;;  %v2270_v36 = vor.u32 %v2269_v30, %v2266_v19  ;;  %2810 = vmatprep.subr.bf16.mxu0 %v2876_v23 }
  0xa1   :  { %v2301_v34 = vrot.slane %v2287_v31, %v3057_v14  ;;  %v2303_v38 = vcombine.low %v2234_v24, %v2248_v35  ;;  %v2262_v41 = vsel %vm3158_vm13, %v2257_v33, %v2261_v29 }
  0xa2   :  { %v2271_v42 = vrot.slane %v2270_v36, 2 }
  0xa3   :  { %v2302_v39 = vcombine.low %v2294_v27, %v2301_v34  ;;  %2811 = vmatpush3.bf16.msra.mxu0 %v2876_v23  ;;  %v2311_v46 = vrot.slane %v2303_v38, %v3057_v14 }
  0xa4   :  { %v2276_v43 = vsel %vm3158_vm13, %v2271_v42, %v2275_v37 }
  0xa5   :  { %2812 = vmatprep.mubr.msk.bf16.mxu0 %vm697_vm4, %v2302_v39  ;;  %v2304_v44 = vcombine.low %v2262_v41, %v2276_v43 }
  0xa7   :  { %v2318_v48 = vrot.slane %v2304_v44, %v3057_v14 }
  0xa9   :  { %v2319_v49 = vcombine.low %v2311_v46, %v2318_v48 }
  0xab   :  { %2813 = vmatmul.mubr.msk.bf16.vlgmr.msra.gmra.mxu0 %vm697_vm4, %v2319_v49 }
  0xe4   :  { %v2718_v50 = vpop.f32.mrf.mxu0 }
  0xe6   :  { %v738_v51 = vpop.f32.mrf.mxu0 }
  0xe8   :  { %v2719_v32 = vpop.f32.mrf.mxu0 }
  0xea   :  { %v741_v54 = vpop.f32.mrf.mxu0 }
  0xf8   :  { %v2730_v25 = vpop.f32.mrf.mxu1 }
  0xf9   :  { %v868_v0 = vadd.f32 %v2730_v25, %v2718_v50 }
  0xfa   :  { %v859_v53 = vpop.f32.mrf.mxu1 }
  0xfb   :  { %v860_v6 = vadd.f32 %v859_v53, %v738_v51 }
  0xfc   :  { %v2731_v40 = vpop.f32.mrf.mxu1 }
  0xfd   :  { %v871_v10 = vadd.f32 %v2731_v40, %v2719_v32 }
  0xfe   :  { %v862_v56 = vpop.f32.mrf.mxu1 }
  0xff   :  { %v863_v12 = vadd.f32 %v862_v56, %v741_v54 }
 0x10d   :  { %v2742_v55 = vpop.f32.mrf.mxu0 }
 0x10e   :  { %v1197_v62 = vadd.f32 %v2742_v55, %v868_v0 }
 0x10f   :  { %v1180_v57 = vpop.f32.mrf.mxu0 }
 0x110   :  { %v1195_v27 = vadd.f32 %v1180_v57, %v860_v6 }
 0x111   :  { %v2743_v45 = vpop.f32.mrf.mxu0 }
 0x112   :  { %v1198_v5 = vadd.f32 %v2743_v45, %v871_v10 }
 0x113   :  { %v1183_v59 = vpop.f32.mrf.mxu0 }
 0x114   :  { %v1196_v20 = vadd.f32 %v1183_v59, %v863_v12 }
 0x12c   :  { %v2754_v11 = vpop.f32.mrf.mxu1 }
 0x12d   :  { %v1339_v9 = vadd.f32 %v2754_v11, %v1197_v62 }
 0x12e   :  { %v1322_v58 = vpop.f32.mrf.mxu1 }
 0x12f   :  { %v1337_v18 = vadd.f32 %v1322_v58, %v1195_v27 }
 0x130   :  { %v2755_v52 = vpop.f32.mrf.mxu1 }
 0x131   :  { %v1340_v15 = vadd.f32 %v2755_v52, %v1198_v5 }
 0x132   :  { %v1325_v14 = vpop.f32.mrf.mxu1 }
 0x133   :  { %v1338_v24 = vadd.f32 %v1325_v14, %v1196_v20 }
 0x138   :  { %v2766_v61 = vpop.f32.mrf.mxu0 }
 0x139   :  { %v1481_v13 = vadd.f32 %v2766_v61, %v1339_v9 }
 0x13a   :  { %v1464_v47 = vpop.f32.mrf.mxu0 }
 0x13b   :  { %v1479_v22 = vadd.f32 %v1464_v47, %v1337_v18 }
 0x13c   :  { %v2767_v63 = vpop.f32.mrf.mxu0 }
 0x13d   :  { %v1482_v31 = vadd.f32 %v2767_v63, %v1340_v15 }
 0x13e   :  { %v1467_v2 = vpop.f32.mrf.mxu0 }
 0x13f   :  { %v1480_v30 = vadd.f32 %v1467_v2, %v1338_v24 }
 0x14c   :  { %v2778_v60 = vpop.f32.mrf.mxu1 }
 0x14d   :  { %v1799_v23 = vadd.f32 %v2778_v60, %v1481_v13 }
 0x14e   :  { %v1782_v1 = vpop.f32.mrf.mxu1 }
 0x14f   :  { %v1797_v26 = vadd.f32 %v1782_v1, %v1479_v22 }
 0x150   :  { %v2779_v4 = vpop.f32.mrf.mxu1 }
 0x151   :  { %v1800_v35 = vadd.f32 %v2779_v4, %v1482_v31 }
 0x152   :  { %v1785_v16 = vpop.f32.mrf.mxu1 }
 0x153   :  { %v1798_v37 = vadd.f32 %v1785_v16, %v1480_v30 }
 0x156   :  { %v2790_v3 = vpop.f32.mrf.mxu0 }
 0x157   :  { %v1941_v19 = vadd.f32 %v2790_v3, %v1799_v23 }
 0x158   :  { %v1924_v7 = vpop.f32.mrf.mxu0 }
 0x159   :  { %v1939_v33 = vadd.f32 %v1924_v7, %v1797_v26 }
 0x15a   :  { %v2791_v17 = vpop.f32.mrf.mxu0 }
 0x15b   :  { %v1942_v41 = vadd.f32 %v2791_v17, %v1800_v35 }
 0x15c   :  { %v2802_v8 = vpop.f32.mrf.mxu1  ;;  %v1927_v28 = vpop.f32.mrf.mxu0 }
 0x15d   :  { %v2083_v34 = vadd.f32 %v2802_v8, %v1941_v19  ;;  %v1940_v44 = vadd.f32 %v1927_v28, %v1798_v37 }
 0x15e   :  { %v2066_v21 = vpop.f32.mrf.mxu1 }
 0x15f   :  { %v2081_v38 = vadd.f32 %v2066_v21, %v1939_v33 }
 0x160   :  { %v2803_v29 = vpop.f32.mrf.mxu1 }
 0x161   :  { %v2084_v49 = vadd.f32 %v2803_v29, %v1942_v41 }
 0x162   :  { %v2069_v42 = vpop.f32.mrf.mxu1 }
 0x163   :  { %v2082_v51 = vadd.f32 %v2069_v42, %v1940_v44 }
 0x16b   :  { %v2814_v36 = vpop.f32.mrf.mxu0 }
 0x16c   :  { %v2401_v39 = vadd.f32 %v2814_v36, %v2083_v34 }
 0x16d   :  { %v2384_v43 = vpop.f32.mrf.mxu0 }
 0x16e   :  { %v2652_v46 = vpack.c.bf16 %v2401_v39, %v2401_v39  ;;  %v2399_v48 = vadd.f32 %v2384_v43, %v2081_v38  ;;  %v2421_v55 = vmul.f32 %v2401_v39, %v2401_v39  ;;  %v2407_v52 = vsel %vm2403_vm15, %v2401_v39, 0.0 }
 0x16f   :  { %v2815_v50 = vpop.f32.mrf.mxu0 }
 0x170   :  { %2456 = vst.msk [vmem:[%s3576_s4 + $0x8] sm:$0xf] %vm2453_vm14, %v2652_v46  ;;  %v2650_v25 = vpack.c.bf16 %v2399_v48, %v2399_v48  ;;  %v2402_v32 = vadd.f32 %v2815_v50, %v2084_v49  ;;  %v2419_v54 = vmul.f32 %v2399_v48, %v2399_v48  ;;  %v2404_v57 = vsel %vm2403_vm15, %v2399_v48, 0.0 }
 0x171   :  { %v2387_v53 = vpop.f32.mrf.mxu0  ;;  %v2426_v1 = vsel %vm2403_vm15, %v2421_v55, 0.0 }
 0x172   :  { %2454 = vst.msk [vmem:[%s3576_s4] sm:$0xf] %vm2453_vm14, %v2650_v25  ;;  %v2400_v40 = vadd.f32 %v2387_v53, %v2082_v51  ;;  %v2653_v56 = vpack.c.bf16 %v2402_v32, %v2402_v32  ;;  %v2423_v61 = vsel %vm2403_vm15, %v2419_v54, 0.0  ;;  %v2422_v14 = vmul.f32 %v2402_v32, %v2402_v32 }
 0x173   :  { %v2409_v2 = vsel %vm2403_vm15, %v2402_v32, 0.0 }
 0x174   :  { %v2405_v11 = vsel %vm2403_vm15, %v2400_v40, 0.0  ;;  %v2420_v45 = vmul.f32 %v2400_v40, %v2400_v40  ;;  %v2651_v58 = vpack.c.bf16 %v2400_v40, %v2400_v40  ;;  %2457 = vst.msk [vmem:[%s3576_s4 + $0xc] sm:$0xf] %vm2453_vm14, %v2653_v56  ;;  %v2428_v0 = vsel %vm2403_vm15, %v2422_v14, 0.0 }
 0x175   :  { %v2406_v59 = vadd.f32 %v2405_v11, %v2404_v57 }
 0x176   :  { %v2424_v47 = vsel %vm2403_vm15, %v2420_v45, 0.0  ;;  %2455 = vst.msk [vmem:[%s3576_s4 + $0x4] sm:$0xf] %vm2453_vm14, %v2651_v58 }
 0x177   :  { %v2408_v60 = vadd.f32 %v2407_v52, %v2406_v59  ;;  %v2425_v63 = vadd.f32 %v2424_v47, %v2423_v61 }
 0x179   :  { %v2410_v4 = vadd.f32 %v2409_v2, %v2408_v60  ;;  %v2427_v3 = vadd.f32 %v2426_v1, %v2425_v63 }
 0x17b   :  { %v2411_v16 = vrot.slane %v2410_v4, 4  ;;  %v2429_v6 = vadd.f32 %v2428_v0, %v2427_v3 }
 0x17d   :  { %v2412_v62 = vadd.f32 %v2411_v16, %v2410_v4  ;;  %v2430_v7 = vrot.slane %v2429_v6, 4 }
 0x17f   :  { %v2413_v8 = vrot.slane %v2412_v62, 2  ;;  %v2431_v27 = vadd.f32 %v2430_v7, %v2429_v6 }
 0x181   :  { %v2414_v9 = vadd.f32 %v2413_v8, %v2412_v62  ;;  %v2432_v10 = vrot.slane %v2431_v27, 2 }
 0x183   :  { %v2415_v12 = vrot.slane %v2414_v9, 1  ;;  %v2433_v18 = vadd.f32 %v2432_v10, %v2431_v27 }
 0x185   :  { %v2416_v13 = vadd.f32 %v2415_v12, %v2414_v9  ;;  %v2434_v5 = vrot.slane %v2433_v18, 1 }
 0x187   :  { %2418 = vst.msk [vmem:[%s3577_s5] sm:$0x1] %vm2417_vm0, %v2416_v13  ;;  %v2435_v17 = vadd.f32 %v2434_v5, %v2433_v18 }
 0x189   :  { %2436 = vst.msk [vmem:[%s3578_s6] sm:$0x1] %vm2417_vm0, %v2435_v17 }

// kernel: _lambda_.10
= control target key start
LH: loop header
LB: loop body
LE: loop exit
PB: predicated region body
PF: predicated region fallthrough
CT: control target
= control target key end

     0   :  { %v1934_v0 = vmov 0.0   ;;  %vm1935_vm0 = vmmov 0   ;;  %vm132_vm1 = vsmask.f32 1280  ;;  %vm131_vm2 = vcmask 517120   ;;  %s2437_s1 = inlined_call_operand.vmem [shape: bf16[9,64,32], index: 1, kind: input, shape index: {}]   ;;  %s2438_s0 = inlined_call_operand.vmem [shape: bf16[4,2,2,2,64], index: 0, kind: input, shape index: {}]   ;;  %s2439_s2 = inlined_call_operand.vmem [shape: f32[1,64], index: 2, kind: input, shape index: {}]   ;;  %s2440_s3 = inlined_call_operand.vmem [shape: f32[1,64], index: 3, kind: input, shape index: {}]   ;;  %s2441_s4 = inlined_call_operand.vmem [shape: bf16[8,32], index: 4, kind: output, shape index: {0}]   ;;  %s2442_s5 = inlined_call_operand.vmem [shape: f32[1,32], index: 5, kind: output, shape index: {1}]   ;;  %s2443_s6 = inlined_call_operand.vmem [shape: f32[1,32], index: 6, kind: output, shape index: {2}]  }
   0x1   :  { %1786 = vmatprep.subr.bf16.mxu0 %v1934_v0  ;;  %v1898_v1 = vld [vmem:[%s2437_s1 + $0x38] sm:$0xff]   ;;  %1798 = vmatprep.subr.bf16.mxu1 %v1934_v0  ;;  %v1899_v2 = vld [vmem:[%s2437_s1 + $0x30] sm:$0xff]   ;;  %v1900_v4 = vld [vmem:[%s2437_s1 + $0x28] sm:$0xff]   ;;  %v219_v37 = vlaneseq  ;;  %vm207_vm4 = vcmask 516096   ;;  %v1936_v40 = vmov 1966171168  }
   0x2   :  { %1794 = vmatprep.mubr.msk.bf16.mxu0 %vm1935_vm0, %v1934_v0  ;;  %1806 = vmatprep.mubr.msk.bf16.mxu1 %vm1935_vm0, %v1934_v0  ;;  %v1901_v3 = vld [vmem:[%s2437_s1 + $0x18] sm:$0xff]   ;;  %v1903_v5 = vld [vmem:[%s2437_s1 + $0x10] sm:$0xff]   ;;  %v29_v6 = vld [vmem:[%s2438_s0 + $0x8] sm:$0x1]  ;;  %v406_v41 = vunpack.c.l.s4 %v1936_v40  ;;  %v1937_v61 = vmov 1983009808  }
   0x3   :  { %1787 = vmatpush3.bf16.msra.mxu0 %v1898_v1  ;;  %1799 = vmatpush3.bf16.msra.mxu1 %v1901_v3  ;;  %v31_v7 = vld [vmem:[%s2438_s0 + $0xa] sm:$0x1]  ;;  %v2005_v8 = vld [vmem:[%s2439_s2] ss:$0 sm:$0xff]  ;;  %v45_v9 = vunpack.c.l.bf16 %v29_v6  ;;  %vm2015_vm3 = vmand %vm131_vm2, %vm132_vm1  ;;  %v220_v43 = vshrl.u32 %v219_v37, 7  ;;  %v217_v62 = vunpack.c.l.s4 %v1937_v61  ;;  %vm451_vm12 = vcmask 523264  }
   0x4   :  { %1788 = vmatprep.subr.bf16.mxu0 %v1934_v0  ;;  %1800 = vmatprep.subr.bf16.mxu1 %v1934_v0  ;;  %v47_v10 = vunpack.c.l.bf16 %v31_v7  ;;  %v2011_v11 = vld [vmem:[%s2440_s3] ss:$0 sm:$0xff]  ;;  %v152_v13 = vld [vmem:[#allocation2 + $0xc] sm:$0x3]  ;;  %v155_v16 = vld [vmem:[#allocation2 + $0xe] sm:$0x3]  ;;  %v407_v51 = vunpack.c.0.s8 %v406_v41 }
   0x5   :  { %v1902_v14 = vld [vmem:[%s2437_s1 + $0x20] sm:$0xff]   ;;  %v153_v15 = vsel %vm2015_vm3, 0, %v152_v13  ;;  %v161_v17 = vld [vmem:[#allocation2 + $0x12] sm:$0x3]  ;;  %v68_v18 = vmul.f32 %v2005_v8, %v45_v9  ;;  %v156_v20 = vsel %vm2015_vm3, 0, %v155_v16  ;;  %v1905_v34 = vld [vmem:[%s2437_s1 + $0x8] sm:$0xff]   ;;  %v218_v3 = vunpack.c.0.s8 %v217_v62 }
   0x6   :  { %v70_v19 = vmul.f32 %v2005_v8, %v47_v10  ;;  %154 = vst [vmem:[#allocation2 + $0xc] sm:$0x3] %v153_v15  ;;  %v162_v21 = vsel %vm2015_vm3, 0, %v161_v17  ;;  %v164_v22 = vld [vmem:[#allocation2 + $0x14] sm:$0x3]  ;;  %v1907_v42 = vld [vmem:[%s2437_s1] sm:$0xff]  }
   0x7   :  { %1789 = vmatpush3.bf16.msra.mxu0 %v1899_v2  ;;  %1801 = vmatpush3.bf16.msra.mxu1 %v1903_v5  ;;  %v176_v23 = vld [vmem:[#allocation2 + $0x1c] sm:$0x3]  ;;  %157 = vst [vmem:[#allocation2 + $0xe] sm:$0x3] %v156_v20  ;;  %163 = vst [vmem:[#allocation2 + $0x12] sm:$0x3] %v162_v21  ;;  %v91_v28 = vadd.f32 %v2011_v11, %v68_v18  ;;  %v2073_v2 = vsub.s32 %v407_v51, %v220_v43 }
   0x8   :  { %1790 = vmatprep.subr.bf16.mxu0 %v1934_v0  ;;  %v165_v24 = vsel %vm2015_vm3, 0, %v164_v22  ;;  %v177_v25 = vsel %vm2015_vm3, 0, %v176_v23  ;;  %v185_v26 = vld [vmem:[#allocation2 + $0x22] sm:$0x3]  ;;  %v194_v27 = vld [vmem:[#allocation2 + $0x28] sm:$0x3]  ;;  %1802 = vmatprep.subr.bf16.mxu1 %v1934_v0  ;;  %v93_v29 = vadd.f32 %v2011_v11, %v70_v19  ;;  %v2075_v13 = vsub.s32 %v218_v3, %v220_v43 }
   0x9   :  { %166 = vst [vmem:[#allocation2 + $0x14] sm:$0x3] %v165_v24  ;;  %178 = vst [vmem:[#allocation2 + $0x1c] sm:$0x3] %v177_v25  ;;  %v186_v30 = vsel %vm2015_vm3, 0, %v185_v26  ;;  %v195_v31 = vsel %vm2015_vm3, 0, %v194_v27 }
   0xa   :  { %v203_v32 = vld [vmem:[#allocation2 + $0x2e] sm:$0x3]  ;;  %187 = vst [vmem:[#allocation2 + $0x22] sm:$0x3] %v186_v30  ;;  %196 = vst [vmem:[#allocation2 + $0x28] sm:$0x3] %v195_v31 }
   0xb   :  { %1791 = vmatpush3.bf16.msra.mxu0 %v1900_v4  ;;  %v204_v33 = vsel %vm2015_vm3, 0, %v203_v32  ;;  %v107_v35 = vmax.f32 %v91_v28, 0.0  ;;  %v109_v36 = vmax.f32 %v93_v29, 0.0  ;;  %1803 = vmatpush3.bf16.msra.mxu1 %v1905_v34  ;;  %v33_v44 = vld [vmem:[%s2438_s0 + $0xc] sm:$0x1]  ;;  %v1904_v18 = vld [vmem:[%s2437_s1 + $0x58] sm:$0xff]  }
   0xc   :  { %1792 = vmatprep.subr.bf16.mxu0 %v1934_v0  ;;  %205 = vst [vmem:[#allocation2 + $0x2e] sm:$0x3] %v204_v33  ;;  %1804 = vmatprep.subr.bf16.mxu1 %v1934_v0  ;;  %v35_v45 = vld [vmem:[%s2438_s0 + $0xe] sm:$0x1]  ;;  %v49_v46 = vunpack.c.l.bf16 %v33_v44  ;;  %v134_v48 = vld [vmem:[#allocation2] sm:$0x3] }
   0xd   :  { %v123_v38 = vpack.c.bf16 %v107_v35, %v107_v35  ;;  %v125_v39 = vpack.c.bf16 %v109_v36, %v109_v36  ;;  %v51_v47 = vunpack.c.l.bf16 %v35_v45  ;;  %v137_v49 = vld [vmem:[#allocation2 + $0x2] sm:$0x3]  ;;  %v143_v50 = vld [vmem:[#allocation2 + $0x6] sm:$0x3]  ;;  %v135_v52 = vsel %vm2015_vm3, 0, %v134_v48  ;;  %v1906_v33 = vld [vmem:[%s2437_s1 + $0x50] sm:$0xff]  }
   0xe   :  { %v138_v53 = vsel %vm2015_vm3, 0, %v137_v49  ;;  %v144_v54 = vsel %vm2015_vm3, 0, %v143_v50  ;;  %v146_v55 = vld [vmem:[#allocation2 + $0x8] sm:$0x3]  ;;  %v386_v56 = vld [vmem:[#allocation2 + $0xc] sm:$0x1]  ;;  %v72_v57 = vmul.f32 %v2005_v8, %v49_v46 }
   0xf   :  { %1793 = vmatpush3.bf16.msra.mxu0 %v1902_v14  ;;  %292 = vst.msk [vmem:[#allocation2 + $0xe] sm:$0x1] %vm207_vm4, %v123_v38  ;;  %294 = vst.msk [vmem:[#allocation2 + $0x14] sm:$0x1] %vm207_vm4, %v125_v39  ;;  %1805 = vmatpush3.bf16.msra.mxu1 %v1907_v42  ;;  %v74_v58 = vmul.f32 %v2005_v8, %v51_v47  ;;  %v147_v59 = vsel %vm2015_vm3, 0, %v146_v55  ;;  %v1908_v61 = vld [vmem:[%s2437_s1 + $0x48] sm:$0xff]  }
  0x10   :  { %1810 = vmatprep.subr.bf16.mxu0 %v1934_v0  ;;  %1822 = vmatprep.subr.bf16.mxu1 %v1934_v0  ;;  %136 = vst [vmem:[#allocation2] sm:$0x3] %v135_v52  ;;  %139 = vst [vmem:[#allocation2 + $0x2] sm:$0x3] %v138_v53  ;;  %v388_v60 = vld [vmem:[#allocation2 + $0x12] sm:$0x1]  ;;  %v95_v63 = vadd.f32 %v2011_v11, %v72_v57 }
  0x11   :  { %145 = vst [vmem:[#allocation2 + $0x6] sm:$0x3] %v144_v54  ;;  %148 = vst [vmem:[#allocation2 + $0x8] sm:$0x3] %v147_v59  ;;  %v97_v1 = vadd.f32 %v2011_v11, %v74_v58  ;;  %vm630_vm5 = vsmask.f32 256 }
  0x12   :  { %vm631_vm6 = vsmask.f32 1284  ;;  %v111_v6 = vmax.f32 %v95_v63, 0.0  ;;  %vm633_vm8 = vsmask.f32 2312  ;;  %v1921_v12 = vld [vmem:[%s2437_s1 + $0xa8] sm:$0xff]  }
  0x13   :  { %v113_v7 = vmax.f32 %v97_v1, 0.0  ;;  %vm632_vm7 = vmor %vm630_vm5, %vm631_vm6  ;;  %vm635_vm10 = vsmask.f32 3340  ;;  %vm637_vm11 = vsmask.f32 4368  ;;  %v1924_v36 = vld [vmem:[%s2437_s1 + $0xc8] sm:$0xff]  }
  0x14   :  { %v127_v14 = vpack.c.bf16 %v111_v6, %v111_v6  ;;  %vm634_vm9 = vmor %vm632_vm7, %vm633_vm8  ;;  %vm277_vm13 = vsmask.f32 1282  ;;  %vm639_vm1 = vsmask.f32 5396  ;;  %vm641_vm6 = vsmask.f32 6424 }
  0x15   :  { %v129_v15 = vpack.c.bf16 %v113_v7, %v113_v7  ;;  %vm636_vm14 = vmor %vm634_vm9, %vm635_vm10  ;;  %vm643_vm7 = vsmask.f32 7452  ;;  %v25_v44 = vld [vmem:[%s2438_s0 + $0x4] sm:$0x1]  ;;  %v26_v45 = vld [vmem:[%s2438_s0 + $0x5] sm:$0x1] }
  0x16   :  { %v387_v4 = vld [vmem:[#allocation2 + $0xe] sm:$0x1]  ;;  %v389_v5 = vld [vmem:[#allocation2 + $0x14] sm:$0x1]  ;;  %v306_v19 = vrot.slane %v127_v14, %v2075_v13  ;;  %vm638_vm15 = vmor %vm636_vm14, %vm637_vm11  ;;  %v41_v48 = vunpack.c.l.bf16 %v25_v44  ;;  %v42_v51 = vunpack.c.l.bf16 %v26_v45 }
  0x17   :  { %v403_v9 = vcombine.low %v386_v56, %v387_v4  ;;  %v404_v10 = vcombine.low %v388_v60, %v389_v5  ;;  %v320_v20 = vrot.slane %v129_v15, %v2075_v13  ;;  %v2084_v21 = vld.sshfl [vmem:[#allocation2] sm:$0x11 pattern:$0x75316420]  ;;  %v361_v30 = vld [vmem:[#allocation2 + $0x2] sm:$0x3]  ;;  %vm640_vm5 = vmor %vm638_vm15, %vm639_vm1 }
  0x18   :  { %v2086_v23 = vld.sshfl [vmem:[#allocation2 + $0x6] sm:$0x11 pattern:$0x75316420]  ;;  %v605_v24 = vcombine.high %v2084_v21, %v2084_v21  ;;  %v329_v25 = vshrl.u32 %v306_v19, 16  ;;  %v332_v26 = vshll.u32 %v306_v19, 16  ;;  %vm2099_vm8 = vmand %vm131_vm2, %vm277_vm13  ;;  %v64_v57 = vmul.f32 %v2005_v8, %v41_v48 }
  0x19   :  { %v411_v16 = vrot.slane %v403_v9, %v2073_v2  ;;  %v418_v17 = vrot.slane %v404_v10, %v2073_v2  ;;  %v343_v27 = vshrl.u32 %v320_v20, 16  ;;  %v346_v28 = vshll.u32 %v320_v20, 16  ;;  %v367_v31 = vld [vmem:[#allocation2 + $0x8] sm:$0x3]  ;;  %vm2106_vm9 = vmor %vm640_vm5, %vm641_vm6  ;;  %v27_v46 = vld [vmem:[%s2438_s0 + $0x6] sm:$0x1] }
  0x1a   :  { %v621_v32 = vcombine.high %v2086_v23, %v2086_v23  ;;  %v331_v34 = vrot.slane %v329_v25, 7  ;;  %v646_v37 = vshrl.u32 %v2084_v21, 16  ;;  %v651_v38 = vshll.u32 %v605_v24, 16  ;;  %v28_v47 = vld [vmem:[%s2438_s0 + $0x7] sm:$0x1]  ;;  %vm2139_vm2 = vmor %vm2106_vm9, %vm643_vm7  ;;  %v1930_v62 = vld [vmem:[%s2437_s1 + $0x110] sm:$0xff]  }
  0x1b   :  { %v419_v22 = vcombine.low %v411_v16, %v418_v17  ;;  %v345_v35 = vrot.slane %v343_v27, 7  ;;  %v664_v42 = vshrl.u32 %v2086_v23, 16  ;;  %v43_v52 = vunpack.c.l.bf16 %v27_v46  ;;  %v170_v53 = vld [vmem:[#allocation2 + $0x18] sm:$0x3]  ;;  %v173_v54 = vld [vmem:[#allocation2 + $0x1a] sm:$0x3] }
  0x1c   :  { %v334_v39 = vor.u32 %v332_v26, %v331_v34  ;;  %v669_v43 = vshll.u32 %v621_v32, 16  ;;  %v179_v55 = vld [vmem:[#allocation2 + $0x1e] sm:$0x3]  ;;  %v44_v56 = vunpack.c.l.bf16 %v28_v47  ;;  %v171_v58 = vsel %vm2015_vm3, 0, %v170_v53  ;;  %v182_v60 = vld [vmem:[#allocation2 + $0x20] sm:$0x3] }
  0x1d   :  { %v426_v29 = vrot.slane %v419_v22, %v2073_v2  ;;  %v348_v40 = vor.u32 %v346_v28, %v345_v35  ;;  %v174_v59 = vsel %vm2015_vm3, 0, %v173_v54  ;;  %v65_v63 = vmul.f32 %v2005_v8, %v42_v51  ;;  %172 = vst [vmem:[#allocation2 + $0x18] sm:$0x3] %v171_v58  ;;  %v373_v7 = vld [vmem:[#allocation2] sm:$0x1] }
  0x1e   :  { %v362_v49 = vsel %vm2099_vm8, %v334_v39, %v361_v30  ;;  %v66_v1 = vmul.f32 %v2005_v8, %v43_v52  ;;  %175 = vst [vmem:[#allocation2 + $0x1a] sm:$0x3] %v174_v59  ;;  %v180_v3 = vsel %vm2015_vm3, 0, %v179_v55  ;;  %v183_v4 = vsel %vm2015_vm3, 0, %v182_v60  ;;  %v375_v9 = vld [vmem:[#allocation2 + $0x6] sm:$0x1] }
  0x1f   :  { %1795 = vmatmul.mubr.msk.bf16.vlgmr.msra.gmra.mxu0 %vm451_vm12, %v426_v29  ;;  %v368_v50 = vsel %vm2099_vm8, %v348_v40, %v367_v31  ;;  %363 = vst [vmem:[#allocation2 + $0x2] sm:$0x3] %v362_v49  ;;  %v67_v5 = vmul.f32 %v2005_v8, %v44_v56  ;;  %v87_v6 = vadd.f32 %v2011_v11, %v64_v57  ;;  %181 = vst [vmem:[#allocation2 + $0x1e] sm:$0x3] %v180_v3  ;;  %v1910_v15 = vld [vmem:[%s2437_s1 + $0x40] sm:$0xff]  }
  0x20   :  { %1811 = vmatpush3.bf16.msra.mxu0 %v1904_v18  ;;  %1818 = vmatprep.mubr.msk.bf16.mxu0 %vm1935_vm0, %v1934_v0  ;;  %369 = vst [vmem:[#allocation2 + $0x8] sm:$0x3] %v368_v50  ;;  %184 = vst [vmem:[#allocation2 + $0x20] sm:$0x3] %v183_v4  ;;  %v88_v10 = vadd.f32 %v2011_v11, %v65_v63  ;;  %v89_v14 = vadd.f32 %v2011_v11, %v66_v1  ;;  %v21_v19 = vld [vmem:[%s2438_s0] sm:$0x1] }
  0x21   :  { %1812 = vmatprep.subr.bf16.mxu0 %v1934_v0  ;;  %v2159_v16 = vsel %vm2139_vm2, %v646_v37, %v651_v38  ;;  %v90_v17 = vadd.f32 %v2011_v11, %v67_v5  ;;  %v103_v18 = vmax.f32 %v87_v6, 0.0  ;;  %v2167_v20 = vsel %vm2139_vm2, %v664_v42, %v669_v43  ;;  %v22_v23 = vld [vmem:[%s2438_s0 + $0x1] sm:$0x1]  ;;  %v2175_v24 = vld [vmem:[%s2438_s0 + $0x2] sm:$0x1] }
  0x22   :  { %v104_v21 = vmax.f32 %v88_v10, 0.0  ;;  %v105_v22 = vmax.f32 %v89_v14, 0.0  ;;  %v37_v25 = vunpack.c.l.bf16 %v21_v19  ;;  %v2181_v28 = vld [vmem:[%s2438_s0 + $0x3] sm:$0x1]  ;;  %v38_v29 = vunpack.c.l.bf16 %v22_v23 }
  0x23   :  { %v106_v26 = vmax.f32 %v90_v17, 0.0  ;;  %v119_v27 = vpack.c.bf16 %v103_v18, %v103_v18  ;;  %v39_v30 = vunpack.c.l.bf16 %v2175_v24  ;;  %v40_v35 = vunpack.c.l.bf16 %v2181_v28 }
  0x24   :  { %1813 = vmatpush3.bf16.msra.mxu0 %v1906_v33  ;;  %v120_v33 = vpack.c.bf16 %v104_v21, %v104_v21  ;;  %v121_v34 = vpack.c.bf16 %v105_v22, %v105_v22  ;;  %v2186_v37 = vmul.f32 %v2005_v8, %v37_v25  ;;  %v279_v60 = vld [vmem:[#allocation2 + $0x18] sm:$0x3]  ;;  %v188_v21 = vld [vmem:[#allocation2 + $0x24] sm:$0x3] }
  0x25   :  { %1814 = vmatprep.subr.bf16.mxu0 %v1934_v0  ;;  %v122_v41 = vpack.c.bf16 %v106_v26, %v106_v26  ;;  %v222_v42 = vrot.slane %v119_v27, %v2075_v13  ;;  %v282_v5 = vld [vmem:[#allocation2 + $0x1a] sm:$0x3]  ;;  %v61_v27 = vmul.f32 %v2005_v8, %v38_v29 }
  0x26   :  { %v374_v31 = vld [vmem:[#allocation2 + $0x2] sm:$0x1]  ;;  %v229_v46 = vrot.slane %v120_v33, %v2075_v13  ;;  %v236_v47 = vrot.slane %v121_v34, %v2075_v13  ;;  %v285_v14 = vld [vmem:[#allocation2 + $0x1e] sm:$0x3] }
  0x27   :  { %v376_v32 = vld [vmem:[#allocation2 + $0x8] sm:$0x1]  ;;  %v499_v38 = vcombine.low %v373_v7, %v374_v31  ;;  %v1627_v40 = vld.sshfl [vmem:[#allocation2 + $0x2] sm:$0x11 pattern:$0x75316420]  ;;  %v243_v53 = vrot.slane %v122_v41, %v2075_v13  ;;  %v63_v41 = vmul.f32 %v2005_v8, %v40_v35 }
  0x28   :  { %1815 = vmatpush3.bf16.msra.mxu0 %v1908_v61  ;;  %v500_v39 = vcombine.low %v375_v9, %v376_v32  ;;  %v1629_v43 = vld.sshfl [vmem:[#allocation2 + $0x8] sm:$0x11 pattern:$0x75316420]  ;;  %v613_v44 = vcombine.high %v1627_v40, %v1627_v40  ;;  %v655_v45 = vshrl.u32 %v1627_v40, 16  ;;  %v245_v54 = vshrl.u32 %v222_v42, 16 }
  0x29   :  { %1816 = vmatprep.subr.bf16.mxu0 %v1934_v0  ;;  %v507_v48 = vrot.slane %v499_v38, %v2073_v2  ;;  %v629_v50 = vcombine.high %v1629_v43, %v1629_v43  ;;  %v673_v51 = vshrl.u32 %v1629_v43, 16  ;;  %v248_v55 = vshll.u32 %v222_v42, 16  ;;  %v1909_v61 = vld [vmem:[%s2437_s1 + $0x78] sm:$0xff]   ;;  %v288_v26 = vld [vmem:[#allocation2 + $0x20] sm:$0x3] }
  0x2a   :  { %v514_v49 = vrot.slane %v500_v39, %v2073_v2  ;;  %v660_v52 = vshll.u32 %v613_v44, 16  ;;  %v252_v58 = vshrl.u32 %v229_v46, 16  ;;  %v255_v59 = vshll.u32 %v229_v46, 16  ;;  %v191_v31 = vld [vmem:[#allocation2 + $0x26] sm:$0x3]  ;;  %v1912_v29 = vld [vmem:[%s2437_s1 + $0x98] sm:$0xff]  }
  0x2b   :  { %v678_v57 = vshll.u32 %v629_v50, 16  ;;  %v247_v1 = vrot.slane %v245_v54, 7  ;;  %v259_v3 = vshrl.u32 %v236_v47, 16  ;;  %v262_v4 = vshll.u32 %v236_v47, 16  ;;  %v197_v38 = vld [vmem:[#allocation2 + $0x2a] sm:$0x3] }
  0x2c   :  { %1817 = vmatpush3.bf16.msra.mxu0 %v1910_v15  ;;  %v515_v56 = vcombine.low %v507_v48, %v514_v49  ;;  %v2200_v63 = vsel %vm2139_vm2, %v655_v45, %v660_v52  ;;  %v254_v10 = vrot.slane %v252_v58, 7  ;;  %v266_v19 = vshrl.u32 %v243_v53, 16  ;;  %v200_v43 = vld [vmem:[#allocation2 + $0x2c] sm:$0x3]  ;;  %v140_v58 = vld [vmem:[#allocation2 + $0x4] sm:$0x3] }
  0x2d   :  { %1834 = vmatprep.subr.bf16.mxu0 %v1934_v0  ;;  %v2205_v7 = vsel %vm2139_vm2, %v673_v51, %v678_v57  ;;  %v690_v9 = vcombine.low %v2159_v16, %v2200_v63  ;;  %v250_v17 = vor.u32 %v248_v55, %v247_v1  ;;  %v261_v18 = vrot.slane %v259_v3, 7  ;;  %v1911_v16 = vld [vmem:[%s2437_s1 + $0x70] sm:$0xff]   ;;  %v1913_v45 = vld [vmem:[%s2437_s1 + $0x68] sm:$0xff]  }
  0x2e   :  { %v522_v6 = vrot.slane %v515_v56, %v2073_v2  ;;  %v691_v15 = vcombine.low %v2167_v20, %v2205_v7  ;;  %v257_v23 = vor.u32 %v255_v59, %v254_v10  ;;  %v269_v25 = vshll.u32 %v243_v53, 16  ;;  %v34_v52 = vld [vmem:[%s2438_s0 + $0xd] sm:$0x1]  ;;  %v36_v53 = vld [vmem:[%s2438_s0 + $0xf] sm:$0x1] }
  0x2f   :  { %v698_v22 = vrot.slane %v690_v9, %v2073_v2  ;;  %v264_v32 = vor.u32 %v262_v4, %v261_v18  ;;  %v268_v33 = vrot.slane %v266_v19, 7  ;;  %v280_v34 = vsel %vm2099_vm8, %v250_v17, %v279_v60  ;;  %v149_v3 = vld [vmem:[#allocation2 + $0xa] sm:$0x3]  ;;  %v1914_v4 = vld [vmem:[%s2437_s1 + $0x90] sm:$0xff]  }
  0x30   :  { %1807 = vmatmul.mubr.msk.bf16.vlgmr.msra.gmra.mxu1 %vm451_vm12, %v522_v6  ;;  %v705_v20 = vrot.slane %v691_v15, %v2073_v2  ;;  %281 = vst [vmem:[#allocation2 + $0x18] sm:$0x3] %v280_v34  ;;  %v283_v39 = vsel %vm2099_vm8, %v257_v23, %v282_v5  ;;  %v62_v40 = vmul.f32 %v2005_v8, %v39_v30  ;;  %v192_v51 = vsel %vm2015_vm3, 0, %v191_v31  ;;  %v1915_v5 = vld [vmem:[%s2437_s1 + $0x60] sm:$0xff]  }
  0x31   :  { %1823 = vmatpush3.bf16.msra.mxu1 %v1909_v61  ;;  %1830 = vmatprep.mubr.msk.bf16.mxu1 %vm1935_vm0, %v1934_v0  ;;  %v83_v42 = vadd.f32 %v2011_v11, %v2186_v37  ;;  %v271_v46 = vor.u32 %v269_v25, %v268_v33  ;;  %284 = vst [vmem:[#allocation2 + $0x1a] sm:$0x3] %v283_v39  ;;  %v189_v37 = vsel %vm2015_vm3, 0, %v188_v21  ;;  %193 = vst [vmem:[#allocation2 + $0x26] sm:$0x3] %v192_v51 }
  0x32   :  { %1824 = vmatprep.subr.bf16.mxu1 %v1934_v0  ;;  %v706_v44 = vcombine.low %v698_v22, %v705_v20  ;;  %v286_v24 = vsel %vm2099_vm8, %v264_v32, %v285_v14  ;;  %v84_v30 = vadd.f32 %v2011_v11, %v61_v27  ;;  %v85_v28 = vadd.f32 %v2011_v11, %v62_v40  ;;  %v1916_v32 = vld [vmem:[%s2437_s1 + $0x88] sm:$0xff]  }
  0x33   :  { %287 = vst [vmem:[#allocation2 + $0x1e] sm:$0x3] %v286_v24  ;;  %v86_v35 = vadd.f32 %v2011_v11, %v63_v41  ;;  %v99_v47 = vmax.f32 %v83_v42, 0.0  ;;  %v289_v49 = vsel %vm2099_vm8, %v271_v46, %v288_v26  ;;  %190 = vst [vmem:[#allocation2 + $0x24] sm:$0x3] %v189_v37  ;;  %v198_v57 = vsel %vm2015_vm3, 0, %v197_v38 }
  0x34   :  { %v713_v48 = vrot.slane %v706_v44, %v2073_v2  ;;  %v100_v50 = vmax.f32 %v84_v30, 0.0  ;;  %290 = vst [vmem:[#allocation2 + $0x20] sm:$0x3] %v289_v49  ;;  %v101_v54 = vmax.f32 %v85_v28, 0.0  ;;  %199 = vst [vmem:[#allocation2 + $0x2a] sm:$0x3] %v198_v57  ;;  %v50_v61 = vunpack.c.l.bf16 %v34_v52 }
  0x35   :  { %1825 = vmatpush3.bf16.msra.mxu1 %v1911_v16  ;;  %v102_v55 = vmax.f32 %v86_v35, 0.0  ;;  %v115_v56 = vpack.c.bf16 %v99_v47, %v99_v47  ;;  %v201_v60 = vsel %vm2015_vm3, 0, %v200_v43  ;;  %v52_v1 = vunpack.c.l.bf16 %v36_v53  ;;  %v1918_v37 = vld [vmem:[%s2437_s1 + $0x80] sm:$0xff]   ;;  %v1917_v52 = vld [vmem:[%s2437_s1 + $0xb8] sm:$0xff]  }
  0x36   :  { %1826 = vmatprep.subr.bf16.mxu1 %v1934_v0  ;;  %1819 = vmatmul.mubr.msk.bf16.vlgmr.msra.gmra.mxu0 %vm451_vm12, %v713_v48  ;;  %v116_v59 = vpack.c.bf16 %v100_v50, %v100_v50  ;;  %v117_v6 = vpack.c.bf16 %v101_v54, %v101_v54  ;;  %202 = vst [vmem:[#allocation2 + $0x2c] sm:$0x3] %v201_v60  ;;  %v141_v10 = vsel %vm2015_vm3, 0, %v140_v58  ;;  %v150_v14 = vsel %vm2015_vm3, 0, %v149_v3 }
  0x37   :  { %1835 = vmatpush3.bf16.msra.mxu0 %v1912_v29  ;;  %1842 = vmatprep.mubr.msk.bf16.mxu0 %vm1935_vm0, %v1934_v0  ;;  %v118_v9 = vpack.c.bf16 %v102_v55, %v102_v55  ;;  %208 = vst.msk [vmem:[#allocation2 + $0x24] sm:$0x1] %vm207_vm4, %v115_v56  ;;  %v782_v15 = vld [vmem:[#allocation2 + $0x18] sm:$0x1]  ;;  %v73_v18 = vmul.f32 %v2005_v8, %v50_v61  ;;  %142 = vst [vmem:[#allocation2 + $0x4] sm:$0x3] %v141_v10 }
  0x38   :  { %1836 = vmatprep.subr.bf16.mxu0 %v1934_v0  ;;  %209 = vst.msk [vmem:[#allocation2 + $0x26] sm:$0x1] %vm207_vm4, %v116_v59  ;;  %v1673_v17 = vld.sshfl [vmem:[#allocation2 + $0x18] sm:$0x11 pattern:$0x75316420]  ;;  %v75_v19 = vmul.f32 %v2005_v8, %v52_v1 }
  0x39   :  { %1827 = vmatpush3.bf16.msra.mxu1 %v1913_v45  ;;  %151 = vst [vmem:[#allocation2 + $0xa] sm:$0x3] %v150_v14  ;;  %v783_v21 = vld [vmem:[#allocation2 + $0x1a] sm:$0x1]  ;;  %210 = vst.msk [vmem:[#allocation2 + $0x2a] sm:$0x1] %vm207_vm4, %v117_v6  ;;  %v1015_v23 = vcombine.high %v1673_v17, %v1673_v17  ;;  %v96_v16 = vadd.f32 %v2011_v11, %v73_v18 }
  0x3a   :  { %1828 = vmatprep.subr.bf16.mxu1 %v1934_v0  ;;  %211 = vst.msk [vmem:[#allocation2 + $0x2c] sm:$0x1] %vm207_vm4, %v118_v9  ;;  %v1674_v22 = vld.sshfl [vmem:[#allocation2 + $0x1a] sm:$0x11 pattern:$0x75316420]  ;;  %v799_v26 = vcombine.low %v782_v15, %v783_v21  ;;  %v98_v20 = vadd.f32 %v2011_v11, %v75_v19 }
  0x3b   :  { %v784_v25 = vld [vmem:[#allocation2 + $0x1e] sm:$0x1]  ;;  %v1023_v31 = vcombine.high %v1674_v22, %v1674_v22  ;;  %1837 = vmatpush3.bf16.msra.mxu0 %v1914_v4  ;;  %v1041_v34 = vshrl.u32 %v1673_v17, 16  ;;  %v1046_v38 = vshll.u32 %v1015_v23, 16  ;;  %v1050_v29 = vshrl.u32 %v1674_v22, 16 }
  0x3c   :  { %v1675_v27 = vld.sshfl [vmem:[#allocation2 + $0x1e] sm:$0x11 pattern:$0x75316420]  ;;  %1838 = vmatprep.subr.bf16.mxu0 %v1934_v0  ;;  %v785_v39 = vld [vmem:[#allocation2 + $0x20] sm:$0x1]  ;;  %v807_v40 = vrot.slane %v799_v26, %v2073_v2 }
  0x3d   :  { %v1031_v33 = vcombine.high %v1675_v27, %v1675_v27  ;;  %1829 = vmatpush3.bf16.msra.mxu1 %v1915_v5  ;;  %v1676_v41 = vld.sshfl [vmem:[#allocation2 + $0x20] sm:$0x11 pattern:$0x75316420]  ;;  %v800_v42 = vcombine.low %v784_v25, %v785_v39  ;;  %v2293_v44 = vsel %vm2139_vm2, %v1041_v34, %v1046_v38  ;;  %v1055_v45 = vshll.u32 %v1023_v31, 16 }
  0x3e   :  { %1846 = vmatprep.subr.bf16.mxu1 %v1934_v0  ;;  %v1039_v43 = vcombine.high %v1676_v41, %v1676_v41  ;;  %v891_v46 = vld [vmem:[#allocation2 + $0x24] sm:$0x1]  ;;  %v1059_v24 = vshrl.u32 %v1675_v27, 16  ;;  %v1068_v28 = vshrl.u32 %v1676_v41, 16  ;;  %v112_v35 = vmax.f32 %v96_v16, 0.0  ;;  %v1920_v16 = vld [vmem:[%s2437_s1 + $0xd8] sm:$0xff]  }
  0x3f   :  { %v1064_v30 = vshll.u32 %v1031_v33, 16  ;;  %v814_v47 = vrot.slane %v800_v42, %v2073_v2  ;;  %1839 = vmatpush3.bf16.msra.mxu0 %v1916_v32  ;;  %v892_v48 = vld [vmem:[#allocation2 + $0x26] sm:$0x1]  ;;  %v1057_v49 = vsel %vm2139_vm2, %v1050_v29, %v1055_v45  ;;  %v114_v51 = vmax.f32 %v98_v20, 0.0  ;;  %v30_v5 = vld [vmem:[%s2438_s0 + $0x9] sm:$0x1] }
  0x40   :  { %v1073_v50 = vshll.u32 %v1039_v43, 16  ;;  %1840 = vmatprep.subr.bf16.mxu0 %v1934_v0  ;;  %v893_v53 = vld [vmem:[#allocation2 + $0x2a] sm:$0x1]  ;;  %v908_v55 = vcombine.low %v891_v46, %v892_v48  ;;  %v128_v57 = vpack.c.bf16 %v112_v35, %v112_v35  ;;  %v1085_v3 = vcombine.low %v2293_v44, %v1057_v49  ;;  %v32_v6 = vld [vmem:[%s2438_s0 + $0xb] sm:$0x1]  ;;  %v1923_v48 = vld [vmem:[%s2437_s1 + $0xa0] sm:$0xff]  }
  0x41   :  { %v894_v54 = vld [vmem:[#allocation2 + $0x2c] sm:$0x1]  ;;  %v1066_v56 = vsel %vm2139_vm2, %v1059_v24, %v1064_v30  ;;  %v815_v58 = vcombine.low %v807_v40, %v814_v47  ;;  %v130_v61 = vpack.c.bf16 %v114_v51, %v114_v51  ;;  %v46_v15 = vunpack.c.l.bf16 %v30_v5  ;;  %v158_v17 = vld [vmem:[#allocation2 + $0x10] sm:$0x3]  ;;  %v167_v23 = vld [vmem:[#allocation2 + $0x16] sm:$0x3] }
  0x42   :  { %v909_v59 = vcombine.low %v893_v53, %v894_v54  ;;  %v1075_v60 = vsel %vm2139_vm2, %v1068_v28, %v1073_v50  ;;  %v916_v1 = vrot.slane %v908_v55, %v2073_v2  ;;  %v313_v4 = vrot.slane %v128_v57, %v2075_v13  ;;  %v364_v29 = vld [vmem:[#allocation2 + $0x4] sm:$0x3]  ;;  %v370_v42 = vld [vmem:[#allocation2 + $0xa] sm:$0x3]  ;;  %v1922_v24 = vld [vmem:[%s2437_s1 + $0xd0] sm:$0xff]  }
  0x43   :  { %v822_v9 = vrot.slane %v815_v58, %v2073_v2  ;;  %1841 = vmatpush3.bf16.msra.mxu0 %v1918_v37  ;;  %v327_v14 = vrot.slane %v130_v61, %v2075_v13  ;;  %v1086_v18 = vcombine.low %v1066_v56, %v1075_v60  ;;  %v48_v22 = vunpack.c.l.bf16 %v32_v6  ;;  %v1919_v13 = vld [vmem:[%s2437_s1 + $0xb0] sm:$0xff]   ;;  %v1925_v49 = vld [vmem:[%s2437_s1 + $0xf8] sm:$0xff]   ;;  %v1926_v50 = vld [vmem:[%s2437_s1 + $0xc0] sm:$0xff]  }
  0x44   :  { %v923_v10 = vrot.slane %v909_v59, %v2073_v2  ;;  %1858 = vmatprep.subr.bf16.mxu0 %v1934_v0  ;;  %v336_v19 = vshrl.u32 %v313_v4, 16  ;;  %v339_v21 = vshll.u32 %v313_v4, 16  ;;  %v69_v31 = vmul.f32 %v2005_v8, %v46_v15  ;;  %v1177_v51 = vld [vmem:[#allocation2 + $0x2] sm:$0x1]  ;;  %v1179_v53 = vld [vmem:[#allocation2 + $0x8] sm:$0x1] }
  0x45   :  { %1831 = vmatmul.mubr.msk.bf16.vlgmr.msra.gmra.mxu1 %vm451_vm12, %v822_v9  ;;  %v350_v26 = vshrl.u32 %v327_v14, 16  ;;  %v353_v27 = vshll.u32 %v327_v14, 16  ;;  %v71_v32 = vmul.f32 %v2005_v8, %v48_v22  ;;  %v159_v33 = vsel %vm2015_vm3, 0, %v158_v17  ;;  %v1286_v54 = vld [vmem:[#allocation2 + $0xe] sm:$0x1]  ;;  %v1927_v17 = vld [vmem:[%s2437_s1 + $0xf0] sm:$0xff]  }
  0x46   :  { %v924_v25 = vcombine.low %v916_v1, %v923_v10  ;;  %1847 = vmatpush3.bf16.msra.mxu1 %v1917_v52  ;;  %1854 = vmatprep.mubr.msk.bf16.mxu1 %vm1935_vm0, %v1934_v0  ;;  %v338_v20 = vrot.slane %v336_v19, 7  ;;  %v92_v39 = vadd.f32 %v2011_v11, %v69_v31  ;;  %160 = vst [vmem:[#allocation2 + $0x10] sm:$0x3] %v159_v33  ;;  %v168_v40 = vsel %vm2015_vm3, 0, %v167_v23  ;;  %v1288_v55 = vld [vmem:[#allocation2 + $0x14] sm:$0x1] }
  0x47   :  { %1848 = vmatprep.subr.bf16.mxu1 %v1934_v0  ;;  %v352_v38 = vrot.slane %v350_v26, 7  ;;  %v94_v43 = vadd.f32 %v2011_v11, %v71_v32  ;;  %169 = vst [vmem:[#allocation2 + $0x16] sm:$0x3] %v168_v40  ;;  %v1093_v8 = vrot.slane %v1085_v3, %v2073_v2  ;;  %v1100_v44 = vrot.slane %v1086_v18, %v2073_v2  ;;  %v1928_v23 = vld [vmem:[%s2437_s1 + $0x118] sm:$0xff]   ;;  %v1933_v40 = vld [vmem:[%s2437_s1 + $0x100] sm:$0xff]  }
  0x48   :  { %v931_v34 = vrot.slane %v924_v25, %v2073_v2  ;;  %v341_v41 = vor.u32 %v339_v21, %v338_v20  ;;  %v108_v46 = vmax.f32 %v92_v39, 0.0  ;;  %vm1592_vm3 = vcmask 257024  }
  0x49   :  { %v355_v45 = vor.u32 %v353_v27, %v352_v38  ;;  %v110_v30 = vmax.f32 %v94_v43, 0.0  ;;  %v1101_v37 = vcombine.low %v1093_v8, %v1100_v44 }
  0x4a   :  { %1843 = vmatmul.mubr.msk.bf16.vlgmr.msra.gmra.mxu0 %vm451_vm12, %v931_v34  ;;  %1849 = vmatpush3.bf16.msra.mxu1 %v1919_v13  ;;  %v365_v11 = vsel %vm2099_vm8, %v341_v41, %v364_v29  ;;  %v124_v35 = vpack.c.bf16 %v108_v46, %v108_v46  ;;  %v1931_v34 = vld [vmem:[%s2437_s1 + $0xe0] sm:$0xff]   ;;  %v1932_v29 = vld [vmem:[%s2437_s1 + $0x108] sm:$0xff]  }
  0x4b   :  { %1859 = vmatpush3.bf16.msra.mxu0 %v1920_v16  ;;  %1850 = vmatprep.subr.bf16.mxu1 %v1934_v0  ;;  %366 = vst [vmem:[#allocation2 + $0x4] sm:$0x3] %v365_v11  ;;  %v371_v28 = vsel %vm2099_vm8, %v355_v45, %v370_v42  ;;  %v126_v47 = vpack.c.bf16 %v110_v30, %v110_v30  ;;  %v1929_v16 = vld [vmem:[%s2437_s1 + $0xe8] sm:$0xff]  }
  0x4c   :  { %1860 = vmatprep.subr.bf16.mxu0 %v1934_v0  ;;  %1866 = vmatprep.mubr.msk.bf16.mxu0 %vm1935_vm0, %v1934_v0  ;;  %372 = vst [vmem:[#allocation2 + $0xa] sm:$0x3] %v371_v28  ;;  %293 = vst.msk [vmem:[#allocation2 + $0x10] sm:$0x1] %vm207_vm4, %v124_v35  ;;  %v1108_v52 = vrot.slane %v1101_v37, %v2073_v2 }
  0x4d   :  { %295 = vst.msk [vmem:[#allocation2 + $0x16] sm:$0x1] %vm207_vm4, %v126_v47  ;;  %vm1580_vm4 = vcmask 253952  }
  0x4e   :  { %1851 = vmatpush3.bf16.msra.mxu1 %v1921_v12 }
  0x4f   :  { %1861 = vmatpush3.bf16.msra.mxu0 %v1922_v24  ;;  %1852 = vmatprep.subr.bf16.mxu1 %v1934_v0 }
  0x50   :  { %1862 = vmatprep.subr.bf16.mxu0 %v1934_v0 }
  0x52   :  { %1853 = vmatpush3.bf16.msra.mxu1 %v1923_v48  ;;  %v1178_v56 = vld [vmem:[#allocation2 + $0x4] sm:$0x1] }
  0x53   :  { %1863 = vmatpush3.bf16.msra.mxu0 %v1924_v36  ;;  %v1721_v57 = vld.sshfl [vmem:[#allocation2 + $0x4] sm:$0x11 pattern:$0x75316420]  ;;  %1870 = vmatprep.subr.bf16.mxu1 %v1934_v0  ;;  %v1180_v58 = vld [vmem:[#allocation2 + $0xa] sm:$0x1]  ;;  %v1194_v59 = vcombine.low %v1177_v51, %v1178_v56 }
  0x54   :  { %1864 = vmatprep.subr.bf16.mxu0 %v1934_v0  ;;  %v1723_v60 = vld.sshfl [vmem:[#allocation2 + $0xa] sm:$0x11 pattern:$0x75316420]  ;;  %v1418_v61 = vcombine.high %v1721_v57, %v1721_v57  ;;  %v1195_v1 = vcombine.low %v1179_v53, %v1180_v58  ;;  %v1287_v3 = vld [vmem:[#allocation2 + $0x10] sm:$0x1] }
  0x55   :  { %v1434_v4 = vcombine.high %v1723_v60, %v1723_v60  ;;  %v1445_v5 = vshrl.u32 %v1721_v57, 16  ;;  %1855 = vmatmul.mubr.msk.bf16.vlgmr.msra.gmra.mxu1 %vm451_vm12, %v1108_v52  ;;  %v1202_v6 = vrot.slane %v1194_v59, %v2073_v2  ;;  %v1289_v9 = vld [vmem:[#allocation2 + $0x16] sm:$0x1]  ;;  %v1303_v10 = vcombine.low %v1286_v54, %v1287_v3 }
  0x56   :  { %v1450_v14 = vshll.u32 %v1418_v61, 16  ;;  %v1463_v15 = vshrl.u32 %v1723_v60, 16  ;;  %1871 = vmatpush3.bf16.msra.mxu1 %v1925_v49  ;;  %v1209_v18 = vrot.slane %v1195_v1, %v2073_v2  ;;  %v1304_v19 = vcombine.low %v1288_v55, %v1289_v9  ;;  %1878 = vmatprep.mubr.msk.bf16.mxu1 %vm1935_vm0, %v1934_v0 }
  0x57   :  { %1865 = vmatpush3.bf16.msra.mxu0 %v1926_v50  ;;  %v1468_v21 = vshll.u32 %v1434_v4, 16  ;;  %1872 = vmatprep.subr.bf16.mxu1 %v1934_v0  ;;  %v1311_v25 = vrot.slane %v1303_v10, %v2073_v2 }
  0x58   :  { %1882 = vmatprep.subr.bf16.mxu0 %v1934_v0  ;;  %v1210_v22 = vcombine.low %v1202_v6, %v1209_v18  ;;  %v1318_v26 = vrot.slane %v1304_v19, %v2073_v2  ;;  %v1452_v27 = vsel %vm2139_vm2, %v1445_v5, %v1450_v14 }
  0x59   :  { %v1470_v31 = vsel %vm2139_vm2, %v1463_v15, %v1468_v21  ;;  %v1480_v20 = vcombine.low %v2200_v63, %v1452_v27 }
  0x5a   :  { %1873 = vmatpush3.bf16.msra.mxu1 %v1927_v17  ;;  %v1217_v13 = vrot.slane %v1210_v22, %v2073_v2  ;;  %v1481_v32 = vcombine.low %v2205_v7, %v1470_v31  ;;  %v1319_v33 = vcombine.low %v1311_v25, %v1318_v26 }
  0x5b   :  { %1874 = vmatprep.subr.bf16.mxu1 %v1934_v0  ;;  %v1488_v63 = vrot.slane %v1480_v20, %v2073_v2 }
  0x5c   :  { %1867 = vmatmul.mubr.msk.bf16.vlgmr.msra.gmra.mxu0 %vm451_vm12, %v1217_v13  ;;  %v1495_v7 = vrot.slane %v1481_v32, %v2073_v2  ;;  %v1326_v38 = vrot.slane %v1319_v33, %v2073_v2 }
  0x5d   :  { %1883 = vmatpush3.bf16.msra.mxu0 %v1928_v23  ;;  %1890 = vmatprep.mubr.msk.bf16.mxu0 %vm1935_vm0, %v1934_v0  ;;  %vm1572_vm0 = vcmask 261120  }
  0x5e   :  { %1875 = vmatpush3.bf16.msra.mxu1 %v1929_v16  ;;  %1884 = vmatprep.subr.bf16.mxu0 %v1934_v0  ;;  %v1496_v39 = vcombine.low %v1488_v63, %v1495_v7 }
  0x5f   :  { %1876 = vmatprep.subr.bf16.mxu1 %v1934_v0 }
  0x60   :  { %v1503_v41 = vrot.slane %v1496_v39, %v2073_v2 }
  0x61   :  { %1885 = vmatpush3.bf16.msra.mxu0 %v1930_v62 }
  0x62   :  { %1877 = vmatpush3.bf16.msra.mxu1 %v1931_v34  ;;  %1886 = vmatprep.subr.bf16.mxu0 %v1934_v0 }
  0x65   :  { %1879 = vmatmul.mubr.msk.bf16.vlgmr.msra.gmra.mxu1 %vm451_vm12, %v1326_v38  ;;  %1887 = vmatpush3.bf16.msra.mxu0 %v1932_v29 }
  0x66   :  { %1888 = vmatprep.subr.bf16.mxu0 %v1934_v0 }
  0x69   :  { %1889 = vmatpush3.bf16.msra.mxu0 %v1933_v40 }
  0x6c   :  { %1891 = vmatmul.mubr.msk.bf16.vlgmr.msra.gmra.mxu0 %vm451_vm12, %v1503_v41 }
  0xdf   :  { %v489_v42 = vpop.f32.mrf.mxu0 }
  0xe1   :  { %v1796_v43 = vpop.f32.mrf.mxu0 }
  0xe3   :  { %v492_v8 = vpop.f32.mrf.mxu0 }
  0xe5   :  { %v1797_v44 = vpop.f32.mrf.mxu0 }
  0xf0   :  { %v584_v45 = vpop.f32.mrf.mxu1 }
  0xf1   :  { %v585_v57 = vadd.f32 %v584_v45, %v489_v42 }
  0xf2   :  { %v1808_v46 = vpop.f32.mrf.mxu1 }
  0xf4   :  { %v587_v12 = vpop.f32.mrf.mxu1 }
  0xf6   :  { %v1809_v24 = vpop.f32.mrf.mxu1  ;;  %v775_v11 = vpop.f32.mrf.mxu0 }
  0xf7   :  { %v781_v59 = vadd.f32 %v775_v11, %v585_v57 }
  0xf8   :  { %v1820_v30 = vpop.f32.mrf.mxu0 }
  0xfa   :  { %v778_v28 = vpop.f32.mrf.mxu0 }
  0xfc   :  { %v1821_v35 = vpop.f32.mrf.mxu0 }
 0x105   :  { %v884_v47 = vpop.f32.mrf.mxu1 }
 0x106   :  { %v890_v61 = vadd.f32 %v884_v47, %v781_v59 }
 0x107   :  { %v1832_v37 = vpop.f32.mrf.mxu1 }
 0x109   :  { %v887_v0 = vpop.f32.mrf.mxu1 }
 0x10a   :  { %v993_v48 = vpop.f32.mrf.mxu0 }
 0x10b   :  { %v1833_v2 = vpop.f32.mrf.mxu1  ;;  %v999_v1 = vadd.f32 %v993_v48, %v890_v61 }
 0x10c   :  { %v1844_v36 = vpop.f32.mrf.mxu0 }
 0x10e   :  { %v996_v49 = vpop.f32.mrf.mxu0 }
 0x110   :  { %v1845_v50 = vpop.f32.mrf.mxu0 }
 0x115   :  { %v1170_v51 = vpop.f32.mrf.mxu1 }
 0x116   :  { %v1176_v4 = vadd.f32 %v1170_v51, %v999_v1 }
 0x117   :  { %v1856_v52 = vpop.f32.mrf.mxu1 }
 0x119   :  { %v1173_v53 = vpop.f32.mrf.mxu1 }
 0x11b   :  { %v1857_v54 = vpop.f32.mrf.mxu1 }
 0x11c   :  { %v1279_v55 = vpop.f32.mrf.mxu0 }
 0x11d   :  { %v1285_v6 = vadd.f32 %v1279_v55, %v1176_v4 }
 0x11e   :  { %v1868_v56 = vpop.f32.mrf.mxu0 }
 0x120   :  { %v1282_v58 = vpop.f32.mrf.mxu0 }
 0x122   :  { %v1869_v60 = vpop.f32.mrf.mxu0 }
 0x125   :  { %v1388_v3 = vpop.f32.mrf.mxu1 }
 0x126   :  { %v1394_v10 = vadd.f32 %v1388_v3, %v1285_v6 }
 0x127   :  { %v1880_v5 = vpop.f32.mrf.mxu1 }
 0x129   :  { %v1391_v9 = vpop.f32.mrf.mxu1 }
 0x12b   :  { %v1881_v14 = vpop.f32.mrf.mxu1 }
 0x12c   :  { %v1565_v15 = vpop.f32.mrf.mxu0 }
 0x12d   :  { %v1571_v17 = vadd.f32 %v1565_v15, %v1394_v10 }
 0x12e   :  { %v1892_v18 = vpop.f32.mrf.mxu0 }
 0x12f   :  { %v1573_v19 = vsel %vm1572_vm0, %v1571_v17, 0.0  ;;  %v1582_v21 = vmul.f32 %v1571_v17, %v1571_v17  ;;  %v1591_v22 = vpack.c.bf16 %v1571_v17, %v1571_v17 }
 0x130   :  { %v1574_v23 = vrot.slane %v1573_v19, 4  ;;  %v1568_v25 = vpop.f32.mrf.mxu0 }
 0x131   :  { %v1583_v26 = vsel %vm1572_vm0, %v1582_v21, 0.0  ;;  %1593 = vst.msk [vmem:[%s2441_s4] sm:$0xf] %vm1592_vm3, %v1591_v22 }
 0x132   :  { %v1575_v27 = vadd.f32 %v1574_v23, %v1573_v19  ;;  %v1584_v31 = vrot.slane %v1583_v26, 4  ;;  %v1893_v13 = vpop.f32.mrf.mxu0 }
 0x134   :  { %v1576_v16 = vrot.slane %v1575_v27, 2  ;;  %v1585_v20 = vadd.f32 %v1584_v31, %v1583_v26 }
 0x136   :  { %v1577_v32 = vadd.f32 %v1576_v16, %v1575_v27  ;;  %v1586_v62 = vrot.slane %v1585_v20, 2 }
 0x138   :  { %v1578_v33 = vrot.slane %v1577_v32, 1  ;;  %v1587_v34 = vadd.f32 %v1586_v62, %v1585_v20 }
 0x13a   :  { %v1579_v63 = vadd.f32 %v1578_v33, %v1577_v32  ;;  %v1588_v7 = vrot.slane %v1587_v34, 1 }
 0x13c   :  { %1581 = vst.msk [vmem:[%s2442_s5] sm:$0x1] %vm1580_vm4, %v1579_v63  ;;  %v1589_v38 = vadd.f32 %v1588_v7, %v1587_v34 }
 0x13e   :  { %1590 = vst.msk [vmem:[%s2443_s6] sm:$0x1] %vm1580_vm4, %v1589_v38 }

// kernel: _lambda_.11
= control target key start
LH: loop header
LB: loop body
LE: loop exit
PB: predicated region body
PF: predicated region fallthrough
CT: control target
= control target key end

     0   :  { %vm62_vm0 = vcmask 254976   ;;  %v1559_v0 = vmov 0.0   ;;  %v1560_v2 = vmov 0   ;;  %vm1561_vm1 = vmmov 0   ;;  %s1837_s1 = inlined_call_operand.vmem [shape: bf16[9,32,128], index: 1, kind: input, shape index: {}]   ;;  %s1838_s0 = inlined_call_operand.vmem [shape: bf16[1,2,2,2,32], index: 0, kind: input, shape index: {}]   ;;  %s1839_s2 = inlined_call_operand.vmem [shape: f32[1,32], index: 2, kind: input, shape index: {}]   ;;  %s1840_s3 = inlined_call_operand.vmem [shape: f32[1,32], index: 3, kind: input, shape index: {}]   ;;  %s1841_s4 = inlined_call_operand.vmem [shape: bf16[8,128], index: 4, kind: input, shape index: {}]   ;;  %s1842_s5 = inlined_call_operand.vmem [shape: bf16[8,128], index: 5, kind: output, shape index: {0}]   ;;  %s1843_s6 = inlined_call_operand.vmem [shape: f32[1,128], index: 6, kind: output, shape index: {1}]   ;;  %s1844_s7 = inlined_call_operand.vmem [shape: f32[1,128], index: 7, kind: output, shape index: {2}]  }
   0x1   :  { %1464 = vmatprep.subr.bf16.mxu0 %v1559_v0  ;;  %v1541_v1 = vld [vmem:[%s1837_s1 + $0x18] sm:$0xff]   ;;  %1472 = vmatprep.subr.bf16.mxu1 %v1559_v0  ;;  %63 = vst.msk [vmem:[#allocation2] sm:$0x3] %vm62_vm0, %v1560_v2  ;;  %64 = vst.msk [vmem:[#allocation2 + $0x2] sm:$0x3] %vm62_vm0, %v1560_v2  ;;  %v1542_v3 = vld [vmem:[%s1837_s1 + $0x8] sm:$0xff]   ;;  %v78_v5 = vlaneseq }
   0x2   :  { %67 = vst.msk [vmem:[#allocation2 + $0x8] sm:$0x3] %vm62_vm0, %v1560_v2  ;;  %68 = vst.msk [vmem:[#allocation2 + $0xa] sm:$0x3] %vm62_vm0, %v1560_v2  ;;  %1468 = vmatprep.mubr.msk.bf16.mxu0 %vm1561_vm1, %v1559_v0  ;;  %1476 = vmatprep.mubr.msk.bf16.mxu1 %vm1561_vm1, %v1559_v0  ;;  %v1543_v4 = vld [vmem:[%s1837_s1 + $0x10] sm:$0xff]   ;;  %v1544_v6 = vld [vmem:[%s1837_s1] sm:$0xff]  }
   0x3   :  { %65 = vst.msk [vmem:[#allocation2 + $0x4] sm:$0x3] %vm62_vm0, %v1560_v2  ;;  %66 = vst.msk [vmem:[#allocation2 + $0x6] sm:$0x3] %vm62_vm0, %v1560_v2  ;;  %1465 = vmatpush3.bf16.msra.mxu0 %v1541_v1  ;;  %1473 = vmatpush3.bf16.msra.mxu1 %v1542_v3  ;;  %v24_v7 = vld [vmem:[%s1838_s0] sm:$0x1] }
   0x4   :  { %69 = vst.msk [vmem:[#allocation2 + $0xc] sm:$0x3] %vm62_vm0, %v1560_v2  ;;  %70 = vst.msk [vmem:[#allocation2 + $0xe] sm:$0x3] %vm62_vm0, %v1560_v2  ;;  %1466 = vmatprep.subr.bf16.mxu0 %v1559_v0  ;;  %1474 = vmatprep.subr.bf16.mxu1 %v1559_v0  ;;  %v26_v8 = vld [vmem:[%s1838_s0 + $0x2] sm:$0x1]  ;;  %v28_v10 = vunpack.c.l.bf16 %v24_v7 }
   0x5   :  { %v1334_v9 = vld [vmem:[%s1839_s2] ss:$0 sm:$0xff]  ;;  %v30_v11 = vunpack.c.l.bf16 %v26_v8  ;;  %v1562_v13 = vmov 1983009808   ;;  %v1644_v15 = vshrl.u32 %v78_v5, 7  ;;  %v1545_v34 = vld [vmem:[%s1837_s1 + $0x28] sm:$0xff]  }
   0x6   :  { %v1335_v12 = vld [vmem:[%s1840_s3] ss:$0 sm:$0xff]  ;;  %v76_v14 = vunpack.c.l.s4 %v1562_v13  ;;  %v39_v16 = vmul.f32 %v1334_v9, %v28_v10  ;;  %vm199_vm2 = vsmask.f32 256  ;;  %vm200_vm3 = vsmask.f32 1284 }
   0x7   :  { %1467 = vmatpush3.bf16.msra.mxu0 %v1543_v4  ;;  %1475 = vmatpush3.bf16.msra.mxu1 %v1544_v6  ;;  %v41_v17 = vmul.f32 %v1334_v9, %v30_v11  ;;  %vm201_vm4 = vmor %vm199_vm2, %vm200_vm3  ;;  %vm202_vm5 = vsmask.f32 2312  ;;  %vm204_vm7 = vsmask.f32 3340  ;;  %vm137_vm8 = vsmask.f32 1282 }
   0x8   :  { %1480 = vmatprep.subr.bf16.mxu0 %v1559_v0  ;;  %v77_v18 = vunpack.c.0.s8 %v76_v14  ;;  %1488 = vmatprep.subr.bf16.mxu1 %v1559_v0  ;;  %v50_v19 = vadd.f32 %v1335_v12, %v39_v16  ;;  %vm203_vm6 = vmor %vm201_vm4, %vm202_vm5  ;;  %vm206_vm10 = vsmask.f32 4368  ;;  %v1336_v32 = vld.sshfl [vmem:[#allocation2] sm:$0x11 pattern:$0x75316420] }
   0x9   :  { %v52_v20 = vadd.f32 %v1335_v12, %v41_v17  ;;  %vm205_vm9 = vmor %vm203_vm6, %vm204_vm7  ;;  %v25_v33 = vld [vmem:[%s1838_s0 + $0x1] sm:$0x1]  ;;  %vm208_vm12 = vsmask.f32 5396  ;;  %v27_v35 = vld [vmem:[%s1838_s0 + $0x3] sm:$0x1]  ;;  %v174_v47 = vcombine.high %v1336_v32, %v1336_v32 }
   0xa   :  { %v54_v21 = vmax.f32 %v50_v19, 0.0  ;;  %v80_v23 = vsub.s32 %v77_v18, %v1644_v15  ;;  %vm1653_vm11 = vmand %vm62_vm0, %vm137_vm8  ;;  %v29_v36 = vunpack.c.l.bf16 %v25_v33  ;;  %v31_v39 = vunpack.c.l.bf16 %v27_v35  ;;  %v139_v40 = vld [vmem:[#allocation2 + $0x2] sm:$0x3]  ;;  %v145_v41 = vld [vmem:[#allocation2 + $0xa] sm:$0x3] }
   0xb   :  { %v56_v22 = vmax.f32 %v52_v20, 0.0  ;;  %vm207_vm13 = vmor %vm205_vm9, %vm206_vm10  ;;  %v1338_v45 = vld.sshfl [vmem:[#allocation2 + $0x8] sm:$0x11 pattern:$0x75316420]  ;;  %v215_v59 = vshrl.u32 %v1336_v32, 16 }
   0xc   :  { %v58_v24 = vpack.c.bf16 %v54_v21, %v54_v21  ;;  %v40_v42 = vmul.f32 %v1334_v9, %v29_v36  ;;  %v42_v46 = vmul.f32 %v1334_v9, %v31_v39  ;;  %vm209_vm14 = vmor %vm207_vm13, %vm208_vm12  ;;  %vm210_vm15 = vsmask.f32 6424  ;;  %v151_v2 = vld [vmem:[#allocation2] sm:$0x1]  ;;  %v153_v6 = vld [vmem:[#allocation2 + $0x8] sm:$0x1] }
   0xd   :  { %v60_v25 = vpack.c.bf16 %v56_v22, %v56_v22  ;;  %v1563_v48 = vmov 1966171168   ;;  %vm212_vm0 = vsmask.f32 7452  ;;  %vm211_vm2 = vmor %vm209_vm14, %vm210_vm15  ;;  %v190_v56 = vcombine.high %v1338_v45, %v1338_v45 }
   0xe   :  { %v81_v26 = vrot.slane %v58_v24, %v80_v23  ;;  %v258_v49 = vunpack.c.l.s4 %v1563_v48  ;;  %v51_v50 = vadd.f32 %v1335_v12, %v40_v42  ;;  %v53_v53 = vadd.f32 %v1335_v12, %v42_v46  ;;  %vm1665_vm3 = vmor %vm211_vm2, %vm212_vm0  ;;  %v142_v12 = vld [vmem:[#allocation2 + $0x4] sm:$0x3]  ;;  %v1354_v22 = vld.sshfl [vmem:[#allocation2] sm:$0x10 pattern:$0x75316420] }
   0xf   :  { %v95_v27 = vrot.slane %v60_v25, %v80_v23  ;;  %v220_v60 = vshll.u32 %v174_v47, 16  ;;  %v233_v1 = vshrl.u32 %v1338_v45, 16  ;;  %v238_v4 = vshll.u32 %v190_v56, 16  ;;  %v1546_v47 = vld [vmem:[%s1837_s1 + $0x38] sm:$0xff]  }
  0x10   :  { %v104_v28 = vshrl.u32 %v81_v26, 16  ;;  %v107_v29 = vshll.u32 %v81_v26, 16  ;;  %v55_v54 = vmax.f32 %v51_v50, 0.0  ;;  %v57_v55 = vmax.f32 %v53_v53, 0.0 }
  0x11   :  { %v118_v30 = vshrl.u32 %v95_v27, 16  ;;  %v121_v31 = vshll.u32 %v95_v27, 16  ;;  %v259_v57 = vunpack.c.0.s8 %v258_v49  ;;  %v222_v10 = vsel %vm1665_vm3, %v215_v59, %v220_v60  ;;  %v1412_v56 = vld.sshfl [vmem:[#allocation2 + $0xe] sm:$0x11 pattern:$0x75316420] }
  0x12   :  { %v106_v37 = vrot.slane %v104_v28, 7  ;;  %v59_v58 = vpack.c.bf16 %v55_v54, %v55_v54  ;;  %v61_v61 = vpack.c.bf16 %v57_v55, %v57_v55  ;;  %vm291_vm4 = vcmask 261120  }
  0x13   :  { %v120_v38 = vrot.slane %v118_v30, 7  ;;  %v1670_v5 = vsub.s32 %v259_v57, %v1644_v15  ;;  %v1356_v15 = vld.sshfl [vmem:[#allocation2 + $0x8] sm:$0x10 pattern:$0x75316420]  ;;  %v240_v30 = vsel %vm1665_vm3, %v233_v1, %v238_v4  ;;  %v1548_v57 = vld [vmem:[%s1837_s1 + $0x30] sm:$0xff]   ;;  %v1055_v4 = vcombine.high %v1412_v56, %v1412_v56 }
  0x14   :  { %v109_v43 = vor.u32 %v107_v29, %v106_v37  ;;  %v88_v63 = vrot.slane %v59_v58, %v80_v23  ;;  %v102_v3 = vrot.slane %v61_v61, %v80_v23 }
  0x15   :  { %v123_v44 = vor.u32 %v121_v31, %v120_v38  ;;  %v148_v38 = vld [vmem:[#allocation2 + $0xc] sm:$0x3] }
  0x16   :  { %v140_v51 = vsel %vm1653_vm11, %v109_v43, %v139_v40  ;;  %v111_v7 = vshrl.u32 %v88_v63, 16  ;;  %v114_v8 = vshll.u32 %v88_v63, 16  ;;  %v125_v23 = vshrl.u32 %v102_v3, 16 }
  0x17   :  { %v146_v52 = vsel %vm1653_vm11, %v123_v44, %v145_v41  ;;  %141 = vst [vmem:[#allocation2 + $0x2] sm:$0x3] %v140_v51  ;;  %v128_v24 = vshll.u32 %v102_v3, 16 }
  0x18   :  { %147 = vst [vmem:[#allocation2 + $0xa] sm:$0x3] %v146_v52  ;;  %v113_v18 = vrot.slane %v111_v7, 7  ;;  %v127_v33 = vrot.slane %v125_v23, 7 }
  0x19   :  { %v1704_v51 = vld.sshfl [vmem:[#allocation2 + $0x6] sm:$0x11 pattern:$0x75316420] }
  0x1a   :  { %v116_v29 = vor.u32 %v114_v8, %v113_v18  ;;  %v130_v41 = vor.u32 %v128_v24, %v127_v33  ;;  %v1039_v3 = vcombine.high %v1704_v51, %v1704_v51 }
  0x1c   :  { %v143_v37 = vsel %vm1653_vm11, %v116_v29, %v142_v12  ;;  %v149_v48 = vsel %vm1653_vm11, %v130_v41, %v148_v38 }
  0x1d   :  { %144 = vst [vmem:[#allocation2 + $0x4] sm:$0x3] %v143_v37  ;;  %150 = vst [vmem:[#allocation2 + $0xc] sm:$0x3] %v149_v48 }
  0x1e   :  { %v1337_v9 = vld.sshfl [vmem:[#allocation2 + $0x2] sm:$0x11 pattern:$0x75316420] }
  0x1f   :  { %v152_v11 = vld [vmem:[#allocation2 + $0x2] sm:$0x1]  ;;  %v1339_v13 = vld.sshfl [vmem:[#allocation2 + $0xa] sm:$0x11 pattern:$0x75316420]  ;;  %v182_v14 = vcombine.high %v1337_v9, %v1337_v9 }
  0x20   :  { %v224_v16 = vshrl.u32 %v1337_v9, 16  ;;  %v339_v17 = vcombine.low %v151_v2, %v152_v11  ;;  %v198_v19 = vcombine.high %v1339_v13, %v1339_v13  ;;  %v242_v20 = vshrl.u32 %v1339_v13, 16  ;;  %v154_v21 = vld [vmem:[#allocation2 + $0xa] sm:$0x1]  ;;  %v543_v55 = vld [vmem:[#allocation2 + $0x2] sm:$0x1] }
  0x21   :  { %v229_v25 = vshll.u32 %v182_v14, 16  ;;  %v340_v26 = vcombine.low %v153_v6, %v154_v21  ;;  %v1675_v28 = vld.sshfl [vmem:[#allocation2 + $0x2] sm:$0x10 pattern:$0x75316420]  ;;  %v1066_v9 = vshrl.u32 %v1704_v51, 16 }
  0x22   :  { %v347_v27 = vrot.slane %v339_v17, %v1670_v5  ;;  %v247_v31 = vshll.u32 %v198_v19, 16  ;;  %v1679_v32 = vld.sshfl [vmem:[#allocation2 + $0xa] sm:$0x10 pattern:$0x75316420]  ;;  %v1362_v44 = vcombine.high %v1354_v22, %v1675_v28  ;;  %v1547_v6 = vld [vmem:[%s1837_s1 + $0x20] sm:$0xff]  }
  0x23   :  { %v1683_v35 = vsel %vm1665_vm3, %v224_v16, %v229_v25  ;;  %v354_v36 = vrot.slane %v340_v26, %v1670_v5  ;;  %v1363_v45 = vcombine.high %v1356_v15, %v1679_v32  ;;  %v545_v61 = vld [vmem:[#allocation2 + $0xa] sm:$0x1]  ;;  %v1071_v21 = vshll.u32 %v1039_v3, 16  ;;  %v1555_v3 = vld [vmem:[%s1837_s1 + $0x60] sm:$0xff]  }
  0x24   :  { %v1690_v39 = vsel %vm1665_vm3, %v242_v20, %v247_v31  ;;  %v255_v40 = vcombine.low %v222_v10, %v1683_v35  ;;  %v471_v53 = vrot.slane %v1362_v44, %v1670_v5  ;;  %v544_v59 = vld [vmem:[#allocation2 + $0x4] sm:$0x1]  ;;  %v1719_v2 = vld.sshfl [vmem:[#allocation2 + $0x4] sm:$0x10 pattern:$0x75316420] }
  0x25   :  { %v256_v42 = vcombine.low %v240_v30, %v1690_v39  ;;  %v355_v43 = vcombine.low %v347_v27, %v354_v36  ;;  %v478_v54 = vrot.slane %v1363_v45, %v1670_v5  ;;  %v1375_v60 = vld.sshfl [vmem:[#allocation2 + $0x4] sm:$0x11 pattern:$0x75316420]  ;;  %v556_v63 = vcombine.low %v543_v55, %v544_v59  ;;  %v546_v10 = vld [vmem:[#allocation2 + $0xc] sm:$0x1] }
  0x26   :  { %v263_v46 = vrot.slane %v255_v40, %v1670_v5  ;;  %v659_v1 = vcombine.high %v1375_v60, %v1375_v60  ;;  %v686_v8 = vshrl.u32 %v1375_v60, 16  ;;  %v1377_v12 = vld.sshfl [vmem:[#allocation2 + $0xc] sm:$0x11 pattern:$0x75316420]  ;;  %v1397_v13 = vcombine.high %v1675_v28, %v1719_v2  ;;  %v1550_v40 = vld [vmem:[%s1837_s1 + $0x58] sm:$0xff]  }
  0x27   :  { %v270_v49 = vrot.slane %v256_v42, %v1670_v5  ;;  %v362_v50 = vrot.slane %v355_v43, %v1670_v5  ;;  %v479_v7 = vcombine.low %v471_v53, %v478_v54  ;;  %v564_v11 = vrot.slane %v556_v63, %v1670_v5  ;;  %v1734_v19 = vld.sshfl [vmem:[#allocation2 + $0xc] sm:$0x10 pattern:$0x75316420]  ;;  %v924_v28 = vld [vmem:[#allocation2 + $0x6] sm:$0x1] }
  0x28   :  { %v557_v14 = vcombine.low %v545_v61, %v546_v10  ;;  %v675_v16 = vcombine.high %v1377_v12, %v1377_v12  ;;  %v691_v17 = vshll.u32 %v659_v1, 16  ;;  %v704_v18 = vshrl.u32 %v1377_v12, 16  ;;  %v1549_v25 = vld [vmem:[%s1837_s1 + $0x48] sm:$0xff]   ;;  %v923_v30 = vld [vmem:[#allocation2 + $0x4] sm:$0x1]  ;;  %v1554_v60 = vld [vmem:[%s1837_s1 + $0x78] sm:$0xff]  }
  0x29   :  { %v271_v52 = vcombine.low %v263_v46, %v270_v49  ;;  %1477 = vmatmul.mubr.msk.bf16.vlgmr.msra.gmra.mxu1 %vm291_vm4, %v362_v50  ;;  %v1398_v20 = vcombine.high %v1679_v32, %v1734_v19  ;;  %v1084_v22 = vshrl.u32 %v1412_v56, 16  ;;  %v1089_v15 = vshll.u32 %v1055_v4, 16  ;;  %v925_v31 = vld [vmem:[#allocation2 + $0xc] sm:$0x1]  ;;  %v926_v32 = vld [vmem:[#allocation2 + $0xe] sm:$0x1] }
  0x2a   :  { %1489 = vmatpush3.bf16.msra.mxu1 %v1546_v47  ;;  %1492 = vmatprep.mubr.msk.bf16.mxu1 %vm1561_vm1, %v1559_v0  ;;  %v486_v23 = vrot.slane %v479_v7, %v1670_v5  ;;  %v571_v24 = vrot.slane %v557_v14, %v1670_v5  ;;  %v693_v26 = vsel %vm1665_vm3, %v686_v8, %v691_v17  ;;  %v709_v27 = vshll.u32 %v675_v16, 16  ;;  %v1551_v47 = vld [vmem:[%s1837_s1 + $0x40] sm:$0xff]   ;;  %v1552_v50 = vld [vmem:[%s1837_s1 + $0x50] sm:$0xff]   ;;  %v1553_v56 = vld [vmem:[%s1837_s1 + $0x68] sm:$0xff]  }
  0x2b   :  { %v278_v58 = vrot.slane %v271_v52, %v1670_v5  ;;  %1490 = vmatprep.subr.bf16.mxu1 %v1559_v0  ;;  %v717_v29 = vcombine.low %v1683_v35, %v693_v26  ;;  %v850_v37 = vrot.slane %v1397_v13, %v1670_v5  ;;  %v857_v38 = vrot.slane %v1398_v20, %v1670_v5  ;;  %v1425_v54 = vld.sshfl [vmem:[#allocation2 + $0x6] sm:$0x10 pattern:$0x75316420] }
  0x2c   :  { %v572_v33 = vcombine.low %v564_v11, %v571_v24  ;;  %v711_v36 = vsel %vm1665_vm3, %v704_v18, %v709_v27  ;;  %v1073_v42 = vsel %vm1665_vm3, %v1066_v9, %v1071_v21  ;;  %v1091_v43 = vsel %vm1665_vm3, %v1084_v22, %v1089_v15  ;;  %v1557_v9 = vld [vmem:[%s1837_s1 + $0x88] sm:$0xff]   ;;  %v1558_v12 = vld [vmem:[%s1837_s1 + $0x80] sm:$0xff]  }
  0x2d   :  { %1469 = vmatmul.mubr.msk.bf16.vlgmr.msra.gmra.mxu0 %vm291_vm4, %v278_v58  ;;  %v718_v41 = vcombine.low %v1690_v39, %v711_v36  ;;  %v725_v35 = vrot.slane %v717_v29, %v1670_v5  ;;  %v936_v45 = vcombine.low %v923_v30, %v924_v28  ;;  %v937_v46 = vcombine.low %v925_v31, %v926_v32 }
  0x2e   :  { %1481 = vmatpush3.bf16.msra.mxu0 %v1545_v34  ;;  %1491 = vmatpush3.bf16.msra.mxu1 %v1548_v57  ;;  %v579_v44 = vrot.slane %v572_v33, %v1670_v5  ;;  %v858_v62 = vcombine.low %v850_v37, %v857_v38  ;;  %v1097_v48 = vcombine.low %v693_v26, %v1073_v42  ;;  %v1427_v34 = vld.sshfl [vmem:[#allocation2 + $0xe] sm:$0x10 pattern:$0x75316420] }
  0x2f   :  { %1482 = vmatprep.subr.bf16.mxu0 %v1559_v0  ;;  %1484 = vmatprep.mubr.msk.bf16.mxu0 %vm1561_vm1, %v1559_v0  ;;  %v732_v39 = vrot.slane %v718_v41, %v1670_v5  ;;  %v1098_v49 = vcombine.low %v711_v36, %v1091_v43  ;;  %v944_v52 = vrot.slane %v936_v45, %v1670_v5 }
  0x30   :  { %1504 = vmatprep.subr.bf16.mxu1 %v1559_v0  ;;  %v951_v53 = vrot.slane %v937_v46, %v1670_v5  ;;  %v865_v57 = vrot.slane %v858_v62, %v1670_v5  ;;  %v1105_v58 = vrot.slane %v1097_v48, %v1670_v5  ;;  %v1432_v63 = vcombine.high %v1719_v2, %v1425_v54  ;;  %v1556_v2 = vld [vmem:[%s1837_s1 + $0x70] sm:$0xff]   ;;  %v1302_v62 = vld [vmem:[%s1841_s4] sm:$0xf] }
  0x31   :  { %1493 = vmatmul.mubr.msk.bf16.vlgmr.msra.gmra.mxu1 %vm291_vm4, %v579_v44  ;;  %v733_v51 = vcombine.low %v725_v35, %v732_v39  ;;  %v1112_v59 = vrot.slane %v1098_v49, %v1670_v5  ;;  %v1433_v1 = vcombine.high %v1734_v19, %v1427_v34 }
  0x32   :  { %1483 = vmatpush3.bf16.msra.mxu0 %v1547_v6  ;;  %1505 = vmatpush3.bf16.msra.mxu1 %v1550_v40  ;;  %v952_v61 = vcombine.low %v944_v52, %v951_v53  ;;  %v1230_v7 = vrot.slane %v1432_v63, %v1670_v5 }
  0x33   :  { %1496 = vmatprep.subr.bf16.mxu0 %v1559_v0  ;;  %1508 = vmatprep.mubr.msk.bf16.mxu1 %vm1561_vm1, %v1559_v0  ;;  %v740_v55 = vrot.slane %v733_v51, %v1670_v5  ;;  %v1113_v4 = vcombine.low %v1105_v58, %v1112_v59  ;;  %v1237_v8 = vrot.slane %v1433_v1, %v1670_v5  ;;  %v1303_v51 = vunpack.c.l.bf16 %v1302_v62 }
  0x34   :  { %1506 = vmatprep.subr.bf16.mxu1 %v1559_v0  ;;  %v959_v6 = vrot.slane %v952_v61, %v1670_v5 }
  0x35   :  { %1485 = vmatmul.mubr.msk.bf16.vlgmr.msra.gmra.mxu0 %vm291_vm4, %v486_v23  ;;  %v1120_v10 = vrot.slane %v1113_v4, %v1670_v5  ;;  %v1238_v11 = vcombine.low %v1230_v7, %v1237_v8 }
  0x36   :  { %1497 = vmatpush3.bf16.msra.mxu0 %v1549_v25  ;;  %1500 = vmatprep.mubr.msk.bf16.mxu0 %vm1561_vm1, %v1559_v0 }
  0x37   :  { %1498 = vmatprep.subr.bf16.mxu0 %v1559_v0  ;;  %1507 = vmatpush3.bf16.msra.mxu1 %v1552_v50  ;;  %v1245_v13 = vrot.slane %v1238_v11, %v1670_v5 }
  0x38   :  { %1520 = vmatprep.subr.bf16.mxu1 %v1559_v0 }
  0x3a   :  { %1499 = vmatpush3.bf16.msra.mxu0 %v1551_v47  ;;  %1509 = vmatmul.mubr.msk.bf16.vlgmr.msra.gmra.mxu1 %vm291_vm4, %v865_v57 }
  0x3b   :  { %1512 = vmatprep.subr.bf16.mxu0 %v1559_v0  ;;  %1521 = vmatpush3.bf16.msra.mxu1 %v1554_v60 }
  0x3c   :  { %1524 = vmatprep.mubr.msk.bf16.mxu1 %vm1561_vm1, %v1559_v0  ;;  %1522 = vmatprep.subr.bf16.mxu1 %v1559_v0 }
  0x3d   :  { %1501 = vmatmul.mubr.msk.bf16.vlgmr.msra.gmra.mxu0 %vm291_vm4, %v740_v55 }
  0x3e   :  { %1513 = vmatpush3.bf16.msra.mxu0 %v1553_v56  ;;  %1516 = vmatprep.mubr.msk.bf16.mxu0 %vm1561_vm1, %v1559_v0 }
  0x3f   :  { %1514 = vmatprep.subr.bf16.mxu0 %v1559_v0  ;;  %1523 = vmatpush3.bf16.msra.mxu1 %v1556_v2 }
  0x42   :  { %1515 = vmatpush3.bf16.msra.mxu0 %v1555_v3  ;;  %1525 = vmatmul.mubr.msk.bf16.vlgmr.msra.gmra.mxu1 %vm291_vm4, %v1120_v10 }
  0x43   :  { %1528 = vmatprep.subr.bf16.mxu0 %v1559_v0 }
  0x45   :  { %1517 = vmatmul.mubr.msk.bf16.vlgmr.msra.gmra.mxu0 %vm291_vm4, %v959_v6 }
  0x46   :  { %1529 = vmatpush3.bf16.msra.mxu0 %v1557_v9  ;;  %1532 = vmatprep.mubr.msk.bf16.mxu0 %vm1561_vm1, %v1559_v0 }
  0x47   :  { %1530 = vmatprep.subr.bf16.mxu0 %v1559_v0 }
  0x4a   :  { %1531 = vmatpush3.bf16.msra.mxu0 %v1558_v12 }
  0x4d   :  { %1533 = vmatmul.mubr.msk.bf16.vlgmr.msra.gmra.mxu0 %vm291_vm4, %v1245_v13 }
  0xe9   :  { %v412_v14 = vpop.f32.mrf.mxu1 }
  0xeb   :  { %v1478_v16 = vpop.f32.mrf.mxu1 }
  0xed   :  { %v329_v17 = vpop.f32.mrf.mxu0  ;;  %v415_v18 = vpop.f32.mrf.mxu1 }
  0xee   :  { %v413_v27 = vadd.f32 %v412_v14, %v329_v17 }
  0xef   :  { %v1470_v19 = vpop.f32.mrf.mxu0  ;;  %v1479_v20 = vpop.f32.mrf.mxu1 }
  0xf1   :  { %v332_v21 = vpop.f32.mrf.mxu0  ;;  %v629_v23 = vpop.f32.mrf.mxu1 }
  0xf3   :  { %v1471_v22 = vpop.f32.mrf.mxu0  ;;  %v1494_v25 = vpop.f32.mrf.mxu1 }
  0xf5   :  { %v536_v15 = vpop.f32.mrf.mxu0  ;;  %v632_v0 = vpop.f32.mrf.mxu1 }
  0xf6   :  { %v542_v5 = vadd.f32 %v536_v15, %v413_v27 }
  0xf7   :  { %v1486_v24 = vpop.f32.mrf.mxu0  ;;  %v1495_v29 = vpop.f32.mrf.mxu1 }
  0xf8   :  { %v635_v33 = vadd.f32 %v629_v23, %v542_v5 }
  0xf9   :  { %v539_v26 = vpop.f32.mrf.mxu0 }
  0xfa   :  { %v915_v31 = vpop.f32.mrf.mxu1 }
  0xfb   :  { %v1487_v28 = vpop.f32.mrf.mxu0 }
  0xfc   :  { %v1510_v36 = vpop.f32.mrf.mxu1 }
  0xfd   :  { %v790_v30 = vpop.f32.mrf.mxu0 }
  0xfe   :  { %v796_v38 = vadd.f32 %v790_v30, %v635_v33  ;;  %v918_v40 = vpop.f32.mrf.mxu1 }
  0xff   :  { %v1502_v32 = vpop.f32.mrf.mxu0 }
 0x100   :  { %v1511_v35 = vpop.f32.mrf.mxu1  ;;  %v921_v43 = vadd.f32 %v915_v31, %v796_v38 }
 0x101   :  { %v793_v37 = vpop.f32.mrf.mxu0 }
 0x102   :  { %v1170_v44 = vpop.f32.mrf.mxu1 }
 0x103   :  { %v1503_v41 = vpop.f32.mrf.mxu0 }
 0x104   :  { %v1526_v47 = vpop.f32.mrf.mxu1 }
 0x105   :  { %v1009_v42 = vpop.f32.mrf.mxu0 }
 0x106   :  { %v1015_v46 = vadd.f32 %v1009_v42, %v921_v43  ;;  %v1173_v48 = vpop.f32.mrf.mxu1 }
 0x107   :  { %v1518_v45 = vpop.f32.mrf.mxu0 }
 0x108   :  { %v1176_v50 = vadd.f32 %v1170_v44, %v1015_v46  ;;  %v1527_v52 = vpop.f32.mrf.mxu1 }
 0x109   :  { %v1012_v39 = vpop.f32.mrf.mxu0 }
 0x10b   :  { %v1519_v49 = vpop.f32.mrf.mxu0 }
 0x10d   :  { %v1295_v53 = vpop.f32.mrf.mxu0 }
 0x10e   :  { %v1301_v54 = vadd.f32 %v1295_v53, %v1176_v50 }
 0x10f   :  { %v1534_v55 = vpop.f32.mrf.mxu0 }
 0x110   :  { %v1304_v56 = vadd.f32 %v1303_v51, %v1301_v54 }
 0x111   :  { %v1298_v34 = vpop.f32.mrf.mxu0 }
 0x112   :  { %v1305_v57 = vrot.slane %v1304_v56, 4  ;;  %v1312_v58 = vmul.f32 %v1304_v56, %v1304_v56  ;;  %v1320_v59 = vpack.c.bf16 %v1304_v56, %v1304_v56 }
 0x113   :  { %v1535_v60 = vpop.f32.mrf.mxu0 }
 0x114   :  { %v1306_v61 = vadd.f32 %v1305_v57, %v1304_v56  ;;  %v1313_v63 = vrot.slane %v1312_v58, 4  ;;  %1321 = vst [vmem:[%s1842_s5] sm:$0xf] %v1320_v59 }
 0x116   :  { %v1307_v1 = vrot.slane %v1306_v61, 2  ;;  %v1314_v3 = vadd.f32 %v1313_v63, %v1312_v58 }
 0x118   :  { %v1308_v4 = vadd.f32 %v1307_v1, %v1306_v61  ;;  %v1315_v2 = vrot.slane %v1314_v3, 2 }
 0x11a   :  { %v1309_v6 = vrot.slane %v1308_v4, 1  ;;  %v1316_v7 = vadd.f32 %v1315_v2, %v1314_v3 }
 0x11c   :  { %v1310_v8 = vadd.f32 %v1309_v6, %v1308_v4  ;;  %v1317_v9 = vrot.slane %v1316_v7, 1 }
 0x11e   :  { %1311 = vst [vmem:[%s1843_s6] sm:$0x1] %v1310_v8  ;;  %v1318_v10 = vadd.f32 %v1317_v9, %v1316_v7 }
 0x120   :  { %1319 = vst [vmem:[%s1844_s7] sm:$0x1] %v1318_v10 }

// kernel: _lambda_.12
= control target key start
LH: loop header
LB: loop body
LE: loop exit
PB: predicated region body
PF: predicated region fallthrough
CT: control target
= control target key end

     0   :  { %12 = vsyncpa [#allocation4], 0  ;;  %v2147_v1 = vmov 0.0   ;;  %vm2148_vm0 = vmmov 0   ;;  %v2149_v5 = vmov 0   ;;  %v104_v10 = vlaneseq  ;;  %s2629_s0 = inlined_call_operand.vmem [shape: bf16[4,2,1,1,128], index: 0, kind: input, shape index: {}]   ;;  %s2630_s1 = inlined_call_operand.vmem [shape: bf16[9,128,64], index: 1, kind: input, shape index: {}]   ;;  %s2631_s2 = inlined_call_operand.vmem [shape: f32[1,128], index: 2, kind: input, shape index: {}]   ;;  %s2632_s3 = inlined_call_operand.vmem [shape: f32[1,128], index: 3, kind: input, shape index: {}]   ;;  %s2633_s4 = inlined_call_operand.vmem [shape: bf16[2,64], index: 4, kind: output, shape index: {0}]   ;;  %s2634_s5 = inlined_call_operand.hbm [shape: f32[1,64], index: 5, kind: output, shape index: {1}]   ;;  %s2635_s6 = inlined_call_operand.hbm [shape: f32[1,64], index: 6, kind: output, shape index: {2}]  }
   0x1   :  { %v2031_v0 = vld [vmem:[%s2630_s1 + $0x78] sm:$0xff]   ;;  %1845 = vmatprep.subr.bf16.mxu0 %v2147_v1  ;;  %1865 = vmatprep.subr.bf16.mxu1 %v2147_v1  ;;  %v2033_v3 = vld [vmem:[%s2630_s1 + $0x70] sm:$0xff]   ;;  %77 = vst [vmem:[#allocation2 + $0x4] sm:$0x1] %v2149_v5  ;;  %79 = vst [vmem:[#allocation2 + $0x6] sm:$0x1] %v2149_v5 }
   0x2   :  { %v2032_v2 = vld [vmem:[%s2630_s1 + $0x38] sm:$0xff]   ;;  %1846 = vmatpush3.bf16.msra.mxu0 %v2031_v0  ;;  %1861 = vmatprep.mubr.msk.bf16.mxu0 %vm2148_vm0, %v2147_v1  ;;  %v2034_v4 = vld [vmem:[%s2630_s1 + $0x30] sm:$0xff]   ;;  %73 = vst [vmem:[#allocation2] sm:$0x1] %v2149_v5  ;;  %74 = vst [vmem:[#allocation2 + $0x1] sm:$0x1] %v2149_v5 }
   0x3   :  { %1866 = vmatpush3.bf16.msra.mxu1 %v2032_v2  ;;  %1847 = vmatprep.subr.bf16.mxu0 %v2147_v1  ;;  %75 = vst [vmem:[#allocation2 + $0x2] sm:$0x1] %v2149_v5  ;;  %76 = vst [vmem:[#allocation2 + $0x3] sm:$0x1] %v2149_v5  ;;  %v2035_v6 = vld [vmem:[%s2630_s1 + $0x68] sm:$0xff]   ;;  %v2037_v8 = vld [vmem:[%s2630_s1 + $0x60] sm:$0xff]  }
   0x4   :  { %78 = vst [vmem:[#allocation2 + $0x5] sm:$0x1] %v2149_v5  ;;  %80 = vst [vmem:[#allocation2 + $0x7] sm:$0x1] %v2149_v5  ;;  %1867 = vmatprep.subr.bf16.mxu1 %v2147_v1  ;;  %1881 = vmatprep.mubr.msk.bf16.mxu1 %vm2148_vm0, %v2147_v1  ;;  %v2036_v7 = vld [vmem:[%s2630_s1 + $0x28] sm:$0xff]   ;;  %v2038_v9 = vld [vmem:[%s2630_s1 + $0x20] sm:$0xff]  }
   0x5   :  { %81 = vst [vmem:[#allocation2 + $0x8] sm:$0x1] %v2149_v5  ;;  %83 = vst [vmem:[#allocation2 + $0xa] sm:$0x1] %v2149_v5  ;;  %v2039_v11 = vld [vmem:[%s2630_s1 + $0x58] sm:$0xff]   ;;  %v2041_v13 = vld [vmem:[%s2630_s1 + $0x50] sm:$0xff]  }
   0x6   :  { %85 = vst [vmem:[#allocation2 + $0xc] sm:$0x1] %v2149_v5  ;;  %87 = vst [vmem:[#allocation2 + $0xe] sm:$0x1] %v2149_v5  ;;  %1848 = vmatpush3.bf16.msra.mxu0 %v2033_v3  ;;  %v2040_v12 = vld [vmem:[%s2630_s1 + $0x18] sm:$0xff]   ;;  %v105_v16 = vshrl.u32 %v104_v10, 7 }
   0x7   :  { %1868 = vmatpush3.bf16.msra.mxu1 %v2034_v4  ;;  %1849 = vmatprep.subr.bf16.mxu0 %v2147_v1  ;;  %v2150_v14 = vmov 1966171168   ;;  %v2042_v20 = vld [vmem:[%s2630_s1 + $0x10] sm:$0xff]   ;;  %v2043_v24 = vld [vmem:[%s2630_s1 + $0x48] sm:$0xff]   ;;  %v2045_v32 = vld [vmem:[%s2630_s1 + $0x40] sm:$0xff]   ;;  %vm269_vm1 = vcmask 1041409  }
   0x8   :  { %1869 = vmatprep.subr.bf16.mxu1 %v2147_v1  ;;  %v102_v15 = vunpack.c.l.s4 %v2150_v14  ;;  %v1562_v17 = vld.sshfl [vmem:[#allocation2 + $0x4] sm:$0x1 pattern:$0x75316420]  ;;  %v2044_v25 = vld [vmem:[%s2630_s1 + $0x8] sm:$0xff]   ;;  %v2047_v41 = vld [vmem:[%s2630_s1 + $0xb8] sm:$0xff]  }
   0x9   :  { %v1563_v18 = vld.sshfl [vmem:[#allocation2 + $0x6] sm:$0x1 pattern:$0x75316420]  ;;  %v2048_v43 = vld [vmem:[%s2630_s1 + $0xf8] sm:$0xff]   ;;  %v2049_v44 = vld [vmem:[%s2630_s1 + $0xb0] sm:$0xff]  }
   0xa   :  { %1850 = vmatpush3.bf16.msra.mxu0 %v2035_v6  ;;  %v1572_v19 = vld.sshfl [vmem:[#allocation2] sm:$0x1 pattern:$0x75316420]  ;;  %v103_v21 = vunpack.c.0.s8 %v102_v15  ;;  %v2050_v45 = vld [vmem:[%s2630_s1 + $0xf0] sm:$0xff]   ;;  %v2051_v50 = vld [vmem:[%s2630_s1 + $0xa8] sm:$0xff]  }
   0xb   :  { %1870 = vmatpush3.bf16.msra.mxu1 %v2036_v7  ;;  %1851 = vmatprep.subr.bf16.mxu0 %v2147_v1  ;;  %v1573_v22 = vld.sshfl [vmem:[#allocation2 + $0x2] sm:$0x1 pattern:$0x75316420]  ;;  %v26_v47 = vld [vmem:[%s2629_s0 + $0x3] sm:$0x1] }
   0xc   :  { %1871 = vmatprep.subr.bf16.mxu1 %v2147_v1  ;;  %v2240_v23 = vsub.s32 %v103_v21, %v105_v16  ;;  %v2046_v35 = vld [vmem:[%s2630_s1] sm:$0xff]   ;;  %v34_v51 = vunpack.c.l.bf16 %v26_v47  ;;  %v2052_v54 = vld [vmem:[%s2630_s1 + $0xe8] sm:$0xff]   ;;  %v2055_v63 = vld [vmem:[%s2630_s1 + $0x98] sm:$0xff]   ;;  %vm90_vm2 = vcmask 1040384   ;;  %vm138_vm3 = vsmask.f32 7938 }
   0xd   :  { %v25_v46 = vld [vmem:[%s2629_s0 + $0x2] sm:$0x1]  ;;  %v2297_v49 = vld [vmem:[%s2631_s2] sm:$0x1]  ;;  %v2056_v2 = vld [vmem:[%s2630_s1 + $0xd8] sm:$0xff]  }
   0xe   :  { %1852 = vmatpush3.bf16.msra.mxu0 %v2037_v8  ;;  %v251_v26 = vrot.slane %v1562_v17, %v2240_v23  ;;  %v265_v27 = vrot.slane %v1563_v18, %v2240_v23  ;;  %v376_v28 = vrot.slane %v1572_v19, %v2240_v23  ;;  %v390_v29 = vrot.slane %v1573_v22, %v2240_v23  ;;  %v2308_v53 = vld [vmem:[%s2632_s3] sm:$0x1]  ;;  %v2057_v5 = vld [vmem:[%s2630_s1 + $0x90] sm:$0xff]   ;;  %v140_v7 = vld [vmem:[#allocation2 + $0x8] sm:$0x1] }
   0xf   :  { %1872 = vmatpush3.bf16.msra.mxu1 %v2038_v9  ;;  %1853 = vmatprep.subr.bf16.mxu0 %v2147_v1  ;;  %v33_v48 = vunpack.c.l.bf16 %v25_v46  ;;  %v43_v55 = vmul.f32 %v2297_v49, %v34_v51  ;;  %v2053_v58 = vld [vmem:[%s2630_s1 + $0xa0] sm:$0xff]   ;;  %v143_v9 = vld [vmem:[#allocation2 + $0xa] sm:$0x1]  ;;  %vm2342_vm4 = vmand %vm90_vm2, %vm138_vm3  ;;  %vm91_vm5 = vsmask.f32 256 }
  0x10   :  { %1873 = vmatprep.subr.bf16.mxu1 %v2147_v1  ;;  %v266_v30 = vunpack.c.l.b16 %v251_v26  ;;  %v267_v31 = vunpack.c.l.b16 %v265_v27  ;;  %v2257_v33 = vunpack.c.l.b16 %v376_v28  ;;  %v2259_v34 = vunpack.c.l.b16 %v390_v29  ;;  %v2054_v60 = vld [vmem:[%s2630_s1 + $0xe0] sm:$0xff]   ;;  %v2059_v18 = vld [vmem:[%s2630_s1 + $0x88] sm:$0xff]   ;;  %vm2386_vm6 = vmand %vm90_vm2, %vm91_vm5 }
  0x11   :  { %v42_v52 = vmul.f32 %v2297_v49, %v33_v48  ;;  %v52_v57 = vadd.f32 %v2308_v53, %v43_v55  ;;  %v23_v16 = vld [vmem:[%s2629_s0] sm:$0x1]  ;;  %v24_v17 = vld [vmem:[%s2629_s0 + $0x1] sm:$0x1]  ;;  %v2060_v22 = vld [vmem:[%s2630_s1 + $0xc8] sm:$0xff]  }
  0x12   :  { %1854 = vmatpush3.bf16.msra.mxu0 %v2039_v11  ;;  %v268_v36 = vrot.slane %v267_v31, 7  ;;  %v393_v37 = vrot.slane %v2259_v34, 7  ;;  %v536_v19 = vrot.slane %v2257_v33, 1  ;;  %v32_v21 = vunpack.c.l.bf16 %v24_v17  ;;  %v2062_v27 = vld [vmem:[%s2630_s1 + $0xc0] sm:$0xff]   ;;  %v93_v31 = vld [vmem:[#allocation2 + $0xc] sm:$0x1] }
  0x13   :  { %1874 = vmatpush3.bf16.msra.mxu1 %v2040_v12  ;;  %1855 = vmatprep.subr.bf16.mxu0 %v2147_v1  ;;  %v51_v56 = vadd.f32 %v2308_v53, %v42_v52  ;;  %v60_v61 = vmax.f32 %v52_v57, 0.0  ;;  %v2058_v12 = vld [vmem:[%s2630_s1 + $0xd0] sm:$0xff]   ;;  %v2064_v52 = vld [vmem:[%s2630_s1 + $0x178] sm:$0xff]   ;;  %v2067_v55 = vld [vmem:[%s2630_s1 + $0x128] sm:$0xff]  }
  0x14   :  { %1875 = vmatprep.subr.bf16.mxu1 %v2147_v1  ;;  %v270_v38 = vsel %vm269_vm1, %v268_v36, %v266_v30  ;;  %v394_v40 = vsel %vm269_vm1, %v393_v37, %v2257_v33  ;;  %v41_v26 = vmul.f32 %v2297_v49, %v32_v21  ;;  %v537_v28 = vsel %vm269_vm1, %v2259_v34, %v536_v19 }
  0x15   :  { %v271_v39 = vpack.c.b16 %v270_v38, %v270_v38  ;;  %v395_v42 = vpack.c.b16 %v394_v40, %v394_v40  ;;  %v59_v59 = vmax.f32 %v51_v56, 0.0  ;;  %v68_v0 = vpack.c.bf16 %v60_v61, %v60_v61  ;;  %v2063_v40 = vld [vmem:[%s2630_s1 + $0x138] sm:$0xff]   ;;  %v2066_v56 = vld [vmem:[%s2630_s1 + $0x170] sm:$0xff]  }
  0x16   :  { %1856 = vmatpush3.bf16.msra.mxu0 %v2041_v13  ;;  %v50_v30 = vadd.f32 %v2308_v53, %v41_v26  ;;  %v538_v37 = vpack.c.b16 %v537_v28, %v537_v28  ;;  %v2072_v26 = vld [vmem:[%s2630_s1 + $0x158] sm:$0xff]   ;;  %v147_v28 = vld [vmem:[#allocation2 + $0x5] sm:$0x1] }
  0x17   :  { %1876 = vmatpush3.bf16.msra.mxu1 %v2042_v20  ;;  %1857 = vmatprep.subr.bf16.mxu0 %v2147_v1  ;;  %v67_v62 = vpack.c.bf16 %v59_v59, %v59_v59  ;;  %v121_v4 = vrot.slane %v68_v0, %v2240_v23  ;;  %v31_v20 = vunpack.c.l.bf16 %v23_v16  ;;  %v29_v59 = vld [vmem:[%s2629_s0 + $0x6] sm:$0x1]  ;;  %v27_v0 = vld [vmem:[%s2629_s0 + $0x4] sm:$0x1]  ;;  %v2073_v16 = vld [vmem:[%s2630_s1 + $0x110] sm:$0xff]  }
  0x18   :  { %1877 = vmatprep.subr.bf16.mxu1 %v2147_v1  ;;  %v58_v36 = vmax.f32 %v50_v30, 0.0  ;;  %v37_v61 = vunpack.c.l.bf16 %v29_v59 }
  0x19   :  { %v107_v3 = vrot.slane %v67_v62, %v2240_v23  ;;  %v128_v8 = vrot.slane %v121_v4, %v2240_v23 }
  0x1a   :  { %1858 = vmatpush3.bf16.msra.mxu0 %v2043_v24  ;;  %v2061_v24 = vld [vmem:[%s2630_s1 + $0x80] sm:$0xff]   ;;  %v46_v4 = vmul.f32 %v2297_v49, %v37_v61 }
  0x1b   :  { %1878 = vmatpush3.bf16.msra.mxu1 %v2044_v25  ;;  %1859 = vmatprep.subr.bf16.mxu0 %v2147_v1  ;;  %v114_v6 = vrot.slane %v107_v3, %v2240_v23  ;;  %v133_v13 = vshll.u32 %v128_v8, 16  ;;  %v40_v25 = vmul.f32 %v2297_v49, %v31_v20  ;;  %v2071_v8 = vld [vmem:[%s2630_s1 + $0x118] sm:$0xff]  }
  0x1c   :  { %1879 = vmatprep.subr.bf16.mxu1 %v2147_v1 }
  0x1d   :  { %v130_v10 = vshll.u32 %v114_v6, 16  ;;  %v144_v15 = vsel %vm2342_vm4, %v133_v13, %v143_v9  ;;  %v49_v29 = vadd.f32 %v2308_v53, %v40_v25  ;;  %v35_v6 = vunpack.c.l.bf16 %v27_v0 }
  0x1e   :  { %1860 = vmatpush3.bf16.msra.mxu0 %v2045_v32  ;;  %145 = vst [vmem:[#allocation2 + $0xa] sm:$0x1] %v144_v15  ;;  %v96_v32 = vld [vmem:[#allocation2 + $0xe] sm:$0x1]  ;;  %v2070_v15 = vld [vmem:[%s2630_s1 + $0x160] sm:$0xff]  }
  0x1f   :  { %1880 = vmatpush3.bf16.msra.mxu1 %v2046_v35  ;;  %1885 = vmatprep.subr.bf16.mxu0 %v2147_v1  ;;  %v141_v14 = vsel %vm2342_vm4, %v130_v10, %v140_v7  ;;  %v57_v35 = vmax.f32 %v49_v29, 0.0  ;;  %v55_v10 = vadd.f32 %v2308_v53, %v46_v4  ;;  %v44_v13 = vmul.f32 %v2297_v49, %v35_v6 }
  0x20   :  { %1905 = vmatprep.subr.bf16.mxu1 %v2147_v1  ;;  %142 = vst [vmem:[#allocation2 + $0x8] sm:$0x1] %v141_v14 }
  0x21   :  { %1862 = vmatmul.mubr.bf16.vlgmr.msra.gmra.mxu0 %v271_v39  ;;  %v63_v17 = vmax.f32 %v55_v10, 0.0  ;;  %v53_v19 = vadd.f32 %v2308_v53, %v44_v13 }
  0x22   :  { %1882 = vmatmul.mubr.bf16.vlgmr.msra.gmra.mxu1 %v395_v42  ;;  %1886 = vmatpush3.bf16.msra.mxu0 %v2047_v41  ;;  %v65_v42 = vpack.c.bf16 %v57_v35, %v57_v35 }
  0x23   :  { %1906 = vmatpush3.bf16.msra.mxu1 %v2048_v43  ;;  %1887 = vmatprep.subr.bf16.mxu0 %v2147_v1  ;;  %v66_v43 = vpack.c.bf16 %v58_v36, %v58_v36  ;;  %v61_v25 = vmax.f32 %v53_v19, 0.0 }
  0x24   :  { %1907 = vmatprep.subr.bf16.mxu1 %v2147_v1  ;;  %1901 = vmatprep.mubr.msk.bf16.mxu0 %vm2148_vm0, %v2147_v1  ;;  %v94_v46 = vsel %vm2386_vm6, %v65_v42, %v93_v31 }
  0x25   :  { %1921 = vmatprep.mubr.msk.bf16.mxu1 %vm2148_vm0, %v2147_v1  ;;  %v1625_v38 = vld.sshfl [vmem:[#allocation2 + $0xa] sm:$0x1 pattern:$0x75316420]  ;;  %v97_v47 = vsel %vm2386_vm6, %v66_v43, %v96_v32  ;;  %95 = vst [vmem:[#allocation2 + $0xc] sm:$0x1] %v94_v46 }
  0x26   :  { %1888 = vmatpush3.bf16.msra.mxu0 %v2049_v44  ;;  %v677_v41 = vrot.slane %v1625_v38, %v2240_v23  ;;  %98 = vst [vmem:[#allocation2 + $0xe] sm:$0x1] %v97_v47 }
  0x27   :  { %1908 = vmatpush3.bf16.msra.mxu1 %v2050_v45  ;;  %1889 = vmatprep.subr.bf16.mxu0 %v2147_v1  ;;  %v1624_v33 = vld.sshfl [vmem:[#allocation2 + $0x8] sm:$0x1 pattern:$0x75316420] }
  0x28   :  { %1909 = vmatprep.subr.bf16.mxu1 %v2147_v1  ;;  %v663_v39 = vrot.slane %v1624_v33, %v2240_v23  ;;  %v2397_v45 = vunpack.c.l.b16 %v677_v41 }
  0x2a   :  { %1890 = vmatpush3.bf16.msra.mxu0 %v2051_v50  ;;  %v2395_v44 = vunpack.c.l.b16 %v663_v39  ;;  %v680_v48 = vrot.slane %v2397_v45, 7  ;;  %v2065_v50 = vld [vmem:[%s2630_s1 + $0x130] sm:$0xff]  }
  0x2b   :  { %1910 = vmatpush3.bf16.msra.mxu1 %v2052_v54  ;;  %1891 = vmatprep.subr.bf16.mxu0 %v2147_v1 }
  0x2c   :  { %1911 = vmatprep.subr.bf16.mxu1 %v2147_v1  ;;  %v681_v51 = vsel %vm269_vm1, %v680_v48, %v2395_v44  ;;  %v1650_v3 = vld.sshfl [vmem:[#allocation2 + $0xc] sm:$0x1 pattern:$0x75316420] }
  0x2d   :  { %v682_v54 = vpack.c.b16 %v681_v51, %v681_v51  ;;  %v1651_v57 = vld.sshfl [vmem:[#allocation2 + $0xe] sm:$0x1 pattern:$0x75316420]  ;;  %v807_v20 = vrot.slane %v1650_v3, %v2240_v23 }
  0x2e   :  { %1892 = vmatpush3.bf16.msra.mxu0 %v2053_v58  ;;  %v2069_v58 = vld [vmem:[%s2630_s1 + $0x120] sm:$0xff]   ;;  %v821_v9 = vrot.slane %v1651_v57, %v2240_v23 }
  0x2f   :  { %1912 = vmatpush3.bf16.msra.mxu1 %v2054_v60  ;;  %1893 = vmatprep.subr.bf16.mxu0 %v2147_v1  ;;  %v30_v60 = vld [vmem:[%s2629_s0 + $0x7] sm:$0x1] }
  0x30   :  { %1913 = vmatprep.subr.bf16.mxu1 %v2147_v1  ;;  %v38_v62 = vunpack.c.l.bf16 %v30_v60  ;;  %v823_v21 = vunpack.c.l.b16 %v821_v9 }
  0x32   :  { %1894 = vmatpush3.bf16.msra.mxu0 %v2055_v63  ;;  %v2068_v63 = vld [vmem:[%s2630_s1 + $0x168] sm:$0xff]  }
  0x33   :  { %1914 = vmatpush3.bf16.msra.mxu1 %v2056_v2  ;;  %1895 = vmatprep.subr.bf16.mxu0 %v2147_v1  ;;  %v28_v2 = vld [vmem:[%s2629_s0 + $0x5] sm:$0x1] }
  0x34   :  { %1915 = vmatprep.subr.bf16.mxu1 %v2147_v1  ;;  %v36_v7 = vunpack.c.l.bf16 %v28_v2 }
  0x36   :  { %1896 = vmatpush3.bf16.msra.mxu0 %v2057_v5  ;;  %v47_v5 = vmul.f32 %v2297_v49, %v38_v62  ;;  %v45_v14 = vmul.f32 %v2297_v49, %v36_v7 }
  0x37   :  { %1916 = vmatpush3.bf16.msra.mxu1 %v2058_v12  ;;  %1897 = vmatprep.subr.bf16.mxu0 %v2147_v1 }
  0x38   :  { %1917 = vmatprep.subr.bf16.mxu1 %v2147_v1  ;;  %v56_v12 = vadd.f32 %v2308_v53, %v47_v5  ;;  %v54_v49 = vadd.f32 %v2308_v53, %v45_v14 }
  0x3a   :  { %1898 = vmatpush3.bf16.msra.mxu0 %v2059_v18  ;;  %v64_v18 = vmax.f32 %v56_v12, 0.0 }
  0x3b   :  { %1918 = vmatpush3.bf16.msra.mxu1 %v2060_v22  ;;  %1899 = vmatprep.subr.bf16.mxu0 %v2147_v1  ;;  %v71_v22 = vpack.c.bf16 %v63_v17, %v63_v17 }
  0x3c   :  { %1919 = vmatprep.subr.bf16.mxu1 %v2147_v1 }
  0x3e   :  { %1900 = vmatpush3.bf16.msra.mxu0 %v2061_v24  ;;  %v72_v24 = vpack.c.bf16 %v64_v18, %v64_v18 }
  0x3f   :  { %1920 = vmatpush3.bf16.msra.mxu1 %v2062_v27  ;;  %1925 = vmatprep.subr.bf16.mxu0 %v2147_v1  ;;  %v62_v27 = vmax.f32 %v54_v49, 0.0 }
  0x40   :  { %1945 = vmatprep.subr.bf16.mxu1 %v2147_v1 }
  0x41   :  { %1902 = vmatmul.mubr.bf16.vlgmr.msra.gmra.mxu0 %v538_v37 }
  0x42   :  { %1926 = vmatpush3.bf16.msra.mxu0 %v2063_v40  ;;  %1941 = vmatprep.mubr.msk.bf16.mxu0 %vm2148_vm0, %v2147_v1 }
  0x43   :  { %1927 = vmatprep.subr.bf16.mxu0 %v2147_v1  ;;  %1922 = vmatmul.mubr.bf16.vlgmr.msra.gmra.mxu1 %v682_v54 }
  0x44   :  { %1946 = vmatpush3.bf16.msra.mxu1 %v2064_v52  ;;  %1961 = vmatprep.mubr.msk.bf16.mxu1 %vm2148_vm0, %v2147_v1 }
  0x45   :  { %1947 = vmatprep.subr.bf16.mxu1 %v2147_v1 }
  0x46   :  { %1928 = vmatpush3.bf16.msra.mxu0 %v2065_v50 }
  0x47   :  { %1929 = vmatprep.subr.bf16.mxu0 %v2147_v1 }
  0x48   :  { %1948 = vmatpush3.bf16.msra.mxu1 %v2066_v56 }
  0x49   :  { %1949 = vmatprep.subr.bf16.mxu1 %v2147_v1 }
  0x4a   :  { %1930 = vmatpush3.bf16.msra.mxu0 %v2067_v55 }
  0x4b   :  { %1931 = vmatprep.subr.bf16.mxu0 %v2147_v1 }
  0x4c   :  { %1950 = vmatpush3.bf16.msra.mxu1 %v2068_v63 }
  0x4d   :  { %1951 = vmatprep.subr.bf16.mxu1 %v2147_v1 }
  0x4e   :  { %1932 = vmatpush3.bf16.msra.mxu0 %v2069_v58 }
  0x4f   :  { %1933 = vmatprep.subr.bf16.mxu0 %v2147_v1 }
  0x50   :  { %1952 = vmatpush3.bf16.msra.mxu1 %v2070_v15 }
  0x52   :  { %1934 = vmatpush3.bf16.msra.mxu0 %v2071_v8 }
  0x53   :  { %1935 = vmatprep.subr.bf16.mxu0 %v2147_v1 }
  0x54   :  { %13 = vsyncpa [#allocation6], 0  ;;  %1953 = vmatprep.subr.bf16.mxu1 %v2147_v1  ;;  %v161_v29 = vrot.slane %v71_v22, %v2240_v23  ;;  %v175_v30 = vrot.slane %v72_v24, %v2240_v23  ;;  %v69_v53 = vpack.c.bf16 %v61_v25, %v61_v25  ;;  %v150_v31 = vld [vmem:[#allocation2 + $0x7] sm:$0x1]  ;;  %v2075_v32 = vld [vmem:[%s2630_s1 + $0x108] sm:$0xff]   ;;  %v822_v33 = vunpack.c.l.b16 %v807_v20  ;;  %s2151_s29 = smov [#allocation3]  }
  0x55   :  { %v824_v35 = vrot.slane %v823_v21, 7  ;;  %v70_v36 = vpack.c.bf16 %v62_v27, %v62_v27  ;;  %1954 = vmatpush3.bf16.msra.mxu1 %v2072_v26  ;;  %v2074_v40 = vld [vmem:[%s2630_s1 + $0x150] sm:$0xff]   ;;  %v192_v41 = vld [vmem:[#allocation2 + $0x1] sm:$0x1]  ;;  %v195_v42 = vld [vmem:[#allocation2 + $0x3] sm:$0x1] }
  0x56   :  { %1936 = vmatpush3.bf16.msra.mxu0 %v2073_v16  ;;  %v168_v37 = vrot.slane %v161_v29, %v2240_v23  ;;  %v182_v38 = vrot.slane %v175_v30, %v2240_v23  ;;  %v148_v39 = vsel %vm2386_vm6, %v69_v53, %v147_v28  ;;  %1955 = vmatprep.subr.bf16.mxu1 %v2147_v1  ;;  %v2077_v48 = vld [vmem:[%s2630_s1 + $0x100] sm:$0xff]   ;;  %v2076_v52 = vld [vmem:[%s2630_s1 + $0x148] sm:$0xff]   ;;  %v968_v54 = vrot.slane %v2395_v44, 1  ;;  %v2079_v56 = vld [vmem:[%s2630_s1 + $0x1b8] sm:$0xff]   ;;  %s1522_s30 = sshll.u32 %s2151_s29, 4  ;;  %s2152_s7 = smov [#allocation5]   ;;  %s1523_s30 = int_to_ptr.vmem [resolvable:$true] %s1522_s30 }
  0x57   :  { %1937 = vmatprep.subr.bf16.mxu0 %v2147_v1  ;;  %149 = vst [vmem:[#allocation2 + $0x5] sm:$0x1] %v148_v39  ;;  %v151_v43 = vsel %vm2386_vm6, %v70_v36, %v150_v31  ;;  %v825_v50 = vsel %vm269_vm1, %v824_v35, %v822_v33  ;;  %v2078_v11 = vld [vmem:[%s2630_s1 + $0x140] sm:$0xff]   ;;  %v2081_v57 = vld [vmem:[%s2630_s1 + $0x1b0] sm:$0xff]   ;;  %v2080_v59 = vld [vmem:[%s2630_s1 + $0x1f8] sm:$0xff]   ;;  %vm1493_vm7 = vcmask 517120   ;;  %p2108_p1 = scmp.lt.s32.totalorder %s1523_s30, %s1523_s30 }
  0x58   :  { %v184_v46 = vshll.u32 %v168_v37, 16  ;;  %v187_v47 = vshll.u32 %v182_v38, 16  ;;  %152 = vst [vmem:[#allocation2 + $0x7] sm:$0x1] %v151_v43  ;;  %v826_v55 = vpack.c.b16 %v825_v50, %v825_v50  ;;  %v969_v44 = vsel %vm269_vm1, %v2397_v45, %v968_v54  ;;  %v2083_v45 = vld [vmem:[%s2630_s1 + $0x1a8] sm:$0xff]   ;;  %v2082_v60 = vld [vmem:[%s2630_s1 + $0x1f0] sm:$0xff]  }
  0x59   :  { %1956 = vmatpush3.bf16.msra.mxu1 %v2074_v40  ;;  %v970_v58 = vpack.c.b16 %v969_v44, %v969_v44  ;;  %v2085_v61 = vld [vmem:[%s2630_s1 + $0x1a0] sm:$0xff]   ;;  %v2084_v63 = vld [vmem:[%s2630_s1 + $0x1e8] sm:$0xff]   ;;  %v2087_v0 = vld [vmem:[%s2630_s1 + $0x198] sm:$0xff]   ;;  %vm1501_vm8 = vcmask 516096   ;;  %s1532_s8 = sshll.u32 %s2152_s7, 4  ;;  %s2107_s9 = scalar_lea.vmem %s1523_s30, 32  ;;  %s1533_s8 = int_to_ptr.vmem [resolvable:$true] %s1532_s8 }
  0x5a   :  { %1938 = vmatpush3.bf16.msra.mxu0 %v2075_v32  ;;  %v193_v51 = vsel %vm2342_vm4, %v184_v46, %v192_v41  ;;  %v196_v34 = vsel %vm2342_vm4, %v187_v47, %v195_v42  ;;  %1957 = vmatprep.subr.bf16.mxu1 %v2147_v1  ;;  %v2086_v4 = vld [vmem:[%s2630_s1 + $0x1e0] sm:$0xff]   ;;  %v2089_v6 = vld [vmem:[%s2630_s1 + $0x190] sm:$0xff]   ;;  %v2088_v9 = vld [vmem:[%s2630_s1 + $0x1d8] sm:$0xff]  }
  0x5b   :  { %1939 = vmatprep.subr.bf16.mxu0 %v2147_v1  ;;  %194 = vst [vmem:[#allocation2 + $0x1] sm:$0x1] %v193_v51  ;;  %197 = vst [vmem:[#allocation2 + $0x3] sm:$0x1] %v196_v34  ;;  %v2091_v13 = vld [vmem:[%s2630_s1 + $0x188] sm:$0xff]   ;;  %v2090_v16 = vld [vmem:[%s2630_s1 + $0x1d0] sm:$0xff]  }
  0x5c   :  { %v2093_v19 = vld [vmem:[%s2630_s1 + $0x180] sm:$0xff]   ;;  %v2092_v21 = vld [vmem:[%s2630_s1 + $0x1c8] sm:$0xff]   ;;  %v2095_v24 = vld [vmem:[%s2630_s1 + $0x238] sm:$0xff]  }
  0x5d   :  { %1958 = vmatpush3.bf16.msra.mxu1 %v2076_v52  ;;  %v2094_v25 = vld [vmem:[%s2630_s1 + $0x1c0] sm:$0xff]   ;;  %v2096_v27 = vld [vmem:[%s2630_s1 + $0x230] sm:$0xff]   ;;  %v2097_v29 = vld [vmem:[%s2630_s1 + $0x228] sm:$0xff]  }
  0x5e   :  { %1940 = vmatpush3.bf16.msra.mxu0 %v2077_v48  ;;  %1959 = vmatprep.subr.bf16.mxu1 %v2147_v1  ;;  %v1728_v12 = vld.sshfl [vmem:[#allocation2 + $0x5] sm:$0x1 pattern:$0x75316420]  ;;  %v2099_v53 = vld [vmem:[%s2630_s1 + $0x218] sm:$0xff]   ;;  %v2100_v31 = vld [vmem:[%s2630_s1 + $0x210] sm:$0xff]  }
  0x5f   :  { %1965 = vmatprep.subr.bf16.mxu0 %v2147_v1  ;;  %v1729_v5 = vld.sshfl [vmem:[#allocation2 + $0x7] sm:$0x1 pattern:$0x75316420]  ;;  %v1239_v17 = vrot.slane %v1728_v12, %v2240_v23  ;;  %v2101_v32 = vld [vmem:[%s2630_s1 + $0x208] sm:$0xff]  }
  0x60   :  { %v1253_v10 = vrot.slane %v1729_v5, %v2240_v23  ;;  %v2098_v30 = vld [vmem:[%s2630_s1 + $0x220] sm:$0xff]  }
  0x61   :  { %1942 = vmatmul.mubr.bf16.vlgmr.msra.gmra.mxu0 %v826_v55  ;;  %1960 = vmatpush3.bf16.msra.mxu1 %v2078_v11  ;;  %v1254_v49 = vunpack.c.l.b16 %v1239_v17  ;;  %v2102_v35 = vld [vmem:[%s2630_s1 + $0x200] sm:$0xff]  }
  0x62   :  { %1966 = vmatpush3.bf16.msra.mxu0 %v2079_v56  ;;  %1981 = vmatprep.mubr.msk.bf16.mxu0 %vm2148_vm0, %v2147_v1  ;;  %v1703_v62 = vld.sshfl [vmem:[#allocation2 + $0x3] sm:$0x1 pattern:$0x75316420]  ;;  %v1255_v18 = vunpack.c.l.b16 %v1253_v10 }
  0x63   :  { %1967 = vmatprep.subr.bf16.mxu0 %v2147_v1  ;;  %1985 = vmatprep.subr.bf16.mxu1 %v2147_v1  ;;  %v1109_v2 = vrot.slane %v1703_v62, %v2240_v23  ;;  %v1702_v3 = vld.sshfl [vmem:[#allocation2 + $0x1] sm:$0x1 pattern:$0x75316420] }
  0x64   :  { %1962 = vmatmul.mubr.bf16.vlgmr.msra.gmra.mxu1 %v970_v58  ;;  %v1095_v7 = vrot.slane %v1702_v3, %v2240_v23  ;;  %v1256_v22 = vrot.slane %v1255_v18, 7 }
  0x65   :  { %1986 = vmatpush3.bf16.msra.mxu1 %v2080_v59  ;;  %2001 = vmatprep.mubr.msk.bf16.mxu1 %vm2148_vm0, %v2147_v1  ;;  %v1111_v8 = vunpack.c.l.b16 %v1109_v2 }
  0x66   :  { %1968 = vmatpush3.bf16.msra.mxu0 %v2081_v57  ;;  %1987 = vmatprep.subr.bf16.mxu1 %v2147_v1  ;;  %v1110_v14 = vunpack.c.l.b16 %v1095_v7  ;;  %v1257_v26 = vsel %vm269_vm1, %v1256_v22, %v1254_v49 }
  0x67   :  { %1969 = vmatprep.subr.bf16.mxu0 %v2147_v1  ;;  %v1112_v15 = vrot.slane %v1111_v8, 7  ;;  %v1258_v28 = vpack.c.b16 %v1257_v26, %v1257_v26 }
  0x68   :  { %v1400_v33 = vrot.slane %v1110_v14, 1 }
  0x69   :  { %1988 = vmatpush3.bf16.msra.mxu1 %v2082_v60  ;;  %v1113_v20 = vsel %vm269_vm1, %v1112_v15, %v1110_v14 }
  0x6a   :  { %1970 = vmatpush3.bf16.msra.mxu0 %v2083_v45  ;;  %1989 = vmatprep.subr.bf16.mxu1 %v2147_v1  ;;  %v1114_v23 = vpack.c.b16 %v1113_v20, %v1113_v20  ;;  %v1401_v36 = vsel %vm269_vm1, %v1111_v8, %v1400_v33 }
  0x6b   :  { %1971 = vmatprep.subr.bf16.mxu0 %v2147_v1  ;;  %v1402_v37 = vpack.c.b16 %v1401_v36, %v1401_v36 }
  0x6d   :  { %1990 = vmatpush3.bf16.msra.mxu1 %v2084_v63 }
  0x6e   :  { %1972 = vmatpush3.bf16.msra.mxu0 %v2085_v61  ;;  %1991 = vmatprep.subr.bf16.mxu1 %v2147_v1 }
  0x6f   :  { %1973 = vmatprep.subr.bf16.mxu0 %v2147_v1 }
  0x71   :  { %1992 = vmatpush3.bf16.msra.mxu1 %v2086_v4 }
  0x72   :  { %1974 = vmatpush3.bf16.msra.mxu0 %v2087_v0  ;;  %1993 = vmatprep.subr.bf16.mxu1 %v2147_v1 }
  0x73   :  { %1975 = vmatprep.subr.bf16.mxu0 %v2147_v1 }
  0x75   :  { %1994 = vmatpush3.bf16.msra.mxu1 %v2088_v9 }
  0x76   :  { %1976 = vmatpush3.bf16.msra.mxu0 %v2089_v6  ;;  %1995 = vmatprep.subr.bf16.mxu1 %v2147_v1 }
  0x77   :  { %1977 = vmatprep.subr.bf16.mxu0 %v2147_v1 }
  0x79   :  { %1996 = vmatpush3.bf16.msra.mxu1 %v2090_v16 }
  0x7a   :  { %1978 = vmatpush3.bf16.msra.mxu0 %v2091_v13  ;;  %1997 = vmatprep.subr.bf16.mxu1 %v2147_v1 }
  0x7b   :  { %1979 = vmatprep.subr.bf16.mxu0 %v2147_v1 }
  0x7d   :  { %1998 = vmatpush3.bf16.msra.mxu1 %v2092_v21 }
  0x7e   :  { %1980 = vmatpush3.bf16.msra.mxu0 %v2093_v19  ;;  %1999 = vmatprep.subr.bf16.mxu1 %v2147_v1 }
  0x7f   :  { %2005 = vmatprep.subr.bf16.mxu0 %v2147_v1 }
  0x81   :  { %1982 = vmatmul.mubr.bf16.vlgmr.msra.gmra.mxu0 %v1114_v23  ;;  %2000 = vmatpush3.bf16.msra.mxu1 %v2094_v25 }
  0x82   :  { %2006 = vmatpush3.bf16.msra.mxu0 %v2095_v24  ;;  %2021 = vmatprep.mubr.msk.bf16.mxu0 %vm2148_vm0, %v2147_v1 }
  0x83   :  { %2007 = vmatprep.subr.bf16.mxu0 %v2147_v1 }
  0x84   :  { %2002 = vmatmul.mubr.bf16.vlgmr.msra.gmra.mxu1 %v1258_v28 }
  0x86   :  { %2008 = vmatpush3.bf16.msra.mxu0 %v2096_v27 }
  0x87   :  { %2009 = vmatprep.subr.bf16.mxu0 %v2147_v1 }
  0x8a   :  { %2010 = vmatpush3.bf16.msra.mxu0 %v2097_v29 }
  0x8b   :  { %2011 = vmatprep.subr.bf16.mxu0 %v2147_v1 }
  0x8e   :  { %2012 = vmatpush3.bf16.msra.mxu0 %v2098_v30 }
  0x8f   :  { %2013 = vmatprep.subr.bf16.mxu0 %v2147_v1 }
  0x92   :  { %2014 = vmatpush3.bf16.msra.mxu0 %v2099_v53 }
  0x93   :  { %2015 = vmatprep.subr.bf16.mxu0 %v2147_v1 }
  0x96   :  { %2016 = vmatpush3.bf16.msra.mxu0 %v2100_v31 }
  0x97   :  { %2017 = vmatprep.subr.bf16.mxu0 %v2147_v1 }
  0x9a   :  { %2018 = vmatpush3.bf16.msra.mxu0 %v2101_v32 }
  0x9b   :  { %2019 = vmatprep.subr.bf16.mxu0 %v2147_v1 }
  0x9e   :  { %2020 = vmatpush3.bf16.msra.mxu0 %v2102_v35 }
  0xa1   :  { %2022 = vmatmul.mubr.bf16.vlgmr.msra.gmra.mxu0 %v1402_v37 }
  0xe1   :  { %v355_v38 = vpop.f32.mrf.mxu0 }
  0xe2   :  { %v479_v39 = vpop.f32.mrf.mxu1 }
  0xe3   :  { %v480_v40 = vadd.f32 %v479_v39, %v355_v38  ;;  %v1863_v41 = vpop.f32.mrf.mxu0 }
  0xe4   :  { %v1883_v42 = vpop.f32.mrf.mxu1 }
  0xe5   :  { %v358_v43 = vpop.f32.mrf.mxu0 }
  0xe6   :  { %v482_v46 = vpop.f32.mrf.mxu1 }
  0xe7   :  { %v1864_v47 = vpop.f32.mrf.mxu0 }
  0xe8   :  { %v1884_v48 = vpop.f32.mrf.mxu1 }
 0x101   :  { %v622_v50 = vpop.f32.mrf.mxu0 }
 0x102   :  { %v628_v51 = vadd.f32 %v622_v50, %v480_v40 }
 0x103   :  { %v1903_v34 = vpop.f32.mrf.mxu0  ;;  %v766_v54 = vpop.f32.mrf.mxu1 }
 0x104   :  { %v772_v56 = vadd.f32 %v766_v54, %v628_v51 }
 0x105   :  { %v625_v52 = vpop.f32.mrf.mxu0  ;;  %v1923_v1 = vpop.f32.mrf.mxu1 }
 0x107   :  { %v1904_v55 = vpop.f32.mrf.mxu0  ;;  %v769_v11 = vpop.f32.mrf.mxu1 }
 0x109   :  { %v1924_v44 = vpop.f32.mrf.mxu1 }
 0x121   :  { %v910_v57 = vpop.f32.mrf.mxu0 }
 0x122   :  { %v916_v9 = vadd.f32 %v910_v57, %v772_v56 }
 0x123   :  { %v1943_v58 = vpop.f32.mrf.mxu0 }
 0x124   :  { %v1054_v45 = vpop.f32.mrf.mxu1 }
 0x125   :  { %v913_v59 = vpop.f32.mrf.mxu0  ;;  %v1060_v10 = vadd.f32 %v1054_v45, %v916_v9 }
 0x126   :  { %v1963_v61 = vpop.f32.mrf.mxu1 }
 0x127   :  { %v1944_v60 = vpop.f32.mrf.mxu0 }
 0x128   :  { %v1057_v62 = vpop.f32.mrf.mxu1 }
 0x12a   :  { %v1964_v63 = vpop.f32.mrf.mxu1 }
 0x141   :  { %v1198_v0 = vpop.f32.mrf.mxu0 }
 0x142   :  { %v1204_v12 = vadd.f32 %v1198_v0, %v1060_v10 }
 0x143   :  { %v1983_v2 = vpop.f32.mrf.mxu0 }
 0x144   :  { %v1342_v4 = vpop.f32.mrf.mxu1 }
 0x145   :  { %v1201_v3 = vpop.f32.mrf.mxu0  ;;  %v1348_v13 = vadd.f32 %v1342_v4, %v1204_v12 }
 0x146   :  { %v2003_v6 = vpop.f32.mrf.mxu1 }
 0x147   :  { %v1984_v5 = vpop.f32.mrf.mxu0 }
 0x148   :  { %v1345_v7 = vpop.f32.mrf.mxu1 }
 0x14a   :  { %v2004_v8 = vpop.f32.mrf.mxu1 }
 0x161   :  { %v1486_v14 = vpop.f32.mrf.mxu0 }
 0x162   :  { %v1492_v15 = vadd.f32 %v1486_v14, %v1348_v13 }
 0x163   :  { %v2023_v16 = vpop.f32.mrf.mxu0 }
 0x164   :  { %v1494_v17 = vsel %vm1493_vm7, %v1492_v15, 0.0  ;;  %v1503_v18 = vmul.f32 %v1492_v15, %v1492_v15  ;;  %v1512_v19 = vpack.c.bf16 %v1492_v15, %v1492_v15 }
 0x165   :  { %v1495_v20 = vrot.slane %v1494_v17, 4  ;;  %v1489_v21 = vpop.f32.mrf.mxu0 }
 0x166   :  { %v1504_v49 = vsel %vm1493_vm7, %v1503_v18, 0.0  ;;  %1513 = vst.msk [vmem:[%s2633_s4] sm:$0x1] %vm1501_vm8, %v1512_v19  ;;  %s2103_s4 = scalar_lea.vmem %s1523_s30, 16 }
 0x167   :  { %v1496_v22 = vadd.f32 %v1495_v20, %v1494_v17  ;;  %v1505_v23 = vrot.slane %v1504_v49, 4  ;;  %v2024_v24 = vpop.f32.mrf.mxu0  ;;  %p2104_p0 = scmp.ne.s32.totalorder %s1523_s30, %s2103_s4  ;;  %p2109_p2 = scmp.lt.s32.totalorder %s2107_s9, %s2103_s4 }
 0x169   :  { %v1497_v25 = vrot.slane %v1496_v22, 2  ;;  %v1506_v26 = vadd.f32 %v1505_v23, %v1504_v49  ;;  %p2110_p3 = por %p2109_p2, %p2108_p1 }
 0x16b   :  { %v1498_v27 = vadd.f32 %v1497_v25, %v1496_v22  ;;  %v1507_v28 = vrot.slane %v1506_v26, 2  ;;  %p2111_p4 = pnand %p2110_p3, %p2104_p0 }
 0x16d   :  { %v1499_v29 = vrot.slane %v1498_v27, 1  ;;  %v1508_v30 = vadd.f32 %v1507_v28, %v1506_v26 }
 0x16f   :  { %v1500_v53 = vadd.f32 %v1499_v29, %v1498_v27  ;;  %v1509_v31 = vrot.slane %v1508_v30, 1 }
 0x171   :  { %1502 = vst.msk [vmem:[#allocation3] sm:$0x1] %vm1501_vm8, %v1500_v53  ;;  %v1510_v32 = vadd.f32 %v1509_v31, %v1508_v30 }
 0x172   :  { %2114 = shalt.err (!%p2111_p4)
}
 0x173   :  { %1525 = dma.vmem_to_hbm [thread:$0]  %s1523_s30, 16, %s2634_s5, [#allocation4]   ;;  %1511 = vst.msk [vmem:[#allocation5] sm:$0x1] %vm1501_vm8, %v1510_v32 }
 0x174   :  { %s2123_s12 = scalar_lea.vmem %s1533_s8, 16  ;;  %s2127_s13 = scalar_lea.vmem %s1533_s8, 32 }
 0x175   :  { %p2124_p5 = scmp.ne.s32.totalorder %s1533_s8, %s2123_s12  ;;  %p2128_p6 = scmp.lt.s32.totalorder %s1533_s8, %s1533_s8 }
 0x176   :  { %p2129_p7 = scmp.lt.s32.totalorder %s2127_s13, %s2123_s12 }
 0x178   :  { %p2130_p8 = por %p2129_p7, %p2128_p6 }
 0x17a   :  { %p2131_p9 = pnand %p2130_p8, %p2124_p5 }
 0x17c   :  { %2134 = shalt.err (!%p2131_p9)
}
 0x17d   :  { %1535 = dma.vmem_to_hbm [thread:$0]  %s1533_s8, 16, %s2635_s6, [#allocation6]  }
 0x17e   :  { %2143 = dma.done.wait [#allocation4], 16  }
 0x17f   :  { %2144 = vsyncadd [#allocation4], 4294967280 }
 0x180   :  { %2145 = dma.done.wait [#allocation6], 16  }
 0x181   :  { %2146 = vsyncadd [#allocation6], 4294967280 }
 0x182   :  { %1544 = vsyncpa [#allocation4], 1 }
 0x183   :  { %1545 = vsyncpa [#allocation6], 1 }

// kernel: _lambda_.13
= control target key start
LH: loop header
LB: loop body
LE: loop exit
PB: predicated region body
PF: predicated region fallthrough
CT: control target
= control target key end

     0   :  { %11 = vsyncpa [#allocation4], 0  ;;  %v1587_v2 = vmov 0   ;;  %vm28_vm0 = vcmask 517120   ;;  %vm29_vm1 = vsmask.f32 1280  ;;  %v54_v24 = vlaneseq  ;;  %s1923_s0 = inlined_call_operand.vmem [shape: bf16[1,2,1,1,64], index: 0, kind: input, shape index: {}]   ;;  %s1924_s1 = inlined_call_operand.vmem [shape: bf16[9,64,256], index: 1, kind: input, shape index: {}]   ;;  %s1925_s2 = inlined_call_operand.vmem [shape: bf16[2,256], index: 2, kind: input, shape index: {}]   ;;  %s1926_s3 = inlined_call_operand.vmem [shape: bf16[2,256], index: 3, kind: output, shape index: {0}]   ;;  %s1927_s4 = inlined_call_operand.hbm [shape: f32[1,256], index: 4, kind: output, shape index: {1}]   ;;  %s1928_s5 = inlined_call_operand.hbm [shape: f32[1,256], index: 5, kind: output, shape index: {2}]  }
   0x1   :  { %v1435_v0 = vld [vmem:[%s1924_s1 + $0x74] ss:$8 sps:$4 sm:$0xff]   ;;  %200 = vmatprep.mubr.bf16.mxu0 %v1587_v2  ;;  %287 = vmatprep.mubr.bf16.mxu1 %v1587_v2  ;;  %v1439_v3 = vld [vmem:[%s1924_s1 + $0x70] ss:$8 sps:$4 sm:$0xff]   ;;  %v1441_v5 = vld [vmem:[%s1924_s1 + $0x64] ss:$8 sps:$4 sm:$0xff]  }
   0x2   :  { %v1437_v1 = vld [vmem:[%s1924_s1 + $0x34] ss:$8 sps:$4 sm:$0xff]   ;;  %176 = vmatprep.subr.bf16.mxu0 %v1435_v0  ;;  %v1440_v4 = vld [vmem:[%s1924_s1 + $0x30] ss:$8 sps:$4 sm:$0xff]   ;;  %v1443_v6 = vld [vmem:[%s1924_s1 + $0x24] ss:$8 sps:$4 sm:$0xff]  }
   0x3   :  { %263 = vmatprep.subr.bf16.mxu1 %v1437_v1  ;;  %177 = vmatpush1.bf16.msra.mxu0 %v1439_v3  ;;  %v1445_v7 = vld [vmem:[%s1924_s1 + $0x60] ss:$8 sps:$4 sm:$0xff]   ;;  %v1447_v9 = vld [vmem:[%s1924_s1 + $0x54] ss:$8 sps:$4 sm:$0xff]   ;;  %v1451_v11 = vld [vmem:[%s1924_s1 + $0x50] ss:$8 sps:$4 sm:$0xff]  }
   0x4   :  { %264 = vmatpush1.bf16.msra.mxu1 %v1440_v4  ;;  %178 = vmatprep.subr.bf16.mxu0 %v1441_v5  ;;  %v1446_v8 = vld [vmem:[%s1924_s1 + $0x20] ss:$8 sps:$4 sm:$0xff]   ;;  %v1449_v10 = vld [vmem:[%s1924_s1 + $0x14] ss:$8 sps:$4 sm:$0xff]   ;;  %v1452_v12 = vld [vmem:[%s1924_s1 + $0x10] ss:$8 sps:$4 sm:$0xff]  }
   0x5   :  { %265 = vmatprep.subr.bf16.mxu1 %v1443_v6  ;;  %v1453_v13 = vld [vmem:[%s1924_s1 + $0x44] ss:$8 sps:$4 sm:$0xff]   ;;  %v1457_v15 = vld [vmem:[%s1924_s1 + $0x40] ss:$8 sps:$4 sm:$0xff]   ;;  %vm1669_vm2 = vmand %vm28_vm0, %vm29_vm1  ;;  %v1588_v26 = vmov 1983009808  }
   0x6   :  { %v1455_v14 = vld [vmem:[%s1924_s1 + $0x4] ss:$8 sps:$4 sm:$0xff]   ;;  %v31_v17 = vld [vmem:[#allocation2] sm:$0x3]  ;;  %v1461_v22 = vld [vmem:[%s1924_s1 + $0xb4] ss:$8 sps:$4 sm:$0xff]   ;;  %v52_v27 = vunpack.c.l.s4 %v1588_v26 }
   0x7   :  { %179 = vmatpush1.bf16.msra.mxu0 %v1445_v7  ;;  %v40_v18 = vld [vmem:[#allocation2 + $0x6] sm:$0x3]  ;;  %v1458_v19 = vld [vmem:[%s1924_s1] ss:$8 sps:$4 sm:$0xff]   ;;  %v32_v20 = vsel %vm1669_vm2, 0, %v31_v17  ;;  %vm121_vm3 = vcmask 1041409  }
   0x8   :  { %266 = vmatpush1.bf16.msra.mxu1 %v1446_v8  ;;  %180 = vmatprep.subr.bf16.mxu0 %v1447_v9  ;;  %v41_v21 = vsel %vm1669_vm2, 0, %v40_v18  ;;  %33 = vst [vmem:[#allocation2] sm:$0x3] %v32_v20  ;;  %v1464_v23 = vld [vmem:[%s1924_s1 + $0xf4] ss:$8 sps:$4 sm:$0xff]   ;;  %vm164_vm4 = vcmask 523264   ;;  %v53_v37 = vunpack.c.0.s8 %v52_v27 }
   0x9   :  { %267 = vmatprep.subr.bf16.mxu1 %v1449_v10  ;;  %42 = vst [vmem:[#allocation2 + $0x6] sm:$0x3] %v41_v21  ;;  %v1459_v32 = vld [vmem:[%s1924_s1 + $0xb0] ss:$8 sps:$4 sm:$0xff]   ;;  %v1690_v33 = vshrl.u32 %v54_v24, 7  ;;  %vm74_vm6 = vcmask 516096  }
   0xa   :  { %v1462_v35 = vld [vmem:[%s1924_s1 + $0xf0] ss:$8 sps:$4 sm:$0xff]   ;;  %v1467_v39 = vld [vmem:[%s1924_s1 + $0xa4] ss:$8 sps:$4 sm:$0xff]   ;;  %v20_v44 = vld [vmem:[%s1923_s0] sm:$0x1] }
   0xb   :  { %181 = vmatpush1.bf16.msra.mxu0 %v1451_v11  ;;  %v1470_v43 = vld [vmem:[%s1924_s1 + $0xe4] ss:$8 sps:$4 sm:$0xff]   ;;  %v21_v45 = vld [vmem:[%s1923_s0 + $0x1] sm:$0x1]  ;;  %v22_v47 = vunpack.c.l.bf16 %v20_v44  ;;  %v34_v49 = vld [vmem:[#allocation2 + $0x2] sm:$0x3]  ;;  %v1715_v53 = vsub.s32 %v53_v37, %v1690_v33 }
   0xc   :  { %268 = vmatpush1.bf16.msra.mxu1 %v1452_v12  ;;  %182 = vmatprep.subr.bf16.mxu0 %v1453_v13  ;;  %v23_v48 = vunpack.c.l.bf16 %v21_v45  ;;  %v43_v50 = vld [vmem:[#allocation2 + $0x8] sm:$0x3]  ;;  %v35_v51 = vsel %vm1669_vm2, 0, %v34_v49  ;;  %vm75_vm5 = vsmask.f32 7938 }
   0xd   :  { %269 = vmatprep.subr.bf16.mxu1 %v1455_v14  ;;  %v44_v52 = vsel %vm1669_vm2, 0, %v43_v50  ;;  %v1465_v54 = vld [vmem:[%s1924_s1 + $0xa0] ss:$8 sps:$4 sm:$0xff]   ;;  %v24_v57 = vmax.f32 %v22_v47, 0.0  ;;  %36 = vst [vmem:[#allocation2 + $0x2] sm:$0x3] %v35_v51  ;;  %vm76_vm7 = vmand %vm74_vm6, %vm75_vm5 }
   0xe   :  { %v25_v58 = vmax.f32 %v23_v48, 0.0  ;;  %45 = vst [vmem:[#allocation2 + $0x8] sm:$0x3] %v44_v52  ;;  %v1468_v59 = vld [vmem:[%s1924_s1 + $0xe0] ss:$8 sps:$4 sm:$0xff]  }
   0xf   :  { %183 = vmatpush1.bf16.msra.mxu0 %v1457_v15  ;;  %v1275_v25 = vld.sshfl [vmem:[#allocation2] sm:$0x1 pattern:$0x76325410]  ;;  %v1473_v60 = vld [vmem:[%s1924_s1 + $0x94] ss:$8 sps:$4 sm:$0xff]   ;;  %v26_v62 = vpack.c.bf16 %v24_v57, %v24_v57 }
  0x10   :  { %270 = vmatpush1.bf16.msra.mxu1 %v1458_v19  ;;  %380 = vmatprep.subr.bf16.mxu0 %v1461_v22  ;;  %v1276_v28 = vld.sshfl [vmem:[#allocation2 + $0x6] sm:$0x1 pattern:$0x76325410]  ;;  %v118_v29 = vunpack.c.l.b16 %v1275_v25  ;;  %v1476_v61 = vld [vmem:[%s1924_s1 + $0xd4] ss:$8 sps:$4 sm:$0xff]   ;;  %v27_v63 = vpack.c.bf16 %v25_v58, %v25_v58 }
  0x11   :  { %498 = vmatprep.subr.bf16.mxu1 %v1464_v23  ;;  %v119_v30 = vunpack.c.l.b16 %v1276_v28  ;;  %v1303_v36 = vld.sshfl [vmem:[#allocation2] sm:$0x2 pattern:$0x76325410]  ;;  %v1471_v0 = vld [vmem:[%s1924_s1 + $0x90] ss:$8 sps:$4 sm:$0xff]   ;;  %v57_v5 = vrot.slane %v26_v62, %v1715_v53 }
  0x12   :  { %v120_v31 = vrot.slane %v118_v29, 1  ;;  %v1304_v40 = vld.sshfl [vmem:[#allocation2 + $0x6] sm:$0x2 pattern:$0x76325410]  ;;  %v323_v55 = vunpack.c.l.b16 %v1303_v36  ;;  %v64_v6 = vrot.slane %v27_v63, %v1715_v53 }
  0x13   :  { %v209_v34 = vrot.slane %v119_v30, 7  ;;  %v324_v56 = vunpack.c.l.b16 %v1304_v40  ;;  %v1474_v1 = vld [vmem:[%s1924_s1 + $0xd0] ss:$8 sps:$4 sm:$0xff]   ;;  %v1479_v7 = vld [vmem:[%s1924_s1 + $0x84] ss:$8 sps:$4 sm:$0xff]   ;;  %v66_v9 = vshll.u32 %v57_v5, 16 }
  0x14   :  { %v122_v38 = vsel %vm121_vm3, %v119_v30, %v120_v31  ;;  %v325_v3 = vrot.slane %v323_v55, 2  ;;  %v1482_v8 = vld [vmem:[%s1924_s1 + $0xc4] ss:$8 sps:$4 sm:$0xff]   ;;  %v69_v10 = vshll.u32 %v64_v6, 16  ;;  %v77_v11 = vld [vmem:[#allocation2 + $0x2] sm:$0x1] }
  0x15   :  { %v123_v41 = vpack.c.b16 %v122_v38, %v122_v38  ;;  %v210_v42 = vsel %vm121_vm3, %v209_v34, %v118_v29  ;;  %v326_v4 = vrot.slane %v324_v56, 1  ;;  %v80_v12 = vld [vmem:[#allocation2 + $0x8] sm:$0x1]  ;;  %v78_v17 = vsel %vm76_vm7, %v66_v9, %v77_v11  ;;  %v1485_v19 = vld [vmem:[%s1924_s1 + $0x134] ss:$8 sps:$4 sm:$0xff]  }
  0x16   :  { %v211_v46 = vpack.c.b16 %v210_v42, %v210_v42  ;;  %v1477_v13 = vld [vmem:[%s1924_s1 + $0x80] ss:$8 sps:$4 sm:$0xff]   ;;  %v81_v18 = vsel %vm76_vm7, %v69_v10, %v80_v12  ;;  %79 = vst [vmem:[#allocation2 + $0x2] sm:$0x1] %v78_v17  ;;  %v1488_v20 = vld [vmem:[%s1924_s1 + $0x174] ss:$8 sps:$4 sm:$0xff]  }
  0x17   :  { %1285 = vmatmul.mubr.msk.bf16.vlgmr.msra.gmra.mxu0 %vm164_vm4, %v123_v41  ;;  %v1480_v14 = vld [vmem:[%s1924_s1 + $0xc0] ss:$8 sps:$4 sm:$0xff]   ;;  %v327_v15 = vsel %vm121_vm3, %v326_v4, %v325_v3  ;;  %82 = vst [vmem:[#allocation2 + $0x8] sm:$0x1] %v81_v18  ;;  %v1483_v22 = vld [vmem:[%s1924_s1 + $0x130] ss:$8 sps:$4 sm:$0xff]  }
  0x18   :  { %1294 = vmatmul.mubr.msk.bf16.vlgmr.msra.gmra.mxu1 %vm164_vm4, %v211_v46  ;;  %381 = vmatpush1.bf16.msra.mxu0 %v1459_v32  ;;  %v328_v21 = vpack.c.b16 %v327_v15, %v327_v15  ;;  %v1491_v23 = vld [vmem:[%s1924_s1 + $0x124] ss:$8 sps:$4 sm:$0xff]   ;;  %v1489_v26 = vld [vmem:[%s1924_s1 + $0x120] ss:$8 sps:$4 sm:$0xff]   ;;  %v1497_v28 = vld [vmem:[%s1924_s1 + $0x114] ss:$8 sps:$4 sm:$0xff]  }
  0x19   :  { %499 = vmatpush1.bf16.msra.mxu1 %v1462_v35  ;;  %382 = vmatprep.subr.bf16.mxu0 %v1467_v39  ;;  %v1495_v31 = vld [vmem:[%s1924_s1 + $0x110] ss:$8 sps:$4 sm:$0xff]   ;;  %v1503_v35 = vld [vmem:[%s1924_s1 + $0x104] ss:$8 sps:$4 sm:$0xff]   ;;  %v46_v41 = vld [vmem:[#allocation2 + $0xa] sm:$0x3] }
  0x1a   :  { %500 = vmatprep.subr.bf16.mxu1 %v1470_v43  ;;  %404 = vmatprep.mubr.bf16.mxu0 %v1587_v2  ;;  %v1486_v34 = vld [vmem:[%s1924_s1 + $0x170] ss:$8 sps:$4 sm:$0xff]   ;;  %v1360_v37 = vld.sshfl [vmem:[#allocation2 + $0x2] sm:$0x2 pattern:$0x76325410] }
  0x1b   :  { %522 = vmatprep.mubr.bf16.mxu1 %v1587_v2  ;;  %v1361_v38 = vld.sshfl [vmem:[#allocation2 + $0x8] sm:$0x2 pattern:$0x76325410]  ;;  %v37_v40 = vld [vmem:[#allocation2 + $0x4] sm:$0x3]  ;;  %v678_v49 = vunpack.c.l.b16 %v1360_v37 }
  0x1c   :  { %383 = vmatpush1.bf16.msra.mxu0 %v1465_v54  ;;  %v1494_v43 = vld [vmem:[%s1924_s1 + $0x164] ss:$8 sps:$4 sm:$0xff]   ;;  %v38_v44 = vsel %vm1669_vm2, 0, %v37_v40  ;;  %v47_v45 = vsel %vm1669_vm2, 0, %v46_v41  ;;  %v1501_v46 = vld [vmem:[%s1924_s1 + $0x100] ss:$8 sps:$4 sm:$0xff]   ;;  %v679_v50 = vunpack.c.l.b16 %v1361_v38 }
  0x1d   :  { %501 = vmatpush1.bf16.msra.mxu1 %v1468_v59  ;;  %384 = vmatprep.subr.bf16.mxu0 %v1473_v60  ;;  %v1322_v25 = vld.sshfl [vmem:[#allocation2 + $0x2] sm:$0x1 pattern:$0x76325410]  ;;  %39 = vst [vmem:[#allocation2 + $0x4] sm:$0x3] %v38_v44 }
  0x1e   :  { %502 = vmatprep.subr.bf16.mxu1 %v1476_v61  ;;  %v1323_v27 = vld.sshfl [vmem:[#allocation2 + $0x8] sm:$0x1 pattern:$0x76325410]  ;;  %v442_v29 = vunpack.c.l.b16 %v1322_v25  ;;  %48 = vst [vmem:[#allocation2 + $0xa] sm:$0x3] %v47_v45 }
  0x1f   :  { %v443_v30 = vunpack.c.l.b16 %v1323_v27  ;;  %v1509_v48 = vld [vmem:[%s1924_s1 + $0x1b4] ss:$8 sps:$4 sm:$0xff]   ;;  %v1492_v16 = vld [vmem:[%s1924_s1 + $0x160] ss:$8 sps:$4 sm:$0xff]   ;;  %v1507_v54 = vld [vmem:[%s1924_s1 + $0x1b0] ss:$8 sps:$4 sm:$0xff]  }
  0x20   :  { %385 = vmatpush1.bf16.msra.mxu0 %v1471_v0  ;;  %v562_v36 = vrot.slane %v442_v29, 1  ;;  %v1500_v51 = vld [vmem:[%s1924_s1 + $0x154] ss:$8 sps:$4 sm:$0xff]  }
  0x21   :  { %503 = vmatpush1.bf16.msra.mxu1 %v1474_v1  ;;  %386 = vmatprep.subr.bf16.mxu0 %v1479_v7  ;;  %v444_v32 = vrot.slane %v443_v30, 7 }
  0x22   :  { %504 = vmatprep.subr.bf16.mxu1 %v1482_v8  ;;  %v563_v47 = vsel %vm121_vm3, %v443_v30, %v562_v36 }
  0x23   :  { %v445_v39 = vsel %vm121_vm3, %v444_v32, %v442_v29  ;;  %v564_v52 = vpack.c.b16 %v563_v47, %v563_v47 }
  0x24   :  { %387 = vmatpush1.bf16.msra.mxu0 %v1477_v13  ;;  %v446_v42 = vpack.c.b16 %v445_v39, %v445_v39 }
  0x25   :  { %505 = vmatpush1.bf16.msra.mxu1 %v1480_v14  ;;  %616 = vmatprep.subr.bf16.mxu0 %v1485_v19 }
  0x26   :  { %735 = vmatprep.subr.bf16.mxu1 %v1488_v20 }
  0x27   :  { %1313 = vmatmul.mubr.msk.bf16.vlgmr.msra.gmra.mxu0 %vm164_vm4, %v328_v21 }
  0x28   :  { %617 = vmatpush1.bf16.msra.mxu0 %v1483_v22  ;;  %640 = vmatprep.mubr.bf16.mxu0 %v1587_v2 }
  0x29   :  { %618 = vmatprep.subr.bf16.mxu0 %v1491_v23  ;;  %1332 = vmatmul.mubr.msk.bf16.vlgmr.msra.gmra.mxu1 %vm164_vm4, %v446_v42 }
  0x2a   :  { %736 = vmatpush1.bf16.msra.mxu1 %v1486_v34  ;;  %759 = vmatprep.mubr.bf16.mxu1 %v1587_v2 }
  0x2b   :  { %737 = vmatprep.subr.bf16.mxu1 %v1494_v43 }
  0x2c   :  { %619 = vmatpush1.bf16.msra.mxu0 %v1489_v26 }
  0x2d   :  { %620 = vmatprep.subr.bf16.mxu0 %v1497_v28 }
  0x30   :  { %621 = vmatpush1.bf16.msra.mxu0 %v1495_v31 }
  0x31   :  { %622 = vmatprep.subr.bf16.mxu0 %v1503_v35 }
  0x34   :  { %623 = vmatpush1.bf16.msra.mxu0 %v1501_v46 }
  0x35   :  { %12 = vsyncpa [#allocation6], 0  ;;  %854 = vmatprep.subr.bf16.mxu0 %v1509_v48  ;;  %v1515_v55 = vld [vmem:[%s1924_s1 + $0x1a4] ss:$8 sps:$4 sm:$0xff]   ;;  %738 = vmatpush1.bf16.msra.mxu1 %v1492_v16  ;;  %v1498_v56 = vld [vmem:[%s1924_s1 + $0x150] ss:$8 sps:$4 sm:$0xff]  }
  0x36   :  { %v680_v57 = vrot.slane %v678_v49, 2  ;;  %v681_v58 = vrot.slane %v679_v50, 1  ;;  %739 = vmatprep.subr.bf16.mxu1 %v1500_v51  ;;  %v1506_v59 = vld [vmem:[%s1924_s1 + $0x144] ss:$8 sps:$4 sm:$0xff]   ;;  %v1513_v60 = vld [vmem:[%s1924_s1 + $0x1a0] ss:$8 sps:$4 sm:$0xff]  }
  0x37   :  { %1351 = vmatmul.mubr.msk.bf16.vlgmr.msra.gmra.mxu0 %vm164_vm4, %v564_v52  ;;  %v1380_v61 = vld.sshfl [vmem:[#allocation2 + $0xa] sm:$0x1 pattern:$0x76325410]  ;;  %v1521_v62 = vld [vmem:[%s1924_s1 + $0x194] ss:$8 sps:$4 sm:$0xff]  }
  0x38   :  { %855 = vmatpush1.bf16.msra.mxu0 %v1507_v54  ;;  %878 = vmatprep.mubr.bf16.mxu0 %v1587_v2  ;;  %v1379_v63 = vld.sshfl [vmem:[#allocation2 + $0x4] sm:$0x1 pattern:$0x76325410]  ;;  %v799_v0 = vunpack.c.l.b16 %v1380_v61  ;;  %v1504_v1 = vld [vmem:[%s1924_s1 + $0x140] ss:$8 sps:$4 sm:$0xff]   ;;  %v682_v3 = vsel %vm121_vm3, %v681_v58, %v680_v57 }
  0x39   :  { %856 = vmatprep.subr.bf16.mxu0 %v1515_v55  ;;  %740 = vmatpush1.bf16.msra.mxu1 %v1498_v56  ;;  %v1512_v4 = vld [vmem:[%s1924_s1 + $0x1f4] ss:$8 sps:$4 sm:$0xff]   ;;  %v1519_v5 = vld [vmem:[%s1924_s1 + $0x190] ss:$8 sps:$4 sm:$0xff]   ;;  %v798_v6 = vunpack.c.l.b16 %v1379_v63  ;;  %v683_v8 = vpack.c.b16 %v682_v3, %v682_v3  ;;  %v1527_v9 = vld [vmem:[%s1924_s1 + $0x184] ss:$8 sps:$4 sm:$0xff]  }
  0x3a   :  { %741 = vmatprep.subr.bf16.mxu1 %v1506_v59  ;;  %v800_v7 = vrot.slane %v799_v0, 7  ;;  %v1510_v10 = vld [vmem:[%s1924_s1 + $0x1f0] ss:$8 sps:$4 sm:$0xff]   ;;  %v1518_v11 = vld [vmem:[%s1924_s1 + $0x1e4] ss:$8 sps:$4 sm:$0xff]   ;;  %vm1141_vm8 = vcmask 1041408  }
  0x3b   :  { %v1525_v12 = vld [vmem:[%s1924_s1 + $0x180] ss:$8 sps:$4 sm:$0xff]   ;;  %v1533_v14 = vld [vmem:[%s1924_s1 + $0x234] ss:$8 sps:$4 sm:$0xff]   ;;  %v1531_v19 = vld [vmem:[%s1924_s1 + $0x230] ss:$8 sps:$4 sm:$0xff]  }
  0x3c   :  { %857 = vmatpush1.bf16.msra.mxu0 %v1513_v60  ;;  %v801_v13 = vsel %vm121_vm3, %v800_v7, %v798_v6  ;;  %v1516_v15 = vld [vmem:[%s1924_s1 + $0x1e0] ss:$8 sps:$4 sm:$0xff]   ;;  %v1524_v17 = vld [vmem:[%s1924_s1 + $0x1d4] ss:$8 sps:$4 sm:$0xff]   ;;  %v1536_v21 = vld [vmem:[%s1924_s1 + $0x224] ss:$8 sps:$4 sm:$0xff]  }
  0x3d   :  { %858 = vmatprep.subr.bf16.mxu0 %v1521_v62  ;;  %742 = vmatpush1.bf16.msra.mxu1 %v1504_v1  ;;  %v802_v18 = vpack.c.b16 %v801_v13, %v801_v13  ;;  %v1417_v20 = vld.sshfl [vmem:[#allocation2 + $0x4] sm:$0x2 pattern:$0x76325410]  ;;  %v1522_v23 = vld [vmem:[%s1924_s1 + $0x1d0] ss:$8 sps:$4 sm:$0xff]  }
  0x3e   :  { %972 = vmatprep.subr.bf16.mxu1 %v1512_v4  ;;  %v1418_v22 = vld.sshfl [vmem:[#allocation2 + $0xa] sm:$0x2 pattern:$0x76325410]  ;;  %v918_v25 = vrot.slane %v798_v6, 1  ;;  %v1034_v28 = vunpack.c.l.b16 %v1417_v20  ;;  %s1590_s14 = smov [#allocation3]  }
  0x3f   :  { %v1530_v26 = vld [vmem:[%s1924_s1 + $0x1c4] ss:$8 sps:$4 sm:$0xff]   ;;  %v1534_v27 = vld [vmem:[%s1924_s1 + $0x220] ss:$8 sps:$4 sm:$0xff]   ;;  %v1035_v29 = vunpack.c.l.b16 %v1418_v22  ;;  %v1539_v30 = vld [vmem:[%s1924_s1 + $0x214] ss:$8 sps:$4 sm:$0xff]  }
  0x40   :  { %859 = vmatpush1.bf16.msra.mxu0 %v1519_v5  ;;  %1370 = vmatmul.mubr.msk.bf16.vlgmr.msra.gmra.mxu1 %vm164_vm4, %v683_v8  ;;  %v1528_v31 = vld [vmem:[%s1924_s1 + $0x1c0] ss:$8 sps:$4 sm:$0xff]   ;;  %v919_v32 = vsel %vm121_vm3, %v799_v0, %v918_v25  ;;  %v1036_v34 = vrot.slane %v1034_v28, 2  ;;  %v1542_v37 = vld [vmem:[%s1924_s1 + $0x204] ss:$8 sps:$4 sm:$0xff]   ;;  %s1243_s15 = sshll.u32 %s1590_s14, 4  ;;  %s1244_s15 = int_to_ptr.vmem [resolvable:$true] %s1243_s15 }
  0x41   :  { %860 = vmatprep.subr.bf16.mxu0 %v1527_v9  ;;  %973 = vmatpush1.bf16.msra.mxu1 %v1510_v10  ;;  %v1037_v35 = vrot.slane %v1035_v29, 1  ;;  %v920_v36 = vpack.c.b16 %v919_v32, %v919_v32  ;;  %v1540_v38 = vld [vmem:[%s1924_s1 + $0x200] ss:$8 sps:$4 sm:$0xff]   ;;  %v1589_v25 = vmov 1966171168   ;;  %vm1909_vm9 = vcmp.lt.s32.totalorder %v54_v24, 256  ;;  %p1548_p1 = scmp.lt.s32.totalorder %s1244_s15, %s1244_s15 }
  0x42   :  { %996 = vmatprep.mubr.bf16.mxu1 %v1587_v2  ;;  %974 = vmatprep.subr.bf16.mxu1 %v1518_v11  ;;  %v1126_v13 = vld [vmem:[%s1925_s2] sm:$0x3]  ;;  %s1543_s16 = scalar_lea.vmem %s1244_s15, 32 }
  0x43   :  { %v1038_v39 = vsel %vm121_vm3, %v1037_v35, %v1036_v34  ;;  %p1544_p0 = scmp.ne.s32.totalorder %s1244_s15, %s1543_s16  ;;  %p1549_p2 = scmp.lt.s32.totalorder %s1543_s16, %s1543_s16 }
  0x44   :  { %861 = vmatpush1.bf16.msra.mxu0 %v1525_v12  ;;  %v1039_v40 = vpack.c.b16 %v1038_v39, %v1038_v39 }
  0x45   :  { %1091 = vmatprep.subr.bf16.mxu0 %v1533_v14  ;;  %975 = vmatpush1.bf16.msra.mxu1 %v1516_v15  ;;  %p1550_p3 = por %p1549_p2, %p1548_p1 }
  0x46   :  { %976 = vmatprep.subr.bf16.mxu1 %v1524_v17  ;;  %v1127_v17 = vunpack.c.l.bf16 %v1126_v13 }
  0x47   :  { %1389 = vmatmul.mubr.msk.bf16.vlgmr.msra.gmra.mxu0 %vm164_vm4, %v802_v18  ;;  %p1551_p4 = pnand %p1550_p3, %p1544_p0 }
  0x48   :  { %1092 = vmatpush1.bf16.msra.mxu0 %v1531_v19  ;;  %1115 = vmatprep.mubr.bf16.mxu0 %v1587_v2  ;;  %v1537_v2 = vld [vmem:[%s1924_s1 + $0x210] ss:$8 sps:$4 sm:$0xff]  }
  0x49   :  { %1093 = vmatprep.subr.bf16.mxu0 %v1536_v21  ;;  %977 = vmatpush1.bf16.msra.mxu1 %v1522_v23  ;;  %v1135_v23 = vrot.slane %v1127_v17, %v1715_v53 }
  0x4a   :  { %978 = vmatprep.subr.bf16.mxu1 %v1530_v26  ;;  %v1160_v26 = vunpack.c.l.s4 %v1589_v25 }
  0x4c   :  { %1094 = vmatpush1.bf16.msra.mxu0 %v1534_v27  ;;  %v1161_v34 = vunpack.c.0.s8 %v1160_v26 }
  0x4d   :  { %1095 = vmatprep.subr.bf16.mxu0 %v1539_v30  ;;  %979 = vmatpush1.bf16.msra.mxu1 %v1528_v31 }
  0x4e   :  { %v1164_v53 = vsub.s32 %v1161_v34, %v1690_v33 }
  0x50   :  { %1096 = vmatpush1.bf16.msra.mxu0 %v1537_v2  ;;  %1408 = vmatmul.mubr.msk.bf16.vlgmr.msra.gmra.mxu1 %vm164_vm4, %v920_v36  ;;  %v1136_v2 = vcombine.high %v1135_v23, %v1135_v23 }
  0x51   :  { %1097 = vmatprep.subr.bf16.mxu0 %v1542_v37 }
  0x54   :  { %1098 = vmatpush1.bf16.msra.mxu0 %v1540_v38 }
  0x57   :  { %1427 = vmatmul.mubr.msk.bf16.vlgmr.msra.gmra.mxu0 %vm164_vm4, %v1039_v40 }
  0xd7   :  { %v202_v41 = vpop.f32.mrf.mxu0 }
  0xd8   :  { %v289_v42 = vpop.f32.mrf.mxu1 }
  0xd9   :  { %v204_v43 = vpop.f32.mrf.mxu0  ;;  %v290_v63 = vadd.f32 %v289_v42, %v202_v41 }
  0xda   :  { %v291_v44 = vpop.f32.mrf.mxu1 }
  0xdb   :  { %v206_v45 = vpop.f32.mrf.mxu0  ;;  %v292_v1 = vadd.f32 %v291_v44, %v204_v43 }
  0xdc   :  { %v293_v46 = vpop.f32.mrf.mxu1 }
  0xdd   :  { %v207_v47 = vpop.f32.mrf.mxu0 }
  0xde   :  { %v294_v48 = vpop.f32.mrf.mxu1 }
  0xe7   :  { %v406_v16 = vpop.f32.mrf.mxu0 }
  0xe8   :  { %v413_v3 = vadd.f32 %v406_v16, %v290_v63 }
  0xe9   :  { %v408_v49 = vpop.f32.mrf.mxu0  ;;  %v524_v52 = vpop.f32.mrf.mxu1 }
  0xea   :  { %v414_v6 = vadd.f32 %v408_v49, %v292_v1  ;;  %v531_v8 = vadd.f32 %v524_v52, %v413_v3 }
  0xeb   :  { %v410_v50 = vpop.f32.mrf.mxu0  ;;  %v526_v54 = vpop.f32.mrf.mxu1 }
  0xec   :  { %v532_v10 = vadd.f32 %v526_v54, %v414_v6 }
  0xed   :  { %v411_v51 = vpop.f32.mrf.mxu0  ;;  %v528_v55 = vpop.f32.mrf.mxu1 }
  0xef   :  { %v529_v56 = vpop.f32.mrf.mxu1 }
  0xf7   :  { %v642_v57 = vpop.f32.mrf.mxu0 }
  0xf8   :  { %v649_v11 = vadd.f32 %v642_v57, %v531_v8 }
  0xf9   :  { %v644_v58 = vpop.f32.mrf.mxu0 }
  0xfa   :  { %v650_v14 = vadd.f32 %v644_v58, %v532_v10 }
  0xfb   :  { %v646_v59 = vpop.f32.mrf.mxu0 }
  0xfd   :  { %v647_v60 = vpop.f32.mrf.mxu0 }
 0x100   :  { %v761_v61 = vpop.f32.mrf.mxu1 }
 0x101   :  { %v768_v15 = vadd.f32 %v761_v61, %v649_v11 }
 0x102   :  { %v763_v62 = vpop.f32.mrf.mxu1 }
 0x103   :  { %v769_v19 = vadd.f32 %v763_v62, %v650_v14 }
 0x104   :  { %v765_v0 = vpop.f32.mrf.mxu1 }
 0x106   :  { %v766_v4 = vpop.f32.mrf.mxu1 }
 0x107   :  { %v880_v5 = vpop.f32.mrf.mxu0 }
 0x108   :  { %v887_v20 = vadd.f32 %v880_v5, %v768_v15 }
 0x109   :  { %v882_v7 = vpop.f32.mrf.mxu0 }
 0x10a   :  { %v888_v22 = vadd.f32 %v882_v7, %v769_v19 }
 0x10b   :  { %v884_v9 = vpop.f32.mrf.mxu0 }
 0x10d   :  { %v885_v12 = vpop.f32.mrf.mxu0 }
 0x110   :  { %v998_v18 = vpop.f32.mrf.mxu1 }
 0x111   :  { %v1005_v28 = vadd.f32 %v998_v18, %v887_v20 }
 0x112   :  { %v1000_v21 = vpop.f32.mrf.mxu1 }
 0x113   :  { %v1006_v31 = vadd.f32 %v1000_v21, %v888_v22 }
 0x114   :  { %v1002_v27 = vpop.f32.mrf.mxu1 }
 0x116   :  { %v1003_v29 = vpop.f32.mrf.mxu1 }
 0x117   :  { %v1117_v30 = vpop.f32.mrf.mxu0 }
 0x118   :  { %v1124_v32 = vadd.f32 %v1117_v30, %v1005_v28 }
 0x119   :  { %v1119_v35 = vpop.f32.mrf.mxu0 }
 0x11a   :  { %v1139_v36 = vadd.f32 %v1135_v23, %v1124_v32  ;;  %v1125_v37 = vadd.f32 %v1119_v35, %v1006_v31 }
 0x11b   :  { %v1121_v38 = vpop.f32.mrf.mxu0 }
 0x11c   :  { %v1142_v39 = vsel %vm1141_vm8, %v1139_v36, 0.0  ;;  %v1179_v40 = vmul.f32 %v1139_v36, %v1139_v36  ;;  %v1140_v41 = vadd.f32 %v1136_v2, %v1125_v37 }
 0x11d   :  { %v1143_v42 = vrot.slane %v1142_v39, 4  ;;  %v1122_v43 = vpop.f32.mrf.mxu0 }
 0x11e   :  { %v1181_v44 = vsel %vm1141_vm8, %v1179_v40, 0.0  ;;  %v1149_v45 = vsel %vm1141_vm8, %v1140_v41, 0.0  ;;  %v1180_v46 = vmul.f32 %v1140_v41, %v1140_v41  ;;  %v1428_v47 = vpack.c.bf16 %v1140_v41, %v1139_v36 }
 0x11f   :  { %v1144_v48 = vadd.f32 %v1143_v42, %v1142_v39  ;;  %v1182_v16 = vrot.slane %v1181_v44, 4  ;;  %v1150_v49 = vrot.slane %v1149_v45, 4 }
 0x120   :  { %v1188_v50 = vsel %vm1141_vm8, %v1180_v46, 0.0  ;;  %v1225_v51 = vrot.slane %v1428_v47, %v1164_v53 }
 0x121   :  { %v1145_v52 = vrot.slane %v1144_v48, 2  ;;  %v1183_v54 = vadd.f32 %v1182_v16, %v1181_v44  ;;  %v1151_v55 = vadd.f32 %v1150_v49, %v1149_v45  ;;  %v1189_v56 = vrot.slane %v1188_v50, 4 }
 0x122   :  { %1429 = vst.sshfl [vmem:[%s1926_s3] sm:$0x5 pattern:$0x73625140] %v1225_v51  ;;  %s1591_s3 = smov [#allocation5]  }
 0x123   :  { %v1146_v33 = vadd.f32 %v1145_v52, %v1144_v48  ;;  %v1184_v57 = vrot.slane %v1183_v54, 2  ;;  %v1152_v58 = vrot.slane %v1151_v55, 2  ;;  %v1190_v59 = vadd.f32 %v1189_v56, %v1188_v50  ;;  %s1253_s0 = sshll.u32 %s1591_s3, 4  ;;  %s1254_s0 = int_to_ptr.vmem [resolvable:$true] %s1253_s0 }
 0x125   :  { %v1153_v60 = vadd.f32 %v1152_v58, %v1151_v55  ;;  %v1191_v61 = vrot.slane %v1190_v59, 2  ;;  %v1147_v62 = vrot.slane %v1146_v33, 1  ;;  %v1185_v63 = vadd.f32 %v1184_v57, %v1183_v54 }
 0x127   :  { %v1154_v0 = vrot.slane %v1153_v60, 1  ;;  %v1186_v1 = vrot.slane %v1185_v63, 1  ;;  %v1192_v3 = vadd.f32 %v1191_v61, %v1190_v59  ;;  %v1148_v4 = vadd.f32 %v1147_v62, %v1146_v33 }
 0x129   :  { %v1155_v5 = vadd.f32 %v1154_v0, %v1153_v60  ;;  %v1193_v6 = vrot.slane %v1192_v3, 1  ;;  %v1187_v8 = vadd.f32 %v1186_v1, %v1185_v63 }
 0x12b   :  { %v1158_v7 = vcombine.low %v1148_v4, %v1155_v5  ;;  %v1194_v9 = vadd.f32 %v1193_v6, %v1192_v3 }
 0x12d   :  { %v1165_v10 = vrot.slane %v1158_v7, %v1164_v53  ;;  %v1197_v11 = vcombine.low %v1187_v8, %v1194_v9 }
 0x12f   :  { %v1172_v13 = vrot.slane %v1165_v10, %v1164_v53  ;;  %v1204_v14 = vrot.slane %v1197_v11, %v1164_v53 }
 0x131   :  { %1178 = vst.msk [vmem:[#allocation3] sm:$0x3] %vm1909_vm9, %v1172_v13  ;;  %v1211_v15 = vrot.slane %v1204_v14, %v1164_v53 }
 0x132   :  { %1554 = shalt.err (!%p1551_p4)
}
 0x133   :  { %1246 = dma.vmem_to_hbm [thread:$0]  %s1244_s15, 32, %s1927_s4, [#allocation4]   ;;  %1213 = vst.msk [vmem:[#allocation5] sm:$0x3] %vm1909_vm9, %v1211_v15 }
 0x134   :  { %s1563_s19 = scalar_lea.vmem %s1254_s0, 32  ;;  %p1568_p6 = scmp.lt.s32.totalorder %s1254_s0, %s1254_s0 }
 0x135   :  { %p1564_p5 = scmp.ne.s32.totalorder %s1254_s0, %s1563_s19  ;;  %p1569_p7 = scmp.lt.s32.totalorder %s1563_s19, %s1563_s19 }
 0x137   :  { %p1570_p8 = por %p1569_p7, %p1568_p6 }
 0x139   :  { %p1571_p9 = pnand %p1570_p8, %p1564_p5 }
 0x13b   :  { %1574 = shalt.err (!%p1571_p9)
}
 0x13c   :  { %1256 = dma.vmem_to_hbm [thread:$0]  %s1254_s0, 32, %s1928_s5, [#allocation6]  }
 0x13d   :  { %1583 = dma.done.wait [#allocation4], 32  }
 0x13e   :  { %1584 = vsyncadd [#allocation4], 4294967264 }
 0x13f   :  { %1585 = dma.done.wait [#allocation6], 32  }
 0x140   :  { %1586 = vsyncadd [#allocation6], 4294967264 }
 0x141   :  { %1265 = vsyncpa [#allocation4], 1 }
 0x142   :  { %1266 = vsyncpa [#allocation6], 1 }

</bundles_post_ra>
